<compile_context>
chip_gen: v7x
topology: tpu7x:2x2x1
jax: 0.10.0
libtpu: 0.0.40
codegen_flags: <defaults>
</compile_context>

<pallas_src>
import functools

import jax
import jax.numpy as jnp
from jax.experimental import pallas as pl
from jax.experimental.pallas import tpu as pltpu


def _round_up(v, m):
    return (v + m - 1) // m * m


# ---------------------------------------------------------------------------
# Kernel 1: fused 3x3 conv (single big-K MXU matmul) + BN batch statistics.
# ---------------------------------------------------------------------------
def _conv3x3_stats_kernel(x_ref, w_ref, y_ref, stat_ref, *, W, Wp, L, Lr):
    # x_ref:    (1, Qp, Cin_p)   bf16  zero-padded image, flattened row-major
    # w_ref:    (9*Cin_p, Cp)    bf16  tap-major weights, Cout zero-padded to Cp
    # y_ref:    (1, Lr, Cp)      bf16  conv output in padded-flat coordinates
    # stat_ref: (1, 2, Cp)       f32   row0: sum, row1: sum-of-squares (valid rows)
    taps = []
    for dy in range(3):
        for dx in range(3):
            s = dy * Wp + dx            # Wp % 8 == 0 -> dy shifts are sublane-aligned
            taps.append(x_ref[0, s:s + Lr, :])
    patches = jnp.concatenate(taps, axis=-1)             # (Lr, 9*Cin_p), VMEM only
    acc = jnp.dot(patches, w_ref[...], preferred_element_type=jnp.float32)
    y_ref[0] = acc.astype(y_ref.dtype)                    # lane-dense bf16 store

    # BatchNorm statistics over valid output rows only (mask the Wp-stride
    # garbage columns and the sublane-alignment tail).
    r = jax.lax.broadcasted_iota(jnp.int32, (Lr, 1), 0)
    valid = ((r % Wp) < W) & (r < L)
    accm = jnp.where(valid, acc, 0.0)
    stat_ref[0, 0:1, :] = jnp.sum(accm, axis=0, keepdims=True)
    stat_ref[0, 1:2, :] = jnp.sum(accm * accm, axis=0, keepdims=True)


# ---------------------------------------------------------------------------
# Kernel 2: BatchNorm (folded scale/shift) + ELU, in padded-flat layout.
# Invalid positions are zeroed so the output doubles as the next conv's padding.
# ---------------------------------------------------------------------------
def _bn_elu_kernel(y_ref, sc_ref, sh_ref, o_ref, *, W, Wp, L):
    Lr = y_ref.shape[1]
    xn = y_ref[0].astype(jnp.float32) * sc_ref[...] + sh_ref[...]
    # ELU(alpha=1); exp argument clamped so the discarded branch never overflows.
    act = jnp.where(xn > 0, xn, jnp.exp(jnp.minimum(xn, 0.0)) - 1.0)
    r = jax.lax.broadcasted_iota(jnp.int32, (Lr, 1), 0)
    valid = ((r % Wp) < W) & (r < L)
    o_ref[0] = jnp.where(valid, act, 0.0).astype(o_ref.dtype)


# ---------------------------------------------------------------------------
# One (conv3x3 SAME -> train-mode BN -> ELU) stage on a padded-flat image.
# ---------------------------------------------------------------------------
def _conv_bn_elu_flat(xflat, w, gamma, beta, *, N, H, W, Wp, eps):
    """xflat: (N, Qp, Cin_p) bf16, zero outside the valid image.
    Returns (N, Lr, Cp) bf16 activation in padded-flat layout with every invalid
    position (garbage columns, tail rows, padded channels) set to zero."""
    Cin_p = xflat.shape[-1]
    Qp = xflat.shape[1]
    Cin, Cout = w.shape[2], w.shape[3]
    Cp = _round_up(Cout, 128)
    L = (H - 1) * Wp + W
    Lr = _round_up(L, 8)
    assert Qp >= Lr + 2 * Wp + 2

    # (3,3,Cin,Cout) -> (9*Cin_p, Cp): tap-major rows, zero padded, bf16.
    w_p = jnp.zeros((3, 3, Cin_p, Cp), jnp.float32).at[:, :, :Cin, :Cout].set(w)
    wflat = w_p.reshape(9 * Cin_p, Cp).astype(jnp.bfloat16)

    y, stats = pl.pallas_call(
        functools.partial(_conv3x3_stats_kernel, W=W, Wp=Wp, L=L, Lr=Lr),
        out_shape=(jax.ShapeDtypeStruct((N, Lr, Cp), jnp.bfloat16),
                   jax.ShapeDtypeStruct((N, 2, Cp), jnp.float32)),
        grid=(N,),
        in_specs=[pl.BlockSpec((1, Qp, Cin_p), lambda n: (n, 0, 0)),
                  pl.BlockSpec((9 * Cin_p, Cp), lambda n: (0, 0))],
        out_specs=(pl.BlockSpec((1, Lr, Cp), lambda n: (n, 0, 0)),
                   pl.BlockSpec((1, 2, Cp), lambda n: (n, 0, 0))),
        compiler_params=pltpu.CompilerParams(
            dimension_semantics=("parallel",)),
    )(xflat, wflat)

    # Tiny per-channel reduction + folded scale/shift in XLA.
    # NOTE: biased variance via E[x^2]-mean^2 in f32 (clamped); adequate here.
    M = N * H * W
    mean = jnp.sum(stats[:, 0, :], axis=0) / M
    var = jnp.maximum(jnp.sum(stats[:, 1, :], axis=0) / M - mean * mean, 0.0)
    g = jnp.zeros((Cp,), jnp.float32).at[:Cout].set(gamma)
    b = jnp.zeros((Cp,), jnp.float32).at[:Cout].set(beta)
    scale = g * jax.lax.rsqrt(var + eps)
    shift = b - mean * scale

    act = pl.pallas_call(
        functools.partial(_bn_elu_kernel, W=W, Wp=Wp, L=L),
        out_shape=jax.ShapeDtypeStruct((N, Lr, Cp), jnp.bfloat16),
        grid=(N,),
        in_specs=[pl.BlockSpec((1, Lr, Cp), lambda n: (n, 0, 0)),
                  pl.BlockSpec((1, Cp), lambda n: (0, 0)),
                  pl.BlockSpec((1, Cp), lambda n: (0, 0))],
        out_specs=pl.BlockSpec((1, Lr, Cp), lambda n: (n, 0, 0)),
        compiler_params=pltpu.CompilerParams(
            dimension_semantics=("parallel",)),
    )(y, scale.reshape(1, Cp), shift.reshape(1, Cp))
    return act


# ---------------------------------------------------------------------------
# DoubleConv forward: NCHW in -> NCHW out (matches the PyTorch module).
# ---------------------------------------------------------------------------
def double_conv(x_nchw, params, eps=1e-5):
    x = jnp.transpose(x_nchw, (0, 2, 3, 1)).astype(jnp.float32)   # NHWC
    N, H, W, Cin = x.shape
    Cout = params["w2"].shape[-1]
    Wp = _round_up(W + 2, 8)                 # sublane-aligned padded width
    L = (H - 1) * Wp + W
    Lr = _round_up(L, 8)
    Qp = _round_up(max((H + 2) * Wp, Lr + 2 * Wp + 2), 8)
    Cin_p = _round_up(max(Cin, 8), 8)
    Cp = _round_up(Cout, 128)

    # conv1 input: zero-padded NHWC image flattened to (Hp*Wp, Cin_p), bf16.
    xp = jnp.pad(x.astype(jnp.bfloat16),
                 ((0, 0), (1, 1), (1, Wp - W - 1), (0, Cin_p - Cin)))
    xflat = xp.reshape(N, (H + 2) * Wp, Cin_p)
    xflat = jnp.pad(xflat, ((0, 0), (0, Qp - (H + 2) * Wp), (0, 0)))

    a1 = _conv_bn_elu_flat(xflat, params["w1"], params["g1"], params["be1"],
                           N=N, H=H, W=W, Wp=Wp, eps=eps)

    # conv2 input: a1 already has zeros at every invalid position, so SAME
    # padding in flat coordinates is a single zero-row pad (shift by Wp+1 rows).
    x2 = jnp.pad(a1, ((0, 0), (Wp + 1, Qp - (Wp + 1) - Lr), (0, 0)))
    a2 = _conv_bn_elu_flat(x2, params["w2"], params["g2"], params["be2"],
                           N=N, H=H, W=W, Wp=Wp, eps=eps)

    # One NHWC extraction per DoubleConv, on bf16 data.
    rows = H * Wp
    if rows > Lr:
        a2 = jnp.pad(a2, ((0, 0), (0, rows - Lr), (0, 0)))
    else:
        a2 = a2[:, :rows, :]
    out = a2.reshape(N, H, Wp, Cp)[:, :, :W, :Cout]
    return jnp.transpose(out, (0, 3, 1, 2)).astype(jnp.float32)   # NCHW


# ----------------------------- parameters / reference -----------------------
def init_double_conv_params(key, in_ch, out_ch):
    # Conv biases are intentionally omitted: training-mode BatchNorm subtracts
    # the per-channel batch mean, which cancels a constant bias exactly, so the
    # forward output is identical.
    # TODO(synk): eval-mode BN (running stats) would need the biases back.
    k1, k2, k3, k4 = jax.random.split(key, 4)

    def conv_w(k, ci, co):
        fan_in = 9 * ci
        return (jax.random.normal(k, (3, 3, ci, co), jnp.float32)
                / jnp.sqrt(jnp.float32(fan_in)))

    return dict(
        w1=conv_w(k1, in_ch, out_ch),
        g1=1.0 + 0.1 * jax.random.normal(k3, (out_ch,), jnp.float32),
        be1=0.1 * jax.random.normal(k4, (out_ch,), jnp.float32),
        w2=conv_w(k2, out_ch, out_ch),
        g2=jnp.ones((out_ch,), jnp.float32),
        be2=jnp.zeros((out_ch,), jnp.float32),
    )


def reference_double_conv(x_nchw, params, eps=1e-5):
    """Pure-XLA f32 reference (training-mode BN, biased variance)."""
    def stage(x, w, g, b):
        y = jax.lax.conv_general_dilated(
            x, w, window_strides=(1, 1), padding="SAME",
            dimension_numbers=("NCHW", "HWIO", "NCHW"))
        mean = jnp.mean(y, axis=(0, 2, 3), keepdims=True)
        var = jnp.var(y, axis=(0, 2, 3), keepdims=True)
        y = (y - mean) * jax.lax.rsqrt(var + eps)
        y = y * g.reshape(1, -1, 1, 1) + b.reshape(1, -1, 1, 1)
        return jnp.where(y > 0, y, jnp.exp(y) - 1.0)

    x = stage(x_nchw.astype(jnp.float32), params["w1"], params["g1"], params["be1"])
    return stage(x, params["w2"], params["g2"], params["be2"])


# ------------------------------------ main -----------------------------------
if __name__ == "__main__":
    key = jax.random.PRNGKey(0)
    k_param, k_input = jax.random.split(key)
    in_ch, out_ch = 4, 8
    params = init_double_conv_params(k_param, in_ch, out_ch)
    x = jax.random.normal(k_input, (2, in_ch, 16, 16), jnp.float32)

    fwd = jax.jit(double_conv)
    out = fwd(x, params)
    jax.block_until_ready(out)

    assert out.shape == (2, out_ch, 16, 16)
    assert bool(jnp.all(jnp.isfinite(out)))

    # bf16 matmul operands / bf16 activation stores are by design; compare
    # against the f32 reference with a loose-but-meaningful tolerance.
    ref = reference_double_conv(x, params)
    max_err = float(jnp.max(jnp.abs(out - ref)))
    assert max_err < 0.25, f"max abs error vs f32 reference: {max_err}"
    print("KERNEL_OK")
</pallas_src>

<mosaic_0001>
module attributes {stable_mosaic.version = 11 : i64} {
  func.func @_conv3x3_stats_kernel(%arg0: i32, %arg1: memref<1x432x8xbf16, #tpu.memory_space<vmem>>, %arg2: memref<72x128xbf16, #tpu.memory_space<vmem>>, %arg3: memref<1x376x128xbf16, #tpu.memory_space<vmem>>, %arg4: memref<1x2x128xf32, #tpu.memory_space<vmem>>) attributes {dimension_semantics = [#tpu.dimension_semantics<parallel>], iteration_bounds = array<i64: 2>, scalar_prefetch = 0 : i64, scratch_operands = 0 : i64, tpu.core_type = #tpu.core_type<tc>, window_params = [{transform_indices = @transform_0, window_bounds = array<i64: 1, 432, 8>}, {pipeline_mode = #tpu.pipeline_mode<synchronous>, transform_indices = @transform_1, window_bounds = array<i64: 72, 128>}, {transform_indices = @transform_2, window_bounds = array<i64: 1, 376, 128>}, {transform_indices = @transform_3, window_bounds = array<i64: 1, 2, 128>}]} {
    %c0 = arith.constant 0 : index
    %c0_0 = arith.constant 0 : index
    %c0_1 = arith.constant 0 : index
    %0 = vector.load %arg1[%c0, %c0_0, %c0_1] : memref<1x432x8xbf16, #tpu.memory_space<vmem>>, vector<1x376x8xbf16>
    %1 = vector.shape_cast %0 : vector<1x376x8xbf16> to vector<376x8xbf16>
    %c0_2 = arith.constant 0 : index
    %c1 = arith.constant 1 : index
    %c0_3 = arith.constant 0 : index
    %2 = vector.load %arg1[%c0_2, %c1, %c0_3] : memref<1x432x8xbf16, #tpu.memory_space<vmem>>, vector<1x376x8xbf16>
    %3 = vector.shape_cast %2 : vector<1x376x8xbf16> to vector<376x8xbf16>
    %c0_4 = arith.constant 0 : index
    %c2 = arith.constant 2 : index
    %c0_5 = arith.constant 0 : index
    %4 = vector.load %arg1[%c0_4, %c2, %c0_5] : memref<1x432x8xbf16, #tpu.memory_space<vmem>>, vector<1x376x8xbf16>
    %5 = vector.shape_cast %4 : vector<1x376x8xbf16> to vector<376x8xbf16>
    %c0_6 = arith.constant 0 : index
    %c24 = arith.constant 24 : index
    %c0_7 = arith.constant 0 : index
    %6 = vector.load %arg1[%c0_6, %c24, %c0_7] : memref<1x432x8xbf16, #tpu.memory_space<vmem>>, vector<1x376x8xbf16>
    %7 = vector.shape_cast %6 : vector<1x376x8xbf16> to vector<376x8xbf16>
    %c0_8 = arith.constant 0 : index
    %c25 = arith.constant 25 : index
    %c0_9 = arith.constant 0 : index
    %8 = vector.load %arg1[%c0_8, %c25, %c0_9] : memref<1x432x8xbf16, #tpu.memory_space<vmem>>, vector<1x376x8xbf16>
    %9 = vector.shape_cast %8 : vector<1x376x8xbf16> to vector<376x8xbf16>
    %c0_10 = arith.constant 0 : index
    %c26 = arith.constant 26 : index
    %c0_11 = arith.constant 0 : index
    %10 = vector.load %arg1[%c0_10, %c26, %c0_11] : memref<1x432x8xbf16, #tpu.memory_space<vmem>>, vector<1x376x8xbf16>
    %11 = vector.shape_cast %10 : vector<1x376x8xbf16> to vector<376x8xbf16>
    %c0_12 = arith.constant 0 : index
    %c48 = arith.constant 48 : index
    %c0_13 = arith.constant 0 : index
    %12 = vector.load %arg1[%c0_12, %c48, %c0_13] : memref<1x432x8xbf16, #tpu.memory_space<vmem>>, vector<1x376x8xbf16>
    %13 = vector.shape_cast %12 : vector<1x376x8xbf16> to vector<376x8xbf16>
    %c0_14 = arith.constant 0 : index
    %c49 = arith.constant 49 : index
    %c0_15 = arith.constant 0 : index
    %14 = vector.load %arg1[%c0_14, %c49, %c0_15] : memref<1x432x8xbf16, #tpu.memory_space<vmem>>, vector<1x376x8xbf16>
    %15 = vector.shape_cast %14 : vector<1x376x8xbf16> to vector<376x8xbf16>
    %c0_16 = arith.constant 0 : index
    %c50 = arith.constant 50 : index
    %c0_17 = arith.constant 0 : index
    %16 = vector.load %arg1[%c0_16, %c50, %c0_17] : memref<1x432x8xbf16, #tpu.memory_space<vmem>>, vector<1x376x8xbf16>
    %17 = vector.shape_cast %16 : vector<1x376x8xbf16> to vector<376x8xbf16>
    %18 = tpu.concatenate %1, %3, %5, %7, %9, %11, %13, %15, %17 in 1 : vector<376x8xbf16>, vector<376x8xbf16>, vector<376x8xbf16>, vector<376x8xbf16>, vector<376x8xbf16>, vector<376x8xbf16>, vector<376x8xbf16>, vector<376x8xbf16>, vector<376x8xbf16> -> vector<376x72xbf16>
    %c0_18 = arith.constant 0 : index
    %c0_19 = arith.constant 0 : index
    %19 = vector.load %arg2[%c0_18, %c0_19] : memref<72x128xbf16, #tpu.memory_space<vmem>>, vector<72x128xbf16>
    %cst = arith.constant dense<0.000000e+00> : vector<376x128xf32>
    %20 = tpu.matmul %18, %19, %cst {dimension_numbers = #tpu.dot_dimension_numbers<[1], [0], [0], [1], [0, 0, 1, 1], [], []>} : vector<376x72xbf16>, vector<72x128xbf16>, vector<376x128xf32> -> vector<376x128xf32>
    %21 = arith.truncf %20 : vector<376x128xf32> to vector<376x128xbf16>
    %c0_20 = arith.constant 0 : index
    %c0_21 = arith.constant 0 : index
    %c0_22 = arith.constant 0 : index
    %22 = vector.load %arg3[%c0_20, %c0_21, %c0_22] : memref<1x376x128xbf16, #tpu.memory_space<vmem>>, vector<1x376x128xbf16>
    %23 = vector.shape_cast %22 : vector<1x376x128xbf16> to vector<376x128xbf16>
    %24 = vector.shape_cast %21 : vector<376x128xbf16> to vector<1x376x128xbf16>
    tpu.vector_store %arg3[%c0_20, %c0_21, %c0_22], %24 {strides = array<i32>} : memref<1x376x128xbf16, #tpu.memory_space<vmem>>, vector<1x376x128xbf16>,
    %25 = tpu.iota {dimensions = array<i32: 0>} : vector<376x1xi32>
    %c24_i32 = arith.constant 24 : i32
    %c0_i32 = arith.constant 0 : i32
    %26 = arith.cmpi eq, %c24_i32, %c0_i32 : i32
    %c1_i32 = arith.constant 1 : i32
    %27 = arith.select %26, %c1_i32, %c24_i32 : i32
    %28 = vector.broadcast %27 : i32 to vector<376x1xi32>
    %29 = arith.remsi %25, %28 : vector<376x1xi32>
    %c0_i32_23 = arith.constant 0 : i32
    %30 = vector.broadcast %c0_i32_23 : i32 to vector<376x1xi32>
    %31 = arith.cmpi ne, %29, %30 : vector<376x1xi32>
    %c0_i32_24 = arith.constant 0 : i32
    %32 = vector.broadcast %c0_i32_24 : i32 to vector<376x1xi32>
    %33 = arith.cmpi slt, %29, %32 : vector<376x1xi32>
    %c0_i32_25 = arith.constant 0 : i32
    %34 = arith.cmpi slt, %27, %c0_i32_25 : i32
    %35 = vector.broadcast %34 : i1 to vector<376x1xi1>
    %36 = vector.broadcast %35 : vector<376x1xi1> to vector<376x1xi1>
    %37 = arith.xori %33, %36 : vector<376x1xi1>
    %38 = arith.andi %37, %31 : vector<376x1xi1>
    %39 = vector.broadcast %27 : i32 to vector<376x1xi32>
    %40 = arith.addi %29, %39 : vector<376x1xi32>
    %41 = arith.select %38, %40, %29 : vector<376x1xi1>, vector<376x1xi32>
    %c16_i32 = arith.constant 16 : i32
    %42 = vector.broadcast %c16_i32 : i32 to vector<376x1xi32>
    %43 = arith.cmpi slt, %41, %42 : vector<376x1xi32>
    %c376_i32 = arith.constant 376 : i32
    %44 = vector.broadcast %c376_i32 : i32 to vector<376x1xi32>
    %45 = arith.cmpi slt, %25, %44 : vector<376x1xi32>
    %46 = arith.andi %43, %45 : vector<376x1xi1>
    %cst_26 = arith.constant 0.000000e+00 : f32
    %47 = vector.shape_cast %46 : vector<376x1xi1> to vector<376x1xi1>
    %48 = vector.broadcast %47 : vector<376x1xi1> to vector<376x128xi1>
    %49 = vector.broadcast %cst_26 : f32 to vector<376x128xf32>
    %50 = arith.select %48, %20, %49 : vector<376x128xi1>, vector<376x128xf32>
    %cst_27 = arith.constant dense<0.000000e+00> : vector<128xf32>
    %51 = vector.multi_reduction <add>, %50, %cst_27 [0] : vector<376x128xf32> to vector<128xf32>
    %52 = vector.shape_cast %51 : vector<128xf32> to vector<1x128xf32>
    %c0_28 = arith.constant 0 : index
    %c0_29 = arith.constant 0 : index
    %c0_30 = arith.constant 0 : index
    %53 = vector.load %arg4[%c0_28, %c0_29, %c0_30] : memref<1x2x128xf32, #tpu.memory_space<vmem>>, vector<1x1x128xf32>
    %54 = vector.shape_cast %53 : vector<1x1x128xf32> to vector<1x128xf32>
    %55 = vector.shape_cast %52 : vector<1x128xf32> to vector<1x1x128xf32>
    tpu.vector_store %arg4[%c0_28, %c0_29, %c0_30], %55 {strides = array<i32>} : memref<1x2x128xf32, #tpu.memory_space<vmem>>, vector<1x1x128xf32>,
    %56 = arith.mulf %50, %50 : vector<376x128xf32>
    %cst_31 = arith.constant dense<0.000000e+00> : vector<128xf32>
    %57 = vector.multi_reduction <add>, %56, %cst_31 [0] : vector<376x128xf32> to vector<128xf32>
    %58 = vector.shape_cast %57 : vector<128xf32> to vector<1x128xf32>
    %c0_32 = arith.constant 0 : index
    %c1_33 = arith.constant 1 : index
    %c0_34 = arith.constant 0 : index
    %59 = vector.load %arg4[%c0_32, %c1_33, %c0_34] : memref<1x2x128xf32, #tpu.memory_space<vmem>>, vector<1x1x128xf32>
    %60 = vector.shape_cast %59 : vector<1x1x128xf32> to vector<1x128xf32>
    %61 = vector.shape_cast %58 : vector<1x128xf32> to vector<1x1x128xf32>
    tpu.vector_store %arg4[%c0_32, %c1_33, %c0_34], %61 {strides = array<i32>} : memref<1x2x128xf32, #tpu.memory_space<vmem>>, vector<1x1x128xf32>,
    return
  }
  func.func @transform_0(%arg0: i32) -> (i32, i32, i32) {
    %c0_i32 = arith.constant 0 : i32
    %c0_i32_0 = arith.constant 0 : i32
    %c0_i32_1 = arith.constant 0 : i32
    return %arg0, %c0_i32, %c0_i32_0 : i32, i32, i32
  }
  func.func @transform_1(%arg0: i32) -> (i32, i32) {
    %c0_i32 = arith.constant 0 : i32
    %c0_i32_0 = arith.constant 0 : i32
    %c0_i32_1 = arith.constant 0 : i32
    return %c0_i32, %c0_i32_0 : i32, i32
  }
  func.func @transform_2(%arg0: i32) -> (i32, i32, i32) {
    %c0_i32 = arith.constant 0 : i32
    %c0_i32_0 = arith.constant 0 : i32
    %c0_i32_1 = arith.constant 0 : i32
    return %arg0, %c0_i32, %c0_i32_0 : i32, i32, i32
  }
  func.func @transform_3(%arg0: i32) -> (i32, i32, i32) {
    %c0_i32 = arith.constant 0 : i32
    %c0_i32_0 = arith.constant 0 : i32
    %c0_i32_1 = arith.constant 0 : i32
    return %arg0, %c0_i32, %c0_i32_0 : i32, i32, i32
  }
}

module attributes {stable_mosaic.version = 11 : i64} {
  func.func @_bn_elu_kernel(%arg0: i32, %arg1: memref<1x376x128xbf16, #tpu.memory_space<vmem>>, %arg2: memref<1x128xf32, #tpu.memory_space<vmem>>, %arg3: memref<1x128xf32, #tpu.memory_space<vmem>>, %arg4: memref<1x376x128xbf16, #tpu.memory_space<vmem>>) attributes {dimension_semantics = [#tpu.dimension_semantics<parallel>], iteration_bounds = array<i64: 2>, scalar_prefetch = 0 : i64, scratch_operands = 0 : i64, tpu.core_type = #tpu.core_type<tc>, window_params = [{transform_indices = @transform_0, window_bounds = array<i64: 1, 376, 128>}, {pipeline_mode = #tpu.pipeline_mode<synchronous>, transform_indices = @transform_1, window_bounds = array<i64: 1, 128>}, {pipeline_mode = #tpu.pipeline_mode<synchronous>, transform_indices = @transform_2, window_bounds = array<i64: 1, 128>}, {transform_indices = @transform_3, window_bounds = array<i64: 1, 376, 128>}]} {
    %c0 = arith.constant 0 : index
    %c0_0 = arith.constant 0 : index
    %c0_1 = arith.constant 0 : index
    %0 = vector.load %arg1[%c0, %c0_0, %c0_1] : memref<1x376x128xbf16, #tpu.memory_space<vmem>>, vector<1x376x128xbf16>
    %1 = vector.shape_cast %0 : vector<1x376x128xbf16> to vector<376x128xbf16>
    %2 = arith.extf %1 : vector<376x128xbf16> to vector<376x128xf32>
    %c0_2 = arith.constant 0 : index
    %c0_3 = arith.constant 0 : index
    %3 = vector.load %arg2[%c0_2, %c0_3] : memref<1x128xf32, #tpu.memory_space<vmem>>, vector<1x128xf32>
    %4 = vector.broadcast %3 : vector<1x128xf32> to vector<376x128xf32>
    %5 = arith.mulf %2, %4 : vector<376x128xf32>
    %c0_4 = arith.constant 0 : index
    %c0_5 = arith.constant 0 : index
    %6 = vector.load %arg3[%c0_4, %c0_5] : memref<1x128xf32, #tpu.memory_space<vmem>>, vector<1x128xf32>
    %7 = vector.broadcast %6 : vector<1x128xf32> to vector<376x128xf32>
    %8 = arith.addf %5, %7 : vector<376x128xf32>
    %cst = arith.constant 0.000000e+00 : f32
    %9 = vector.broadcast %cst : f32 to vector<376x128xf32>
    %10 = arith.cmpf ogt, %8, %9 : vector<376x128xf32>
    %cst_6 = arith.constant 0.000000e+00 : f32
    %11 = vector.broadcast %cst_6 : f32 to vector<376x128xf32>
    %12 = arith.minimumf %8, %11 : vector<376x128xf32>
    %13 = math.exp %12 : vector<376x128xf32>
    %cst_7 = arith.constant 1.000000e+00 : f32
    %14 = vector.broadcast %cst_7 : f32 to vector<376x128xf32>
    %15 = arith.subf %13, %14 : vector<376x128xf32>
    %16 = arith.select %10, %8, %15 : vector<376x128xi1>, vector<376x128xf32>
    %17 = tpu.iota {dimensions = array<i32: 0>} : vector<376x1xi32>
    %c24_i32 = arith.constant 24 : i32
    %c0_i32 = arith.constant 0 : i32
    %18 = arith.cmpi eq, %c24_i32, %c0_i32 : i32
    %c1_i32 = arith.constant 1 : i32
    %19 = arith.select %18, %c1_i32, %c24_i32 : i32
    %20 = vector.broadcast %19 : i32 to vector<376x1xi32>
    %21 = arith.remsi %17, %20 : vector<376x1xi32>
    %c0_i32_8 = arith.constant 0 : i32
    %22 = vector.broadcast %c0_i32_8 : i32 to vector<376x1xi32>
    %23 = arith.cmpi ne, %21, %22 : vector<376x1xi32>
    %c0_i32_9 = arith.constant 0 : i32
    %24 = vector.broadcast %c0_i32_9 : i32 to vector<376x1xi32>
    %25 = arith.cmpi slt, %21, %24 : vector<376x1xi32>
    %c0_i32_10 = arith.constant 0 : i32
    %26 = arith.cmpi slt, %19, %c0_i32_10 : i32
    %27 = vector.broadcast %26 : i1 to vector<376x1xi1>
    %28 = vector.broadcast %27 : vector<376x1xi1> to vector<376x1xi1>
    %29 = arith.xori %25, %28 : vector<376x1xi1>
    %30 = arith.andi %29, %23 : vector<376x1xi1>
    %31 = vector.broadcast %19 : i32 to vector<376x1xi32>
    %32 = arith.addi %21, %31 : vector<376x1xi32>
    %33 = arith.select %30, %32, %21 : vector<376x1xi1>, vector<376x1xi32>
    %c16_i32 = arith.constant 16 : i32
    %34 = vector.broadcast %c16_i32 : i32 to vector<376x1xi32>
    %35 = arith.cmpi slt, %33, %34 : vector<376x1xi32>
    %c376_i32 = arith.constant 376 : i32
    %36 = vector.broadcast %c376_i32 : i32 to vector<376x1xi32>
    %37 = arith.cmpi slt, %17, %36 : vector<376x1xi32>
    %38 = arith.andi %35, %37 : vector<376x1xi1>
    %cst_11 = arith.constant 0.000000e+00 : f32
    %39 = vector.shape_cast %38 : vector<376x1xi1> to vector<376x1xi1>
    %40 = vector.broadcast %39 : vector<376x1xi1> to vector<376x128xi1>
    %41 = vector.broadcast %cst_11 : f32 to vector<376x128xf32>
    %42 = arith.select %40, %16, %41 : vector<376x128xi1>, vector<376x128xf32>
    %43 = arith.truncf %42 : vector<376x128xf32> to vector<376x128xbf16>
    %c0_12 = arith.constant 0 : index
    %c0_13 = arith.constant 0 : index
    %c0_14 = arith.constant 0 : index
    %44 = vector.load %arg4[%c0_12, %c0_13, %c0_14] : memref<1x376x128xbf16, #tpu.memory_space<vmem>>, vector<1x376x128xbf16>
    %45 = vector.shape_cast %44 : vector<1x376x128xbf16> to vector<376x128xbf16>
    %46 = vector.shape_cast %43 : vector<376x128xbf16> to vector<1x376x128xbf16>
    tpu.vector_store %arg4[%c0_12, %c0_13, %c0_14], %46 {strides = array<i32>} : memref<1x376x128xbf16, #tpu.memory_space<vmem>>, vector<1x376x128xbf16>,
    return
  }
  func.func @transform_0(%arg0: i32) -> (i32, i32, i32) {
    %c0_i32 = arith.constant 0 : i32
    %c0_i32_0 = arith.constant 0 : i32
    %c0_i32_1 = arith.constant 0 : i32
    return %arg0, %c0_i32, %c0_i32_0 : i32, i32, i32
  }
  func.func @transform_1(%arg0: i32) -> (i32, i32) {
    %c0_i32 = arith.constant 0 : i32
    %c0_i32_0 = arith.constant 0 : i32
    %c0_i32_1 = arith.constant 0 : i32
    return %c0_i32, %c0_i32_0 : i32, i32
  }
  func.func @transform_2(%arg0: i32) -> (i32, i32) {
    %c0_i32 = arith.constant 0 : i32
    %c0_i32_0 = arith.constant 0 : i32
    %c0_i32_1 = arith.constant 0 : i32
    return %c0_i32, %c0_i32_0 : i32, i32
  }
  func.func @transform_3(%arg0: i32) -> (i32, i32, i32) {
    %c0_i32 = arith.constant 0 : i32
    %c0_i32_0 = arith.constant 0 : i32
    %c0_i32_1 = arith.constant 0 : i32
    return %arg0, %c0_i32, %c0_i32_0 : i32, i32, i32
  }
}

module attributes {stable_mosaic.version = 11 : i64} {
  func.func @_conv3x3_stats_kernel(%arg0: i32, %arg1: memref<1x432x128xbf16, #tpu.memory_space<vmem>>, %arg2: memref<1152x128xbf16, #tpu.memory_space<vmem>>, %arg3: memref<1x376x128xbf16, #tpu.memory_space<vmem>>, %arg4: memref<1x2x128xf32, #tpu.memory_space<vmem>>) attributes {dimension_semantics = [#tpu.dimension_semantics<parallel>], iteration_bounds = array<i64: 2>, scalar_prefetch = 0 : i64, scratch_operands = 0 : i64, tpu.core_type = #tpu.core_type<tc>, window_params = [{transform_indices = @transform_0, window_bounds = array<i64: 1, 432, 128>}, {pipeline_mode = #tpu.pipeline_mode<synchronous>, transform_indices = @transform_1, window_bounds = array<i64: 1152, 128>}, {transform_indices = @transform_2, window_bounds = array<i64: 1, 376, 128>}, {transform_indices = @transform_3, window_bounds = array<i64: 1, 2, 128>}]} {
    %c0 = arith.constant 0 : index
    %c0_0 = arith.constant 0 : index
    %c0_1 = arith.constant 0 : index
    %0 = vector.load %arg1[%c0, %c0_0, %c0_1] : memref<1x432x128xbf16, #tpu.memory_space<vmem>>, vector<1x376x128xbf16>
    %1 = vector.shape_cast %0 : vector<1x376x128xbf16> to vector<376x128xbf16>
    %c0_2 = arith.constant 0 : index
    %c1 = arith.constant 1 : index
    %c0_3 = arith.constant 0 : index
    %2 = vector.load %arg1[%c0_2, %c1, %c0_3] : memref<1x432x128xbf16, #tpu.memory_space<vmem>>, vector<1x376x128xbf16>
    %3 = vector.shape_cast %2 : vector<1x376x128xbf16> to vector<376x128xbf16>
    %c0_4 = arith.constant 0 : index
    %c2 = arith.constant 2 : index
    %c0_5 = arith.constant 0 : index
    %4 = vector.load %arg1[%c0_4, %c2, %c0_5] : memref<1x432x128xbf16, #tpu.memory_space<vmem>>, vector<1x376x128xbf16>
    %5 = vector.shape_cast %4 : vector<1x376x128xbf16> to vector<376x128xbf16>
    %c0_6 = arith.constant 0 : index
    %c24 = arith.constant 24 : index
    %c0_7 = arith.constant 0 : index
    %6 = vector.load %arg1[%c0_6, %c24, %c0_7] : memref<1x432x128xbf16, #tpu.memory_space<vmem>>, vector<1x376x128xbf16>
    %7 = vector.shape_cast %6 : vector<1x376x128xbf16> to vector<376x128xbf16>
    %c0_8 = arith.constant 0 : index
    %c25 = arith.constant 25 : index
    %c0_9 = arith.constant 0 : index
    %8 = vector.load %arg1[%c0_8, %c25, %c0_9] : memref<1x432x128xbf16, #tpu.memory_space<vmem>>, vector<1x376x128xbf16>
    %9 = vector.shape_cast %8 : vector<1x376x128xbf16> to vector<376x128xbf16>
    %c0_10 = arith.constant 0 : index
    %c26 = arith.constant 26 : index
    %c0_11 = arith.constant 0 : index
    %10 = vector.load %arg1[%c0_10, %c26, %c0_11] : memref<1x432x128xbf16, #tpu.memory_space<vmem>>, vector<1x376x128xbf16>
    %11 = vector.shape_cast %10 : vector<1x376x128xbf16> to vector<376x128xbf16>
    %c0_12 = arith.constant 0 : index
    %c48 = arith.constant 48 : index
    %c0_13 = arith.constant 0 : index
    %12 = vector.load %arg1[%c0_12, %c48, %c0_13] : memref<1x432x128xbf16, #tpu.memory_space<vmem>>, vector<1x376x128xbf16>
    %13 = vector.shape_cast %12 : vector<1x376x128xbf16> to vector<376x128xbf16>
    %c0_14 = arith.constant 0 : index
    %c49 = arith.constant 49 : index
    %c0_15 = arith.constant 0 : index
    %14 = vector.load %arg1[%c0_14, %c49, %c0_15] : memref<1x432x128xbf16, #tpu.memory_space<vmem>>, vector<1x376x128xbf16>
    %15 = vector.shape_cast %14 : vector<1x376x128xbf16> to vector<376x128xbf16>
    %c0_16 = arith.constant 0 : index
    %c50 = arith.constant 50 : index
    %c0_17 = arith.constant 0 : index
    %16 = vector.load %arg1[%c0_16, %c50, %c0_17] : memref<1x432x128xbf16, #tpu.memory_space<vmem>>, vector<1x376x128xbf16>
    %17 = vector.shape_cast %16 : vector<1x376x128xbf16> to vector<376x128xbf16>
    %18 = tpu.concatenate %1, %3, %5, %7, %9, %11, %13, %15, %17 in 1 : vector<376x128xbf16>, vector<376x128xbf16>, vector<376x128xbf16>, vector<376x128xbf16>, vector<376x128xbf16>, vector<376x128xbf16>, vector<376x128xbf16>, vector<376x128xbf16>, vector<376x128xbf16> -> vector<376x1152xbf16>
    %c0_18 = arith.constant 0 : index
    %c0_19 = arith.constant 0 : index
    %19 = vector.load %arg2[%c0_18, %c0_19] : memref<1152x128xbf16, #tpu.memory_space<vmem>>, vector<1152x128xbf16>
    %cst = arith.constant dense<0.000000e+00> : vector<376x128xf32>
    %20 = tpu.matmul %18, %19, %cst {dimension_numbers = #tpu.dot_dimension_numbers<[1], [0], [0], [1], [0, 0, 1, 1], [], []>} : vector<376x1152xbf16>, vector<1152x128xbf16>, vector<376x128xf32> -> vector<376x128xf32>
    %21 = arith.truncf %20 : vector<376x128xf32> to vector<376x128xbf16>
    %c0_20 = arith.constant 0 : index
    %c0_21 = arith.constant 0 : index
    %c0_22 = arith.constant 0 : index
    %22 = vector.load %arg3[%c0_20, %c0_21, %c0_22] : memref<1x376x128xbf16, #tpu.memory_space<vmem>>, vector<1x376x128xbf16>
    %23 = vector.shape_cast %22 : vector<1x376x128xbf16> to vector<376x128xbf16>
    %24 = vector.shape_cast %21 : vector<376x128xbf16> to vector<1x376x128xbf16>
    tpu.vector_store %arg3[%c0_20, %c0_21, %c0_22], %24 {strides = array<i32>} : memref<1x376x128xbf16, #tpu.memory_space<vmem>>, vector<1x376x128xbf16>,
    %25 = tpu.iota {dimensions = array<i32: 0>} : vector<376x1xi32>
    %c24_i32 = arith.constant 24 : i32
    %c0_i32 = arith.constant 0 : i32
    %26 = arith.cmpi eq, %c24_i32, %c0_i32 : i32
    %c1_i32 = arith.constant 1 : i32
    %27 = arith.select %26, %c1_i32, %c24_i32 : i32
    %28 = vector.broadcast %27 : i32 to vector<376x1xi32>
    %29 = arith.remsi %25, %28 : vector<376x1xi32>
    %c0_i32_23 = arith.constant 0 : i32
    %30 = vector.broadcast %c0_i32_23 : i32 to vector<376x1xi32>
    %31 = arith.cmpi ne, %29, %30 : vector<376x1xi32>
    %c0_i32_24 = arith.constant 0 : i32
    %32 = vector.broadcast %c0_i32_24 : i32 to vector<376x1xi32>
    %33 = arith.cmpi slt, %29, %32 : vector<376x1xi32>
    %c0_i32_25 = arith.constant 0 : i32
    %34 = arith.cmpi slt, %27, %c0_i32_25 : i32
    %35 = vector.broadcast %34 : i1 to vector<376x1xi1>
    %36 = vector.broadcast %35 : vector<376x1xi1> to vector<376x1xi1>
    %37 = arith.xori %33, %36 : vector<376x1xi1>
    %38 = arith.andi %37, %31 : vector<376x1xi1>
    %39 = vector.broadcast %27 : i32 to vector<376x1xi32>
    %40 = arith.addi %29, %39 : vector<376x1xi32>
    %41 = arith.select %38, %40, %29 : vector<376x1xi1>, vector<376x1xi32>
    %c16_i32 = arith.constant 16 : i32
    %42 = vector.broadcast %c16_i32 : i32 to vector<376x1xi32>
    %43 = arith.cmpi slt, %41, %42 : vector<376x1xi32>
    %c376_i32 = arith.constant 376 : i32
    %44 = vector.broadcast %c376_i32 : i32 to vector<376x1xi32>
    %45 = arith.cmpi slt, %25, %44 : vector<376x1xi32>
    %46 = arith.andi %43, %45 : vector<376x1xi1>
    %cst_26 = arith.constant 0.000000e+00 : f32
    %47 = vector.shape_cast %46 : vector<376x1xi1> to vector<376x1xi1>
    %48 = vector.broadcast %47 : vector<376x1xi1> to vector<376x128xi1>
    %49 = vector.broadcast %cst_26 : f32 to vector<376x128xf32>
    %50 = arith.select %48, %20, %49 : vector<376x128xi1>, vector<376x128xf32>
    %cst_27 = arith.constant dense<0.000000e+00> : vector<128xf32>
    %51 = vector.multi_reduction <add>, %50, %cst_27 [0] : vector<376x128xf32> to vector<128xf32>
    %52 = vector.shape_cast %51 : vector<128xf32> to vector<1x128xf32>
    %c0_28 = arith.constant 0 : index
    %c0_29 = arith.constant 0 : index
    %c0_30 = arith.constant 0 : index
    %53 = vector.load %arg4[%c0_28, %c0_29, %c0_30] : memref<1x2x128xf32, #tpu.memory_space<vmem>>, vector<1x1x128xf32>
    %54 = vector.shape_cast %53 : vector<1x1x128xf32> to vector<1x128xf32>
    %55 = vector.shape_cast %52 : vector<1x128xf32> to vector<1x1x128xf32>
    tpu.vector_store %arg4[%c0_28, %c0_29, %c0_30], %55 {strides = array<i32>} : memref<1x2x128xf32, #tpu.memory_space<vmem>>, vector<1x1x128xf32>,
    %56 = arith.mulf %50, %50 : vector<376x128xf32>
    %cst_31 = arith.constant dense<0.000000e+00> : vector<128xf32>
    %57 = vector.multi_reduction <add>, %56, %cst_31 [0] : vector<376x128xf32> to vector<128xf32>
    %58 = vector.shape_cast %57 : vector<128xf32> to vector<1x128xf32>
    %c0_32 = arith.constant 0 : index
    %c1_33 = arith.constant 1 : index
    %c0_34 = arith.constant 0 : index
    %59 = vector.load %arg4[%c0_32, %c1_33, %c0_34] : memref<1x2x128xf32, #tpu.memory_space<vmem>>, vector<1x1x128xf32>
    %60 = vector.shape_cast %59 : vector<1x1x128xf32> to vector<1x128xf32>
    %61 = vector.shape_cast %58 : vector<1x128xf32> to vector<1x1x128xf32>
    tpu.vector_store %arg4[%c0_32, %c1_33, %c0_34], %61 {strides = array<i32>} : memref<1x2x128xf32, #tpu.memory_space<vmem>>, vector<1x1x128xf32>,
    return
  }
  func.func @transform_0(%arg0: i32) -> (i32, i32, i32) {
    %c0_i32 = arith.constant 0 : i32
    %c0_i32_0 = arith.constant 0 : i32
    %c0_i32_1 = arith.constant 0 : i32
    return %arg0, %c0_i32, %c0_i32_0 : i32, i32, i32
  }
  func.func @transform_1(%arg0: i32) -> (i32, i32) {
    %c0_i32 = arith.constant 0 : i32
    %c0_i32_0 = arith.constant 0 : i32
    %c0_i32_1 = arith.constant 0 : i32
    return %c0_i32, %c0_i32_0 : i32, i32
  }
  func.func @transform_2(%arg0: i32) -> (i32, i32, i32) {
    %c0_i32 = arith.constant 0 : i32
    %c0_i32_0 = arith.constant 0 : i32
    %c0_i32_1 = arith.constant 0 : i32
    return %arg0, %c0_i32, %c0_i32_0 : i32, i32, i32
  }
  func.func @transform_3(%arg0: i32) -> (i32, i32, i32) {
    %c0_i32 = arith.constant 0 : i32
    %c0_i32_0 = arith.constant 0 : i32
    %c0_i32_1 = arith.constant 0 : i32
    return %arg0, %c0_i32, %c0_i32_0 : i32, i32, i32
  }
}

</mosaic_0001>

<bundles_post_ra>
// kernel: double_conv.5
= control target key start
LH: loop header
LB: loop body
LE: loop exit
PB: predicated region body
PF: predicated region fallthrough
CT: control target
= control target key end

     0   :  { %s2660_s12 = smov 0   ;;  %s3742_s0 = inlined_call_operand.vmem [shape: bf16[2,376,128], index: 0, kind: input, shape index: {}]   ;;  %s3743_s1 = inlined_call_operand.vmem [shape: f32[1,128], index: 1, kind: input, shape index: {}]   ;;  %s3744_s2 = inlined_call_operand.vmem [shape: f32[1,128], index: 2, kind: input, shape index: {}]   ;;  %s3745_s3 = inlined_call_operand.vmem [shape: bf16[2,376,128], index: 3, kind: output, shape index: {}]  }
   0x1 LB: > { %s2028_s13 = sadd.s32 4294967295, %s2638_s12   ;;  %p2032_p0 = scmp.ge.s32.totalorder %s2638_s12, 1  ;;  %s2638_s12 = sphi %s2660_s12, %s13_s12  }
   0x2   : > { %p137_p1 = scmp.lt.s32.totalorder %s2638_s12, 3 }
   0x4   : > { %p138_p2 = pnand %p2032_p0, %p137_p1 }
   0x5   : > { %p161_p3 = scmp.lt.s32.totalorder (!%p138_p2), %s2028_s13, 1  ;;  %v655_v0 = vlaneseq (!%p138_p2)  ;;  %v2700_v12 = vld [vmem:[%s3743_s1] ss:$0 sm:$0xff] (!%p138_p2) }
   0x6   : > { %141 = sbr.rel (%p138_p2) target bundleno = 274 (0x112), region = 32  ;;  %v2710_v20 = vld [vmem:[%s3744_s2] ss:$0 sm:$0xff] (!%p138_p2) }
   0x7   : > { %v2670_v1 = vshrl.u32 (!%p138_p2), %v655_v0, 7 }
   0x9   : > { %v657_v2 = vadd.s32 (!%p138_p2), 8, %v2670_v1  ;;  %v2675_v3 = vmul.u32.u64.low (!%p138_p2), 2863311531, %v2670_v1  ;;  %v2676_v4 = vmul.u32.u64.high 2863311531, %v2670_v1, %v2675_v3  ;;  %v2679_v5 = vadd.s32 (!%p138_p2), 16, %v2670_v1 }
   0xa   : > { %v659_v6 = vadd.s32 (!%p138_p2), 24, %v2670_v1  ;;  %v2713_v22 = vadd.s32 (!%p138_p2), 32, %v2670_v1  ;;  %v2737_v38 = vadd.s32 (!%p138_p2), 40, %v2670_v1  ;;  %v2740_v39 = vadd.s32 (!%p138_p2), 48, %v2670_v1 }
   0xb   : > { %v2689_v7 = vmul.u32.u64.low (!%p138_p2), 2863311531, %v657_v2  ;;  %v2690_v8 = vmul.u32.u64.high 2863311531, %v657_v2, %v2689_v7  ;;  %v2693_v9 = vmul.u32.u64.low (!%p138_p2), 2863311531, %v2679_v5  ;;  %v2694_v10 = vmul.u32.u64.high 2863311531, %v2679_v5, %v2693_v9 }
   0xc   : > { %v2703_v14 = vmul.u32.u64.low (!%p138_p2), 2863311531, %v659_v6  ;;  %v2704_v15 = vmul.u32.u64.high 2863311531, %v659_v6, %v2703_v14  ;;  %v709_v18 = vshrl.u32 (!%p138_p2), %v2676_v4, 4  ;;  %v2750_v51 = vadd.s32 (!%p138_p2), 56, %v2670_v1 }
   0xd   : > { %s3839_s13 = smov (!%p161_p3, %s2028_s13), 1  ;;  %v720_v26 = vshrl.u32 %v2690_v8, 4  ;;  %v731_v29 = vshrl.u32 %v2694_v10, 4  ;;  %v2778_v8 = vmul.u32.u64.low 2863311531, %v2713_v22  ;;  %v2779_v9 = vmul.u32.u64.high 2863311531, %v2713_v22, %v2778_v8 }
   0xe   : > { %s2431_s14 = smul.u32 188, %s3839_s13  ;;  %v710_v25 = vmul.u32 24, %v709_v18  ;;  %v742_v30 = vshrl.u32 %v2704_v15, 4 }
   0xf   : > { %v721_v34 = vmul.u32 24, %v720_v26  ;;  %v732_v42 = vmul.u32 24, %v731_v29 }
  0x10   : > { %s2687_s17 = scalar_lea.vmem %s3742_s0, %s2431_s14  ;;  %v711_v33 = vsub.s32 %v2670_v1, %v710_v25  ;;  %v743_v43 = vmul.u32 24, %v742_v30  ;;  %s2845_s24 = scalar_lea.vmem %s3745_s3, %s2431_s14 }
  0x11   : > { %v2181_v11 = vld [vmem:[%s2687_s17] sm:$0xff]   ;;  %v2387_v13 = vld [vmem:[%s2687_s17 + $0x8] sm:$0xff]   ;;  %v2388_v37 = vld [vmem:[%s2687_s17 + $0x10] sm:$0xff]   ;;  %v722_v44 = vsub.s32 %v657_v2, %v721_v34  ;;  %v733_v59 = vsub.s32 %v2679_v5, %v732_v42 }
  0x12   : > { %v2182_v16 = vunpack.c.l.bf16 %v2181_v11  ;;  %v2183_v17 = vunpack.c.h.bf16 %v2181_v11  ;;  %v2186_v19 = vunpack.c.l.bf16 %v2387_v13  ;;  %v2187_v21 = vunpack.c.h.bf16 %v2387_v13  ;;  %v2389_v46 = vld [vmem:[%s2687_s17 + $0x18] sm:$0xff]   ;;  %v2390_v42 = vld [vmem:[%s2687_s17 + $0x20] sm:$0xff]  }
  0x13   : > { %vm1220_vm0 = vcmp.ne.s32.totalorder %v711_v33, 0  ;;  %vm1267_vm1 = vcmp.lt.s32.totalorder %v711_v33, 0  ;;  %v1361_v45 = vadd.s32 24, %v711_v33  ;;  %v2190_v50 = vunpack.c.l.bf16 %v2388_v37 }
  0x14   : > { %v272_v23 = vmul.f32 %v2182_v16, %v2700_v12  ;;  %v273_v24 = vmul.f32 %v2183_v17, %v2700_v12  ;;  %v274_v27 = vmul.f32 %v2186_v19, %v2700_v12  ;;  %v275_v28 = vmul.f32 %v2187_v21, %v2700_v12  ;;  %vm2745_vm2 = vmand %vm1267_vm1, %vm1220_vm0 }
  0x15   : > { %vm1221_vm3 = vcmp.ne.s32.totalorder %v722_v44, 0  ;;  %vm1268_vm4 = vcmp.lt.s32.totalorder %v722_v44, 0  ;;  %v1362_v52 = vadd.s32 24, %v722_v44  ;;  %v2191_v53 = vunpack.c.h.bf16 %v2388_v37 }
  0x16   : > { %v2723_v31 = vadd.f32 %v2710_v20, %v272_v23  ;;  %v2726_v32 = vadd.f32 %v2710_v20, %v273_v24  ;;  %v2730_v35 = vadd.f32 %v2710_v20, %v274_v27  ;;  %v2733_v36 = vadd.f32 %v2710_v20, %v275_v28  ;;  %vm2752_vm5 = vmand %vm1268_vm4, %vm1221_vm3 }
  0x17   : > { %v2194_v57 = vunpack.c.l.bf16 %v2389_v46  ;;  %v1408_v58 = vsel %vm2745_vm2, %v1361_v45, %v711_v33  ;;  %v744_v60 = vsub.s32 %v659_v6, %v743_v43  ;;  %v1409_v61 = vsel %vm2752_vm5, %v1362_v52, %v722_v44 }
  0x18   : > { %v420_v40 = vmin.f32 %v2723_v31, 0.0  ;;  %v421_v41 = vmin.f32 %v2726_v32, 0.0  ;;  %v422_v55 = vmin.f32 %v2730_v35, 0.0  ;;  %v423_v56 = vmin.f32 %v2733_v36, 0.0 }
  0x19   : > { %vm373_vm6 = vcmp.gt.f32.partialorder %v2723_v31, 0.0  ;;  %v276_v0 = vmul.f32 %v2190_v50, %v2700_v12  ;;  %vm1222_vm7 = vcmp.ne.s32.totalorder %v733_v59, 0  ;;  %vm1223_vm8 = vcmp.ne.s32.totalorder %v744_v60, 0 }
  0x1a   : > { %v467_v47 = vmul.f32 1.442695, %v420_v40  ;;  %v469_v48 = vmul.f32 1.442695, %v421_v41  ;;  %v471_v62 = vmul.f32 1.442695, %v422_v55  ;;  %v277_v5 = vmul.f32 %v2191_v53, %v2700_v12 }
  0x1b   : > { %v473_v63 = vmul.f32 1.442695, %v423_v56  ;;  %vm1269_vm9 = vcmp.lt.s32.totalorder %v733_v59, 0  ;;  %vm1270_vm10 = vcmp.lt.s32.totalorder %v744_v60, 0  ;;  %v1363_v3 = vadd.s32 24, %v733_v59 }
  0x1c   : > { %2534 = vpow2.f32 %v467_v47  ;;  %vm2765_vm11 = vmand %vm1269_vm9, %vm1222_vm7  ;;  %v1364_v4 = vadd.s32 24, %v744_v60  ;;  %v2775_v7 = vadd.f32 %v2710_v20, %v276_v0  ;;  %vm374_vm13 = vcmp.gt.f32.partialorder %v2726_v32, 0.0 }
  0x1d   : > { %2536 = vpow2.f32 %v469_v48  ;;  %vm2770_vm12 = vmand %vm1270_vm10, %vm1223_vm8  ;;  %vm375_vm14 = vcmp.gt.f32.partialorder %v2730_v35, 0.0  ;;  %v2784_v10 = vadd.f32 %v2710_v20, %v277_v5  ;;  %v2195_v11 = vunpack.c.h.bf16 %v2389_v46 }
  0x1e   : > { %2538 = vpow2.f32 %v471_v62  ;;  %vm2786_vm15 = vcmp.lt.s32.totalorder %v1408_v58, 16  ;;  %vm2790_vm0 = vcmp.lt.s32.totalorder %v1409_v61, 16  ;;  %vm376_vm1 = vcmp.gt.f32.partialorder %v2733_v36, 0.0 }
  0x1f   : > { %2540 = vpow2.f32 %v473_v63  ;;  %v1410_v15 = vsel %vm2765_vm11, %v1363_v3, %v733_v59  ;;  %v424_v16 = vmin.f32 %v2775_v7, 0.0  ;;  %v1411_v17 = vsel %vm2770_vm12, %v1364_v4, %v744_v60 }
  0x20   : > { %v425_v18 = vmin.f32 %v2784_v10, 0.0  ;;  %v2802_v19 = vmul.u32.u64.low 2863311531, %v2737_v38  ;;  %v2803_v21 = vmul.u32.u64.high 2863311531, %v2737_v38, %v2802_v19  ;;  %v753_v24 = vshrl.u32 %v2779_v9, 4 }
  0x21   : > { %v475_v23 = vmul.f32 1.442695, %v424_v16  ;;  %v278_v25 = vmul.f32 %v2194_v57, %v2700_v12  ;;  %v279_v26 = vmul.f32 %v2195_v11, %v2700_v12  ;;  %vm2808_vm2 = vcmp.lt.s32.totalorder %v1410_v15, 16 }
  0x22   : > { %v477_v29 = vmul.f32 1.442695, %v425_v18  ;;  %v2813_v30 = vmul.u32.u64.low 2863311531, %v2740_v39  ;;  %v2814_v33 = vmul.u32.u64.high 2863311531, %v2740_v39, %v2813_v30  ;;  %v754_v40 = vmul.u32 24, %v753_v24 }
  0x23   : > { %2542 = vpow2.f32 %v475_v23  ;;  %v2817_v41 = vadd.f32 %v2710_v20, %v278_v25  ;;  %vm2820_vm3 = vcmp.lt.s32.totalorder %v1411_v17, 16  ;;  %v764_v45 = vshrl.u32 %v2803_v21, 4 }
  0x24   : > { %2544 = vpow2.f32 %v477_v29  ;;  %vm377_vm4 = vcmp.gt.f32.partialorder %v2775_v7, 0.0  ;;  %v755_v47 = vsub.s32 %v2713_v22, %v754_v40  ;;  %v2831_v48 = vadd.f32 %v2710_v20, %v279_v26 }
  0x25   : > { %v426_v49 = vmin.f32 %v2817_v41, 0.0  ;;  %vm378_vm5 = vcmp.gt.f32.partialorder %v2784_v10, 0.0  ;;  %v2198_v54 = vunpack.c.l.bf16 %v2390_v42  ;;  %v775_v0 = vshrl.u32 %v2814_v33, 4  ;;  %v2391_v33 = vld [vmem:[%s2687_s17 + $0x28] sm:$0xff]  }
  0x26   : > { %v2535_v27 = vpop.eup %2534  ;;  %vm1271_vm7 = vcmp.lt.s32.totalorder %v755_v47, 0  ;;  %v1365_v60 = vadd.s32 24, %v755_v47  ;;  %v427_v62 = vmin.f32 %v2831_v48, 0.0  ;;  %v2199_v15 = vunpack.c.h.bf16 %v2390_v42 }
  0x27   : > { %v2537_v34 = vpop.eup %2536  ;;  %v2037_v37 = vadd.f32 -1.0, %v2535_v27  ;;  %v479_v63 = vmul.f32 1.442695, %v426_v49  ;;  %v776_v8 = vmul.u32 24, %v775_v0  ;;  %v280_v23 = vmul.f32 %v2198_v54, %v2700_v12 }
  0x28   : > { %v2038_v43 = vadd.f32 -1.0, %v2537_v34  ;;  %v2539_v50 = vpop.eup %2538  ;;  %v2874_v13 = vmul.u32.u64.low 2863311531, %v2750_v51  ;;  %v2875_v14 = vmul.u32.u64.high 2863311531, %v2750_v51, %v2874_v13  ;;  %v281_v24 = vmul.f32 %v2199_v15, %v2700_v12 }
  0x29   : > { %v608_v46 = vsel %vm373_vm6, %v2723_v31, %v2037_v37  ;;  %v765_v31 = vmul.u32 24, %v764_v45  ;;  %v2541_v55 = vpop.eup %2540  ;;  %v2039_v56 = vadd.f32 -1.0, %v2539_v50  ;;  %vm1224_vm6 = vcmp.ne.s32.totalorder %v755_v47, 0 }
  0x2a   : > { %v609_v52 = vsel %vm374_vm13, %v2726_v32, %v2038_v43  ;;  %v1690_v53 = vsel %vm2786_vm15, %v608_v46, 0.0  ;;  %v2040_v57 = vadd.f32 -1.0, %v2541_v55  ;;  %vm2850_vm8 = vmand %vm1271_vm7, %vm1224_vm6  ;;  %2546 = vpow2.f32 %v479_v63 }
  0x2b   : > { %v1691_v22 = vsel %vm2790_vm0, %v609_v52, 0.0  ;;  %v766_v58 = vsub.s32 %v2737_v38, %v765_v31  ;;  %v610_v61 = vsel %vm375_vm14, %v2730_v35, %v2039_v56  ;;  %v1412_v4 = vsel %vm2850_vm8, %v1365_v60, %v755_v47 }
  0x2c   : > { %v2275_v32 = vpack.c.bf16 %v1691_v22, %v1690_v53  ;;  %v611_v2 = vsel %vm376_vm1, %v2733_v36, %v2040_v57  ;;  %v1692_v38 = vsel %vm2808_vm2, %v610_v61, 0.0  ;;  %vm2869_vm12 = vcmp.lt.s32.totalorder %v1412_v4, 16 }
  0x2d   : > { %vm1225_vm9 = vcmp.ne.s32.totalorder %v766_v58, 0  ;;  %vm1272_vm10 = vcmp.lt.s32.totalorder %v766_v58, 0  ;;  %v1693_v3 = vsel %vm2820_vm3, %v611_v2, 0.0  ;;  %v1366_v35 = vadd.s32 24, %v766_v58  ;;  %v2543_v9 = vpop.eup %2542 }
  0x2e   : > { %2276 = vst [vmem:[%s2845_s24] sm:$0xff] %v2275_v32   ;;  %vm1319_vm11 = vmand %vm1272_vm10, %vm1225_vm9  ;;  %v2280_v5 = vpack.c.bf16 %v1693_v3, %v1692_v38  ;;  %v481_v36 = vmul.f32 1.442695, %v427_v62  ;;  %v2545_v16 = vpop.eup %2544  ;;  %v2041_v17 = vadd.f32 -1.0, %v2543_v9  ;;  %v777_v19 = vsub.s32 %v2740_v39, %v776_v8 }
  0x2f   : > { %v1413_v11 = vsel %vm1319_vm11, %v1366_v35, %v766_v58  ;;  %v2042_v21 = vadd.f32 -1.0, %v2545_v16  ;;  %v2886_v25 = vadd.s32 64, %v2670_v1  ;;  %v786_v29 = vshrl.u32 %v2875_v14, 4 }
  0x30   : > { %2409 = vst [vmem:[%s2845_s24 + $0x8] sm:$0xff] %v2280_v5   ;;  %vm2878_vm13 = vcmp.lt.s32.totalorder %v1413_v11, 16  ;;  %2548 = vpow2.f32 %v481_v36  ;;  %v612_v26 = vsel %vm377_vm4, %v2775_v7, %v2041_v17  ;;  %vm1226_vm14 = vcmp.ne.s32.totalorder %v777_v19, 0 }
  0x31   : > { %vm1273_vm15 = vcmp.lt.s32.totalorder %v777_v19, 0  ;;  %v1367_v27 = vadd.s32 24, %v777_v19  ;;  %v613_v28 = vsel %vm378_vm5, %v2784_v10, %v2042_v21  ;;  %v1694_v39 = vsel %vm2869_vm12, %v612_v26, 0.0 }
  0x32   : > { %vm1320_vm0 = vmand %vm1273_vm15, %vm1226_vm14  ;;  %v2898_v30 = vadd.f32 %v2710_v20, %v280_v23  ;;  %v1695_v7 = vsel %vm2878_vm13, %v613_v28, 0.0  ;;  %vm379_vm1 = vcmp.gt.f32.partialorder %v2817_v41, 0.0  ;;  %v2905_v37 = vadd.f32 %v2710_v20, %v281_v24 }
  0x33   : > { %v1414_v34 = vsel %vm1320_vm0, %v1367_v27, %v777_v19  ;;  %v2285_v10 = vpack.c.bf16 %v1695_v7, %v1694_v39  ;;  %vm380_vm2 = vcmp.gt.f32.partialorder %v2831_v48, 0.0  ;;  %v787_v40 = vmul.u32 24, %v786_v29 }
  0x34   : > { %v665_v42 = vadd.s32 72, %v2670_v1  ;;  %vm2909_vm3 = vcmp.lt.s32.totalorder %v1414_v34, 16  ;;  %v428_v44 = vmin.f32 %v2898_v30, 0.0  ;;  %v429_v45 = vmin.f32 %v2905_v37, 0.0  ;;  %v2547_v47 = vpop.eup %2546 }
  0x35   : > { %v2202_v46 = vunpack.c.l.bf16 %v2391_v33  ;;  %2410 = vst [vmem:[%s2845_s24 + $0x10] sm:$0xff] %v2285_v10   ;;  %v788_v49 = vsub.s32 %v2750_v51, %v787_v40  ;;  %v2918_v50 = vmul.u32.u64.low 2863311531, %v2886_v25  ;;  %v2919_v52 = vmul.u32.u64.high 2863311531, %v2886_v25, %v2918_v50 }
  0x36   : > { %v2203_v53 = vunpack.c.h.bf16 %v2391_v33  ;;  %v2043_v31 = vadd.f32 -1.0, %v2547_v47  ;;  %v483_v54 = vmul.f32 1.442695, %v428_v44  ;;  %v485_v55 = vmul.f32 1.442695, %v429_v45 }
  0x37   : > { %v282_v22 = vmul.f32 %v2202_v46, %v2700_v12  ;;  %vm1227_vm4 = vcmp.ne.s32.totalorder %v788_v49, 0  ;;  %vm1274_vm5 = vcmp.lt.s32.totalorder %v788_v49, 0  ;;  %v1368_v56 = vadd.s32 24, %v788_v49 }
  0x38   : > { %v283_v32 = vmul.f32 %v2203_v53, %v2700_v12  ;;  %v614_v51 = vsel %vm379_vm1, %v2817_v41, %v2043_v31  ;;  %vm1321_vm6 = vmand %vm1274_vm5, %vm1227_vm4  ;;  %2550 = vpow2.f32 %v483_v54  ;;  %v797_v63 = vshrl.u32 %v2919_v52, 4  ;;  %v2392_v41 = vld [vmem:[%s2687_s17 + $0x30] sm:$0xff]  }
  0x39   : > { %v2926_v58 = vmul.u32.u64.low 2863311531, %v665_v42  ;;  %v2927_v59 = vmul.u32.u64.high 2863311531, %v665_v42, %v2926_v58  ;;  %v1415_v61 = vsel %vm1321_vm6, %v1368_v56, %v788_v49  ;;  %v1696_v62 = vsel %vm2909_vm3, %v614_v51, 0.0 }
  0x3a   : > { %v2549_v57 = vpop.eup %2548  ;;  %2552 = vpow2.f32 %v485_v55  ;;  %vm1462_vm7 = vcmp.lt.s32.totalorder %v1415_v61, 16  ;;  %v2933_v0 = vadd.f32 %v2710_v20, %v282_v22  ;;  %v2936_v2 = vadd.f32 %v2710_v20, %v283_v32  ;;  %v2393_v22 = vld [vmem:[%s2687_s17 + $0x38] sm:$0xff]  }
  0x3b   : > { %v2044_v60 = vadd.f32 -1.0, %v2549_v57  ;;  %v666_v3 = vadd.s32 80, %v2670_v1  ;;  %v667_v35 = vadd.s32 88, %v2670_v1  ;;  %vm381_vm8 = vcmp.gt.f32.partialorder %v2898_v30, 0.0 }
  0x3c   : > { %v798_v5 = vmul.u32 24, %v797_v63  ;;  %v808_v6 = vshrl.u32 %v2927_v59, 4  ;;  %v430_v8 = vmin.f32 %v2933_v0, 0.0  ;;  %v431_v9 = vmin.f32 %v2936_v2, 0.0 }
  0x3d   : > { %v615_v38 = vsel %vm380_vm2, %v2831_v48, %v2044_v60  ;;  %v2206_v11 = vunpack.c.l.bf16 %v2392_v41  ;;  %v2949_v48 = vmul.u32.u64.low 2863311531, %v666_v3  ;;  %v2950_v15 = vmul.u32.u64.high 2863311531, %v666_v3, %v2949_v48 }
  0x3e   : > { %v1697_v4 = vsel %vm1462_vm7, %v615_v38, 0.0  ;;  %v799_v13 = vsub.s32 %v2886_v25, %v798_v5  ;;  %v809_v14 = vmul.u32 24, %v808_v6  ;;  %v487_v16 = vmul.f32 1.442695, %v430_v8  ;;  %v2394_v6 = vld [vmem:[%s2687_s17 + $0x40] sm:$0xff]  }
  0x3f   : > { %v2290_v36 = vpack.c.bf16 %v1697_v4, %v1696_v62  ;;  %v489_v17 = vmul.f32 1.442695, %v431_v9  ;;  %v2953_v18 = vmul.u32.u64.low 2863311531, %v667_v35  ;;  %v2954_v19 = vmul.u32.u64.high 2863311531, %v667_v35, %v2953_v18 }
  0x40   : > { %v810_v21 = vsub.s32 %v665_v42, %v809_v14  ;;  %vm1228_vm9 = vcmp.ne.s32.totalorder %v799_v13, 0  ;;  %vm1275_vm10 = vcmp.lt.s32.totalorder %v799_v13, 0  ;;  %v1369_v23 = vadd.s32 24, %v799_v13 }
  0x41   : > { %2411 = vst [vmem:[%s2845_s24 + $0x18] sm:$0xff] %v2290_v36   ;;  %vm382_vm11 = vcmp.gt.f32.partialorder %v2905_v37, 0.0  ;;  %vm1322_vm12 = vmand %vm1275_vm10, %vm1228_vm9  ;;  %2554 = vpow2.f32 %v487_v16  ;;  %v2207_v24 = vunpack.c.h.bf16 %v2392_v41  ;;  %v284_v25 = vmul.f32 %v2206_v11, %v2700_v12 }
  0x42   : > { %v2551_v26 = vpop.eup %2550  ;;  %vm1229_vm13 = vcmp.ne.s32.totalorder %v810_v21, 0  ;;  %vm1276_vm14 = vcmp.lt.s32.totalorder %v810_v21, 0  ;;  %v1370_v27 = vadd.s32 24, %v810_v21  ;;  %v1416_v28 = vsel %vm1322_vm12, %v1369_v23, %v799_v13 }
  0x43   : > { %v2045_v29 = vadd.f32 -1.0, %v2551_v26  ;;  %vm1323_vm15 = vmand %vm1276_vm14, %vm1229_vm13  ;;  %vm2958_vm0 = vcmp.lt.s32.totalorder %v1416_v28, 16  ;;  %vm383_vm1 = vcmp.gt.f32.partialorder %v2933_v0, 0.0  ;;  %2556 = vpow2.f32 %v489_v17 }
  0x44   : > { %v2553_v39 = vpop.eup %2552  ;;  %v819_v7 = vshrl.u32 %v2950_v15, 4  ;;  %v1417_v10 = vsel %vm1323_vm15, %v1370_v27, %v810_v21  ;;  %v830_v40 = vshrl.u32 %v2954_v19, 4  ;;  %v285_v42 = vmul.f32 %v2207_v24, %v2700_v12 }
  0x45   : > { %v2046_v34 = vadd.f32 -1.0, %v2553_v39  ;;  %v616_v43 = vsel %vm381_vm8, %v2898_v30, %v2045_v29  ;;  %vm1464_vm2 = vcmp.lt.s32.totalorder %v1417_v10, 16  ;;  %v2970_v45 = vadd.f32 %v2710_v20, %v284_v25 }
  0x46   : > { %v820_v44 = vmul.u32 24, %v819_v7  ;;  %v1698_v47 = vsel %vm2958_vm0, %v616_v43, 0.0  ;;  %v831_v49 = vmul.u32 24, %v830_v40  ;;  %v2978_v50 = vadd.f32 %v2710_v20, %v285_v42 }
  0x47   : > { %v617_v46 = vsel %vm382_vm11, %v2905_v37, %v2046_v34  ;;  %vm384_vm3 = vcmp.gt.f32.partialorder %v2936_v2, 0.0  ;;  %v432_v53 = vmin.f32 %v2970_v45, 0.0  ;;  %v668_v37 = vadd.s32 96, %v2670_v1 }
  0x48   : > { %v1699_v52 = vsel %vm1464_vm2, %v617_v46, 0.0  ;;  %v821_v30 = vsub.s32 %v666_v3, %v820_v44  ;;  %v832_v54 = vsub.s32 %v667_v35, %v831_v49  ;;  %v433_v55 = vmin.f32 %v2978_v50, 0.0 }
  0x49   : > { %v2295_v31 = vpack.c.bf16 %v1699_v52, %v1698_v47  ;;  %v491_v32 = vmul.f32 1.442695, %v432_v53  ;;  %v669_v60 = vadd.s32 104, %v2670_v1  ;;  %v2210_v61 = vunpack.c.l.bf16 %v2393_v22 }
  0x4a   : > { %vm1230_vm4 = vcmp.ne.s32.totalorder %v821_v30, 0  ;;  %vm1277_vm5 = vcmp.lt.s32.totalorder %v821_v30, 0  ;;  %v1371_v56 = vadd.s32 24, %v821_v30  ;;  %vm1231_vm6 = vcmp.ne.s32.totalorder %v832_v54, 0 }
  0x4b   : > { %2412 = vst [vmem:[%s2845_s24 + $0x20] sm:$0xff] %v2295_v31   ;;  %vm1278_vm7 = vcmp.lt.s32.totalorder %v832_v54, 0  ;;  %vm1324_vm8 = vmand %vm1277_vm5, %vm1230_vm4  ;;  %v1372_v57 = vadd.s32 24, %v832_v54  ;;  %v493_v51 = vmul.f32 1.442695, %v433_v55  ;;  %v2555_v58 = vpop.eup %2554  ;;  %2558 = vpow2.f32 %v491_v32 }
  0x4c   : > { %vm1325_vm9 = vmand %vm1278_vm7, %vm1231_vm6  ;;  %v1418_v59 = vsel %vm1324_vm8, %v1371_v56, %v821_v30  ;;  %v2047_v62 = vadd.f32 -1.0, %v2555_v58  ;;  %v2995_v35 = vmul.u32.u64.low 2863311531, %v668_v37  ;;  %v2996_v4 = vmul.u32.u64.high 2863311531, %v668_v37, %v2995_v35 }
  0x4d   : > { %v1419_v63 = vsel %vm1325_vm9, %v1372_v57, %v832_v54  ;;  %vm2987_vm10 = vcmp.lt.s32.totalorder %v1418_v59, 16  ;;  %2560 = vpow2.f32 %v493_v51  ;;  %v2557_v38 = vpop.eup %2556  ;;  %v2211_v5 = vunpack.c.h.bf16 %v2393_v22 }
  0x4e   : > { %vm2991_vm11 = vcmp.lt.s32.totalorder %v1419_v63, 16  ;;  %v2048_v36 = vadd.f32 -1.0, %v2557_v38  ;;  %v618_v8 = vsel %vm383_vm1, %v2933_v0, %v2047_v62  ;;  %v286_v14 = vmul.f32 %v2210_v61, %v2700_v12  ;;  %v2395_v62 = vld [vmem:[%s2687_s17 + $0x48] sm:$0xff]  }
  0x4f   : > { %v3002_v9 = vmul.u32.u64.low 2863311531, %v669_v60  ;;  %v3003_v11 = vmul.u32.u64.high 2863311531, %v669_v60, %v3002_v9  ;;  %v1700_v13 = vsel %vm2987_vm10, %v618_v8, 0.0  ;;  %v287_v48 = vmul.f32 %v2211_v5, %v2700_v12 }
  0x50   : > { %v670_v15 = vadd.s32 112, %v2670_v1  ;;  %v619_v16 = vsel %vm384_vm3, %v2936_v2, %v2048_v36  ;;  %v671_v17 = vadd.s32 120, %v2670_v1  ;;  %v2214_v0 = vunpack.c.l.bf16 %v2394_v6 }
  0x51   : > { %v2215_v18 = vunpack.c.h.bf16 %v2394_v6  ;;  %v1701_v19 = vsel %vm2991_vm11, %v619_v16, 0.0  ;;  %v841_v21 = vshrl.u32 %v2996_v4, 4  ;;  %v3018_v23 = vadd.f32 %v2710_v20, %v286_v14 }
  0x52   : > { %v3021_v24 = vadd.f32 %v2710_v20, %v287_v48  ;;  %v2300_v25 = vpack.c.bf16 %v1701_v19, %v1700_v13  ;;  %v852_v26 = vshrl.u32 %v3003_v11, 4  ;;  %vm385_vm12 = vcmp.gt.f32.partialorder %v2970_v45, 0.0 }
  0x53   : > { %v3024_v27 = vmul.u32.u64.low 2863311531, %v670_v15  ;;  %v3025_v2 = vmul.u32.u64.high 2863311531, %v670_v15, %v3024_v27  ;;  %vm386_vm13 = vcmp.gt.f32.partialorder %v2978_v50, 0.0  ;;  %v842_v28 = vmul.u32 24, %v841_v21 }
  0x54   : > { %v434_v39 = vmin.f32 %v3018_v23, 0.0  ;;  %2413 = vst [vmem:[%s2845_s24 + $0x28] sm:$0xff] %v2300_v25   ;;  %v853_v29 = vmul.u32 24, %v852_v26  ;;  %v435_v33 = vmin.f32 %v3021_v24, 0.0  ;;  %v288_v43 = vmul.f32 %v2214_v0, %v2700_v12 }
  0x55   : > { %v3032_v7 = vmul.u32.u64.low 2863311531, %v671_v17  ;;  %v3033_v34 = vmul.u32.u64.high 2863311531, %v671_v17, %v3032_v7  ;;  %v2559_v10 = vpop.eup %2558  ;;  %v843_v40 = vsub.s32 %v668_v37, %v842_v28  ;;  %v289_v44 = vmul.f32 %v2215_v18, %v2700_v12  ;;  %v3077_v18 = vld [vmem:[%s2687_s17 + $0x50] sm:$0xff]  }
  0x56   : > { %v495_v42 = vmul.f32 1.442695, %v434_v39  ;;  %v2049_v47 = vadd.f32 -1.0, %v2559_v10  ;;  %v854_v49 = vsub.s32 %v669_v60, %v853_v29  ;;  %v497_v52 = vmul.f32 1.442695, %v435_v33 }
  0x57   : > { %v2561_v46 = vpop.eup %2560  ;;  %v863_v30 = vshrl.u32 %v3025_v2, 4  ;;  %vm1232_vm14 = vcmp.ne.s32.totalorder %v843_v40, 0  ;;  %vm1279_vm15 = vcmp.lt.s32.totalorder %v843_v40, 0  ;;  %v1373_v31 = vadd.s32 24, %v843_v40 }
  0x58   : > { %v2050_v53 = vadd.f32 -1.0, %v2561_v46  ;;  %v620_v54 = vsel %vm385_vm12, %v2970_v45, %v2049_v47  ;;  %vm1233_vm0 = vcmp.ne.s32.totalorder %v854_v49, 0  ;;  %vm1280_vm1 = vcmp.lt.s32.totalorder %v854_v49, 0  ;;  %vm1326_vm2 = vmand %vm1279_vm15, %vm1232_vm14 }
  0x59   : > { %v1374_v55 = vadd.s32 24, %v854_v49  ;;  %vm1327_vm3 = vmand %vm1280_vm1, %vm1233_vm0  ;;  %v1420_v22 = vsel %vm1326_vm2, %v1373_v31, %v843_v40  ;;  %2562 = vpow2.f32 %v495_v42  ;;  %v864_v56 = vmul.u32 24, %v863_v30 }
  0x5a   : > { %v621_v37 = vsel %vm386_vm13, %v2978_v50, %v2050_v53  ;;  %vm1467_vm4 = vcmp.lt.s32.totalorder %v1420_v22, 16  ;;  %2564 = vpow2.f32 %v497_v52  ;;  %v874_v57 = vshrl.u32 %v3033_v34, 4 }
  0x5b   : > { %v1421_v32 = vsel %vm1327_vm3, %v1374_v55, %v854_v49  ;;  %v1702_v45 = vsel %vm1467_vm4, %v620_v54, 0.0  ;;  %v865_v51 = vsub.s32 %v670_v15, %v864_v56  ;;  %v3046_v58 = vadd.f32 %v2710_v20, %v288_v43 }
  0x5c   : > { %vm1468_vm5 = vcmp.lt.s32.totalorder %v1421_v32, 16  ;;  %v875_v60 = vmul.u32 24, %v874_v57  ;;  %v3049_v50 = vadd.f32 %v2710_v20, %v289_v44  ;;  %v672_v61 = vadd.s32 128, %v2670_v1 }
  0x5d   : > { %v1703_v59 = vsel %vm1468_vm5, %v621_v37, 0.0  ;;  %vm1234_vm6 = vcmp.ne.s32.totalorder %v865_v51, 0  ;;  %vm1281_vm7 = vcmp.lt.s32.totalorder %v865_v51, 0  ;;  %v1375_v41 = vadd.s32 24, %v865_v51 }
  0x5e   : > { %v2305_v63 = vpack.c.bf16 %v1703_v59, %v1702_v45  ;;  %v876_v38 = vsub.s32 %v671_v17, %v875_v60  ;;  %vm3053_vm8 = vmand %vm1281_vm7, %vm1234_vm6  ;;  %v436_v35 = vmin.f32 %v3046_v58, 0.0  ;;  %vm387_vm9 = vcmp.gt.f32.partialorder %v3018_v23, 0.0 }
  0x5f   : > { %v437_v4 = vmin.f32 %v3049_v50, 0.0  ;;  %v673_v5 = vadd.s32 136, %v2670_v1  ;;  %v2218_v6 = vunpack.c.l.bf16 %v2395_v62  ;;  %v1422_v8 = vsel %vm3053_vm8, %v1375_v41, %v865_v51 }
  0x60   : > { %2414 = vst [vmem:[%s2845_s24 + $0x30] sm:$0xff] %v2305_v63   ;;  %vm1235_vm10 = vcmp.ne.s32.totalorder %v876_v38, 0  ;;  %vm1282_vm11 = vcmp.lt.s32.totalorder %v876_v38, 0  ;;  %v1376_v36 = vadd.s32 24, %v876_v38  ;;  %v499_v11 = vmul.f32 1.442695, %v436_v35 }
  0x61   : > { %vm3064_vm12 = vmand %vm1282_vm11, %vm1235_vm10  ;;  %v501_v13 = vmul.f32 1.442695, %v437_v4  ;;  %v3068_v14 = vmul.u32.u64.low 2863311531, %v672_v61  ;;  %v3069_v48 = vmul.u32.u64.high 2863311531, %v672_v61, %v3068_v14  ;;  %v2219_v0 = vunpack.c.h.bf16 %v2395_v62 }
  0x62   : > { %v1423_v15 = vsel %vm3064_vm12, %v1376_v36, %v876_v38  ;;  %v3073_v16 = vmul.u32.u64.low 2863311531, %v673_v5  ;;  %v3074_v17 = vmul.u32.u64.high 2863311531, %v673_v5, %v3073_v16  ;;  %vm388_vm13 = vcmp.gt.f32.partialorder %v3021_v24, 0.0 }
  0x63   : > { %v2563_v19 = vpop.eup %2562  ;;  %vm3080_vm14 = vcmp.lt.s32.totalorder %v1422_v8, 16  ;;  %2566 = vpow2.f32 %v499_v11  ;;  %v290_v25 = vmul.f32 %v2218_v6, %v2700_v12  ;;  %vm3085_vm15 = vcmp.lt.s32.totalorder %v1423_v15, 16 }
  0x64   : > { %v2565_v26 = vpop.eup %2564  ;;  %v2051_v27 = vadd.f32 -1.0, %v2563_v19  ;;  %2568 = vpow2.f32 %v501_v13  ;;  %v291_v28 = vmul.f32 %v2219_v0, %v2700_v12  ;;  %vm389_vm0 = vcmp.gt.f32.partialorder %v3046_v58, 0.0 }
  0x65   : > { %v2052_v39 = vadd.f32 -1.0, %v2565_v26  ;;  %v885_v29 = vshrl.u32 %v3069_v48, 4  ;;  %v3093_v33 = vadd.f32 %v2710_v20, %v290_v25  ;;  %v2222_v7 = vunpack.c.l.bf16 %v3077_v18 }
  0x66   : > { %v622_v34 = vsel %vm387_vm9, %v3018_v23, %v2051_v27  ;;  %vm390_vm1 = vcmp.gt.f32.partialorder %v3049_v50, 0.0  ;;  %v896_v10 = vshrl.u32 %v3074_v17, 4  ;;  %v3102_v40 = vadd.f32 %v2710_v20, %v291_v28 }
  0x67   : > { %v674_v42 = vadd.s32 144, %v2670_v1  ;;  %v623_v43 = vsel %vm388_vm13, %v3021_v24, %v2052_v39  ;;  %v1704_v44 = vsel %vm3080_vm14, %v622_v34, 0.0  ;;  %v886_v46 = vmul.u32 24, %v885_v29  ;;  %v2397_v39 = vld [vmem:[%s2687_s17 + $0x58] sm:$0xff]  }
  0x68   : > { %v675_v23 = vadd.s32 152, %v2670_v1  ;;  %v1705_v47 = vsel %vm3085_vm15, %v623_v43, 0.0  ;;  %v897_v49 = vmul.u32 24, %v896_v10  ;;  %v438_v52 = vmin.f32 %v3093_v33, 0.0 }
  0x69   : > { %v2223_v30 = vunpack.c.h.bf16 %v3077_v18  ;;  %v2310_v53 = vpack.c.bf16 %v1705_v47, %v1704_v44  ;;  %v887_v31 = vsub.s32 %v672_v61, %v886_v46  ;;  %v439_v54 = vmin.f32 %v3102_v40, 0.0 }
  0x6a   : > { %v292_v24 = vmul.f32 %v2222_v7, %v2700_v12  ;;  %v898_v55 = vsub.s32 %v673_v5, %v897_v49  ;;  %v503_v37 = vmul.f32 1.442695, %v438_v52  ;;  %vm391_vm10 = vcmp.gt.f32.partialorder %v3093_v33, 0.0 }
  0x6b   : > { %v3117_v22 = vmul.u32.u64.low 2863311531, %v674_v42  ;;  %v3118_v56 = vmul.u32.u64.high 2863311531, %v674_v42, %v3117_v22  ;;  %2415 = vst [vmem:[%s2845_s24 + $0x38] sm:$0xff] %v2310_v53   ;;  %vm1236_vm2 = vcmp.ne.s32.totalorder %v887_v31, 0  ;;  %vm1283_vm3 = vcmp.lt.s32.totalorder %v887_v31, 0 }
  0x6c   : > { %v1377_v32 = vadd.s32 24, %v887_v31  ;;  %v505_v57 = vmul.f32 1.442695, %v439_v54  ;;  %vm1237_vm4 = vcmp.ne.s32.totalorder %v898_v55, 0  ;;  %vm1284_vm5 = vcmp.lt.s32.totalorder %v898_v55, 0  ;;  %vm1330_vm6 = vmand %vm1283_vm3, %vm1236_vm2 }
  0x6d   : > { %v1378_v45 = vadd.s32 24, %v898_v55  ;;  %2570 = vpow2.f32 %v503_v37  ;;  %v2567_v51 = vpop.eup %2566  ;;  %vm1331_vm7 = vmand %vm1284_vm5, %vm1237_vm4  ;;  %v3121_v60 = vmul.u32.u64.low 2863311531, %v675_v23  ;;  %v3122_v61 = vmul.u32.u64.high 2863311531, %v675_v23, %v3121_v60 }
  0x6e   : > { %v1424_v59 = vsel %vm1330_vm6, %v1377_v32, %v887_v31  ;;  %2572 = vpow2.f32 %v505_v57  ;;  %v2569_v62 = vpop.eup %2568  ;;  %v2053_v63 = vadd.f32 -1.0, %v2567_v51  ;;  %v907_v3 = vshrl.u32 %v3118_v56, 4  ;;  %v2398_v56 = vld [vmem:[%s2687_s17 + $0x60] sm:$0xff]  }
  0x6f   : > { %v1425_v41 = vsel %vm1331_vm7, %v1378_v45, %v898_v55  ;;  %vm3124_vm8 = vcmp.lt.s32.totalorder %v1424_v59, 16  ;;  %v2054_v35 = vadd.f32 -1.0, %v2569_v62  ;;  %v293_v5 = vmul.f32 %v2223_v30, %v2700_v12 }
  0x70   : > { %vm3129_vm9 = vcmp.lt.s32.totalorder %v1425_v41, 16  ;;  %v3135_v6 = vadd.f32 %v2710_v20, %v292_v24  ;;  %v624_v36 = vsel %vm389_vm0, %v3046_v58, %v2053_v63  ;;  %v908_v8 = vmul.u32 24, %v907_v3 }
  0x71   : > { %v676_v9 = vadd.s32 160, %v2670_v1  ;;  %v625_v11 = vsel %vm390_vm1, %v3049_v50, %v2054_v35  ;;  %v1706_v13 = vsel %vm3124_vm8, %v624_v36, 0.0  ;;  %v918_v14 = vshrl.u32 %v3122_v61, 4 }
  0x72   : > { %v3149_v48 = vadd.f32 %v2710_v20, %v293_v5  ;;  %v1707_v58 = vsel %vm3129_vm9, %v625_v11, 0.0  ;;  %v909_v15 = vsub.s32 %v674_v42, %v908_v8  ;;  %v440_v16 = vmin.f32 %v3135_v6, 0.0 }
  0x73   : > { %v677_v17 = vadd.s32 168, %v2670_v1  ;;  %v2315_v0 = vpack.c.bf16 %v1707_v58, %v1706_v13  ;;  %vm392_vm11 = vcmp.gt.f32.partialorder %v3102_v40, 0.0  ;;  %v919_v50 = vmul.u32 24, %v918_v14  ;;  %v3212_v14 = vld [vmem:[%s3743_s1] ss:$0 sm:$0xff] }
  0x74   : > { %v441_v18 = vmin.f32 %v3149_v48, 0.0  ;;  %vm1238_vm12 = vcmp.ne.s32.totalorder %v909_v15, 0  ;;  %vm1285_vm13 = vcmp.lt.s32.totalorder %v909_v15, 0  ;;  %v1379_v19 = vadd.s32 24, %v909_v15 }
  0x75   : > { %v507_v21 = vmul.f32 1.442695, %v440_v16  ;;  %2416 = vst [vmem:[%s2845_s24 + $0x40] sm:$0xff] %v2315_v0   ;;  %v920_v25 = vsub.s32 %v675_v23, %v919_v50  ;;  %vm3158_vm14 = vmand %vm1285_vm13, %vm1238_vm12  ;;  %v3162_v2 = vmul.u32.u64.low 2863311531, %v676_v9  ;;  %v3163_v28 = vmul.u32.u64.high 2863311531, %v676_v9, %v3162_v2 }
  0x76   : > { %v509_v27 = vmul.f32 1.442695, %v441_v18  ;;  %v1426_v7 = vsel %vm3158_vm14, %v1379_v19, %v909_v15  ;;  %v3168_v34 = vmul.u32.u64.low 2863311531, %v677_v17  ;;  %v3169_v10 = vmul.u32.u64.high 2863311531, %v677_v17, %v3168_v34  ;;  %v3230_v2 = vld [vmem:[%s3744_s2] ss:$0 sm:$0xff] }
  0x77   : > { %v2571_v29 = vpop.eup %2570  ;;  %2574 = vpow2.f32 %v507_v21  ;;  %vm1239_vm15 = vcmp.ne.s32.totalorder %v920_v25, 0  ;;  %vm1286_vm0 = vcmp.lt.s32.totalorder %v920_v25, 0  ;;  %v1380_v44 = vadd.s32 24, %v920_v25 }
  0x78   : > { %v2573_v42 = vpop.eup %2572  ;;  %v2055_v43 = vadd.f32 -1.0, %v2571_v29  ;;  %vm1333_vm1 = vmand %vm1286_vm0, %vm1239_vm15  ;;  %vm3171_vm2 = vcmp.lt.s32.totalorder %v1426_v7, 16  ;;  %2576 = vpow2.f32 %v509_v27  ;;  %v2226_v47 = vunpack.c.l.bf16 %v2397_v39  ;;  %v2399_v7 = vld [vmem:[%s2687_s17 + $0x68] sm:$0xff]  }
  0x79   : > { %v2056_v46 = vadd.f32 -1.0, %v2573_v42  ;;  %v1427_v52 = vsel %vm1333_vm1, %v1380_v44, %v920_v25  ;;  %v929_v30 = vshrl.u32 %v3163_v28, 4  ;;  %v2227_v53 = vunpack.c.h.bf16 %v2397_v39 }
  0x7a   : > { %v626_v49 = vsel %vm391_vm10, %v3093_v33, %v2055_v43  ;;  %vm1474_vm3 = vcmp.lt.s32.totalorder %v1427_v52, 16  ;;  %v940_v24 = vshrl.u32 %v3169_v10, 4  ;;  %v294_v22 = vmul.f32 %v2226_v47, %v2700_v12 }
  0x7b   : > { %v627_v31 = vsel %vm392_vm11, %v3102_v40, %v2056_v46  ;;  %v1708_v54 = vsel %vm3171_vm2, %v626_v49, 0.0  ;;  %v930_v37 = vmul.u32 24, %v929_v30  ;;  %v295_v33 = vmul.f32 %v2227_v53, %v2700_v12 }
  0x7c   : > { %v1709_v55 = vsel %vm1474_vm3, %v627_v31, 0.0  ;;  %vm393_vm4 = vcmp.gt.f32.partialorder %v3135_v6, 0.0  ;;  %v941_v57 = vmul.u32 24, %v940_v24  ;;  %v678_v40 = vadd.s32 176, %v2670_v1 }
  0x7d   : > { %v2320_v32 = vpack.c.bf16 %v1709_v55, %v1708_v54  ;;  %vm394_vm5 = vcmp.gt.f32.partialorder %v3149_v48, 0.0  ;;  %v931_v45 = vsub.s32 %v676_v9, %v930_v37  ;;  %v3192_v51 = vadd.f32 %v2710_v20, %v294_v22 }
  0x7e   : > { %v3195_v59 = vadd.f32 %v2710_v20, %v295_v33  ;;  %v942_v60 = vsub.s32 %v677_v17, %v941_v57  ;;  %v3198_v61 = vmul.u32.u64.low 2863311531, %v678_v40  ;;  %v3199_v12 = vmul.u32.u64.high 2863311531, %v678_v40, %v3198_v61 }
  0x7f   : > { %2417 = vst [vmem:[%s2845_s24 + $0x48] sm:$0xff] %v2320_v32   ;;  %v2230_v62 = vunpack.c.l.bf16 %v2398_v56  ;;  %vm1240_vm6 = vcmp.ne.s32.totalorder %v931_v45, 0  ;;  %vm1287_vm7 = vcmp.lt.s32.totalorder %v931_v45, 0  ;;  %v1381_v63 = vadd.s32 24, %v931_v45 }
  0x80   : > { %v679_v41 = vadd.s32 184, %v2670_v1  ;;  %vm1241_vm8 = vcmp.ne.s32.totalorder %v942_v60, 0  ;;  %vm1288_vm9 = vcmp.lt.s32.totalorder %v942_v60, 0  ;;  %vm1334_vm10 = vmand %vm1287_vm7, %vm1240_vm6  ;;  %v1382_v3 = vadd.s32 24, %v942_v60 }
  0x81   : > { %v2575_v38 = vpop.eup %2574  ;;  %v2231_v35 = vunpack.c.h.bf16 %v2398_v56  ;;  %vm1335_vm11 = vmand %vm1288_vm9, %vm1241_vm8  ;;  %v1428_v20 = vsel %vm1334_vm10, %v1381_v63, %v931_v45  ;;  %v442_v5 = vmin.f32 %v3192_v51, 0.0  ;;  %v443_v36 = vmin.f32 %v3195_v59, 0.0 }
  0x82   : > { %v2057_v4 = vadd.f32 -1.0, %v2575_v38  ;;  %v2577_v8 = vpop.eup %2576  ;;  %v1429_v9 = vsel %vm1335_vm11, %v1382_v3, %v942_v60  ;;  %vm3204_vm12 = vcmp.lt.s32.totalorder %v1428_v20, 16  ;;  %v951_v13 = vshrl.u32 %v3199_v12, 4  ;;  %v2400_v38 = vld [vmem:[%s2687_s17 + $0x70] sm:$0xff]  }
  0x83   : > { %v296_v58 = vmul.f32 %v3212_v14, %v2230_v62  ;;  %v2058_v15 = vadd.f32 -1.0, %v2577_v8  ;;  %vm1476_vm13 = vcmp.lt.s32.totalorder %v1429_v9, 16  ;;  %v511_v17 = vmul.f32 1.442695, %v442_v5 }
  0x84   : > { %v628_v16 = vsel %vm393_vm4, %v3135_v6, %v2057_v4  ;;  %v513_v50 = vmul.f32 1.442695, %v443_v36  ;;  %v952_v18 = vmul.u32 24, %v951_v13  ;;  %v297_v19 = vmul.f32 %v3212_v14, %v2231_v35 }
  0x85   : > { %v1710_v0 = vsel %vm3204_vm12, %v628_v16, 0.0  ;;  %v629_v21 = vsel %vm394_vm5, %v3149_v48, %v2058_v15  ;;  %2578 = vpow2.f32 %v511_v17  ;;  %v3233_v28 = vadd.f32 %v3230_v2, %v296_v58 }
  0x86   : > { %v3224_v25 = vmul.u32.u64.low 2863311531, %v679_v41  ;;  %v3225_v26 = vmul.u32.u64.high 2863311531, %v679_v41, %v3224_v25  ;;  %v1711_v6 = vsel %vm1476_vm13, %v629_v21, 0.0  ;;  %2580 = vpow2.f32 %v513_v50 }
  0x87   : > { %v953_v27 = vsub.s32 %v678_v40, %v952_v18  ;;  %v2325_v39 = vpack.c.bf16 %v1711_v6, %v1710_v0  ;;  %v3236_v29 = vadd.f32 %v3230_v2, %v297_v19  ;;  %v680_v48 = vadd.s32 192, %v2670_v1 }
  0x88   : > { %v681_v10 = vadd.s32 200, %v2670_v1  ;;  %v962_v42 = vshrl.u32 %v3225_v26, 4  ;;  %v444_v44 = vmin.f32 %v3233_v28, 0.0  ;;  %v2234_v52 = vunpack.c.l.bf16 %v2399_v7 }
  0x89   : > { %vm1242_vm14 = vcmp.ne.s32.totalorder %v953_v27, 0  ;;  %vm1289_vm15 = vcmp.lt.s32.totalorder %v953_v27, 0  ;;  %v1383_v34 = vadd.s32 24, %v953_v27  ;;  %2418 = vst [vmem:[%s2845_s24 + $0x50] sm:$0xff] %v2325_v39   ;;  %v445_v46 = vmin.f32 %v3236_v29, 0.0 }
  0x8a   : > { %vm3243_vm0 = vmand %vm1289_vm15, %vm1242_vm14  ;;  %v3251_v47 = vmul.u32.u64.low 2863311531, %v680_v48  ;;  %v3252_v49 = vmul.u32.u64.high 2863311531, %v680_v48, %v3251_v47  ;;  %vm395_vm1 = vcmp.gt.f32.partialorder %v3192_v51, 0.0  ;;  %v963_v30 = vmul.u32 24, %v962_v42 }
  0x8b   : > { %v1430_v23 = vsel %vm3243_vm0, %v1383_v34, %v953_v27  ;;  %v515_v53 = vmul.f32 1.442695, %v444_v44  ;;  %v517_v31 = vmul.f32 1.442695, %v445_v46  ;;  %v2235_v55 = vunpack.c.h.bf16 %v2399_v7 }
  0x8c   : > { %v3255_v54 = vmul.u32.u64.low 2863311531, %v681_v10  ;;  %v3256_v24 = vmul.u32.u64.high 2863311531, %v681_v10, %v3255_v54  ;;  %v298_v37 = vmul.f32 %v3212_v14, %v2234_v52  ;;  %vm396_vm2 = vcmp.gt.f32.partialorder %v3195_v59, 0.0 }
  0x8d   : > { %v964_v22 = vsub.s32 %v679_v41, %v963_v30  ;;  %vm3260_vm3 = vcmp.lt.s32.totalorder %v1430_v23, 16  ;;  %2582 = vpow2.f32 %v515_v53  ;;  %v973_v56 = vshrl.u32 %v3252_v49, 4  ;;  %v2401_v53 = vld [vmem:[%s2687_s17 + $0x78] sm:$0xff]  }
  0x8e   : > { %2584 = vpow2.f32 %v517_v31  ;;  %v299_v32 = vmul.f32 %v3212_v14, %v2235_v55  ;;  %v3267_v57 = vadd.f32 %v3230_v2, %v298_v37  ;;  %vm397_vm6 = vcmp.gt.f32.partialorder %v3233_v28, 0.0 }
  0x8f   : > { %v2579_v40 = vpop.eup %2578  ;;  %vm1243_vm4 = vcmp.ne.s32.totalorder %v964_v22, 0  ;;  %vm1290_vm5 = vcmp.lt.s32.totalorder %v964_v22, 0  ;;  %v1384_v45 = vadd.s32 24, %v964_v22  ;;  %v3271_v60 = vadd.s32 208, %v2670_v1 }
  0x90   : > { %v2581_v61 = vpop.eup %2580  ;;  %v2059_v12 = vadd.f32 -1.0, %v2579_v40  ;;  %vm1337_vm7 = vmand %vm1290_vm5, %vm1243_vm4  ;;  %vm398_vm8 = vcmp.gt.f32.partialorder %v3236_v29, 0.0  ;;  %v974_v62 = vmul.u32 24, %v973_v56  ;;  %v984_v63 = vshrl.u32 %v3256_v24, 4 }
  0x91   : > { %v3276_v41 = vadd.f32 %v3230_v2, %v299_v32  ;;  %v2060_v3 = vadd.f32 -1.0, %v2581_v61  ;;  %v1431_v35 = vsel %vm1337_vm7, %v1384_v45, %v964_v22  ;;  %v446_v4 = vmin.f32 %v3267_v57, 0.0 }
  0x92   : > { %v3281_v20 = vadd.s32 216, %v2670_v1  ;;  %v630_v5 = vsel %vm395_vm1, %v3192_v51, %v2059_v12  ;;  %vm1478_vm9 = vcmp.lt.s32.totalorder %v1431_v35, 16  ;;  %v975_v36 = vsub.s32 %v680_v48, %v974_v62 }
  0x93   : > { %v985_v8 = vmul.u32 24, %v984_v63  ;;  %v631_v9 = vsel %vm396_vm2, %v3195_v59, %v2060_v3  ;;  %v1712_v11 = vsel %vm3260_vm3, %v630_v5, 0.0  ;;  %v447_v13 = vmin.f32 %v3276_v41, 0.0 }
  0x94   : > { %v2238_v58 = vunpack.c.l.bf16 %v2400_v38  ;;  %v1713_v15 = vsel %vm1478_vm9, %v631_v9, 0.0  ;;  %vm1244_vm10 = vcmp.ne.s32.totalorder %v975_v36, 0  ;;  %vm1291_vm11 = vcmp.lt.s32.totalorder %v975_v36, 0 }
  0x95   : > { %v986_v16 = vsub.s32 %v681_v10, %v985_v8  ;;  %v2330_v17 = vpack.c.bf16 %v1713_v15, %v1712_v11  ;;  %vm3292_vm12 = vmand %vm1291_vm11, %vm1244_vm10  ;;  %v1385_v0 = vadd.s32 24, %v975_v36  ;;  %v519_v50 = vmul.f32 1.442695, %v446_v4 }
  0x96   : > { %v521_v18 = vmul.f32 1.442695, %v447_v13  ;;  %v2239_v19 = vunpack.c.h.bf16 %v2400_v38  ;;  %v3300_v26 = vmul.u32.u64.low 2863311531, %v3271_v60  ;;  %v3301_v6 = vmul.u32.u64.high 2863311531, %v3271_v60, %v3300_v26 }
  0x97   : > { %vm1245_vm13 = vcmp.ne.s32.totalorder %v986_v16, 0  ;;  %vm1292_vm14 = vcmp.lt.s32.totalorder %v986_v16, 0  ;;  %v1386_v59 = vadd.s32 24, %v986_v16  ;;  %v2583_v21 = vpop.eup %2582  ;;  %2419 = vst [vmem:[%s2845_s24 + $0x58] sm:$0xff] %v2330_v17   ;;  %v1432_v25 = vsel %vm3292_vm12, %v1385_v0, %v975_v36 }
  0x98   : > { %vm1339_vm15 = vmand %vm1292_vm14, %vm1245_vm13  ;;  %2586 = vpow2.f32 %v519_v50  ;;  %v2585_v27 = vpop.eup %2584  ;;  %v2061_v39 = vadd.f32 -1.0, %v2583_v21  ;;  %vm3303_vm0 = vcmp.lt.s32.totalorder %v1432_v25, 16  ;;  %vm399_vm2 = vcmp.gt.f32.partialorder %v3267_v57, 0.0 }
  0x99   : > { %v1433_v48 = vsel %vm1339_vm15, %v1386_v59, %v986_v16  ;;  %2588 = vpow2.f32 %v521_v18  ;;  %v2062_v34 = vadd.f32 -1.0, %v2585_v27  ;;  %v300_v46 = vmul.f32 %v3212_v14, %v2238_v58 }
  0x9a   : > { %vm3307_vm1 = vcmp.lt.s32.totalorder %v1433_v48, 16  ;;  %v3312_v42 = vmul.u32.u64.low 2863311531, %v3281_v20  ;;  %v3313_v43 = vmul.u32.u64.high 2863311531, %v3281_v20, %v3312_v42  ;;  %v632_v44 = vsel %vm397_vm6, %v3233_v28, %v2061_v39 }
  0x9b   : > { %v301_v23 = vmul.f32 %v3212_v14, %v2239_v19  ;;  %v633_v47 = vsel %vm398_vm8, %v3236_v29, %v2062_v34  ;;  %v1714_v49 = vsel %vm3303_vm0, %v632_v44, 0.0  ;;  %v995_v52 = vshrl.u32 %v3301_v6, 4 }
  0x9c   : > { %v684_v30 = vadd.s32 224, %v2670_v1  ;;  %v1715_v28 = vsel %vm3307_vm1, %v633_v47, 0.0  ;;  %v3332_v31 = vadd.f32 %v3230_v2, %v300_v46  ;;  %v685_v29 = vadd.s32 232, %v2670_v1 }
  0x9d   : > { %v3335_v54 = vadd.f32 %v3230_v2, %v301_v23  ;;  %v2335_v24 = vpack.c.bf16 %v1715_v28, %v1714_v49  ;;  %vm400_vm3 = vcmp.gt.f32.partialorder %v3276_v41, 0.0  ;;  %v996_v55 = vmul.u32 24, %v995_v52 }
  0x9e   : > { %v1006_v37 = vshrl.u32 %v3313_v43, 4  ;;  %v448_v22 = vmin.f32 %v3332_v31, 0.0  ;;  %v2242_v56 = vunpack.c.l.bf16 %v2401_v53  ;;  %v2243_v32 = vunpack.c.h.bf16 %v2401_v53  ;;  %v2402_v43 = vld [vmem:[%s2687_s17 + $0x80] sm:$0xff]  }
  0x9f   : > { %v449_v33 = vmin.f32 %v3335_v54, 0.0  ;;  %2420 = vst [vmem:[%s2845_s24 + $0x60] sm:$0xff] %v2335_v24   ;;  %v997_v40 = vsub.s32 %v3271_v60, %v996_v55  ;;  %v3344_v61 = vmul.u32.u64.low 2863311531, %v684_v30  ;;  %v3345_v12 = vmul.u32.u64.high 2863311531, %v684_v30, %v3344_v61 }
  0xa0   : > { %v1007_v45 = vmul.u32 24, %v1006_v37  ;;  %v523_v62 = vmul.f32 1.442695, %v448_v22  ;;  %v3347_v38 = vmul.u32.u64.low 2863311531, %v685_v29  ;;  %v3348_v3 = vmul.u32.u64.high 2863311531, %v685_v29, %v3347_v38 }
  0xa1   : > { %v525_v63 = vmul.f32 1.442695, %v449_v33  ;;  %vm1246_vm4 = vcmp.ne.s32.totalorder %v997_v40, 0  ;;  %vm1293_vm5 = vcmp.lt.s32.totalorder %v997_v40, 0  ;;  %v1387_v5 = vadd.s32 24, %v997_v40 }
  0xa2   : > { %v2587_v35 = vpop.eup %2586  ;;  %v1008_v4 = vsub.s32 %v3281_v20, %v1007_v45  ;;  %vm3351_vm6 = vmand %vm1293_vm5, %vm1246_vm4  ;;  %2590 = vpow2.f32 %v523_v62  ;;  %v302_v60 = vmul.f32 %v3212_v14, %v2242_v56  ;;  %v303_v11 = vmul.f32 %v3212_v14, %v2243_v32 }
  0xa3   : > { %v2589_v36 = vpop.eup %2588  ;;  %v2063_v8 = vadd.f32 -1.0, %v2587_v35  ;;  %v1434_v15 = vsel %vm3351_vm6, %v1387_v5, %v997_v40  ;;  %2592 = vpow2.f32 %v525_v63  ;;  %v1017_v16 = vshrl.u32 %v3345_v12, 4  ;;  %v2403_v5 = vld [vmem:[%s2687_s17 + $0x88] sm:$0xff]  }
  0xa4   : > { %v2064_v13 = vadd.f32 -1.0, %v2589_v36  ;;  %vm1247_vm7 = vcmp.ne.s32.totalorder %v1008_v4, 0  ;;  %vm1294_vm8 = vcmp.lt.s32.totalorder %v1008_v4, 0  ;;  %v1388_v58 = vadd.s32 24, %v1008_v4 }
  0xa5   : > { %v634_v20 = vsel %vm399_vm2, %v3267_v57, %v2063_v8  ;;  %vm1341_vm9 = vmand %vm1294_vm8, %vm1247_vm7  ;;  %vm1481_vm10 = vcmp.lt.s32.totalorder %v1434_v15, 16  ;;  %v1028_v0 = vshrl.u32 %v3348_v3, 4  ;;  %v1018_v18 = vmul.u32 24, %v1017_v16 }
  0xa6   : > { %v635_v17 = vsel %vm400_vm3, %v3276_v41, %v2064_v13  ;;  %v1435_v51 = vsel %vm1341_vm9, %v1388_v58, %v1008_v4  ;;  %v1716_v50 = vsel %vm1481_vm10, %v634_v20, 0.0  ;;  %v3368_v57 = vadd.f32 %v3230_v2, %v302_v60 }
  0xa7   : > { %vm1482_vm11 = vcmp.lt.s32.totalorder %v1435_v51, 16  ;;  %vm401_vm12 = vcmp.gt.f32.partialorder %v3332_v31, 0.0  ;;  %v1029_v19 = vmul.u32 24, %v1028_v0  ;;  %v3372_v21 = vadd.f32 %v3230_v2, %v303_v11 }
  0xa8   : > { %v1717_v59 = vsel %vm1482_vm11, %v635_v17, 0.0  ;;  %v1019_v41 = vsub.s32 %v684_v30, %v1018_v18  ;;  %v450_v26 = vmin.f32 %v3368_v57, 0.0  ;;  %v686_v6 = vadd.s32 240, %v2670_v1 }
  0xa9   : > { %v2340_v25 = vpack.c.bf16 %v1717_v59, %v1716_v50  ;;  %vm402_vm13 = vcmp.gt.f32.partialorder %v3335_v54, 0.0  ;;  %v1030_v27 = vsub.s32 %v685_v29, %v1029_v19  ;;  %v451_v39 = vmin.f32 %v3372_v21, 0.0 }
  0xaa   : > { %v687_v48 = vadd.s32 248, %v2670_v1  ;;  %vm1248_vm14 = vcmp.ne.s32.totalorder %v1019_v41, 0  ;;  %vm1295_vm15 = vcmp.lt.s32.totalorder %v1019_v41, 0  ;;  %v1389_v7 = vadd.s32 24, %v1019_v41 }
  0xab   : > { %2421 = vst [vmem:[%s2845_s24 + $0x68] sm:$0xff] %v2340_v25   ;;  %v527_v34 = vmul.f32 1.442695, %v450_v26  ;;  %vm1249_vm0 = vcmp.ne.s32.totalorder %v1030_v27, 0  ;;  %vm1296_vm1 = vcmp.lt.s32.totalorder %v1030_v27, 0  ;;  %vm1342_vm2 = vmand %vm1295_vm15, %vm1248_vm14  ;;  %v1390_v10 = vadd.s32 24, %v1030_v27 }
  0xac   : > { %v529_v42 = vmul.f32 1.442695, %v451_v39  ;;  %v2591_v44 = vpop.eup %2590  ;;  %vm1343_vm3 = vmand %vm1296_vm1, %vm1249_vm0  ;;  %v1436_v46 = vsel %vm1342_vm2, %v1389_v7, %v1019_v41  ;;  %v3381_v23 = vmul.u32.u64.low 2863311531, %v686_v6  ;;  %v3382_v47 = vmul.u32.u64.high 2863311531, %v686_v6, %v3381_v23 }
  0xad   : > { %2594 = vpow2.f32 %v527_v34  ;;  %v2065_v49 = vadd.f32 -1.0, %v2591_v44  ;;  %v1437_v52 = vsel %vm1343_vm3, %v1390_v10, %v1030_v27  ;;  %vm3384_vm4 = vcmp.lt.s32.totalorder %v1436_v46, 16  ;;  %v2593_v53 = vpop.eup %2592 }
  0xae   : > { %2596 = vpow2.f32 %v529_v42  ;;  %vm3388_vm5 = vcmp.lt.s32.totalorder %v1437_v52, 16  ;;  %v3392_v29 = vmul.u32.u64.low 2863311531, %v687_v48  ;;  %v3393_v24 = vmul.u32.u64.high 2863311531, %v687_v48, %v3392_v29 }
  0xaf   : > { %v2246_v55 = vunpack.c.l.bf16 %v2402_v43  ;;  %v2066_v37 = vadd.f32 -1.0, %v2593_v53  ;;  %v636_v22 = vsel %vm401_vm12, %v3332_v31, %v2065_v49  ;;  %v2247_v33 = vunpack.c.h.bf16 %v2402_v43 }
  0xb0   : > { %v688_v56 = vadd.s32 256, %v2670_v1  ;;  %v1718_v32 = vsel %vm3384_vm4, %v636_v22, 0.0  ;;  %v1039_v40 = vshrl.u32 %v3382_v47, 4  ;;  %v3404_v61 = vadd.s32 264, %v2670_v1 }
  0xb1   : > { %v304_v45 = vmul.f32 %v3212_v14, %v2246_v55  ;;  %v637_v12 = vsel %vm402_vm13, %v3335_v54, %v2066_v37  ;;  %v305_v31 = vmul.f32 %v3212_v14, %v2247_v33  ;;  %v1050_v35 = vshrl.u32 %v3393_v24, 4 }
  0xb2   : > { %v3410_v62 = vmul.u32.u64.low 2863311531, %v688_v56  ;;  %v3411_v63 = vmul.u32.u64.high 2863311531, %v688_v56, %v3410_v62  ;;  %v1719_v38 = vsel %vm3388_vm5, %v637_v12, 0.0  ;;  %v1040_v3 = vmul.u32 24, %v1039_v40 }
  0xb3   : > { %v3417_v4 = vadd.f32 %v3230_v2, %v304_v45  ;;  %v2345_v36 = vpack.c.bf16 %v1719_v38, %v1718_v32  ;;  %v3421_v8 = vadd.f32 %v3230_v2, %v305_v31  ;;  %vm403_vm6 = vcmp.gt.f32.partialorder %v3368_v57, 0.0 }
  0xb4   : > { %v3424_v54 = vmul.u32.u64.low 2863311531, %v3404_v61  ;;  %v3425_v9 = vmul.u32.u64.high 2863311531, %v3404_v61, %v3424_v54  ;;  %v1041_v60 = vsub.s32 %v686_v6, %v1040_v3  ;;  %v1051_v11 = vmul.u32 24, %v1050_v35 }
  0xb5   : > { %v452_v13 = vmin.f32 %v3417_v4, 0.0  ;;  %2422 = vst [vmem:[%s2845_s24 + $0x70] sm:$0xff] %v2345_v36   ;;  %vm404_vm7 = vcmp.gt.f32.partialorder %v3372_v21, 0.0  ;;  %v453_v58 = vmin.f32 %v3421_v8, 0.0  ;;  %v1061_v20 = vshrl.u32 %v3411_v63, 4 }
  0xb6   : > { %v2250_v15 = vunpack.c.l.bf16 %v2403_v5  ;;  %v1052_v17 = vsub.s32 %v687_v48, %v1051_v11  ;;  %vm1250_vm8 = vcmp.ne.s32.totalorder %v1041_v60, 0  ;;  %vm1297_vm9 = vcmp.lt.s32.totalorder %v1041_v60, 0 }
  0xb7   : > { %v2595_v16 = vpop.eup %2594  ;;  %v1391_v51 = vadd.s32 24, %v1041_v60  ;;  %vm3433_vm10 = vmand %vm1297_vm9, %vm1250_vm8  ;;  %v531_v59 = vmul.f32 1.442695, %v452_v13  ;;  %v533_v19 = vmul.f32 1.442695, %v453_v58  ;;  %v1062_v25 = vmul.u32 24, %v1061_v20 }
  0xb8   : > { %v2597_v0 = vpop.eup %2596  ;;  %v2067_v50 = vadd.f32 -1.0, %v2595_v16  ;;  %vm1251_vm11 = vcmp.ne.s32.totalorder %v1052_v17, 0  ;;  %vm1298_vm12 = vcmp.lt.s32.totalorder %v1052_v17, 0  ;;  %v1392_v26 = vadd.s32 24, %v1052_v17 }
  0xb9   : > { %v2068_v41 = vadd.f32 -1.0, %v2597_v0  ;;  %vm1345_vm13 = vmand %vm1298_vm12, %vm1251_vm11  ;;  %v1438_v27 = vsel %vm3433_vm10, %v1391_v51, %v1041_v60  ;;  %2598 = vpow2.f32 %v531_v59  ;;  %v1063_v39 = vsub.s32 %v688_v56, %v1062_v25 }
  0xba   : > { %v638_v6 = vsel %vm403_vm6, %v3368_v57, %v2067_v50  ;;  %v1439_v7 = vsel %vm1345_vm13, %v1392_v26, %v1052_v17  ;;  %vm1485_vm14 = vcmp.lt.s32.totalorder %v1438_v27, 16  ;;  %2600 = vpow2.f32 %v533_v19  ;;  %v2404_v57 = vld [vmem:[%s2687_s17 + $0x90] sm:$0xff]   ;;  %v2405_v27 = vld [vmem:[%s2687_s17 + $0x98] sm:$0xff]  }
  0xbb   : > { %v639_v48 = vsel %vm404_vm7, %v3372_v21, %v2068_v41  ;;  %vm1486_vm15 = vcmp.lt.s32.totalorder %v1439_v7, 16  ;;  %v1720_v34 = vsel %vm1485_vm14, %v638_v6, 0.0  ;;  %v1072_v10 = vshrl.u32 %v3425_v9, 4 }
  0xbc   : > { %vm1252_vm0 = vcmp.ne.s32.totalorder %v1063_v39, 0  ;;  %v1721_v42 = vsel %vm1486_vm15, %v639_v48, 0.0  ;;  %vm1299_vm1 = vcmp.lt.s32.totalorder %v1063_v39, 0  ;;  %v1393_v43 = vadd.s32 24, %v1063_v39 }
  0xbd   : > { %v2251_v44 = vunpack.c.h.bf16 %v2403_v5  ;;  %v2350_v46 = vpack.c.bf16 %v1721_v42, %v1720_v34  ;;  %v1073_v23 = vmul.u32 24, %v1072_v10  ;;  %v306_v47 = vmul.f32 %v3212_v14, %v2250_v15  ;;  %vm3450_vm3 = vmand %vm1299_vm1, %vm1252_vm0 }
  0xbe   : > { %v690_v21 = vadd.s32 272, %v2670_v1  ;;  %vm405_vm2 = vcmp.gt.f32.partialorder %v3417_v4, 0.0  ;;  %v2254_v30 = vunpack.c.l.bf16 %v2404_v57  ;;  %v691_v29 = vadd.s32 280, %v2670_v1 }
  0xbf   : > { %v307_v52 = vmul.f32 %v3212_v14, %v2251_v44  ;;  %2423 = vst [vmem:[%s2845_s24 + $0x78] sm:$0xff] %v2350_v46   ;;  %v1074_v53 = vsub.s32 %v3404_v61, %v1073_v23  ;;  %v3458_v28 = vadd.f32 %v3230_v2, %v306_v47  ;;  %v2255_v24 = vunpack.c.h.bf16 %v2404_v57 }
  0xc0   : > { %v3464_v37 = vmul.u32.u64.low 2863311531, %v690_v21  ;;  %v3465_v22 = vmul.u32.u64.high 2863311531, %v690_v21, %v3464_v37  ;;  %v308_v33 = vmul.f32 %v3212_v14, %v2254_v30  ;;  %v1440_v32 = vsel %vm3450_vm3, %v1393_v43, %v1063_v39 }
  0xc1   : > { %v3462_v55 = vadd.f32 %v3230_v2, %v307_v52  ;;  %vm1253_vm4 = vcmp.ne.s32.totalorder %v1074_v53, 0  ;;  %vm1300_vm5 = vcmp.lt.s32.totalorder %v1074_v53, 0  ;;  %v1394_v56 = vadd.s32 24, %v1074_v53  ;;  %v2406_v37 = vld [vmem:[%s2687_s17 + $0xa0] sm:$0xff]  }
  0xc2   : > { %vm406_vm6 = vcmp.gt.f32.partialorder %v3421_v8, 0.0  ;;  %vm1347_vm7 = vmand %vm1300_vm5, %vm1253_vm4  ;;  %v454_v40 = vmin.f32 %v3458_v28, 0.0  ;;  %v309_v61 = vmul.f32 %v3212_v14, %v2255_v24  ;;  %v3478_v38 = vadd.f32 %v3230_v2, %v308_v33 }
  0xc3   : > { %v455_v45 = vmin.f32 %v3462_v55, 0.0  ;;  %v2599_v12 = vpop.eup %2598  ;;  %v1441_v31 = vsel %vm1347_vm7, %v1394_v56, %v1074_v53  ;;  %v3474_v62 = vmul.u32.u64.low 2863311531, %v691_v29  ;;  %v3475_v63 = vmul.u32.u64.high 2863311531, %v691_v29, %v3474_v62 }
  0xc4   : > { %v2601_v3 = vpop.eup %2600  ;;  %v2069_v35 = vadd.f32 -1.0, %v2599_v12  ;;  %vm3480_vm8 = vcmp.lt.s32.totalorder %v1440_v32, 16  ;;  %v535_v36 = vmul.f32 1.442695, %v454_v40  ;;  %vm3484_vm9 = vcmp.lt.s32.totalorder %v1441_v31, 16 }
  0xc5   : > { %v537_v54 = vmul.f32 1.442695, %v455_v45  ;;  %v2070_v9 = vadd.f32 -1.0, %v2601_v3  ;;  %v1083_v11 = vshrl.u32 %v3465_v22, 4  ;;  %v3490_v13 = vadd.f32 %v3230_v2, %v309_v61 }
  0xc6   : > { %v640_v58 = vsel %vm405_vm2, %v3417_v4, %v2069_v35  ;;  %2602 = vpow2.f32 %v535_v36  ;;  %v456_v20 = vmin.f32 %v3478_v38, 0.0  ;;  %v692_v15 = vadd.s32 288, %v2670_v1 }
  0xc7   : > { %v641_v16 = vsel %vm406_vm6, %v3421_v8, %v2070_v9  ;;  %v1722_v17 = vsel %vm3480_vm8, %v640_v58, 0.0  ;;  %2604 = vpow2.f32 %v537_v54  ;;  %v1084_v51 = vmul.u32 24, %v1083_v11 }
  0xc8   : > { %v1723_v0 = vsel %vm3484_vm9, %v641_v16, 0.0  ;;  %vm407_vm10 = vcmp.gt.f32.partialorder %v3458_v28, 0.0  ;;  %v1094_v4 = vshrl.u32 %v3475_v63, 4  ;;  %v457_v50 = vmin.f32 %v3490_v13, 0.0 }
  0xc9   : > { %v2355_v18 = vpack.c.bf16 %v1723_v0, %v1722_v17  ;;  %vm408_vm11 = vcmp.gt.f32.partialorder %v3462_v55, 0.0  ;;  %v1085_v8 = vsub.s32 %v690_v21, %v1084_v51  ;;  %v539_v59 = vmul.f32 1.442695, %v456_v20 }
  0xca   : > { %v693_v19 = vadd.s32 296, %v2670_v1  ;;  %v1095_v25 = vmul.u32 24, %v1094_v4  ;;  %v541_v41 = vmul.f32 1.442695, %v457_v50  ;;  %vm409_vm15 = vcmp.gt.f32.partialorder %v3478_v38, 0.0 }
  0xcb   : > { %v3509_v26 = vmul.u32.u64.low 2863311531, %v692_v15  ;;  %v3510_v6 = vmul.u32.u64.high 2863311531, %v692_v15, %v3509_v26  ;;  %2424 = vst [vmem:[%s2845_s24 + $0x80] sm:$0xff] %v2355_v18   ;;  %vm1254_vm12 = vcmp.ne.s32.totalorder %v1085_v8, 0  ;;  %vm1301_vm13 = vcmp.lt.s32.totalorder %v1085_v8, 0 }
  0xcc   : > { %v1395_v39 = vadd.s32 24, %v1085_v8  ;;  %2606 = vpow2.f32 %v539_v59  ;;  %v1096_v48 = vsub.s32 %v691_v29, %v1095_v25  ;;  %vm3514_vm14 = vmand %vm1301_vm13, %vm1254_vm12  ;;  %v2258_v57 = vunpack.c.l.bf16 %v2405_v27  ;;  %v2407_v26 = vld [vmem:[%s2687_s17 + $0xa8] sm:$0xff]  }
  0xcd   : > { %2608 = vpow2.f32 %v541_v41  ;;  %v3518_v34 = vmul.u32.u64.low 2863311531, %v693_v19  ;;  %v3519_v10 = vmul.u32.u64.high 2863311531, %v693_v19, %v3518_v34  ;;  %v2259_v42 = vunpack.c.h.bf16 %v2405_v27 }
  0xce   : > { %v3523_v43 = vadd.s32 304, %v2670_v1  ;;  %vm1255_vm0 = vcmp.ne.s32.totalorder %v1096_v48, 0  ;;  %vm1302_vm1 = vcmp.lt.s32.totalorder %v1096_v48, 0  ;;  %v1396_v44 = vadd.s32 24, %v1096_v48 }
  0xcf   : > { %v1442_v46 = vsel %vm3514_vm14, %v1395_v39, %v1085_v8  ;;  %vm3527_vm2 = vmand %vm1302_vm1, %vm1255_vm0  ;;  %vm410_vm3 = vcmp.gt.f32.partialorder %v3490_v13, 0.0  ;;  %v1105_v47 = vshrl.u32 %v3510_v6, 4  ;;  %v310_v21 = vmul.f32 %v3212_v14, %v2258_v57 }
  0xd0   : > { %v311_v49 = vmul.f32 %v3212_v14, %v2259_v42  ;;  %v2603_v52 = vpop.eup %2602  ;;  %v1443_v30 = vsel %vm3527_vm2, %v1396_v44, %v1096_v48  ;;  %v1116_v53 = vshrl.u32 %v3519_v10, 4  ;;  %vm3543_vm4 = vcmp.lt.s32.totalorder %v1442_v46, 16 }
  0xd1   : > { %v3539_v29 = vmul.u32.u64.low 2863311531, %v3523_v43  ;;  %v3540_v24 = vmul.u32.u64.high 2863311531, %v3523_v43, %v3539_v29  ;;  %v2605_v22 = vpop.eup %2604  ;;  %v2071_v33 = vadd.f32 -1.0, %v2603_v52  ;;  %v1106_v32 = vmul.u32 24, %v1105_v47 }
  0xd2   : > { %v3548_v40 = vadd.f32 %v3230_v2, %v310_v21  ;;  %v2072_v45 = vadd.f32 -1.0, %v2605_v22  ;;  %vm3550_vm5 = vcmp.lt.s32.totalorder %v1443_v30, 16  ;;  %v1117_v12 = vmul.u32 24, %v1116_v53 }
  0xd3   : > { %v3555_v31 = vadd.s32 312, %v2670_v1  ;;  %v642_v62 = vsel %vm407_vm10, %v3458_v28, %v2071_v33  ;;  %v1107_v63 = vsub.s32 %v692_v15, %v1106_v32  ;;  %v3561_v3 = vadd.f32 %v3230_v2, %v311_v49 }
  0xd4   : > { %v2262_v35 = vunpack.c.l.bf16 %v2406_v37  ;;  %v643_v5 = vsel %vm408_vm11, %v3462_v55, %v2072_v45  ;;  %v1724_v36 = vsel %vm3543_vm4, %v642_v62, 0.0  ;;  %v1118_v54 = vsub.s32 %v693_v19, %v1117_v12 }
  0xd5   : > { %v458_v9 = vmin.f32 %v3548_v40, 0.0  ;;  %v1725_v28 = vsel %vm3550_vm5, %v643_v5, 0.0  ;;  %vm1256_vm6 = vcmp.ne.s32.totalorder %v1107_v63, 0  ;;  %vm1303_vm7 = vcmp.lt.s32.totalorder %v1107_v63, 0 }
  0xd6   : > { %v2607_v60 = vpop.eup %2606  ;;  %v1397_v11 = vadd.s32 24, %v1107_v63  ;;  %v2360_v20 = vpack.c.bf16 %v1725_v28, %v1724_v36  ;;  %vm1257_vm8 = vcmp.ne.s32.totalorder %v1118_v54, 0  ;;  %vm1304_vm9 = vcmp.lt.s32.totalorder %v1118_v54, 0  ;;  %vm1350_vm10 = vmand %vm1303_vm7, %vm1256_vm6 }
  0xd7   : > { %v2609_v58 = vpop.eup %2608  ;;  %v2073_v15 = vadd.f32 -1.0, %v2607_v60  ;;  %vm1351_vm11 = vmand %vm1304_vm9, %vm1257_vm8  ;;  %v1398_v16 = vadd.s32 24, %v1118_v54  ;;  %v459_v51 = vmin.f32 %v3561_v3, 0.0  ;;  %v543_v4 = vmul.f32 1.442695, %v458_v9 }
  0xd8   : > { %v2074_v55 = vadd.f32 -1.0, %v2609_v58  ;;  %v1444_v17 = vsel %vm1350_vm10, %v1397_v11, %v1107_v63  ;;  %2425 = vst [vmem:[%s2845_s24 + $0x88] sm:$0xff] %v2360_v20   ;;  %v1127_v50 = vshrl.u32 %v3540_v24, 4  ;;  %v2263_v41 = vunpack.c.h.bf16 %v2406_v37 }
  0xd9   : > { %v644_v0 = vsel %vm409_vm15, %v3478_v38, %v2073_v15  ;;  %vm1491_vm12 = vcmp.lt.s32.totalorder %v1444_v17, 16  ;;  %v1445_v8 = vsel %vm1351_vm11, %v1398_v16, %v1118_v54  ;;  %v545_v19 = vmul.f32 1.442695, %v459_v51  ;;  %v2408_v17 = vld [vmem:[%s2687_s17 + $0xb0] sm:$0xff]  }
  0xda   : > { %v645_v18 = vsel %vm410_vm3, %v3490_v13, %v2074_v55  ;;  %v1726_v59 = vsel %vm1491_vm12, %v644_v0, 0.0  ;;  %vm1492_vm13 = vcmp.lt.s32.totalorder %v1445_v8, 16  ;;  %2610 = vpow2.f32 %v543_v4 }
  0xdb   : > { %v1128_v25 = vmul.u32 24, %v1127_v50  ;;  %v1727_v6 = vsel %vm1492_vm13, %v645_v18, 0.0  ;;  %2612 = vpow2.f32 %v545_v19  ;;  %v312_v13 = vmul.f32 %v3212_v14, %v2262_v35 }
  0xdc   : > { %v3582_v38 = vmul.u32.u64.low 2863311531, %v3555_v31  ;;  %v3583_v27 = vmul.u32.u64.high 2863311531, %v3555_v31, %v3582_v38  ;;  %v2365_v39 = vpack.c.bf16 %v1727_v6, %v1726_v59  ;;  %v313_v7 = vmul.f32 %v3212_v14, %v2263_v41 }
  0xdd   : > { %v1129_v48 = vsub.s32 %v3523_v43, %v1128_v25  ;;  %v696_v34 = vadd.s32 320, %v2670_v1  ;;  %v697_v10 = vadd.s32 328, %v2670_v1  ;;  %v2266_v57 = vunpack.c.l.bf16 %v2407_v26 }
  0xde   : > { %v2267_v42 = vunpack.c.h.bf16 %v2407_v26  ;;  %2426 = vst [vmem:[%s2845_s24 + $0x90] sm:$0xff] %v2365_v39   ;;  %v3592_v46 = vadd.f32 %v3230_v2, %v312_v13  ;;  %v1138_v23 = vshrl.u32 %v3583_v27, 4  ;;  %v3600_v47 = vadd.f32 %v3230_v2, %v313_v7 }
  0xdf   : > { %vm1258_vm14 = vcmp.ne.s32.totalorder %v1129_v48, 0  ;;  %vm1305_vm15 = vcmp.lt.s32.totalorder %v1129_v48, 0  ;;  %v1399_v44 = vadd.s32 24, %v1129_v48  ;;  %v314_v30 = vmul.f32 %v3212_v14, %v2266_v57 }
  0xe0   : > { %vm3595_vm0 = vmand %vm1305_vm15, %vm1258_vm14  ;;  %v3602_v21 = vmul.u32.u64.low 2863311531, %v696_v34  ;;  %v3603_v49 = vmul.u32.u64.high 2863311531, %v696_v34, %v3602_v21  ;;  %v460_v52 = vmin.f32 %v3592_v46, 0.0  ;;  %vm411_vm1 = vcmp.gt.f32.partialorder %v3548_v40, 0.0 }
  0xe1   : > { %v1139_v53 = vmul.u32 24, %v1138_v23  ;;  %v1446_v29 = vsel %vm3595_vm0, %v1399_v44, %v1129_v48  ;;  %v461_v24 = vmin.f32 %v3600_v47, 0.0  ;;  %v315_v56 = vmul.f32 %v3212_v14, %v2267_v42 }
  0xe2   : > { %v547_v37 = vmul.f32 1.442695, %v460_v52  ;;  %v3611_v22 = vmul.u32.u64.low 2863311531, %v697_v10  ;;  %v3612_v33 = vmul.u32.u64.high 2863311531, %v697_v10, %v3611_v22  ;;  %vm412_vm2 = vcmp.gt.f32.partialorder %v3561_v3, 0.0 }
  0xe3   : > { %v1140_v32 = vsub.s32 %v3555_v31, %v1139_v53  ;;  %v549_v45 = vmul.f32 1.442695, %v461_v24  ;;  %v1149_v61 = vshrl.u32 %v3603_v49, 4  ;;  %vm3618_vm3 = vcmp.lt.s32.totalorder %v1446_v29, 16 }
  0xe4   : > { %v2611_v12 = vpop.eup %2610  ;;  %2614 = vpow2.f32 %v547_v37  ;;  %v3623_v63 = vadd.f32 %v3230_v2, %v314_v30  ;;  %v3626_v35 = vadd.f32 %v3230_v2, %v315_v56  ;;  %vm413_vm7 = vcmp.gt.f32.partialorder %v3592_v46, 0.0  ;;  %v217_v30 = vld [vmem:[%s2687_s17 + $0xb8] sm:$0xf] }
  0xe5   : > { %v2613_v5 = vpop.eup %2612  ;;  %v2075_v36 = vadd.f32 -1.0, %v2611_v12  ;;  %vm1259_vm4 = vcmp.ne.s32.totalorder %v1140_v32, 0  ;;  %vm1306_vm5 = vcmp.lt.s32.totalorder %v1140_v32, 0  ;;  %v1400_v31 = vadd.s32 24, %v1140_v32 }
  0xe6   : > { %v2076_v54 = vadd.f32 -1.0, %v2613_v5  ;;  %vm1353_vm6 = vmand %vm1306_vm5, %vm1259_vm4  ;;  %2616 = vpow2.f32 %v549_v45  ;;  %v1150_v9 = vmul.u32 24, %v1149_v61  ;;  %v1160_v60 = vshrl.u32 %v3612_v33, 4 }
  0xe7   : > { %v646_v28 = vsel %vm411_vm1, %v3548_v40, %v2075_v36  ;;  %v1447_v11 = vsel %vm1353_vm6, %v1400_v31, %v1140_v32  ;;  %v698_v58 = vadd.s32 336, %v2670_v1  ;;  %v3635_v20 = vadd.s32 344, %v2670_v1 }
  0xe8   : > { %v647_v15 = vsel %vm412_vm2, %v3561_v3, %v2076_v54  ;;  %vm1494_vm8 = vcmp.lt.s32.totalorder %v1447_v11, 16  ;;  %v1728_v55 = vsel %vm3618_vm3, %v646_v28, 0.0  ;;  %v1151_v16 = vsub.s32 %v696_v34, %v1150_v9 }
  0xe9   : > { %v1729_v51 = vsel %vm1494_vm8, %v647_v15, 0.0  ;;  %v1161_v0 = vmul.u32 24, %v1160_v60  ;;  %v462_v40 = vmin.f32 %v3623_v63, 0.0  ;;  %v463_v4 = vmin.f32 %v3626_v35, 0.0  ;;  %v2630_v60 = vld [vmem:[%s3743_s1] ss:$0 sm:$0xff] }
  0xea   : > { %v2370_v50 = vpack.c.bf16 %v1729_v51, %v1728_v55  ;;  %vm1260_vm9 = vcmp.ne.s32.totalorder %v1151_v16, 0  ;;  %vm1307_vm10 = vcmp.lt.s32.totalorder %v1151_v16, 0  ;;  %v1401_v18 = vadd.s32 24, %v1151_v16 }
  0xeb   : > { %v1162_v8 = vsub.s32 %v697_v10, %v1161_v0  ;;  %vm1354_vm11 = vmand %vm1307_vm10, %vm1260_vm9  ;;  %v551_v3 = vmul.f32 1.442695, %v462_v40  ;;  %v553_v59 = vmul.f32 1.442695, %v463_v4  ;;  %v2270_v19 = vunpack.c.l.bf16 %v2408_v17 }
  0xec   : > { %2427 = vst [vmem:[%s2845_s24 + $0x98] sm:$0xff] %v2370_v50   ;;  %v1448_v25 = vsel %vm1354_vm11, %v1401_v18, %v1151_v16  ;;  %v3646_v41 = vmul.u32.u64.low 2863311531, %v698_v58  ;;  %v3647_v26 = vmul.u32.u64.high 2863311531, %v698_v58, %v3646_v41  ;;  %v2271_v6 = vunpack.c.h.bf16 %v2408_v17  ;;  %v2631_v16 = vld [vmem:[%s3744_s2] ss:$0 sm:$0xff] }
  0xed   : > { %vm1261_vm12 = vcmp.ne.s32.totalorder %v1162_v8, 0  ;;  %vm1308_vm13 = vcmp.lt.s32.totalorder %v1162_v8, 0  ;;  %v1402_v38 = vadd.s32 24, %v1162_v8  ;;  %vm3649_vm14 = vcmp.lt.s32.totalorder %v1448_v25, 16 }
  0xee   : > { %v2615_v39 = vpop.eup %2614  ;;  %vm3653_vm15 = vmand %vm1308_vm13, %vm1261_vm12  ;;  %2618 = vpow2.f32 %v551_v3  ;;  %v3658_v13 = vmul.u32.u64.low 2863311531, %v3635_v20  ;;  %v3659_v7 = vmul.u32.u64.high 2863311531, %v3635_v20, %v3658_v13  ;;  %v316_v34 = vmul.f32 %v3212_v14, %v2270_v19 }
  0xef   : > { %v2077_v10 = vadd.f32 -1.0, %v2615_v39  ;;  %v1449_v57 = vsel %vm3653_vm15, %v1402_v38, %v1162_v8  ;;  %2620 = vpow2.f32 %v553_v59  ;;  %v317_v42 = vmul.f32 %v3212_v14, %v2271_v6 }
  0xf0   : > { %v2617_v44 = vpop.eup %2616  ;;  %vm414_vm0 = vcmp.gt.f32.partialorder %v3600_v47, 0.0  ;;  %vm415_vm1 = vcmp.gt.f32.partialorder %v3623_v63, 0.0  ;;  %v1171_v23 = vshrl.u32 %v3647_v26, 4  ;;  %v3669_v43 = vadd.f32 %v3230_v2, %v316_v34 }
  0xf1   : > { %v2078_v21 = vadd.f32 -1.0, %v2617_v44  ;;  %v648_v49 = vsel %vm413_vm7, %v3592_v46, %v2077_v10  ;;  %vm3674_vm2 = vcmp.lt.s32.totalorder %v1449_v57, 16  ;;  %vm416_vm3 = vcmp.gt.f32.partialorder %v3626_v35, 0.0 }
  0xf2   : > { %v3680_v14 = vadd.f32 %v3230_v2, %v317_v42  ;;  %v1730_v53 = vsel %vm3649_vm14, %v648_v49, 0.0  ;;  %v1172_v29 = vmul.u32 24, %v1171_v23  ;;  %v1182_v24 = vshrl.u32 %v3659_v7, 4 }
  0xf3   : > { %v700_v37 = vadd.s32 352, %v2670_v1  ;;  %v649_v46 = vsel %vm414_vm0, %v3600_v47, %v2078_v21  ;;  %v464_v22 = vmin.f32 %v3669_v43, 0.0  ;;  %v701_v56 = vadd.s32 360, %v2670_v1 }
  0xf4   : > { %v465_v33 = vmin.f32 %v3680_v14, 0.0  ;;  %v1731_v2 = vsel %vm3674_vm2, %v649_v46, 0.0  ;;  %v1173_v32 = vsub.s32 %v698_v58, %v1172_v29  ;;  %v1183_v45 = vmul.u32 24, %v1182_v24 }
  0xf5   : > { %v264_v61 = vunpack.c.l.bf16 %v217_v30  ;;  %v2375_v12 = vpack.c.bf16 %v1731_v2, %v1730_v53  ;;  %v555_v62 = vmul.f32 1.442695, %v464_v22  ;;  %v3694_v36 = vadd.s32 368, %v2670_v1 }
  0xf6   : > { %v557_v5 = vmul.f32 1.442695, %v465_v33  ;;  %v1184_v47 = vsub.s32 %v3635_v20, %v1183_v45  ;;  %vm1262_vm4 = vcmp.ne.s32.totalorder %v1173_v32, 0  ;;  %vm1309_vm5 = vcmp.lt.s32.totalorder %v1173_v32, 0 }
  0xf7   : > { %v1403_v31 = vadd.s32 24, %v1173_v32  ;;  %2428 = vst [vmem:[%s2845_s24 + $0xa0] sm:$0xff] %v2375_v12   ;;  %vm1356_vm6 = vmand %vm1309_vm5, %vm1262_vm4  ;;  %2622 = vpow2.f32 %v555_v62  ;;  %v3698_v54 = vmul.u32.u64.low 2863311531, %v700_v37  ;;  %v3699_v9 = vmul.u32.u64.high 2863311531, %v700_v37, %v3698_v54 }
  0xf8   : > { %v318_v28 = vmul.f32 %v2630_v60, %v264_v61  ;;  %v2619_v11 = vpop.eup %2618  ;;  %vm1263_vm7 = vcmp.ne.s32.totalorder %v1184_v47, 0  ;;  %vm1310_vm8 = vcmp.lt.s32.totalorder %v1184_v47, 0  ;;  %v1404_v1 = vadd.s32 24, %v1184_v47 }
  0xf9   : > { %v1450_v58 = vsel %vm1356_vm6, %v1403_v31, %v1173_v32  ;;  %v2621_v20 = vpop.eup %2620  ;;  %v2079_v15 = vadd.f32 -1.0, %v2619_v11  ;;  %vm1357_vm9 = vmand %vm1310_vm8, %vm1263_vm7  ;;  %2624 = vpow2.f32 %v557_v5  ;;  %v1193_v18 = vshrl.u32 %v3699_v9, 4 }
  0xfa   : > { %vm3704_vm10 = vcmp.lt.s32.totalorder %v1450_v58, 16  ;;  %v372_v17 = vadd.f32 %v2631_v16, %v318_v28  ;;  %v2080_v51 = vadd.f32 -1.0, %v2621_v20  ;;  %v1451_v0 = vsel %vm1357_vm9, %v1404_v1, %v1184_v47 }
  0xfb   : > { %v3711_v40 = vmul.u32.u64.low 2863311531, %v701_v56  ;;  %v3712_v4 = vmul.u32.u64.high 2863311531, %v701_v56, %v3711_v40  ;;  %v650_v50 = vsel %vm415_vm1, %v3623_v63, %v2079_v15  ;;  %vm1498_vm11 = vcmp.lt.s32.totalorder %v1451_v0, 16 }
  0xfc   : > { %v651_v8 = vsel %vm416_vm3, %v3626_v35, %v2080_v51  ;;  %v1732_v3 = vsel %vm3704_vm10, %v650_v50, 0.0  ;;  %v466_v59 = vmin.f32 %v372_v17, 0.0  ;;  %v1194_v25 = vmul.u32 24, %v1193_v18 }
  0xfd   : > { %v1733_v19 = vsel %vm1498_vm11, %v651_v8, 0.0  ;;  %v3724_v41 = vmul.u32.u64.low 2863311531, %v3694_v36  ;;  %v3725_v26 = vmul.u32.u64.high 2863311531, %v3694_v36, %v3724_v41  ;;  %v1204_v63 = vshrl.u32 %v3712_v4, 4 }
  0xfe   : > { %v2380_v6 = vpack.c.bf16 %v1733_v19, %v1732_v3  ;;  %v559_v38 = vmul.f32 1.442695, %v466_v59  ;;  %v1195_v27 = vsub.s32 %v700_v37, %v1194_v25  ;;  %vm417_vm12 = vcmp.gt.f32.partialorder %v3669_v43, 0.0 }
  0xff   : > { %v1205_v39 = vmul.u32 24, %v1204_v63  ;;  %v1215_v13 = vshrl.u32 %v3725_v26, 4  ;;  %vm418_vm0 = vcmp.gt.f32.partialorder %v3680_v14, 0.0  ;;  %vm419_vm9 = vcmp.gt.f32.partialorder %v372_v17, 0.0 }
 0x100   : > { %2429 = vst [vmem:[%s2845_s24 + $0xa8] sm:$0xff] %v2380_v6   ;;  %2626 = vpow2.f32 %v559_v38  ;;  %vm1264_vm13 = vcmp.ne.s32.totalorder %v1195_v27, 0  ;;  %vm1311_vm14 = vcmp.lt.s32.totalorder %v1195_v27, 0  ;;  %v1405_v48 = vadd.s32 24, %v1195_v27 }
 0x101   : > { %v2623_v35 = vpop.eup %2622  ;;  %v1206_v34 = vsub.s32 %v701_v56, %v1205_v39  ;;  %vm1358_vm15 = vmand %vm1311_vm14, %vm1264_vm13  ;;  %v1216_v42 = vmul.u32 24, %v1215_v13 }
 0x102   : > { %v2081_v7 = vadd.f32 -1.0, %v2623_v35  ;;  %v1452_v57 = vsel %vm1358_vm15, %v1405_v48, %v1195_v27 }
 0x103   : > { %v2625_v10 = vpop.eup %2624  ;;  %vm1265_vm1 = vcmp.ne.s32.totalorder %v1206_v34, 0  ;;  %vm1312_vm2 = vcmp.lt.s32.totalorder %v1206_v34, 0  ;;  %v1406_v21 = vadd.s32 24, %v1206_v34  ;;  %vm1499_vm4 = vcmp.lt.s32.totalorder %v1452_v57, 16 }
 0x104   : > { %v2082_v44 = vadd.f32 -1.0, %v2625_v10  ;;  %v652_v23 = vsel %vm417_vm12, %v3669_v43, %v2081_v7  ;;  %vm1359_vm3 = vmand %vm1312_vm2, %vm1265_vm1  ;;  %v1217_v49 = vsub.s32 %v3694_v36, %v1216_v42 }
 0x105   : > { %v1734_v30 = vsel %vm1499_vm4, %v652_v23, 0.0  ;;  %v1453_v53 = vsel %vm1359_vm3, %v1406_v21, %v1206_v34 }
 0x106   : > { %v653_v52 = vsel %vm418_vm0, %v3680_v14, %v2082_v44  ;;  %vm1266_vm5 = vcmp.ne.s32.totalorder %v1217_v49, 0  ;;  %vm1313_vm6 = vcmp.lt.s32.totalorder %v1217_v49, 0  ;;  %v1407_v29 = vadd.s32 24, %v1217_v49 }
 0x107   : > { %vm1500_vm7 = vcmp.lt.s32.totalorder %v1453_v53, 16  ;;  %vm1360_vm8 = vmand %vm1313_vm6, %vm1266_vm5 }
 0x108   : > { %v1735_v24 = vsel %vm1500_vm7, %v653_v52, 0.0  ;;  %v1454_v43 = vsel %vm1360_vm8, %v1407_v29, %v1217_v49 }
 0x109   : > { %v2385_v46 = vpack.c.bf16 %v1735_v24, %v1734_v30  ;;  %vm1501_vm10 = vcmp.lt.s32.totalorder %v1454_v43, 16 }
 0x10a   : > { %v2627_v37 = vpop.eup %2626 }
 0x10b   : > { %v2083_v22 = vadd.f32 -1.0, %v2627_v37  ;;  %2430 = vst [vmem:[%s2845_s24 + $0xb0] sm:$0xff] %v2385_v46  }
 0x10d   : > { %v654_v33 = vsel %vm419_vm9, %v372_v17, %v2083_v22 }
 0x10e   : > { %v1736_v56 = vsel %vm1501_vm10, %v654_v33, 0.0 }
 0x10f   : > { %v2179_v2 = vpack.c.bf16 %v1736_v56, %v1736_v56 }
 0x111   : > { %1972 = vst [vmem:[%s2845_s24 + $0xb8] sm:$0xf] %v2179_v2 }
 0x112 PF: > { %s13_s12 = sadd.s32 1, %s2638_s12  }
 0x113   : > { %p10_p4 = scmp.ge.s32.totalorder %s13_s12, 4  }
 0x115   :  { %12 = sbr.rel (!%p10_p4) target bundleno = 1 (0x1), region = 62 }

// kernel: double_conv.4
= control target key start
LH: loop header
LB: loop body
LE: loop exit
PB: predicated region body
PF: predicated region fallthrough
CT: control target
= control target key end

     0   :  { %s4224_s12 = smov 0   ;;  %s6195_s0 = inlined_call_operand.vmem [shape: bf16[2,432,8], index: 0, kind: input, shape index: {}]   ;;  %s6196_s1 = inlined_call_operand.vmem [shape: bf16[72,128], index: 1, kind: input, shape index: {}]   ;;  %s6197_s2 = inlined_call_operand.vmem [shape: bf16[2,376,128], index: 2, kind: output, shape index: {0}]   ;;  %s6198_s3 = inlined_call_operand.vmem [shape: f32[2,2,128], index: 3, kind: output, shape index: {1}]  }
   0x1 LB: > { %s3585_s13 = sadd.s32 4294967295, %s4194_s12   ;;  %p3589_p0 = scmp.ge.s32.totalorder %s4194_s12, 1  ;;  %s4194_s12 = sphi %s4224_s12, %s14_s12  }
   0x2   : > { %p140_p1 = scmp.lt.s32.totalorder %s4194_s12, 3 }
   0x4   : > { %p141_p2 = pnand %p3589_p0, %p140_p1 }
   0x5   : > { %p168_p3 = scmp.lt.s32.totalorder (!%p141_p2), %s3585_s13, 1  ;;  %vm606_vm0 = vcmask (!%p141_p2), 1046528   ;;  %vm363_vm1 = vsmask.f32 (!%p141_p2), 7424  ;;  %s4196_s18 = smov (!%p141_p2), 24   ;;  %v4148_v36 = vld [vmem:[%s6196_s1] sm:$0xff] (!%p141_p2)  }
   0x6   : > { %144 = sbr.rel (%p141_p2) target bundleno = 755 (0x2f3), region = 28  ;;  %s4197_s21 = smov (!%p141_p2), 40   ;;  %v4149_v41 = vld [vmem:[%s6196_s1 + $0x8] sm:$0xff] (!%p141_p2)   ;;  %3942 = vmatprep.subr.bf16.mxu0 (!%p141_p2), %v4148_v36  ;;  %4000 = vmatprep.subr.bf16.mxu1 (!%p141_p2), %v4148_v36  ;;  %v4150_v53 = vld [vmem:[%s6196_s1 + $0x10] sm:$0xff] (!%p141_p2)   ;;  %v4152_v62 = vld [vmem:[%s6196_s1 + $0x18] sm:$0xff] (!%p141_p2)   ;;  %vm1800_vm2 = vcmask (!%p141_p2), 1043456  }
   0x7   : > { %s4198_s24 = smov (!%p141_p2), 16   ;;  %3943 = vmatpush3.bf16.msra.mxu0 (!%p141_p2), %v4148_v36  ;;  %4005 = vmatpush3.bf16.msra.mxu1 (!%p141_p2), %v4148_v36  ;;  %s4199_s27 = smov (!%p141_p2), 8   ;;  %vm1322_vm3 = vcmask (!%p141_p2), 64512   ;;  %vm1372_vm4 = vcmask (!%p141_p2), 130048   ;;  %vm1421_vm5 = vcmask (!%p141_p2), 195584   ;;  %vm1470_vm6 = vcmask (!%p141_p2), 261120  }
   0x8   : > { %3944 = vmatprep.subr.bf16.mxu0 (!%p141_p2), %v4149_v41  ;;  %4001 = vmatprep.subr.bf16.mxu1 (!%p141_p2), %v4149_v41  ;;  %s4200_s30 = smov (!%p141_p2), 32   ;;  %s4201_s4 = smov (!%p141_p2), 48   ;;  %vm6203_vm7 = vcmask (!%p141_p2), 326656   ;;  %vm6202_vm8 = vcmask (!%p141_p2), 392192   ;;  %vm6201_vm9 = vcmask (!%p141_p2), 457728   ;;  %vm6200_vm10 = vcmask (!%p141_p2), 523264  }
   0x9   : > { %s4202_s5 = smov (!%p141_p2), 56   ;;  %s4203_s6 = smov (!%p141_p2), 64   ;;  %vm6199_vm11 = vcmask (!%p141_p2), 588800  }
   0xb   : > { %3945 = vmatpush3.bf16.msra.mxu0 (!%p141_p2), %v4149_v41  ;;  %4006 = vmatpush3.bf16.msra.mxu1 (!%p141_p2), %v4149_v41 }
   0xc   : > { %3946 = vmatprep.subr.bf16.mxu0 (!%p141_p2), %v4150_v53  ;;  %4002 = vmatprep.subr.bf16.mxu1 (!%p141_p2), %v4150_v53 }
   0xd   : > { %s6355_s13 = smov (!%p168_p3, %s3585_s13), 1 }
   0xe   : > { %s4012_s14 = smul.u32 216, %s6355_s13  ;;  %s3592_s15 = sshll.u32 %s6355_s13, 1 }
   0xf   : > { %3947 = vmatpush3.bf16.msra.mxu0 %v4150_v53  ;;  %4007 = vmatpush3.bf16.msra.mxu1 %v4150_v53  ;;  %s4013_s9 = smul.u32 188, %s6355_s13 }
  0x10   : > { %s4238_s17 = scalar_lea.vmem %s6195_s0, %s4012_s14  ;;  %3948 = vmatprep.subr.bf16.mxu0 %v4152_v62  ;;  %4003 = vmatprep.subr.bf16.mxu1 %v4152_v62 }
  0x11   : > { %v188_v0 = vld [vmem:[%s4238_s17 + $0x14] sm:$0xf]  ;;  %v189_v1 = vld [vmem:[%s4238_s17 + $0x18] sm:$0xf]  ;;  %v4243_v2 = vld [vmem:[%s4238_s17 + $0x1c] sm:$0xf]  ;;  %s5446_s14 = scalar_lea.vmem %s6197_s2, %s4013_s9 }
  0x12   : > { %v191_v3 = vld [vmem:[%s4238_s17 + $0x20] sm:$0xf]  ;;  %v4246_v4 = vcombine.low %v188_v0, %v189_v1  ;;  %v186_v5 = vld [vmem:[%s4238_s17 + $0xc] sm:$0xf]  ;;  %v187_v6 = vld [vmem:[%s4238_s17 + $0x10] sm:$0xf]  ;;  %v4251_v7 = vcombine.low %v189_v1, %v4243_v2 }
  0x13   : > { %v4253_v8 = vcombine.low %v187_v6, %v188_v0  ;;  %v4255_v9 = vcombine.low %v186_v5, %v187_v6  ;;  %v185_v10 = vld [vmem:[%s4238_s17 + $0x8] sm:$0xf]  ;;  %v236_v11 = vld [vmem:[%s4238_s17 + $0xc] sm:$0xe]  ;;  %v184_v12 = vld [vmem:[%s4238_s17 + $0x4] sm:$0xf]  ;;  %v4261_v13 = vcombine.low %v4243_v2, %v191_v3  ;;  %3949 = vmatpush3.bf16.msra.mxu0 %v4152_v62  ;;  %4008 = vmatpush3.bf16.msra.mxu1 %v4152_v62 }
  0x14   : > { %734 = vrot.lane.b32.xlu1 %v4246_v4, %s4196_s18  ;;  %v4265_v14 = vcombine.low %v185_v10, %v186_v5  ;;  %v3644_v15 = vcombine.low %v236_v11, %v187_v6  ;;  %v1026_v16 = vrot.slane %v4246_v4, 1  ;;  %v231_v17 = vld [vmem:[%s4238_s17] sm:$0xe]  ;;  %v791_v22 = vshll.u32 %v4246_v4, 16  ;;  %v4288_v35 = vld [vmem:[%s4238_s17 + $0x24] sm:$0xf] }
  0x15   : > { %v183_v18 = vld [vmem:[%s4238_s17] sm:$0xf]  ;;  %732 = vrot.lane.b32.xlu0 %v4255_v9, %s4196_s18  ;;  %v3618_v19 = vcombine.low %v231_v17, %v184_v12  ;;  %v610_v21 = vrot.slane %v4253_v8, 1  ;;  %v786_v23 = vshll.u32 %v4255_v9, 16  ;;  %v1028_v34 = vrot.slane %v4261_v13, 1 }
  0x16   : > { %v4272_v20 = vcombine.low %v183_v18, %v184_v12  ;;  %v1025_v24 = vrot.slane %v3644_v15, 1  ;;  %v608_v25 = vrot.slane %v4265_v14, 1  ;;  %v372_v26 = vshll.u32 %v4265_v14, 16  ;;  %v4307_v50 = vld [vmem:[%s4238_s17 + $0x28] sm:$0xf] }
  0x17   : > { %v607_v27 = vrot.slane %v3618_v19, 1  ;;  %v376_v30 = vshrl.u32 %v4265_v14, 16  ;;  %v380_v39 = vshll.u32 %v4253_v8, 16  ;;  %v793_v40 = vrot.slane %v791_v22, 1  ;;  %v4310_v51 = vld [vmem:[%s4238_s17 + $0x2c] sm:$0xf] }
  0x18   : > { %v365_v28 = vshrl.u32 %v4272_v20, 16  ;;  %v367_v29 = vshll.u32 %v4272_v20, 16  ;;  %v1027_v31 = vsel %vm606_vm0, %v1025_v24, %v1026_v16  ;;  %v611_v32 = vsel %vm606_vm0, %v608_v25, %v610_v21 }
  0x19   : > { %v374_v33 = vrot.slane %v372_v26, 1  ;;  %1072 = vrot.lane.b32.xlu0 %v1027_v31, %s4197_s21  ;;  %v609_v37 = vsel %vm606_vm0, %v607_v27, %v608_v25  ;;  %v795_v43 = vshrl.u32 %v4246_v4, 16  ;;  %v799_v44 = vshll.u32 %v4261_v13, 16  ;;  %v195_v27 = vld [vmem:[%s4238_s17 + $0x30] sm:$0xf] }
  0x1a   : > { %v369_v38 = vrot.slane %v367_v29, 1  ;;  %654 = vrot.lane.b32.xlu1 %v609_v37, %s4198_s24  ;;  %v784_v45 = vshrl.u32 %v4255_v9, 16  ;;  %v382_v47 = vrot.slane %v380_v39, 1  ;;  %v788_v48 = vrot.slane %v786_v23, 1  ;;  %v241_v9 = vld [vmem:[%s4238_s17 + $0x18] sm:$0xe] }
  0x1b   : > { %v378_v42 = vor.u32 %v376_v30, %v374_v33  ;;  %v4304_v49 = vcombine.low %v191_v3, %v4288_v35  ;;  %v1029_v54 = vsel %vm606_vm0, %v1026_v16, %v1028_v34  ;;  %v797_v55 = vor.u32 %v795_v43, %v793_v40  ;;  %v196_v39 = vld [vmem:[%s4238_s17 + $0x34] sm:$0xf] }
  0x1c   : > { %v370_v46 = vor.u32 %v369_v38, %v365_v28  ;;  %v4321_v56 = vrot.slane %v799_v44, 1  ;;  %v4325_v57 = vcombine.low %v4307_v50, %v4310_v51  ;;  %v789_v59 = vor.u32 %v788_v48, %v784_v45  ;;  %v197_v44 = vld [vmem:[%s4238_s17 + $0x38] sm:$0xf]  ;;  %v198_v45 = vld [vmem:[%s4238_s17 + $0x3c] sm:$0xf] }
  0x1d   : > { %v383_v58 = vsel %vm363_vm1, %v378_v42, %v382_v47  ;;  %v396_v60 = vshll.u32 %v4304_v49, 16  ;;  %v388_v61 = vshll.u32 %v4251_v7, 16  ;;  %v400_v0 = vshrl.u32 %v4304_v49, 16 }
  0x1e   : > { %v375_v52 = vsel %vm363_vm1, %v370_v46, %v374_v33  ;;  %656 = vrot.lane.b32.xlu1 %v611_v32, %s4198_s24  ;;  %v802_v63 = vsel %vm363_vm1, %v797_v55, %v4321_v56  ;;  %v404_v1 = vshll.u32 %v4325_v57, 16  ;;  %v794_v3 = vsel %vm363_vm1, %v789_v59, %v793_v40 }
  0x1f   : > { %555 = vrot.lane.b32.xlu0 %v375_v52, %s4199_s27  ;;  %v398_v4 = vrot.slane %v396_v60, 1  ;;  %v390_v5 = vrot.slane %v388_v61, 1  ;;  %v392_v6 = vshrl.u32 %v4251_v7, 16  ;;  %v384_v10 = vshrl.u32 %v4253_v8, 16 }
  0x20   : > { %v4345_v12 = vrot.slane %v404_v1, 1  ;;  %v3650_v16 = vcombine.low %v241_v9, %v4243_v2  ;;  %v614_v17 = vrot.slane %v4304_v49, 1  ;;  %v616_v25 = vrot.slane %v4325_v57, 1 }
  0x21   : > { %v402_v11 = vor.u32 %v400_v0, %v398_v4  ;;  %v394_v15 = vor.u32 %v392_v6, %v390_v5  ;;  %v386_v22 = vor.u32 %v384_v10, %v382_v47  ;;  %v3622_v26 = vcombine.low %v4288_v35, %v4307_v50 }
  0x22   : > { %1074 = vrot.lane.b32.xlu1 %v1029_v54, %s4197_s21  ;;  %v1264_v2 = vrot.slane %v3650_v16, 1  ;;  %v612_v28 = vrot.slane %v4251_v7, 1  ;;  %v4373_v29 = vsel %vm606_vm0, %v614_v17, %v616_v25  ;;  %v4376_v30 = vcombine.low %v4310_v51, %v195_v27 }
  0x23   : > { %557 = vrot.lane.b32.xlu0 %v383_v58, %s4199_s27  ;;  %v4355_v18 = vsel %vm363_vm1, %v402_v11, %v4345_v12  ;;  %v399_v19 = vsel %vm363_vm1, %v394_v15, %v398_v4  ;;  %v391_v23 = vsel %vm363_vm1, %v386_v22, %v390_v5  ;;  %v807_v31 = vshll.u32 %v3622_v26, 16  ;;  %v199_v5 = vld [vmem:[%s4238_s17 + $0x40] sm:$0xf] }
  0x24   : > { %v1265_v24 = vsel %vm606_vm0, %v1264_v2, %v614_v17  ;;  %v615_v32 = vsel %vm606_vm0, %v612_v28, %v614_v17  ;;  %v613_v33 = vsel %vm606_vm0, %v610_v21, %v612_v28  ;;  %v811_v36 = vshrl.u32 %v3622_v26, 16  ;;  %v4154_v21 = vld [vmem:[%s6196_s1 + $0x20] ss:$0 sps:$4 sm:$0xff]   ;;  %v200_v17 = vld [vmem:[%s4238_s17 + $0x44] sm:$0xf] }
  0x25   : > { %v809_v35 = vrot.slane %v807_v31, 1  ;;  %v815_v37 = vshll.u32 %v4376_v30, 16  ;;  %v803_v38 = vshrl.u32 %v4261_v13, 16  ;;  %v4391_v43 = vcombine.low %v195_v27, %v196_v39  ;;  %4010 = vmatprep.subr.msk.bf16.mxu0 %vm1800_vm2, %v4154_v21  ;;  %4011 = vmatprep.subr.msk.bf16.mxu1 %vm1800_vm2, %v4154_v21 }
  0x26   : > { %976 = vrot.lane.b32.xlu1 %v802_v63, %s4200_s30  ;;  %v1030_v46 = vrot.slane %v3622_v26, 1  ;;  %v1032_v47 = vrot.slane %v4376_v30, 1  ;;  %v4404_v51 = vcombine.low %v197_v44, %v198_v45  ;;  %v1802_v53 = vsel %vm1800_vm2, %v4154_v21, 0 }
  0x27   : > { %974 = vrot.lane.b32.xlu0 %v794_v3, %s4200_s30  ;;  %v813_v40 = vor.u32 %v811_v36, %v809_v35  ;;  %v817_v41 = vrot.slane %v815_v37, 1  ;;  %v805_v42 = vor.u32 %v803_v38, %v4321_v56  ;;  %v412_v52 = vshll.u32 %v4391_v43, 16  ;;  %3951 = vmatpush3.bf16.msra.mxu0 %v1802_v53 }
  0x28   : > { %4009 = vmatpush3.bf16.msra.mxu1 %v1802_v53  ;;  %v1033_v54 = vsel %vm606_vm0, %v1030_v46, %v1032_v47  ;;  %v408_v55 = vshrl.u32 %v4325_v57, 16  ;;  %v1031_v56 = vsel %vm606_vm0, %v1028_v34, %v1030_v46  ;;  %v416_v59 = vshrl.u32 %v4391_v43, 16 }
  0x29   : > { %v818_v48 = vsel %vm363_vm1, %v813_v40, %v817_v41  ;;  %v810_v50 = vsel %vm363_vm1, %v805_v42, %v809_v35  ;;  %v414_v58 = vrot.slane %v412_v52, 1  ;;  %v420_v60 = vshll.u32 %v4404_v51, 16 }
  0x2a   : > { %1132 = vrot.lane.b32.xlu1 %v4304_v49, %s4201_s4  ;;  %v410_v63 = vor.u32 %v408_v55, %v4345_v12  ;;  %v618_v0 = vrot.slane %v4391_v43, 1  ;;  %v620_v3 = vrot.slane %v4404_v51, 1  ;;  %v3624_v4 = vcombine.low %v196_v39, %v197_v44 }
  0x2b   : > { %1130 = vrot.lane.b32.xlu0 %v4251_v7, %s4201_s4  ;;  %v418_v61 = vor.u32 %v416_v59, %v414_v58  ;;  %v422_v62 = vrot.slane %v420_v60, 1  ;;  %v4439_v9 = vcombine.low %v198_v45, %v199_v5  ;;  %v819_v16 = vshrl.u32 %v4376_v30, 16 }
  0x2c   : > { %v415_v34 = vsel %vm363_vm1, %v410_v63, %v414_v58  ;;  %v619_v1 = vsel %vm606_vm0, %v616_v25, %v618_v0  ;;  %v621_v6 = vsel %vm606_vm0, %v618_v0, %v620_v3  ;;  %v823_v10 = vshll.u32 %v3624_v4, 16  ;;  %v204_v58 = vld [vmem:[%s4238_s17 + $0x54] sm:$0xf]  ;;  %v205_v63 = vld [vmem:[%s4238_s17 + $0x58] sm:$0xf] }
  0x2d   : > { %v827_v12 = vshrl.u32 %v3624_v4, 16  ;;  %v831_v15 = vshll.u32 %v4439_v9, 16  ;;  %v821_v22 = vor.u32 %v819_v16, %v817_v41  ;;  %v4449_v2 = vcombine.low %v199_v5, %v200_v17 }
  0x2e   : > { %1215 = vrot.lane.b32.xlu1 %v4355_v18, %s4202_s5  ;;  %v825_v11 = vrot.slane %v823_v10, 1  ;;  %v1034_v25 = vrot.slane %v3624_v4, 1  ;;  %v424_v38 = vshrl.u32 %v4404_v51, 16 }
  0x2f   : > { %1213 = vrot.lane.b32.xlu0 %v399_v19, %s4202_s5  ;;  %v428_v31 = vshll.u32 %v4449_v2, 16  ;;  %v432_v36 = vshrl.u32 %v4449_v2, 16  ;;  %v622_v21 = vrot.slane %v4449_v2, 1 }
  0x30   : > { %v826_v28 = vsel %vm363_vm1, %v821_v22, %v825_v11  ;;  %v426_v41 = vor.u32 %v424_v38, %v422_v62 }
  0x31   : > { %v430_v35 = vrot.slane %v428_v31, 1  ;;  %v623_v44 = vsel %vm606_vm0, %v620_v3, %v622_v21 }
  0x32   : > { %559 = vrot.lane.b32.xlu1 %v391_v23, %s4199_s27  ;;  %v201_v23 = vld [vmem:[%s4238_s17 + $0x48] sm:$0xf] }
  0x33   : > { %1274 = vrot.lane.b32.xlu0 %v1265_v24, %s4203_s6  ;;  %v202_v24 = vld [vmem:[%s4238_s17 + $0x4c] sm:$0xf]  ;;  %v434_v39 = vor.u32 %v432_v36, %v430_v35  ;;  %v431_v42 = vsel %vm363_vm1, %v426_v41, %v430_v35  ;;  %v3626_v46 = vcombine.low %v200_v17, %v201_v23  ;;  %v207_v36 = vld [vmem:[%s4238_s17 + $0x60] sm:$0xf] }
  0x35   : > { %v839_v52 = vshll.u32 %v3626_v46, 16 }
  0x36   : > { %561 = vrot.lane.b32.xlu1 %v399_v19, %s4199_s27  ;;  %v833_v19 = vrot.slane %v831_v15, 1 }
  0x37   : > { %1276 = vrot.lane.b32.xlu0 %v4373_v29, %s4203_s6  ;;  %v841_v53 = vrot.slane %v839_v52, 1  ;;  %v4572_v52 = vld [vmem:[%s4238_s17 + $0x64] sm:$0xf] }
  0x3a   : > { %660 = vrot.lane.b32.xlu1 %v615_v32, %s4198_s24 }
  0x3b   : > { %658 = vrot.lane.b32.xlu0 %v613_v33, %s4198_s24  ;;  %v1035_v33 = vsel %vm606_vm0, %v1032_v47, %v1034_v25  ;;  %v203_v47 = vld [vmem:[%s4238_s17 + $0x50] sm:$0xf] }
  0x3e   : > { %738 = vrot.lane.b32.xlu1 %v3622_v26, %s4196_s18  ;;  %v1036_v26 = vrot.slane %v4439_v9, 1 }
  0x3f   : > { %736 = vrot.lane.b32.xlu0 %v4261_v13, %s4196_s18  ;;  %v423_v13 = vsel %vm363_vm1, %v418_v61, %v422_v62  ;;  %v4505_v62 = vcombine.low %v203_v47, %v204_v58 }
  0x40   : > { %v1037_v32 = vsel %vm606_vm0, %v1034_v25, %v1036_v26 }
  0x41   : > { %v444_v5 = vshll.u32 %v4505_v62, 16 }
  0x42   : > { %980 = vrot.lane.b32.xlu1 %v818_v48, %s4200_s30 }
  0x43   : > { %978 = vrot.lane.b32.xlu0 %v810_v50, %s4200_s30  ;;  %v4493_v50 = vcombine.low %v202_v24, %v203_v47  ;;  %v446_v10 = vrot.slane %v444_v5, 1 }
  0x45   : > { %v847_v55 = vshll.u32 %v4493_v50, 16  ;;  %v1040_v0 = vrot.slane %v4493_v50, 1 }
  0x46   : > { %1078 = vrot.lane.b32.xlu1 %v1033_v54, %s4197_s21  ;;  %v843_v54 = vshrl.u32 %v3626_v46, 16 }
  0x47   : > { %1076 = vrot.lane.b32.xlu0 %v1031_v56, %s4197_s21  ;;  %v835_v56 = vshrl.u32 %v4439_v9, 16  ;;  %v4503_v60 = vrot.slane %v847_v55, 1 }
  0x48   : > { %v845_v59 = vor.u32 %v843_v54, %v841_v53 }
  0x49   : > { %v837_v61 = vor.u32 %v835_v56, %v833_v19 }
  0x4a   : > { %1136 = vrot.lane.b32.xlu1 %v4391_v43, %s4201_s4 }
  0x4b   : > { %1134 = vrot.lane.b32.xlu0 %v4325_v57, %s4201_s4  ;;  %v842_v3 = vsel %vm363_vm1, %v837_v61, %v841_v53  ;;  %v4590_v61 = vld [vmem:[%s4238_s17 + $0x6c] sm:$0xf] }
  0x4e   : > { %1219 = vrot.lane.b32.xlu1 %v423_v13, %s4202_s5 }
  0x4f   : > { %1217 = vrot.lane.b32.xlu0 %v415_v34, %s4202_s5 }
  0x52   : > { %563 = vrot.lane.b32.xlu1 %v4355_v18, %s4199_s27  ;;  %v829_v18 = vor.u32 %v827_v12, %v825_v11  ;;  %v448_v11 = vshrl.u32 %v4505_v62, 16 }
  0x53   : > { %1278 = vrot.lane.b32.xlu0 %v619_v1, %s4203_s6 }
  0x54   : > { %v834_v27 = vsel %vm363_vm1, %v829_v18, %v833_v19  ;;  %v450_v18 = vor.u32 %v448_v11, %v446_v10 }
  0x56   : > { %565 = vrot.lane.b32.xlu1 %v415_v34, %s4199_s27  ;;  %v1038_v34 = vrot.slane %v3626_v46, 1 }
  0x57   : > { %1280 = vrot.lane.b32.xlu0 %v621_v6, %s4203_s6 }
  0x5a   : > { %664 = vrot.lane.b32.xlu1 %v619_v1, %s4198_s24  ;;  %v850_v1 = vsel %vm363_vm1, %v845_v59, %v4503_v60  ;;  %v4587_v59 = vld [vmem:[%s4238_s17 + $0x68] sm:$0xf] }
  0x5b   : > { %662 = vrot.lane.b32.xlu0 %v4373_v29, %s4198_s24  ;;  %v4459_v29 = vcombine.low %v201_v23, %v202_v24 }
  0x5d   : > { %v436_v37 = vshll.u32 %v4459_v29, 16  ;;  %v624_v45 = vrot.slane %v4459_v29, 1  ;;  %v440_v15 = vshrl.u32 %v4459_v29, 16 }
  0x5e   : > { %742 = vrot.lane.b32.xlu1 %v3624_v4, %s4196_s18 }
  0x5f   : > { %740 = vrot.lane.b32.xlu0 %v4376_v30, %s4196_s18  ;;  %v438_v40 = vrot.slane %v436_v37, 1  ;;  %v4491_v48 = vsel %vm606_vm0, %v622_v21, %v624_v45 }
  0x61   : > { %v4478_v30 = vsel %vm363_vm1, %v434_v39, %v438_v40  ;;  %v442_v22 = vor.u32 %v440_v15, %v438_v40 }
  0x62   : > { %984 = vrot.lane.b32.xlu1 %v834_v27, %s4200_s30 }
  0x63   : > { %982 = vrot.lane.b32.xlu0 %v826_v28, %s4200_s30  ;;  %v447_v25 = vsel %vm363_vm1, %v442_v22, %v446_v10 }
  0x66   : > { %1082 = vrot.lane.b32.xlu1 %v1037_v32, %s4197_s21  ;;  %v3628_v32 = vcombine.low %v204_v58, %v205_v63 }
  0x67   : > { %1080 = vrot.lane.b32.xlu0 %v1035_v33, %s4197_s21 }
  0x68   : > { %v855_v39 = vshll.u32 %v3628_v32, 16  ;;  %v859_v21 = vshrl.u32 %v3628_v32, 16 }
  0x6a   : > { %1140 = vrot.lane.b32.xlu1 %v4449_v2, %s4201_s4 }
  0x6b   : > { %1138 = vrot.lane.b32.xlu0 %v4404_v51, %s4201_s4 }
  0x6e   : > { %1223 = vrot.lane.b32.xlu1 %v4478_v30, %s4202_s5 }
  0x6f   : > { %1221 = vrot.lane.b32.xlu0 %v431_v42, %s4202_s5 }
  0x72   : > { %567 = vrot.lane.b32.xlu1 %v423_v13, %s4199_s27  ;;  %v206_v13 = vld [vmem:[%s4238_s17 + $0x5c] sm:$0xf] }
  0x73   : > { %1282 = vrot.lane.b32.xlu0 %v623_v44, %s4203_s6  ;;  %v4516_v4 = vcombine.low %v205_v63, %v206_v13  ;;  %v4560_v38 = vcombine.low %v206_v13, %v207_v36 }
  0x75   : > { %v452_v12 = vshll.u32 %v4516_v4, 16  ;;  %v628_v31 = vrot.slane %v4516_v4, 1  ;;  %v456_v22 = vshrl.u32 %v4516_v4, 16 }
  0x76   : > { %569 = vrot.lane.b32.xlu1 %v431_v42, %s4199_s27  ;;  %v857_v42 = vrot.slane %v855_v39, 1 }
  0x77   : > { %1284 = vrot.lane.b32.xlu0 %v4491_v48, %s4203_s6  ;;  %v4532_v19 = vrot.slane %v452_v12, 1 }
  0x78   : > { %v861_v56 = vor.u32 %v859_v21, %v857_v42 }
  0x79   : > { %v4542_v24 = vsel %vm363_vm1, %v450_v18, %v4532_v19 }
  0x7a   : > { %668 = vrot.lane.b32.xlu1 %v623_v44, %s4198_s24  ;;  %v863_v44 = vshll.u32 %v4560_v38, 16 }
  0x7b   : > { %666 = vrot.lane.b32.xlu0 %v621_v6, %s4198_s24  ;;  %v1041_v6 = vsel %vm606_vm0, %v1038_v34, %v1040_v0 }
  0x7c   : > { %v4581_v58 = vrot.slane %v863_v44, 1 }
  0x7e   : > { %746 = vrot.lane.b32.xlu1 %v3626_v46, %s4196_s18  ;;  %v866_v5 = vsel %vm363_vm1, %v861_v56, %v4581_v58 }
  0x7f   : > { %744 = vrot.lane.b32.xlu0 %v4439_v9, %s4196_s18  ;;  %v1039_v9 = vsel %vm606_vm0, %v1036_v26, %v1038_v34  ;;  %v626_v26 = vrot.slane %v4505_v62, 1  ;;  %v1044_v34 = vrot.slane %v4560_v38, 1 }
  0x81   : > { %v627_v28 = vsel %vm606_vm0, %v624_v45, %v626_v26  ;;  %v4558_v37 = vsel %vm606_vm0, %v626_v26, %v628_v31 }
  0x82   : > { %988 = vrot.lane.b32.xlu1 %v850_v1, %s4200_s30  ;;  %v4600_v1 = vcombine.low %v4587_v59, %v4590_v61 }
  0x83   : > { %986 = vrot.lane.b32.xlu0 %v842_v3, %s4200_s30 }
  0x84   : > { %v468_v26 = vshll.u32 %v4600_v1, 16 }
  0x86   : > { %1086 = vrot.lane.b32.xlu1 %v1041_v6, %s4197_s21  ;;  %v4530_v16 = vpop.permute.xlu1 %734  ;;  %v4632_v39 = vrot.slane %v468_v26, 1 }
  0x87   : > { %1084 = vrot.lane.b32.xlu0 %v1039_v9, %s4197_s21  ;;  %v733_v17 = vpop.permute.xlu0 %732 }
  0x8a   : > { %1144 = vrot.lane.b32.xlu1 %v4505_v62, %s4201_s4 }
  0x8b   : > { %1142 = vrot.lane.b32.xlu0 %v4459_v29, %s4201_s4  ;;  %v4538_v23 = vpop.permute.xlu0 %1072 }
  0x8c   : > { %v655_v27 = vpop.permute.xlu1 %654 }
  0x8e   : > { %1227 = vrot.lane.b32.xlu1 %v4542_v24, %s4202_s5 }
  0x8f   : > { %1225 = vrot.lane.b32.xlu0 %v447_v25, %s4202_s5 }
  0x90   : > { %v657_v33 = vpop.permute.xlu1 %656 }
  0x91   : > { %v556_v35 = vpop.permute.xlu0 %555 }
  0x92   : > { %571 = vrot.lane.b32.xlu1 %v4478_v30, %s4199_s27  ;;  %v851_v30 = vshrl.u32 %v4493_v50, 16  ;;  %v1324_v45 = vsel %vm1322_vm3, %v4272_v20, %v556_v35  ;;  %v4584_v20 = vcombine.low %v207_v36, %v4572_v52 }
  0x93   : > { %1286 = vrot.lane.b32.xlu0 %v627_v28, %s4203_s6  ;;  %v1374_v55 = vsel %vm1372_vm4, %v1324_v45, %v655_v27 }
  0x94   : > { %v4562_v40 = vpop.permute.xlu1 %1074  ;;  %v853_v54 = vor.u32 %v851_v30, %v4503_v60  ;;  %v1423_v60 = vsel %vm1421_vm5, %v1374_v55, %v733_v17  ;;  %v460_v9 = vshll.u32 %v4584_v20, 16  ;;  %v464_v18 = vshrl.u32 %v4584_v20, 16 }
  0x95   : > { %v558_v41 = vpop.permute.xlu0 %557  ;;  %v630_v45 = vrot.slane %v4584_v20, 1  ;;  %v3630_v55 = vcombine.low %v4572_v52, %v4587_v59 }
  0x96   : > { %573 = vrot.lane.b32.xlu1 %v447_v25, %s4199_s27  ;;  %v1326_v53 = vsel %vm1322_vm3, %v4265_v14, %v558_v41  ;;  %v858_v6 = vsel %vm363_vm1, %v853_v54, %v857_v42  ;;  %v462_v25 = vrot.slane %v460_v9, 1  ;;  %v458_v41 = vor.u32 %v456_v22, %v4532_v19 }
  0x97   : > { %1288 = vrot.lane.b32.xlu0 %v4558_v37, %s4203_s6  ;;  %v1376_v13 = vsel %vm1372_vm4, %v1326_v53, %v657_v33  ;;  %v631_v53 = vsel %vm606_vm0, %v628_v31, %v630_v45  ;;  %v632_v54 = vrot.slane %v4600_v1, 1  ;;  %v875_v59 = vshrl.u32 %v3630_v55, 16 }
  0x98   : > { %v977_v46 = vpop.permute.xlu1 %976  ;;  %v1425_v10 = vsel %vm1421_vm5, %v1376_v13, %v4530_v16  ;;  %v466_v36 = vor.u32 %v464_v18, %v462_v25  ;;  %v463_v19 = vsel %vm363_vm1, %v458_v41, %v462_v25 }
  0x99   : > { %v975_v47 = vpop.permute.xlu0 %974  ;;  %v4664_v13 = vsel %vm606_vm0, %v630_v45, %v632_v54 }
  0x9a   : > { %672 = vrot.lane.b32.xlu1 %v627_v28, %s4198_s24  ;;  %v1472_v3 = vsel %vm1470_vm6, %v1423_v60, %v975_v47 }
  0x9b   : > { %670 = vrot.lane.b32.xlu0 %v4491_v48, %s4198_s24  ;;  %v1042_v48 = vrot.slane %v3628_v32, 1  ;;  %v1521_v17 = vsel %vm6203_vm7, %v1472_v3, %v4538_v23 }
  0x9c   : > { %v1133_v14 = vpop.permute.xlu1 %1132 }
  0x9d   : > { %v1131_v63 = vpop.permute.xlu0 %1130  ;;  %v1043_v15 = vsel %vm606_vm0, %v1040_v0, %v1042_v48  ;;  %v1045_v16 = vsel %vm606_vm0, %v1042_v48, %v1044_v34  ;;  %v871_v48 = vshll.u32 %v3630_v55, 16 }
  0x9e   : > { %750 = vrot.lane.b32.xlu1 %v3628_v32, %s4196_s18  ;;  %v1570_v0 = vsel %vm6202_vm8, %v1521_v17, %v1131_v63  ;;  %v211_v63 = vld [vmem:[%s4238_s17 + $0x70] sm:$0xf]  ;;  %v213_v17 = vld [vmem:[%s4238_s17 + $0x78] sm:$0xf] }
  0x9f   : > { %748 = vrot.lane.b32.xlu0 %v4493_v50, %s4196_s18  ;;  %v1474_v50 = vsel %vm1470_vm6, %v1425_v10, %v977_v46  ;;  %v4667_v31 = vcombine.low %v4590_v61, %v211_v63  ;;  %v4675_v61 = vld [vmem:[%s4238_s17 + $0x74] sm:$0xf] }
  0xa0   : > { %v1216_v11 = vpop.permute.xlu1 %1215  ;;  %v1523_v33 = vsel %vm6203_vm7, %v1474_v50, %v4562_v40  ;;  %v4644_v40 = vsel %vm363_vm1, %v466_v36, %v4632_v39  ;;  %v1046_v50 = vrot.slane %v3630_v55, 1 }
  0xa1   : > { %v1214_v12 = vpop.permute.xlu0 %1213  ;;  %v1572_v35 = vsel %vm6202_vm8, %v1523_v33, %v1133_v14  ;;  %v879_v3 = vshll.u32 %v4667_v31, 16 }
  0xa2   : > { %992 = vrot.lane.b32.xlu1 %v866_v5, %s4200_s30  ;;  %v1619_v23 = vsel %vm6201_vm9, %v1570_v0, %v1214_v12  ;;  %v1621_v30 = vsel %vm6201_vm9, %v1572_v35, %v1216_v11  ;;  %v867_v5 = vshrl.u32 %v4560_v38, 16  ;;  %v1048_v0 = vrot.slane %v4667_v31, 1 }
  0xa3   : > { %990 = vrot.lane.b32.xlu0 %v858_v6, %s4200_s30  ;;  %v4680_v11 = vrot.slane %v879_v3, 1  ;;  %v1047_v36 = vsel %vm606_vm0, %v1044_v34, %v1046_v50  ;;  %v472_v34 = vshrl.u32 %v4600_v1, 16 }
  0xa4   : > { %v560_v27 = vpop.permute.xlu1 %559  ;;  %v869_v12 = vor.u32 %v867_v5, %v4581_v58  ;;  %v1049_v35 = vsel %vm606_vm0, %v1046_v50, %v1048_v0 }
  0xa5   : > { %v1275_v28 = vpop.permute.xlu0 %1274  ;;  %v1328_v25 = vsel %vm1322_vm3, %v4253_v8, %v560_v27 }
  0xa6   : > { %v1668_v32 = vsel %vm6200_vm10, %v1619_v23, %v1275_v28  ;;  %1090 = vrot.lane.b32.xlu1 %v1045_v16, %s4197_s21  ;;  %v4688_v16 = vld [vmem:[%s4238_s17 + $0x7c] sm:$0xf] }
  0xa7   : > { %1088 = vrot.lane.b32.xlu0 %v1043_v15, %s4197_s21  ;;  %3952 = vmatprep.mubr.msk.bf16.mxu0 %vm6199_vm11, %v1668_v32  ;;  %v4684_v15 = vcombine.low %v211_v63, %v4675_v61 }
  0xa8   : > { %v562_v42 = vpop.permute.xlu1 %561 }
  0xa9   : > { %v1277_v21 = vpop.permute.xlu0 %1276  ;;  %v476_v28 = vshll.u32 %v4684_v15, 16  ;;  %v1330_v41 = vsel %vm1322_vm3, %v4251_v7, %v562_v42 }
  0xaa   : > { %v1670_v44 = vsel %vm6200_vm10, %v1621_v30, %v1277_v21  ;;  %1148 = vrot.lane.b32.xlu1 %v4584_v20, %s4201_s4  ;;  %v480_v21 = vshrl.u32 %v4684_v15, 16 }
  0xab   : > { %1146 = vrot.lane.b32.xlu0 %v4516_v4, %s4201_s4  ;;  %3953 = vmatmul.mubr.msk.bf16.vlgmr.msra.gmra.mrb[0].mxu0 %vm6199_vm11, %v1670_v44 }
  0xac   : > { %v661_v46 = vpop.permute.xlu1 %660 }
  0xad   : > { %v659_v47 = vpop.permute.xlu0 %658 }
  0xae   : > { %1231 = vrot.lane.b32.xlu1 %v4644_v40, %s4202_s5  ;;  %v1378_v58 = vsel %vm1372_vm4, %v1328_v25, %v659_v47 }
  0xaf   : > { %1229 = vrot.lane.b32.xlu0 %v463_v19, %s4202_s5 }
  0xb0   : > { %v739_v56 = vpop.permute.xlu1 %738 }
  0xb1   : > { %v737_v14 = vpop.permute.xlu0 %736 }
  0xb2   : > { %575 = vrot.lane.b32.xlu1 %v4542_v24, %s4199_s27  ;;  %v873_v24 = vrot.slane %v871_v48, 1  ;;  %v1427_v32 = vsel %vm1421_vm5, %v1378_v58, %v737_v14  ;;  %v215_v58 = vld [vmem:[%s4238_s17 + $0x80] sm:$0xf] }
  0xb3   : > { %1290 = vrot.lane.b32.xlu0 %v631_v53, %s4203_s6 }
  0xb4   : > { %v981_v60 = vpop.permute.xlu1 %980  ;;  %v877_v10 = vor.u32 %v875_v59, %v873_v24  ;;  %v874_v23 = vsel %vm363_vm1, %v869_v12, %v873_v24 }
  0xb5   : > { %v979_v52 = vpop.permute.xlu0 %978 }
  0xb6   : > { %577 = vrot.lane.b32.xlu1 %v463_v19, %s4199_s27  ;;  %v882_v26 = vsel %vm363_vm1, %v877_v10, %v4680_v11  ;;  %v1476_v33 = vsel %vm1470_vm6, %v1427_v32, %v979_v52  ;;  %v1380_v19 = vsel %vm1372_vm4, %v1330_v41, %v661_v46  ;;  %v474_v52 = vor.u32 %v472_v34, %v4632_v39 }
  0xb7   : > { %1292 = vrot.lane.b32.xlu0 %v4664_v13, %s4203_s6  ;;  %v1429_v47 = vsel %vm1421_vm5, %v1380_v19, %v739_v56  ;;  %v217_v19 = vld [vmem:[%s4238_s17 + $0x88] sm:$0xf] }
  0xb8   : > { %v1079_v6 = vpop.permute.xlu1 %1078 }
  0xb9   : > { %v1077_v9 = vpop.permute.xlu0 %1076 }
  0xba   : > { %676 = vrot.lane.b32.xlu1 %v631_v53, %s4198_s24  ;;  %v1525_v30 = vsel %vm6203_vm7, %v1476_v33, %v1077_v9 }
  0xbb   : > { %674 = vrot.lane.b32.xlu0 %v4558_v37, %s4198_s24  ;;  %v4697_v37 = vcombine.low %v213_v17, %v4688_v16 }
  0xbc   : > { %v1137_v18 = vpop.permute.xlu1 %1136 }
  0xbd   : > { %v1135_v22 = vpop.permute.xlu0 %1134  ;;  %v484_v44 = vshll.u32 %v4697_v37, 16 }
  0xbe   : > { %754 = vrot.lane.b32.xlu1 %v3630_v55, %s4196_s18  ;;  %v1574_v45 = vsel %vm6202_vm8, %v1525_v30, %v1135_v22  ;;  %v1478_v55 = vsel %vm1470_vm6, %v1429_v47, %v981_v60  ;;  %v3632_v22 = vcombine.low %v4675_v61, %v213_v17 }
  0xbf   : > { %752 = vrot.lane.b32.xlu0 %v4560_v38, %s4196_s18  ;;  %v478_v38 = vrot.slane %v476_v28, 1  ;;  %v1527_v63 = vsel %vm6203_vm7, %v1478_v55, %v1079_v6  ;;  %v4731_v56 = vrot.slane %v484_v44, 1  ;;  %v634_v6 = vrot.slane %v4684_v15, 1 }
  0xc0   : > { %v1220_v8 = vpop.permute.xlu1 %1219  ;;  %v1576_v46 = vsel %vm6202_vm8, %v1527_v63, %v1137_v18  ;;  %v636_v18 = vrot.slane %v4697_v37, 1  ;;  %v891_v17 = vshrl.u32 %v3632_v22, 16 }
  0xc1   : > { %v1218_v27 = vpop.permute.xlu0 %1217  ;;  %v482_v48 = vor.u32 %v480_v21, %v478_v38  ;;  %v1625_v24 = vsel %vm6201_vm9, %v1576_v46, %v1220_v8  ;;  %v479_v39 = vsel %vm363_vm1, %v474_v52, %v478_v38  ;;  %v635_v12 = vsel %vm606_vm0, %v632_v54, %v634_v6 }
  0xc2   : > { %996 = vrot.lane.b32.xlu1 %v882_v26, %s4200_s30  ;;  %v1623_v7 = vsel %vm6201_vm9, %v1574_v45, %v1218_v27  ;;  %v4762_v26 = vsel %vm606_vm0, %v634_v6, %v636_v18  ;;  %v4765_v54 = vcombine.low %v4688_v16, %v215_v58  ;;  %v883_v8 = vshrl.u32 %v4667_v31, 16  ;;  %v4773_v27 = vld [vmem:[%s4238_s17 + $0x84] sm:$0xf]  ;;  %v4786_v45 = vld [vmem:[%s4238_s17 + $0x8c] sm:$0xf] }
  0xc3   : > { %994 = vrot.lane.b32.xlu0 %v874_v23, %s4200_s30  ;;  %v4743_v5 = vsel %vm363_vm1, %v482_v48, %v4731_v56  ;;  %v887_v23 = vshll.u32 %v3632_v22, 16  ;;  %v1050_v38 = vrot.slane %v3632_v22, 1  ;;  %v4800_v55 = vcombine.low %v217_v19, %v4786_v45 }
  0xc4   : > { %v564_v42 = vpop.permute.xlu1 %563  ;;  %v895_v32 = vshll.u32 %v4765_v54, 16  ;;  %v885_v30 = vor.u32 %v883_v8, %v4680_v11  ;;  %v1052_v34 = vrot.slane %v4765_v54, 1 }
  0xc5   : > { %v1279_v53 = vpop.permute.xlu0 %1278  ;;  %v1332_v47 = vsel %vm1322_vm3, %v4304_v49, %v564_v42  ;;  %v1051_v48 = vsel %vm606_vm0, %v1048_v0, %v1050_v38  ;;  %v488_v0 = vshrl.u32 %v4697_v37, 16 }
  0xc6   : > { %v1672_v14 = vsel %vm6200_vm10, %v1623_v7, %v1279_v53  ;;  %1094 = vrot.lane.b32.xlu1 %v1049_v35, %s4197_s21  ;;  %v4779_v35 = vcombine.low %v215_v58, %v4773_v27  ;;  %v4781_v41 = vrot.slane %v895_v32, 1  ;;  %v1053_v46 = vsel %vm606_vm0, %v1050_v38, %v1052_v34 }
  0xc7   : > { %1092 = vrot.lane.b32.xlu0 %v1047_v36, %s4197_s21  ;;  %3956 = vmatprep.mubr.msk.bf16.mxu0 %vm6199_vm11, %v1672_v14 }
  0xc8   : > { %v566_v60 = vpop.permute.xlu1 %565 }
  0xc9   : > { %v1281_v59 = vpop.permute.xlu0 %1280  ;;  %v1334_v52 = vsel %vm1322_vm3, %v4325_v57, %v566_v60 }
  0xca   : > { %v1674_v3 = vsel %vm6200_vm10, %v1625_v24, %v1281_v59  ;;  %1152 = vrot.lane.b32.xlu1 %v4684_v15, %s4201_s4 }
  0xcb   : > { %1150 = vrot.lane.b32.xlu0 %v4600_v1, %s4201_s4  ;;  %3957 = vmatmul.mubr.msk.bf16.gmra.mrb[4].mxu0 %vm6199_vm11, %v1674_v3  ;;  %v496_v3 = vshrl.u32 %v4779_v35, 16 }
  0xcc   : > { %v665_v9 = vpop.permute.xlu1 %664 }
  0xcd   : > { %v663_v10 = vpop.permute.xlu0 %662 }
  0xce   : > { %1235 = vrot.lane.b32.xlu1 %v4743_v5, %s4202_s5  ;;  %v1382_v11 = vsel %vm1372_vm4, %v1332_v47, %v663_v10 }
  0xcf   : > { %1233 = vrot.lane.b32.xlu0 %v479_v39, %s4202_s5 }
  0xd0   : > { %v743_v50 = vpop.permute.xlu1 %742 }
  0xd1   : > { %v741_v25 = vpop.permute.xlu0 %740 }
  0xd2   : > { %579 = vrot.lane.b32.xlu1 %v4644_v40, %s4199_s27  ;;  %v889_v40 = vrot.slane %v887_v23, 1  ;;  %v1431_v14 = vsel %vm1421_vm5, %v1382_v11, %v741_v25 }
  0xd3   : > { %1294 = vrot.lane.b32.xlu0 %v635_v12, %s4203_s6 }
  0xd4   : > { %v985_v28 = vpop.permute.xlu1 %984  ;;  %v893_v36 = vor.u32 %v891_v17, %v889_v40  ;;  %v890_v53 = vsel %vm363_vm1, %v885_v30, %v889_v40 }
  0xd5   : > { %v983_v61 = vpop.permute.xlu0 %982 }
  0xd6   : > { %581 = vrot.lane.b32.xlu1 %v479_v39, %s4199_s27  ;;  %v898_v7 = vsel %vm363_vm1, %v893_v36, %v4781_v41  ;;  %v1480_v63 = vsel %vm1470_vm6, %v1431_v14, %v983_v61  ;;  %v1384_v39 = vsel %vm1372_vm4, %v1334_v52, %v665_v9  ;;  %v490_v61 = vor.u32 %v488_v0, %v4731_v56 }
  0xd7   : > { %1296 = vrot.lane.b32.xlu0 %v4762_v26, %s4203_s6  ;;  %v1433_v10 = vsel %vm1421_vm5, %v1384_v39, %v743_v50  ;;  %v221_v39 = vld [vmem:[%s4238_s17 + $0x98] sm:$0xf] }
  0xd8   : > { %v1083_v16 = vpop.permute.xlu1 %1082 }
  0xd9   : > { %v1081_v33 = vpop.permute.xlu0 %1080 }
  0xda   : > { %680 = vrot.lane.b32.xlu1 %v635_v12, %s4198_s24  ;;  %v1529_v24 = vsel %vm6203_vm7, %v1480_v63, %v1081_v33 }
  0xdb   : > { %678 = vrot.lane.b32.xlu0 %v4664_v13, %s4198_s24  ;;  %v492_v13 = vshll.u32 %v4779_v35, 16 }
  0xdc   : > { %v1141_v21 = vpop.permute.xlu1 %1140 }
  0xdd   : > { %v1139_v44 = vpop.permute.xlu0 %1138  ;;  %v494_v59 = vrot.slane %v492_v13, 1  ;;  %v219_v13 = vld [vmem:[%s4238_s17 + $0x90] sm:$0xf] }
  0xde   : > { %758 = vrot.lane.b32.xlu1 %v3632_v22, %s4196_s18  ;;  %v1578_v6 = vsel %vm6202_vm8, %v1529_v24, %v1139_v44  ;;  %v1482_v22 = vsel %vm1470_vm6, %v1433_v10, %v985_v28  ;;  %v3634_v44 = vcombine.low %v4773_v27, %v217_v19 }
  0xdf   : > { %756 = vrot.lane.b32.xlu0 %v4667_v31, %s4196_s18  ;;  %v500_v31 = vshll.u32 %v4800_v55, 16  ;;  %v1531_v58 = vsel %vm6203_vm7, %v1482_v22, %v1083_v16  ;;  %v498_v23 = vor.u32 %v496_v3, %v494_v59  ;;  %v495_v56 = vsel %vm363_vm1, %v490_v61, %v494_v59 }
  0xe0   : > { %v1224_v49 = vpop.permute.xlu1 %1223  ;;  %v1580_v9 = vsel %vm6202_vm8, %v1531_v58, %v1141_v21  ;;  %v638_v16 = vrot.slane %v4779_v35, 1  ;;  %v640_v21 = vrot.slane %v4800_v55, 1  ;;  %v907_v19 = vshrl.u32 %v3634_v44, 16 }
  0xe1   : > { %v1222_v42 = vpop.permute.xlu0 %1221  ;;  %v4829_v50 = vrot.slane %v500_v31, 1  ;;  %v1629_v40 = vsel %vm6201_vm9, %v1580_v9, %v1224_v49  ;;  %v899_v49 = vshrl.u32 %v4765_v54, 16  ;;  %v1054_v31 = vrot.slane %v3634_v44, 1 }
  0xe2   : > { %1000 = vrot.lane.b32.xlu1 %v898_v7, %s4200_s30  ;;  %v1627_v57 = vsel %vm6201_vm9, %v1578_v6, %v1222_v42  ;;  %v639_v30 = vsel %vm606_vm0, %v636_v18, %v638_v16  ;;  %v4860_v11 = vsel %vm606_vm0, %v638_v16, %v640_v21  ;;  %v4863_v18 = vcombine.low %v4786_v45, %v219_v13  ;;  %v4871_v42 = vld [vmem:[%s4238_s17 + $0x94] sm:$0xf]  ;;  %v4884_v6 = vld [vmem:[%s4238_s17 + $0x9c] sm:$0xf] }
  0xe3   : > { %998 = vrot.lane.b32.xlu0 %v890_v53, %s4200_s30  ;;  %v4841_v8 = vsel %vm363_vm1, %v498_v23, %v4829_v50  ;;  %v903_v7 = vshll.u32 %v3634_v44, 16  ;;  %v901_v24 = vor.u32 %v899_v49, %v4781_v41  ;;  %v4898_v22 = vcombine.low %v221_v39, %v4884_v6 }
  0xe4   : > { %v568_v60 = vpop.permute.xlu1 %567  ;;  %v911_v14 = vshll.u32 %v4863_v18, 16  ;;  %v1056_v0 = vrot.slane %v4863_v18, 1  ;;  %v1055_v23 = vsel %vm606_vm0, %v1052_v34, %v1054_v31  ;;  %v504_v34 = vshrl.u32 %v4800_v55, 16 }
  0xe5   : > { %v1283_v12 = vpop.permute.xlu0 %1282  ;;  %v1336_v10 = vsel %vm1322_vm3, %v4391_v43, %v568_v60 }
  0xe6   : > { %v1676_v25 = vsel %vm6200_vm10, %v1627_v57, %v1283_v12  ;;  %1098 = vrot.lane.b32.xlu1 %v1053_v46, %s4197_s21  ;;  %v4877_v46 = vcombine.low %v219_v13, %v4871_v42  ;;  %v4879_v52 = vrot.slane %v911_v14, 1  ;;  %v1057_v9 = vsel %vm606_vm0, %v1054_v31, %v1056_v0 }
  0xe7   : > { %1096 = vrot.lane.b32.xlu0 %v1051_v48, %s4197_s21  ;;  %3960 = vmatprep.mubr.msk.bf16.mxu0 %vm6199_vm11, %v1676_v25 }
  0xe8   : > { %v570_v28 = vpop.permute.xlu1 %569 }
  0xe9   : > { %v1285_v17 = vpop.permute.xlu0 %1284  ;;  %v1338_v61 = vsel %vm1322_vm3, %v4404_v51, %v570_v28 }
  0xea   : > { %v1678_v32 = vsel %vm6200_vm10, %v1629_v40, %v1285_v17  ;;  %1156 = vrot.lane.b32.xlu1 %v4779_v35, %s4201_s4 }
  0xeb   : > { %1154 = vrot.lane.b32.xlu0 %v4697_v37, %s4201_s4  ;;  %3961 = vmatmul.mubr.msk.bf16.gmra.mrb[8].mxu0 %vm6199_vm11, %v1678_v32  ;;  %v512_v32 = vshrl.u32 %v4877_v46, 16 }
  0xec   : > { %v669_v33 = vpop.permute.xlu1 %668 }
  0xed   : > { %v667_v36 = vpop.permute.xlu0 %666 }
  0xee   : > { %1239 = vrot.lane.b32.xlu1 %v4841_v8, %s4202_s5  ;;  %v1386_v41 = vsel %vm1372_vm4, %v1336_v10, %v667_v36 }
  0xef   : > { %1237 = vrot.lane.b32.xlu0 %v495_v56, %s4202_s5 }
  0xf0   : > { %v747_v38 = vpop.permute.xlu1 %746 }
  0xf1   : > { %v745_v47 = vpop.permute.xlu0 %744 }
  0xf2   : > { %583 = vrot.lane.b32.xlu1 %v4743_v5, %s4199_s27  ;;  %v905_v5 = vrot.slane %v903_v7, 1  ;;  %v1435_v25 = vsel %vm1421_vm5, %v1386_v41, %v745_v47 }
  0xf3   : > { %1298 = vrot.lane.b32.xlu0 %v639_v30, %s4203_s6 }
  0xf4   : > { %v989_v53 = vpop.permute.xlu1 %988  ;;  %v909_v48 = vor.u32 %v907_v19, %v905_v5  ;;  %v906_v12 = vsel %vm363_vm1, %v901_v24, %v905_v5 }
  0xf5   : > { %v987_v27 = vpop.permute.xlu0 %986 }
  0xf6   : > { %585 = vrot.lane.b32.xlu1 %v495_v56, %s4199_s27  ;;  %v914_v57 = vsel %vm363_vm1, %v909_v48, %v4879_v52  ;;  %v1484_v58 = vsel %vm1470_vm6, %v1435_v25, %v987_v27  ;;  %v1388_v56 = vsel %vm1372_vm4, %v1338_v61, %v669_v33  ;;  %v506_v27 = vor.u32 %v504_v34, %v4829_v50 }
  0xf7   : > { %1300 = vrot.lane.b32.xlu0 %v4860_v11, %s4203_s6  ;;  %v1437_v36 = vsel %vm1421_vm5, %v1388_v56, %v747_v38  ;;  %v225_v56 = vld [vmem:[%s4238_s17 + $0xa8] sm:$0xf] }
  0xf8   : > { %v1087_v45 = vpop.permute.xlu1 %1086 }
  0xf9   : > { %v1085_v63 = vpop.permute.xlu0 %1084 }
  0xfa   : > { %684 = vrot.lane.b32.xlu1 %v639_v30, %s4198_s24  ;;  %v1533_v40 = vsel %vm6203_vm7, %v1484_v58, %v1085_v63 }
  0xfb   : > { %682 = vrot.lane.b32.xlu0 %v4762_v26, %s4198_s24  ;;  %v508_v26 = vshll.u32 %v4877_v46, 16 }
  0xfc   : > { %v1145_v59 = vpop.permute.xlu1 %1144 }
  0xfd   : > { %v1143_v3 = vpop.permute.xlu0 %1142  ;;  %v510_v17 = vrot.slane %v508_v26, 1  ;;  %v223_v26 = vld [vmem:[%s4238_s17 + $0xa0] sm:$0xf] }
  0xfe   : > { %762 = vrot.lane.b32.xlu1 %v3634_v44, %s4196_s18  ;;  %v1582_v16 = vsel %vm6202_vm8, %v1533_v40, %v1143_v3  ;;  %v1486_v44 = vsel %vm1470_vm6, %v1437_v36, %v989_v53  ;;  %v3636_v3 = vcombine.low %v4871_v42, %v221_v39 }
  0xff   : > { %760 = vrot.lane.b32.xlu0 %v4765_v54, %s4196_s18  ;;  %v516_v54 = vshll.u32 %v4898_v22, 16  ;;  %v1535_v13 = vsel %vm6203_vm7, %v1486_v44, %v1087_v45  ;;  %v514_v7 = vor.u32 %v512_v32, %v510_v17  ;;  %v511_v50 = vsel %vm363_vm1, %v506_v27, %v510_v17 }
 0x100   : > { %v1228_v43 = vpop.permute.xlu1 %1227  ;;  %v1584_v33 = vsel %vm6202_vm8, %v1535_v13, %v1145_v59  ;;  %v642_v45 = vrot.slane %v4877_v46, 1  ;;  %v644_v59 = vrot.slane %v4898_v22, 1  ;;  %v923_v39 = vshrl.u32 %v3636_v3, 16 }
 0x101   : > { %v1226_v60 = vpop.permute.xlu0 %1225  ;;  %v4927_v38 = vrot.slane %v516_v54, 1  ;;  %v1633_v5 = vsel %vm6201_vm9, %v1584_v33, %v1228_v43  ;;  %v915_v43 = vshrl.u32 %v4863_v18, 16  ;;  %v1058_v54 = vrot.slane %v3636_v3, 1 }
 0x102   : > { %1004 = vrot.lane.b32.xlu1 %v914_v57, %s4200_s30  ;;  %v1631_v51 = vsel %vm6201_vm9, %v1582_v16, %v1226_v60  ;;  %v643_v24 = vsel %vm606_vm0, %v640_v21, %v642_v45  ;;  %v4958_v41 = vsel %vm606_vm0, %v642_v45, %v644_v59  ;;  %v4961_v21 = vcombine.low %v4884_v6, %v223_v26  ;;  %v4969_v60 = vld [vmem:[%s4238_s17 + $0xa4] sm:$0xf]  ;;  %v4982_v16 = vld [vmem:[%s4238_s17 + $0xac] sm:$0xf] }
 0x103   : > { %1002 = vrot.lane.b32.xlu0 %v906_v12, %s4200_s30  ;;  %v4939_v49 = vsel %vm363_vm1, %v514_v7, %v4927_v38  ;;  %v919_v57 = vshll.u32 %v3636_v3, 16  ;;  %v917_v40 = vor.u32 %v915_v43, %v4879_v52  ;;  %v4996_v44 = vcombine.low %v225_v56, %v4982_v16 }
 0x104   : > { %v572_v28 = vpop.permute.xlu1 %571  ;;  %v927_v25 = vshll.u32 %v4961_v21, 16  ;;  %v1060_v34 = vrot.slane %v4961_v21, 1  ;;  %v1059_v7 = vsel %vm606_vm0, %v1056_v0, %v1058_v54  ;;  %v520_v0 = vshrl.u32 %v4898_v22, 16 }
 0x105   : > { %v1287_v30 = vpop.permute.xlu0 %1286  ;;  %v1340_v36 = vsel %vm1322_vm3, %v4449_v2, %v572_v28 }
 0x106   : > { %v1680_v47 = vsel %vm6200_vm10, %v1631_v51, %v1287_v30  ;;  %1102 = vrot.lane.b32.xlu1 %v1057_v9, %s4197_s21  ;;  %v4975_v9 = vcombine.low %v223_v26, %v4969_v60  ;;  %v4977_v61 = vrot.slane %v927_v25, 1  ;;  %v1061_v33 = vsel %vm606_vm0, %v1058_v54, %v1060_v34 }
 0x107   : > { %1100 = vrot.lane.b32.xlu0 %v1055_v23, %s4197_s21  ;;  %3964 = vmatprep.mubr.msk.bf16.mxu0 %vm6199_vm11, %v1680_v47 }
 0x108   : > { %v574_v53 = vpop.permute.xlu1 %573 }
 0x109   : > { %v1289_v19 = vpop.permute.xlu0 %1288  ;;  %v1342_v27 = vsel %vm1322_vm3, %v4459_v29, %v574_v53 }
 0x10a   : > { %v1682_v14 = vsel %vm6200_vm10, %v1633_v5, %v1289_v19  ;;  %1160 = vrot.lane.b32.xlu1 %v4877_v46, %s4201_s4 }
 0x10b   : > { %1158 = vrot.lane.b32.xlu0 %v4800_v55, %s4201_s4  ;;  %3965 = vmatmul.mubr.msk.bf16.gmra.mrb[12].mxu0 %vm6199_vm11, %v1682_v14  ;;  %v528_v14 = vshrl.u32 %v4975_v9, 16 }
 0x10c   : > { %v673_v63 = vpop.permute.xlu1 %672 }
 0x10d   : > { %v671_v48 = vpop.permute.xlu0 %670 }
 0x10e   : > { %1243 = vrot.lane.b32.xlu1 %v4939_v49, %s4202_s5  ;;  %v1390_v52 = vsel %vm1372_vm4, %v1340_v36, %v671_v48 }
 0x10f   : > { %1241 = vrot.lane.b32.xlu0 %v511_v50, %s4202_s5 }
 0x110   : > { %v751_v31 = vpop.permute.xlu1 %750 }
 0x111   : > { %v749_v10 = vpop.permute.xlu0 %748 }
 0x112   : > { %587 = vrot.lane.b32.xlu1 %v4841_v8, %s4199_s27  ;;  %v921_v8 = vrot.slane %v919_v57, 1  ;;  %v1439_v47 = vsel %vm1421_vm5, %v1390_v52, %v749_v10 }
 0x113   : > { %1302 = vrot.lane.b32.xlu0 %v643_v24, %s4203_s6 }
 0x114   : > { %v993_v12 = vpop.permute.xlu1 %992  ;;  %v925_v23 = vor.u32 %v923_v39, %v921_v8  ;;  %v922_v30 = vsel %vm363_vm1, %v917_v40, %v921_v8 }
 0x115   : > { %v991_v42 = vpop.permute.xlu0 %990 }
 0x116   : > { %589 = vrot.lane.b32.xlu1 %v511_v50, %s4199_s27  ;;  %v930_v51 = vsel %vm363_vm1, %v925_v23, %v4977_v61  ;;  %v1488_v13 = vsel %vm1470_vm6, %v1439_v47, %v991_v42  ;;  %v1392_v50 = vsel %vm1372_vm4, %v1342_v27, %v673_v63  ;;  %v522_v42 = vor.u32 %v520_v0, %v4927_v38 }
 0x117   : > { %1304 = vrot.lane.b32.xlu0 %v4958_v41, %s4203_s6  ;;  %v1441_v48 = vsel %vm1421_vm5, %v1392_v50, %v751_v31  ;;  %v5079_v50 = vld [vmem:[%s4238_s17 + $0xb8] sm:$0xf] }
 0x118   : > { %v1091_v6 = vpop.permute.xlu1 %1090 }
 0x119   : > { %v1089_v58 = vpop.permute.xlu0 %1088 }
 0x11a   : > { %688 = vrot.lane.b32.xlu1 %v643_v24, %s4198_s24  ;;  %v1537_v5 = vsel %vm6203_vm7, %v1488_v13, %v1089_v58 }
 0x11b   : > { %686 = vrot.lane.b32.xlu0 %v4860_v11, %s4198_s24  ;;  %v524_v11 = vshll.u32 %v4975_v9, 16 }
 0x11c   : > { %v1149_v17 = vpop.permute.xlu1 %1148 }
 0x11d   : > { %v1147_v32 = vpop.permute.xlu0 %1146  ;;  %v526_v19 = vrot.slane %v524_v11, 1  ;;  %v227_v11 = vld [vmem:[%s4238_s17 + $0xb0] sm:$0xf] }
 0x11e   : > { %766 = vrot.lane.b32.xlu1 %v3636_v3, %s4196_s18  ;;  %v1586_v45 = vsel %vm6202_vm8, %v1537_v5, %v1147_v32  ;;  %v1490_v3 = vsel %vm1470_vm6, %v1441_v48, %v993_v12  ;;  %v3638_v32 = vcombine.low %v4969_v60, %v225_v56 }
 0x11f   : > { %764 = vrot.lane.b32.xlu0 %v4863_v18, %s4196_s18  ;;  %v532_v18 = vshll.u32 %v4996_v44, 16  ;;  %v1539_v26 = vsel %vm6203_vm7, %v1490_v3, %v1091_v6  ;;  %v530_v57 = vor.u32 %v528_v14, %v526_v19  ;;  %v527_v38 = vsel %vm363_vm1, %v522_v42, %v526_v19 }
 0x120   : > { %v1232_v2 = vpop.permute.xlu1 %1231  ;;  %v1588_v63 = vsel %vm6202_vm8, %v1539_v26, %v1149_v17  ;;  %v646_v6 = vrot.slane %v4975_v9, 1  ;;  %v648_v17 = vrot.slane %v4996_v44, 1  ;;  %v939_v56 = vshrl.u32 %v3638_v32, 16 }
 0x121   : > { %v1230_v28 = vpop.permute.xlu0 %1229  ;;  %v5025_v31 = vrot.slane %v532_v18, 1  ;;  %v1637_v8 = vsel %vm6201_vm9, %v1588_v63, %v1232_v2  ;;  %v931_v2 = vshrl.u32 %v4961_v21, 16  ;;  %v1062_v18 = vrot.slane %v3638_v32, 1 }
 0x122   : > { %1008 = vrot.lane.b32.xlu1 %v930_v51, %s4200_s30  ;;  %v1635_v29 = vsel %vm6201_vm9, %v1586_v45, %v1230_v28  ;;  %v647_v40 = vsel %vm606_vm0, %v644_v59, %v646_v6  ;;  %v5056_v52 = vsel %vm606_vm0, %v646_v6, %v648_v17  ;;  %v5059_v59 = vcombine.low %v4982_v16, %v227_v11  ;;  %v5067_v28 = vld [vmem:[%s4238_s17 + $0xb4] sm:$0xf]  ;;  %v5082_v45 = vld [vmem:[%s4238_s17 + $0xbc] sm:$0xf] }
 0x123   : > { %1006 = vrot.lane.b32.xlu0 %v922_v30, %s4200_s30  ;;  %v5037_v43 = vsel %vm363_vm1, %v530_v57, %v5025_v31  ;;  %v935_v51 = vshll.u32 %v3638_v32, 16  ;;  %v933_v5 = vor.u32 %v931_v2, %v4977_v61  ;;  %v5097_v3 = vcombine.low %v5079_v50, %v5082_v45 }
 0x124   : > { %v576_v53 = vpop.permute.xlu1 %575  ;;  %v943_v47 = vshll.u32 %v5059_v59, 16  ;;  %v1064_v0 = vrot.slane %v5059_v59, 1  ;;  %v1063_v57 = vsel %vm606_vm0, %v1060_v34, %v1062_v18  ;;  %v536_v34 = vshrl.u32 %v4996_v44, 16 }
 0x125   : > { %v1291_v24 = vpop.permute.xlu0 %1290 }
 0x126   : > { %v1684_v10 = vsel %vm6200_vm10, %v1635_v29, %v1291_v24  ;;  %1106 = vrot.lane.b32.xlu1 %v1061_v33, %s4197_s21  ;;  %v5073_v33 = vcombine.low %v227_v11, %v5067_v28  ;;  %v5075_v27 = vrot.slane %v943_v47, 1  ;;  %v1065_v63 = vsel %vm606_vm0, %v1062_v18, %v1064_v0  ;;  %v233_v18 = vld [vmem:[%s4238_s17 + $0xc0] sm:$0xf] }
 0x127   : > { %1104 = vrot.lane.b32.xlu0 %v1059_v7, %s4197_s21  ;;  %3968 = vmatprep.mubr.msk.bf16.mxu0 %vm6199_vm11, %v1684_v10 }
 0x128   : > { %v578_v12 = vpop.permute.xlu1 %577  ;;  %v540_v48 = vshll.u32 %v5073_v33, 16 }
 0x129   : > { %v1293_v39 = vpop.permute.xlu0 %1292  ;;  %v1346_v42 = vsel %vm1322_vm3, %v4516_v4, %v578_v12 }
 0x12a   : > { %v1686_v25 = vsel %vm6200_vm10, %v1637_v8, %v1293_v39  ;;  %1164 = vrot.lane.b32.xlu1 %v4975_v9, %s4201_s4  ;;  %v542_v39 = vrot.slane %v540_v48, 1 }
 0x12b   : > { %1162 = vrot.lane.b32.xlu0 %v4898_v22, %s4201_s4  ;;  %3969 = vmatmul.mubr.msk.bf16.gmra.mrb[16].mxu0 %vm6199_vm11, %v1686_v25  ;;  %v544_v25 = vshrl.u32 %v5073_v33, 16 }
 0x12c   : > { %v677_v58 = vpop.permute.xlu1 %676 }
 0x12d   : > { %v675_v23 = vpop.permute.xlu0 %674 }
 0x12e   : > { %1247 = vrot.lane.b32.xlu1 %v5037_v43, %s4202_s5 }
 0x12f   : > { %1245 = vrot.lane.b32.xlu0 %v527_v38, %s4202_s5 }
 0x130   : > { %v755_v54 = vpop.permute.xlu1 %754 }
 0x131   : > { %v753_v36 = vpop.permute.xlu0 %752 }
 0x132   : > { %591 = vrot.lane.b32.xlu1 %v4939_v49, %s4199_s27  ;;  %v937_v49 = vrot.slane %v935_v51, 1 }
 0x133   : > { %1306 = vrot.lane.b32.xlu0 %v647_v40, %s4203_s6 }
 0x134   : > { %v997_v30 = vpop.permute.xlu1 %996  ;;  %v941_v7 = vor.u32 %v939_v56, %v937_v49  ;;  %v938_v24 = vsel %vm363_vm1, %v933_v5, %v937_v49  ;;  %v3640_v5 = vcombine.low %v5067_v28, %v5079_v50  ;;  %v5167_v28 = vcombine.low %v5082_v45, %v233_v18 }
 0x135   : > { %v995_v60 = vpop.permute.xlu0 %994 }
 0x136   : > { %593 = vrot.lane.b32.xlu1 %v527_v38, %s4199_s27  ;;  %v946_v29 = vsel %vm363_vm1, %v941_v7, %v5075_v27  ;;  %v1396_v38 = vsel %vm1372_vm4, %v1346_v42, %v677_v58  ;;  %v959_v45 = vshll.u32 %v5167_v28, 16 }
 0x137   : > { %1308 = vrot.lane.b32.xlu0 %v5056_v52, %s4203_s6 }
 0x138   : > { %v1095_v16 = vpop.permute.xlu1 %1094 }
 0x139   : > { %v1093_v13 = vpop.permute.xlu0 %1092 }
 0x13a   : > { %692 = vrot.lane.b32.xlu1 %v647_v40, %s4198_s24 }
 0x13b   : > { %690 = vrot.lane.b32.xlu0 %v4958_v41, %s4198_s24  ;;  %v1344_v41 = vsel %vm1322_vm3, %v4505_v62, %v576_v53 }
 0x13c   : > { %v1153_v19 = vpop.permute.xlu1 %1152  ;;  %v1394_v61 = vsel %vm1372_vm4, %v1344_v41, %v675_v23  ;;  %v1445_v23 = vsel %vm1421_vm5, %v1396_v38, %v755_v54  ;;  %v5128_v54 = vor.u32 %v544_v25, %v542_v39  ;;  %v5193_v38 = vrot.slane %v959_v45, 1 }
 0x13d   : > { %v1151_v14 = vpop.permute.xlu0 %1150  ;;  %v1443_v62 = vsel %vm1421_vm5, %v1394_v61, %v753_v36  ;;  %v2264_v61 = vlaneseq }
 0x13e   : > { %770 = vrot.lane.b32.xlu1 %v3638_v32, %s4196_s18  ;;  %v1492_v26 = vsel %vm1470_vm6, %v1443_v62, %v995_v60  ;;  %v1494_v32 = vsel %vm1470_vm6, %v1445_v23, %v997_v30  ;;  %v538_v60 = vor.u32 %v536_v34, %v5025_v31 }
 0x13f   : > { %768 = vrot.lane.b32.xlu0 %v4961_v21, %s4196_s18  ;;  %v1541_v8 = vsel %vm6203_vm7, %v1492_v26, %v1093_v13  ;;  %v1182_v21 = vshll.u32 %v5097_v3, 16  ;;  %v1543_v11 = vsel %vm6203_vm7, %v1494_v32, %v1095_v16  ;;  %v5147_v16 = vrot.slane %v5073_v33, 1  ;;  %v5181_v26 = vld [vmem:[%s4238_s17 + $0xc4] sm:$0xf] }
 0x140   : > { %v1236_v53 = vpop.permute.xlu1 %1235  ;;  %v1590_v6 = vsel %vm6202_vm8, %v1541_v8, %v1151_v14  ;;  %v1592_v58 = vsel %vm6202_vm8, %v1543_v11, %v1153_v19  ;;  %v543_v2 = vsel %vm363_vm1, %v538_v60, %v542_v39  ;;  %v1266_v14 = vrot.slane %v5097_v3, 1 }
 0x141   : > { %v1234_v10 = vpop.permute.xlu0 %1233  ;;  %v5130_v51 = vrot.slane %v1182_v21, 1  ;;  %v1641_v30 = vsel %vm6201_vm9, %v1592_v58, %v1236_v53  ;;  %v651_v19 = vsel %vm606_vm0, %v648_v17, %v5147_v16  ;;  %v5175_v53 = vshrl.u32 %v2264_v61, 7 }
 0x142   : > { %1012 = vrot.lane.b32.xlu1 %v946_v29, %s4200_s30  ;;  %v1639_v4 = vsel %vm6201_vm9, %v1590_v6, %v1234_v10  ;;  %v951_v29 = vshll.u32 %v3640_v5, 16  ;;  %v1267_v17 = vsel %vm606_vm0, %v5147_v16, %v1266_v14  ;;  %v955_v10 = vshrl.u32 %v3640_v5, 16 }
 0x143   : > { %1010 = vrot.lane.b32.xlu0 %v938_v24, %s4200_s30  ;;  %v1185_v31 = vsel %vm363_vm1, %v5128_v54, %v5130_v51  ;;  %v5185_v8 = vadd.s32 16, %v5175_v53  ;;  %v5188_v39 = vcombine.low %v233_v18, %v5181_v26  ;;  %v5196_v6 = vadd.s32 24, %v5175_v53 }
 0x144   : > { %v5119_v12 = vpop.permute.xlu1 %579  ;;  %v5200_v34 = vadd.s32 8, %v5175_v53  ;;  %v5209_v58 = vmul.u32.u64.low 2863311531, %v5175_v53  ;;  %v5210_v60 = vmul.u32.u64.high 2863311531, %v5175_v53, %v5209_v58 }
 0x145   : > { %v1295_v40 = vpop.permute.xlu0 %1294  ;;  %v1190_v11 = vshll.u32 %v5188_v39, 16 }
 0x146   : > { %v1688_v36 = vsel %vm6200_vm10, %v1639_v4, %v1295_v40  ;;  %1110 = vrot.lane.b32.xlu1 %v1065_v63, %s4197_s21  ;;  %v947_v63 = vshrl.u32 %v5059_v59, 16  ;;  %v1066_v40 = vrot.slane %v3640_v5, 1 }
 0x147   : > { %1108 = vrot.lane.b32.xlu0 %v1063_v57, %s4197_s21  ;;  %3972 = vmatprep.mubr.msk.bf16.mxu0 %vm6199_vm11, %v1688_v36  ;;  %v5203_v32 = vmul.u32.u64.low 2863311531, %v5185_v8  ;;  %v5204_v36 = vmul.u32.u64.high 2863311531, %v5185_v8, %v5203_v32 }
 0x148   : > { %v5134_v49 = vpop.permute.xlu1 %581  ;;  %v949_v21 = vor.u32 %v947_v63, %v5075_v27  ;;  %v1348_v27 = vsel %vm1322_vm3, %v4584_v20, %v5119_v12  ;;  %v5230_v20 = vmul.u32.u64.low 2863311531, %v5200_v34  ;;  %v5231_v12 = vmul.u32.u64.high 2863311531, %v5200_v34, %v5230_v20 }
 0x149   : > { %v1297_v56 = vpop.permute.xlu0 %1296  ;;  %v1350_v45 = vsel %vm1322_vm3, %v4600_v1, %v5134_v49  ;;  %v2340_v32 = vshrl.u32 %v5204_v36, 4 }
 0x14a   : > { %v1690_v47 = vsel %vm6200_vm10, %v1641_v30, %v1297_v56  ;;  %1168 = vrot.lane.b32.xlu1 %v5073_v33, %s4201_s4  ;;  %v5221_v56 = vld [vmem:[%s4238_s17 + $0xc8] sm:$0xff]  }
 0x14b   : > { %1166 = vrot.lane.b32.xlu0 %v4996_v44, %s4201_s4  ;;  %3973 = vmatmul.mubr.msk.bf16.gmra.mrb[20].mxu0 %vm6199_vm11, %v1690_v47  ;;  %v1198_v63 = vshll.u32 %v5221_v56, 16 }
 0x14c   : > { %v5149_v13 = vpop.permute.xlu1 %680 }
 0x14d   : > { %v679_v7 = vpop.permute.xlu0 %678  ;;  %v5270_v58 = vrot.slane %v1198_v63, 1 }
 0x14e   : > { %1251 = vrot.lane.b32.xlu1 %v1185_v31, %s4202_s5  ;;  %v5224_v47 = vmul.u32.u64.low 2863311531, %v5196_v6  ;;  %v5225_v31 = vmul.u32.u64.high 2863311531, %v5196_v6, %v5224_v47 }
 0x14f   : > { %1249 = vrot.lane.b32.xlu0 %v543_v2, %s4202_s5 }
 0x150   : > { %v5161_v41 = vpop.permute.xlu1 %758 }
 0x151   : > { %v757_v48 = vpop.permute.xlu0 %756 }
 0x152   : > { %595 = vrot.lane.b32.xlu1 %v5037_v43, %s4199_s27  ;;  %v953_v43 = vrot.slane %v951_v29, 1  ;;  %v230_v29 = vld [vmem:[%s4238_s17 + $0xbc] sm:$0x1] }
 0x153   : > { %1310 = vrot.lane.b32.xlu0 %v651_v19, %s4203_s6 }
 0x154   : > { %v5173_v24 = vpop.permute.xlu1 %1000  ;;  %v957_v25 = vor.u32 %v955_v10, %v953_v43 }
 0x155   : > { %v999_v62 = vpop.permute.xlu0 %998 }
 0x156   : > { %597 = vrot.lane.b32.xlu1 %v543_v2, %s4199_s27  ;;  %v962_v30 = vsel %vm363_vm1, %v957_v25, %v5193_v38  ;;  %v1398_v2 = vsel %vm1372_vm4, %v1348_v27, %v679_v7  ;;  %v1067_v7 = vsel %vm606_vm0, %v1064_v0, %v1066_v40  ;;  %v1186_v25 = vshrl.u32 %v5097_v3, 16 }
 0x157   : > { %1312 = vrot.lane.b32.xlu0 %v1267_v17, %s4203_s6  ;;  %v2351_v27 = vshrl.u32 %v5225_v31, 4 }
 0x158   : > { %v1099_v57 = vpop.permute.xlu1 %1098 }
 0x159   : > { %v1097_v42 = vpop.permute.xlu0 %1096 }
 0x15a   : > { %696 = vrot.lane.b32.xlu1 %v651_v19, %s4198_s24  ;;  %v954_v19 = vsel %vm363_vm1, %v949_v21, %v953_v43  ;;  %v1192_v43 = vrot.slane %v1190_v11, 1  ;;  %v5255_v21 = vcombine.low %v5079_v50, %v230_v29  ;;  %v2318_v11 = vshrl.u32 %v5210_v60, 4 }
 0x15b   : > { %694 = vrot.lane.b32.xlu0 %v5056_v52, %s4198_s24  ;;  %v1068_v52 = vrot.slane %v5167_v28, 1  ;;  %v2329_v60 = vshrl.u32 %v5231_v12, 4 }
 0x15c   : > { %v1157_v23 = vpop.permute.xlu1 %1156  ;;  %v2319_v31 = vmul.u32 24, %v2318_v11 }
 0x15d   : > { %v1155_v4 = vpop.permute.xlu0 %1154  ;;  %v1069_v10 = vsel %vm606_vm0, %v1066_v40, %v1068_v52 }
 0x15e   : > { %774 = vrot.lane.b32.xlu1 %v3640_v5, %s4196_s18  ;;  %v1447_v5 = vsel %vm1421_vm5, %v1398_v2, %v757_v48 }
 0x15f   : > { %772 = vrot.lane.b32.xlu0 %v5059_v59, %s4196_s18  ;;  %v1496_v17 = vsel %vm1470_vm6, %v1447_v5, %v999_v62  ;;  %v1194_v62 = vshrl.u32 %v5188_v39, 16  ;;  %v1400_v59 = vsel %vm1372_vm4, %v1350_v45, %v5149_v13  ;;  %v552_v45 = vshrl.u32 %v5255_v21, 16 }
 0x160   : > { %v1240_v18 = vpop.permute.xlu1 %1239  ;;  %v1545_v48 = vsel %vm6203_vm7, %v1496_v17, %v1097_v42  ;;  %v1449_v1 = vsel %vm1421_vm5, %v1400_v59, %v5161_v41 }
 0x161   : > { %v1238_v61 = vpop.permute.xlu0 %1237  ;;  %v1594_v0 = vsel %vm6202_vm8, %v1545_v48, %v1155_v4  ;;  %v1498_v13 = vsel %vm1470_vm6, %v1449_v1, %v5173_v24  ;;  %v1196_v41 = vor.u32 %v1194_v62, %v1192_v43  ;;  %v1188_v24 = vor.u32 %v1186_v25, %v5130_v51 }
 0x162   : > { %1016 = vrot.lane.b32.xlu1 %v962_v30, %s4200_s30  ;;  %v1643_v49 = vsel %vm6201_vm9, %v1594_v0, %v1238_v61  ;;  %v1547_v50 = vsel %vm6203_vm7, %v1498_v13, %v1099_v57  ;;  %v548_v30 = vshll.u32 %v5255_v21, 16  ;;  %v2330_v61 = vmul.u32 24, %v2329_v60 }
 0x163   : > { %1014 = vrot.lane.b32.xlu0 %v954_v19, %s4200_s30  ;;  %v1596_v36 = vsel %vm6202_vm8, %v1547_v50, %v1157_v23  ;;  %v2341_v19 = vmul.u32 24, %v2340_v32  ;;  %v1201_v51 = vsel %vm363_vm1, %v1196_v41, %v5270_v58  ;;  %v2352_v23 = vmul.u32 24, %v2351_v27  ;;  %v5342_v41 = vld [vmem:[%s4238_s17 + $0xd0] sm:$0xf]  ;;  %v240_v27 = vld [vmem:[%s4238_s17 + $0xd4] sm:$0x1] }
 0x164   : > { %v5260_v42 = vpop.permute.xlu1 %583  ;;  %v1645_v57 = vsel %vm6201_vm9, %v1596_v36, %v1240_v18  ;;  %v1193_v12 = vsel %vm363_vm1, %v1188_v24, %v1192_v43  ;;  %v550_v5 = vrot.slane %v548_v30, 1  ;;  %v1268_v18 = vrot.slane %v5188_v39, 1 }
 0x165   : > { %v1299_v40 = vpop.permute.xlu0 %1298  ;;  %v2320_v48 = vsub.s32 %v5175_v53, %v2319_v31  ;;  %v1270_v43 = vrot.slane %v5221_v56, 1  ;;  %v2331_v63 = vsub.s32 %v5200_v34, %v2330_v61  ;;  %v5380_v61 = vadd.s32 56, %v5175_v53 }
 0x166   : > { %v1692_v4 = vsel %vm6200_vm10, %v1643_v49, %v1299_v40  ;;  %1114 = vrot.lane.b32.xlu1 %v1069_v10, %s4197_s21  ;;  %v2342_v10 = vsub.s32 %v5185_v8, %v2341_v19  ;;  %v551_v62 = vsel %vm363_vm1, %v5128_v54, %v550_v5  ;;  %v1269_v8 = vsel %vm606_vm0, %v1266_v14, %v1268_v18 }
 0x167   : > { %1112 = vrot.lane.b32.xlu0 %v1067_v7, %s4197_s21  ;;  %3976 = vmatprep.mubr.msk.bf16.mxu1 %vm6199_vm11, %v1692_v4  ;;  %v235_v7 = vld [vmem:[%s4238_s17 + $0xc8] sm:$0x1]  ;;  %v554_v1 = vor.u32 %v552_v45, %v550_v5  ;;  %vm2829_vm14 = vcmp.ne.s32.totalorder %v2320_v48, 0  ;;  %vm2876_vm15 = vcmp.lt.s32.totalorder %v2320_v48, 0  ;;  %v652_v54 = vrot.slane %v5255_v21, 1 }
 0x168   : > { %v5279_v47 = vpop.permute.xlu1 %585  ;;  %v5310_v59 = vcombine.low %v5181_v26, %v235_v7  ;;  %vm2831_vm12 = vcmp.ne.s32.totalorder %v2342_v10, 0  ;;  %vm2878_vm13 = vcmp.lt.s32.totalorder %v2342_v10, 0  ;;  %v2970_v34 = vadd.s32 24, %v2320_v48  ;;  %vm5331_vm7 = vmand %vm2876_vm15, %vm2829_vm14 }
 0x169   : > { %v1301_v2 = vpop.permute.xlu0 %1300  ;;  %vm2830_vm9 = vcmp.ne.s32.totalorder %v2331_v63, 0  ;;  %vm2877_vm8 = vcmp.lt.s32.totalorder %v2331_v63, 0  ;;  %v963_v4 = vshrl.u32 %v5167_v28, 16  ;;  %v2971_v50 = vadd.s32 24, %v2331_v63 }
 0x16a   : > { %v1694_v20 = vsel %vm6200_vm10, %v1645_v57, %v1301_v2  ;;  %1172 = vrot.lane.b32.xlu1 %v5188_v39, %s4201_s4  ;;  %v2353_v39 = vsub.s32 %v5196_v6, %v2352_v23  ;;  %vm5322_vm10 = vmand %vm2878_vm13, %vm2831_vm12  ;;  %v2972_v6 = vadd.s32 24, %v2342_v10  ;;  %v967_v13 = vshll.u32 %v5310_v59, 16 }
 0x16b   : > { %1170 = vrot.lane.b32.xlu0 %v5097_v3, %s4201_s4  ;;  %3977 = vmatmul.mubr.msk.bf16.vlgmr.msra.gmra.mrb[0].mxu1 %vm6199_vm11, %v1694_v20  ;;  %v1271_v3 = vsel %vm606_vm0, %v1268_v18, %v1270_v43  ;;  %vm5347_vm13 = vmand %vm2877_vm8, %vm2830_vm9  ;;  %v653_v24 = vsel %vm606_vm0, %v5147_v16, %v652_v54  ;;  %v3017_v60 = vsel %vm5331_vm7, %v2970_v34, %v2320_v48  ;;  %v971_v57 = vshrl.u32 %v5310_v59, 16 }
 0x16c   : > { %v5291_v29 = vpop.permute.xlu1 %684  ;;  %vm2832_vm2 = vcmp.ne.s32.totalorder %v2353_v39, 0  ;;  %vm2879_vm11 = vcmp.lt.s32.totalorder %v2353_v39, 0  ;;  %v2973_v21 = vadd.s32 24, %v2353_v39  ;;  %v3019_v30 = vsel %vm5322_vm10, %v2972_v6, %v2342_v10 }
 0x16d   : > { %v5293_v17 = vpop.permute.xlu0 %682  ;;  %vm5337_vm12 = vmand %vm2879_vm11, %vm2832_vm2  ;;  %v969_v31 = vrot.slane %v967_v13, 1  ;;  %v5364_v16 = vcombine.low %v5342_v41, %v240_v27  ;;  %v3018_v23 = vsel %vm5347_vm13, %v2971_v50, %v2331_v63  ;;  %v5370_v5 = vadd.s32 48, %v5175_v53 }
 0x16e   : > { %1255 = vrot.lane.b32.xlu1 %v1201_v51, %s4202_s5  ;;  %v3020_v20 = vsel %vm5337_vm12, %v2973_v21, %v2353_v39  ;;  %v965_v51 = vor.u32 %v963_v4, %v5193_v38  ;;  %v3642_v18 = vcombine.low %v5181_v26, %v5181_v26  ;;  %v5377_v38 = vadd.s32 32, %v5175_v53 }
 0x16f   : > { %1253 = vrot.lane.b32.xlu0 %v1193_v12, %s4202_s5  ;;  %v1070_v12 = vrot.slane %v5310_v59, 1  ;;  %vm5382_vm7 = vcmp.lt.s32.totalorder %v3019_v30, 16  ;;  %vm5386_vm8 = vcmp.lt.s32.totalorder %v3017_v60, 16  ;;  %vm5390_vm9 = vcmp.lt.s32.totalorder %v3020_v20, 16 }
 0x170   : > { %v5312_v0 = vpop.permute.xlu1 %762  ;;  %v5395_v26 = vadd.s32 40, %v5175_v53  ;;  %vm5400_vm10 = vcmp.lt.s32.totalorder %v3018_v23, 16  ;;  %v970_v63 = vsel %vm363_vm1, %v965_v51, %v969_v31  ;;  %v1352_v4 = vsel %vm1322_vm3, %v4684_v15, %v5260_v42 }
 0x171   : > { %v5314_v25 = vpop.permute.xlu0 %760  ;;  %v5414_v14 = vmul.u32.u64.low 2863311531, %v5370_v5  ;;  %v5415_v6 = vmul.u32.u64.high 2863311531, %v5370_v5, %v5414_v14  ;;  %v5421_v32 = vmul.u32.u64.low 2863311531, %v5377_v38  ;;  %v5422_v21 = vmul.u32.u64.high 2863311531, %v5377_v38, %v5421_v32 }
 0x172   : > { %599 = vrot.lane.b32.xlu1 %v551_v62, %s4199_s27  ;;  %v1202_v50 = vshrl.u32 %v5221_v56, 16  ;;  %v5433_v27 = vmul.u32.u64.low 2863311531, %v5395_v26  ;;  %v5434_v36 = vmul.u32.u64.high 2863311531, %v5395_v26, %v5433_v27  ;;  %vm6220_vm11 = vcmask 326656  }
 0x173   : > { %1314 = vrot.lane.b32.xlu0 %v1269_v8, %s4203_s6  ;;  %v973_v8 = vor.u32 %v971_v57, %v969_v31  ;;  %v1210_v31 = vshrl.u32 %v5364_v16, 16  ;;  %vm6221_vm14 = vcmask 392192   ;;  %vm6222_vm15 = vcmask 457728   ;;  %vm6224_vm12 = vmmov %vm6220_vm11 }
 0x174   : > { %v5326_v49 = vpop.permute.xlu1 %1004  ;;  %vm6223_vm2 = vcmask 523264   ;;  %v2384_v45 = vshrl.u32 %v5415_v6, 4  ;;  %vm6225_vm13 = vcmask 588800  }
 0x175   : > { %v5328_v40 = vpop.permute.xlu0 %1002 }
 0x176   : > { %601 = vrot.lane.b32.xlu1 %v554_v1, %s4199_s27  ;;  %v1206_v1 = vshll.u32 %v5364_v16, 16 }
 0x177   : > { %1316 = vrot.lane.b32.xlu0 %v1271_v3, %s4203_s6  ;;  %v1071_v3 = vsel %vm606_vm0, %v1068_v52, %v1070_v12  ;;  %v5425_v13 = vmul.u32.u64.low 2863311531, %v5380_v61  ;;  %v5426_v52 = vmul.u32.u64.high 2863311531, %v5380_v61, %v5425_v13 }
 0x178   : > { %v5358_v2 = vpop.permute.xlu1 %1102  ;;  %v1208_v60 = vrot.slane %v1206_v1, 1 }
 0x179   : > { %v1101_v19 = vpop.permute.xlu0 %1100 }
 0x17a   : > { %700 = vrot.lane.b32.xlu1 %v652_v54, %s4198_s24  ;;  %v3648_v54 = vcombine.low %v5342_v41, %v5342_v41 }
 0x17b   : > { %698 = vrot.lane.b32.xlu0 %v653_v24, %s4198_s24  ;;  %v1402_v24 = vsel %vm1372_vm4, %v1352_v4, %v5293_v17 }
 0x17c   : > { %v5397_v48 = vpop.permute.xlu1 %1160 }
 0x17d   : > { %v1159_v39 = vpop.permute.xlu0 %1158 }
 0x17e   : > { %v3954_v34 = vpop.f32.mrb[0].mxu0  ;;  %778 = vrot.lane.b32.xlu1 %v3642_v18, %s4196_s18 }
 0x17f   : > { %776 = vrot.lane.b32.xlu0 %v5167_v28, %s4196_s18  ;;  %v1838_v11 = vpop.f32.mrb[1].mxu0  ;;  %v1354_v28 = vsel %vm1322_vm3, %v4697_v37, %v5279_v47  ;;  %v1451_v37 = vsel %vm1421_vm5, %v1402_v24, %v5314_v25  ;;  %v3301_v23 = vsel %vm5382_vm7, %v3954_v34, 0.0  ;;  %vm6226_vm7 = vmmov %vm6221_vm14  ;;  %v2385_v24 = vmul.u32 24, %v2384_v45  ;;  %s181_s18 = scalar_lea.vmem %s6198_s3, %s3592_s15 }
 0x180   : > { %v3299_v30 = vsel %vm5386_vm8, %v1838_v11, 0.0  ;;  %v3955_v15 = vpop.f32.mrb[2].mxu0  ;;  %v1244_v42 = vpop.permute.xlu1 %1243  ;;  %v1404_v57 = vsel %vm1372_vm4, %v1354_v28, %v5291_v29  ;;  %v1500_v51 = vsel %vm1470_vm6, %v1451_v37, %v5328_v40  ;;  %vm6227_vm8 = vmmov %vm6222_vm15 }
 0x181   : > { %v3784_v47 = vpack.c.bf16 %v3955_v15, %v3954_v34  ;;  %v1841_v17 = vpop.f32.mrb[3].mxu0  ;;  %v1242_v20 = vpop.permute.xlu0 %1241  ;;  %v1549_v29 = vsel %vm6220_vm11, %v1500_v51, %v1101_v19  ;;  %v3399_v25 = vmul.f32 %v3299_v30, %v3299_v30  ;;  %v1453_v40 = vsel %vm1421_vm5, %v1404_v57, %v5312_v0 }
 0x182   : > { %v3779_v18 = vpack.c.bf16 %v1841_v17, %v1838_v11  ;;  %v3300_v7 = vsel %vm5400_vm10, %v1841_v17, 0.0  ;;  %1020 = vrot.lane.b32.xlu1 %v973_v8, %s4200_s30  ;;  %v1598_v10 = vsel %vm6221_vm14, %v1549_v29, %v1159_v39  ;;  %v3302_v34 = vsel %vm5390_vm9, %v3955_v15, 0.0  ;;  %vm6228_vm9 = vmmov %vm6223_vm2 }
 0x183   : > { %1018 = vrot.lane.b32.xlu0 %v970_v63, %s4200_s30  ;;  %3891 = vst [vmem:[%s5446_s14 + $0x8] sm:$0xff] %v3784_v47   ;;  %v3346_v1 = vadd.f32 %v3300_v7, %v3299_v30  ;;  %v3400_v14 = vmul.f32 %v3300_v7, %v3300_v7  ;;  %v1204_v8 = vor.u32 %v1202_v50, %v5270_v58  ;;  %v2362_v58 = vshrl.u32 %v5422_v21, 4  ;;  %vm6229_vm10 = vmmov %vm6225_vm13 }
 0x184   : > { %3780 = vst [vmem:[%s5446_s14] sm:$0xff] %v3779_v18   ;;  %v5469_v62 = vpop.permute.xlu1 %587  ;;  %v3401_v63 = vmul.f32 %v3301_v23, %v3301_v23  ;;  %v1647_v13 = vsel %vm6222_vm15, %v1598_v10, %v1242_v20  ;;  %v1502_v11 = vsel %vm1470_vm6, %v1453_v40, %v5326_v49  ;;  %v3402_v50 = vmul.f32 %v3302_v34, %v3302_v34 }
 0x185   : > { %v3347_v32 = vadd.f32 %v3346_v1, %v3301_v23  ;;  %v3446_v19 = vadd.f32 %v3400_v14, %v3399_v25  ;;  %v1303_v4 = vpop.permute.xlu0 %1302  ;;  %v1551_v39 = vsel %vm6224_vm12, %v1502_v11, %v5358_v2  ;;  %v1272_v30 = vrot.slane %v5364_v16, 1 }
 0x186   : > { %v1696_v0 = vsel %vm6223_vm2, %v1647_v13, %v1303_v4  ;;  %1118 = vrot.lane.b32.xlu1 %v1070_v12, %s4197_s21  ;;  %v1600_v28 = vsel %vm6226_vm7, %v1551_v39, %v5397_v48  ;;  %v2373_v12 = vshrl.u32 %v5434_v36, 4  ;;  %v1212_v48 = vor.u32 %v1210_v31, %v1208_v60 }
 0x187   : > { %1116 = vrot.lane.b32.xlu0 %v1071_v3, %s4197_s21  ;;  %v3447_v27 = vadd.f32 %v3446_v19, %v3401_v63  ;;  %3980 = vmatprep.mubr.msk.bf16.mxu1 %vm6225_vm13, %v1696_v0  ;;  %v5485_v49 = vadd.f32 %v3347_v32, %v3302_v34  ;;  %v1649_v3 = vsel %vm6227_vm8, %v1600_v28, %v1244_v42  ;;  %v2363_v15 = vmul.u32 24, %v2362_v58 }
 0x188   : > { %v5489_v59 = vpop.permute.xlu1 %589  ;;  %v1209_v36 = vsel %vm363_vm1, %v1204_v8, %v1208_v60  ;;  %v2395_v42 = vshrl.u32 %v5426_v52, 4  ;;  %v2374_v37 = vmul.u32 24, %v2373_v12  ;;  %v2386_v41 = vsub.s32 %v5370_v5, %v2385_v24 }
 0x189   : > { %v1305_v6 = vpop.permute.xlu0 %1304  ;;  %v5493_v21 = vadd.f32 %v3447_v27, %v3402_v50  ;;  %v2364_v60 = vsub.s32 %v5377_v38, %v2363_v15  ;;  %v5540_v14 = vadd.s32 80, %v5175_v53  ;;  %v5549_v34 = vadd.s32 64, %v5175_v53 }
 0x18a   : > { %v1698_v2 = vsel %vm6228_vm9, %v1649_v3, %v1305_v6  ;;  %1176 = vrot.lane.b32.xlu1 %v3648_v54, %s4201_s4  ;;  %v1273_v54 = vsel %vm606_vm0, %v1270_v43, %v1272_v30  ;;  %v2396_v17 = vmul.u32 24, %v2395_v42  ;;  %v2375_v52 = vsub.s32 %v5395_v26, %v2374_v37 }
 0x18b   : > { %1174 = vrot.lane.b32.xlu0 %v5221_v56, %s4201_s4  ;;  %3981 = vmatmul.mubr.msk.bf16.gmra.mrb[4].mxu1 %vm6229_vm10, %v1698_v2  ;;  %vm2835_vm1 = vcmp.ne.s32.totalorder %v2386_v41, 0  ;;  %vm2882_vm11 = vcmp.lt.s32.totalorder %v2386_v41, 0  ;;  %vm2833_vm14 = vcmp.ne.s32.totalorder %v2364_v60, 0  ;;  %vm2880_vm15 = vcmp.lt.s32.totalorder %v2364_v60, 0 }
 0x18c   : > { %v689_v57 = vpop.permute.xlu1 %688  ;;  %v2397_v56 = vsub.s32 %v5380_v61, %v2396_v17  ;;  %vm2834_vm0 = vcmp.ne.s32.totalorder %v2375_v52, 0  ;;  %vm2881_vm2 = vcmp.lt.s32.totalorder %v2375_v52, 0  ;;  %vm5521_vm12 = vmand %vm2882_vm11, %vm2835_vm1  ;;  %v2976_v26 = vadd.s32 24, %v2386_v41 }
 0x18d   : > { %v687_v47 = vpop.permute.xlu0 %686  ;;  %v2974_v31 = vadd.s32 24, %v2364_v60  ;;  %vm5525_vm13 = vmand %vm2880_vm15, %vm2833_vm14  ;;  %v2975_v23 = vadd.s32 24, %v2375_v52  ;;  %v5552_v8 = vadd.s32 88, %v5175_v53  ;;  %v5555_v63 = vadd.s32 72, %v5175_v53 }
 0x18e   : > { %1259 = vrot.lane.b32.xlu1 %v1212_v48, %s4202_s5  ;;  %vm2836_vm7 = vcmp.ne.s32.totalorder %v2397_v56, 0  ;;  %vm2883_vm8 = vcmp.lt.s32.totalorder %v2397_v56, 0  ;;  %vm5529_vm9 = vmand %vm2881_vm2, %vm2834_vm0  ;;  %v3023_v29 = vsel %vm5521_vm12, %v2976_v26, %v2386_v41  ;;  %v2977_v1 = vadd.s32 24, %v2397_v56 }
 0x18f   : > { %1257 = vrot.lane.b32.xlu0 %v1209_v36, %s4202_s5  ;;  %v3021_v25 = vsel %vm5525_vm13, %v2974_v31, %v2364_v60  ;;  %vm5542_vm10 = vmand %vm2883_vm8, %vm2836_vm7  ;;  %v3022_v10 = vsel %vm5529_vm9, %v2975_v23, %v2375_v52  ;;  %vm5557_vm1 = vcmp.lt.s32.totalorder %v3023_v29, 16  ;;  %v1356_v12 = vsel %vm1322_vm3, %v4779_v35, %v5469_v62 }
 0x190   : > { %v5513_v16 = vpop.permute.xlu1 %766  ;;  %vm3068_vm11 = vcmp.lt.s32.totalorder %v3021_v25, 16  ;;  %v3024_v4 = vsel %vm5542_vm10, %v2977_v1, %v2397_v56  ;;  %vm5563_vm14 = vcmp.lt.s32.totalorder %v3022_v10, 16  ;;  %v1358_v3 = vsel %vm1322_vm3, %v4800_v55, %v5489_v59 }
 0x191   : > { %v765_v20 = vpop.permute.xlu0 %764  ;;  %v5568_v0 = vmul.u32.u64.low 2863311531, %v5540_v14  ;;  %v5569_v45 = vmul.u32.u64.high 2863311531, %v5540_v14, %v5568_v0  ;;  %v5572_v39 = vmul.u32.u64.low 2863311531, %v5549_v34  ;;  %v5573_v50 = vmul.u32.u64.high 2863311531, %v5549_v34, %v5572_v39 }
 0x192   : > { %1320 = vrot.lane.b32.xlu1 %v1272_v30, %s4203_s6  ;;  %v5576_v27 = vmul.u32.u64.low 2863311531, %v5552_v8  ;;  %v5577_v28 = vmul.u32.u64.high 2863311531, %v5552_v8, %v5576_v27  ;;  %v5586_v2 = vmul.u32.u64.low 2863311531, %v5555_v63  ;;  %v5587_v48 = vmul.u32.u64.high 2863311531, %v5555_v63, %v5586_v2 }
 0x193   : > { %1318 = vrot.lane.b32.xlu0 %v1273_v54, %s4203_s6  ;;  %v1408_v24 = vsel %vm1372_vm4, %v1358_v3, %v689_v57  ;;  %v1406_v36 = vsel %vm1372_vm4, %v1356_v12, %v687_v47  ;;  %vm5591_vm15 = vcmp.lt.s32.totalorder %v3024_v4, 16  ;;  %vm6244_vm0 = vcmask 326656  }
 0x194   : > { %v5519_v5 = vpop.permute.xlu1 %1008  ;;  %v1455_v62 = vsel %vm1421_vm5, %v1406_v36, %v765_v20  ;;  %v1457_v38 = vsel %vm1421_vm5, %v1408_v24, %v5513_v16  ;;  %vm6245_vm2 = vcmask 392192   ;;  %vm6246_vm12 = vcmask 457728   ;;  %vm6248_vm7 = vmmov %vm6244_vm0 }
 0x195   : > { %v1007_v43 = vpop.permute.xlu0 %1006  ;;  %v1506_v29 = vsel %vm1470_vm6, %v1457_v38, %v5519_v5  ;;  %vm6247_vm13 = vcmask 523264   ;;  %v2428_v16 = vshrl.u32 %v5569_v45, 4  ;;  %v2406_v1 = vshrl.u32 %v5573_v50, 4  ;;  %vm6250_vm9 = vmmov %vm6245_vm2 }
 0x196   : > { %v1504_v57 = vsel %vm1470_vm6, %v1455_v62, %v1007_v43  ;;  %vm6249_vm8 = vcmask 588800   ;;  %v2417_v5 = vshrl.u32 %v5587_v48, 4  ;;  %vm6251_vm10 = vmmov %vm6246_vm12  ;;  %v2439_v27 = vshrl.u32 %v5577_v28, 4 }
 0x197   : > { %v2429_v50 = vmul.u32 24, %v2428_v16 }
 0x198   : > { %v5533_v18 = vpop.permute.xlu1 %1106  ;;  %v2418_v3 = vmul.u32 24, %v2417_v5  ;;  %v2440_v48 = vmul.u32 24, %v2439_v27 }
 0x199   : > { %v1105_v7 = vpop.permute.xlu0 %1104  ;;  %v1555_v40 = vsel %vm6248_vm7, %v1506_v29, %v5533_v18  ;;  %v2407_v18 = vmul.u32 24, %v2406_v1 }
 0x19a   : > { %v1553_v52 = vsel %vm6244_vm0, %v1504_v57, %v1105_v7  ;;  %v2419_v36 = vsub.s32 %v5555_v63, %v2418_v3  ;;  %v5659_v57 = vadd.s32 112, %v5175_v53 }
 0x19b   : > { %v2408_v2 = vsub.s32 %v5549_v34, %v2407_v18 }
 0x19c   : > { %v1165_v32 = vpop.permute.xlu1 %1164  ;;  %v2979_v62 = vadd.s32 24, %v2419_v36 }
 0x19d   : > { %v1163_v13 = vpop.permute.xlu0 %1162  ;;  %v1604_v4 = vsel %vm6250_vm9, %v1555_v40, %v1165_v32  ;;  %v2430_v32 = vsub.s32 %v5540_v14, %v2429_v50  ;;  %vm2837_vm0 = vcmp.ne.s32.totalorder %v2408_v2, 0 }
 0x19e   : > { %v3958_v58 = vpop.f32.mrb[4].mxu0  ;;  %v1602_v26 = vsel %vm6245_vm2, %v1553_v52, %v1163_v13  ;;  %vm2884_vm2 = vcmp.lt.s32.totalorder %v2408_v2, 0  ;;  %v5671_v52 = vadd.s32 120, %v5175_v53 }
 0x19f   : > { %v1854_v6 = vpop.f32.mrb[5].mxu0  ;;  %v3305_v47 = vsel %vm5557_vm1, %v3958_v58, 0.0  ;;  %vm6252_vm1 = vmmov %vm6247_vm13  ;;  %v2980_v34 = vadd.s32 24, %v2430_v32 }
 0x1a0   : > { %v3303_v30 = vsel %vm3068_vm11, %v1854_v6, 0.0  ;;  %v3959_v15 = vpop.f32.mrb[6].mxu0  ;;  %v1248_v35 = vpop.permute.xlu1 %1247  ;;  %v3405_v51 = vmul.f32 %v3305_v47, %v3305_v47  ;;  %vm6253_vm11 = vmmov %vm6249_vm8 }
 0x1a1   : > { %v3349_v55 = vadd.f32 %v5485_v49, %v3303_v30  ;;  %v3403_v59 = vmul.f32 %v3303_v30, %v3303_v30  ;;  %v3794_v37 = vpack.c.bf16 %v3959_v15, %v3958_v58  ;;  %v1857_v41 = vpop.f32.mrb[7].mxu0  ;;  %v1246_v54 = vpop.permute.xlu0 %1245  ;;  %v3306_v43 = vsel %vm5591_vm15, %v3959_v15, 0.0 }
 0x1a2   : > { %v3789_v60 = vpack.c.bf16 %v1857_v41, %v1854_v6  ;;  %v3304_v17 = vsel %vm5563_vm14, %v1857_v41, 0.0  ;;  %v1651_v7 = vsel %vm6246_vm12, %v1602_v26, %v1246_v54  ;;  %v3406_v10 = vmul.f32 %v3306_v43, %v3306_v43 }
 0x1a3   : > { %v3449_v20 = vadd.f32 %v5493_v21, %v3403_v59  ;;  %3893 = vst [vmem:[%s5446_s14 + $0x18] sm:$0xff] %v3794_v37   ;;  %v3350_v49 = vadd.f32 %v3349_v55, %v3304_v17  ;;  %v3404_v56 = vmul.f32 %v3304_v17, %v3304_v17  ;;  %v1653_v0 = vsel %vm6251_vm10, %v1604_v4, %v1248_v35 }
 0x1a4   : > { %3892 = vst [vmem:[%s5446_s14 + $0x10] sm:$0xff] %v3789_v60   ;;  %v5611_v31 = vpop.permute.xlu1 %591  ;;  %vm2839_vm14 = vcmp.ne.s32.totalorder %v2430_v32, 0  ;;  %vm2886_vm15 = vcmp.lt.s32.totalorder %v2430_v32, 0  ;;  %v2441_v15 = vsub.s32 %v5552_v8, %v2440_v48  ;;  %vm2838_vm12 = vcmp.ne.s32.totalorder %v2419_v36, 0 }
 0x1a5   : > { %v3351_v23 = vadd.f32 %v3350_v49, %v3305_v47  ;;  %v3450_v61 = vadd.f32 %v3449_v20, %v3404_v56  ;;  %v1307_v21 = vpop.permute.xlu0 %1306  ;;  %vm5640_vm7 = vmand %vm2886_vm15, %vm2839_vm14  ;;  %v2978_v35 = vadd.s32 24, %v2408_v2  ;;  %v5668_v17 = vadd.s32 96, %v5175_v53 }
 0x1a6   : > { %v1700_v25 = vsel %vm6247_vm13, %v1651_v7, %v1307_v21  ;;  %vm2885_vm13 = vcmp.lt.s32.totalorder %v2419_v36, 0  ;;  %vm2840_vm9 = vcmp.ne.s32.totalorder %v2441_v15, 0  ;;  %vm2887_vm10 = vcmp.lt.s32.totalorder %v2441_v15, 0 }
 0x1a7   : > { %v3451_v19 = vadd.f32 %v3450_v61, %v3405_v51  ;;  %3984 = vmatprep.mubr.msk.bf16.mxu1 %vm6249_vm8, %v1700_v25  ;;  %v5622_v13 = vadd.f32 %v3351_v23, %v3306_v43  ;;  %vm5644_vm8 = vmand %vm2884_vm2, %vm2837_vm0  ;;  %v3027_v37 = vsel %vm5640_vm7, %v2980_v34, %v2430_v32  ;;  %v2981_v54 = vadd.s32 24, %v2441_v15 }
 0x1a8   : > { %v594_v11 = vpop.permute.xlu1 %593  ;;  %v3025_v41 = vsel %vm5644_vm8, %v2978_v35, %v2408_v2  ;;  %v5674_v20 = vadd.s32 104, %v5175_v53  ;;  %vm5676_vm14 = vcmp.lt.s32.totalorder %v3027_v37, 16  ;;  %v1360_v16 = vsel %vm1322_vm3, %v4877_v46, %v5611_v31 }
 0x1a9   : > { %v1309_v58 = vpop.permute.xlu0 %1308  ;;  %v5627_v45 = vadd.f32 %v3451_v19, %v3406_v10  ;;  %vm3072_vm15 = vcmp.lt.s32.totalorder %v3025_v41, 16  ;;  %v5687_v51 = vmul.u32.u64.low 2863311531, %v5659_v57  ;;  %v5688_v23 = vmul.u32.u64.high 2863311531, %v5659_v57, %v5687_v51 }
 0x1aa   : > { %v1702_v39 = vsel %vm6252_vm1, %v1653_v0, %v1309_v58  ;;  %vm5648_vm1 = vmand %vm2885_vm13, %vm2838_vm12  ;;  %v5691_v7 = vmul.u32.u64.low 2863311531, %v5668_v17  ;;  %v5692_v21 = vmul.u32.u64.high 2863311531, %v5668_v17, %v5691_v7  ;;  %v1362_v1 = vsel %vm1322_vm3, %v4898_v22, %v594_v11 }
 0x1ab   : > { %3985 = vmatmul.mubr.msk.bf16.gmra.mrb[8].mxu1 %vm6253_vm11, %v1702_v39  ;;  %vm5661_vm11 = vmand %vm2887_vm10, %vm2840_vm9  ;;  %v3026_v60 = vsel %vm5648_vm1, %v2979_v62, %v2419_v36  ;;  %v5695_v29 = vmul.u32.u64.low 2863311531, %v5671_v52  ;;  %v5696_v25 = vmul.u32.u64.high 2863311531, %v5671_v52, %v5695_v29  ;;  %vm6268_vm12 = vcmask 326656  }
 0x1ac   : > { %v693_v12 = vpop.permute.xlu1 %692  ;;  %v3028_v26 = vsel %vm5661_vm11, %v2981_v54, %v2441_v15  ;;  %vm5682_vm0 = vcmp.lt.s32.totalorder %v3026_v60, 16  ;;  %v5704_v10 = vmul.u32.u64.low 2863311531, %v5674_v20  ;;  %v5705_v19 = vmul.u32.u64.high 2863311531, %v5674_v20, %v5704_v10  ;;  %vm6272_vm9 = vmmov %vm6268_vm12 }
 0x1ad   : > { %v691_v6 = vpop.permute.xlu0 %690  ;;  %v1412_v4 = vsel %vm1372_vm4, %v1362_v1, %v693_v12  ;;  %vm5709_vm2 = vcmp.lt.s32.totalorder %v3028_v26, 16  ;;  %vm6269_vm13 = vcmask 392192   ;;  %vm6270_vm7 = vcmask 457728  }
 0x1ae   : > { %v1410_v5 = vsel %vm1372_vm4, %v1360_v16, %v691_v6  ;;  %vm6271_vm8 = vcmask 523264   ;;  %v2450_v37 = vshrl.u32 %v5692_v21, 4  ;;  %vm6273_vm10 = vcmask 588800   ;;  %vm6274_vm1 = vmmov %vm6269_vm13 }
 0x1af   : > { %vm6275_vm11 = vmmov %vm6270_vm7  ;;  %v2483_v7 = vshrl.u32 %v5696_v25, 4 }
 0x1b0   : > { %v5634_v24 = vpop.permute.xlu1 %770 }
 0x1b1   : > { %v769_v30 = vpop.permute.xlu0 %768 }
 0x1b2   : > { %v1459_v31 = vsel %vm1421_vm5, %v1410_v5, %v769_v30  ;;  %v1461_v30 = vsel %vm1421_vm5, %v1412_v4, %v5634_v24  ;;  %v2472_v24 = vshrl.u32 %v5688_v23, 4 }
 0x1b4   : > { %v5638_v28 = vpop.permute.xlu1 %1012 }
 0x1b5   : > { %v1011_v42 = vpop.permute.xlu0 %1010  ;;  %v1510_v8 = vsel %vm1470_vm6, %v1461_v30, %v5638_v28  ;;  %v2461_v28 = vshrl.u32 %v5705_v19, 4 }
 0x1b6   : > { %v1508_v12 = vsel %vm1470_vm6, %v1459_v31, %v1011_v42  ;;  %v5773_v31 = vadd.s32 144, %v5175_v53 }
 0x1b7   : > { %v2462_v29 = vmul.u32 24, %v2461_v28 }
 0x1b8   : > { %v5652_v55 = vpop.permute.xlu1 %1110 }
 0x1b9   : > { %v1109_v59 = vpop.permute.xlu0 %1108  ;;  %v1559_v41 = vsel %vm6272_vm9, %v1510_v8, %v5652_v55  ;;  %v2451_v55 = vmul.u32 24, %v2450_v37  ;;  %v2463_v19 = vsub.s32 %v5674_v20, %v2462_v29 }
 0x1ba   : > { %v1557_v2 = vsel %vm6268_vm12, %v1508_v12, %v1109_v59 }
 0x1bb   : > { %v2452_v1 = vsub.s32 %v5668_v17, %v2451_v55  ;;  %v2983_v39 = vadd.s32 24, %v2463_v19 }
 0x1bc   : > { %v1169_v49 = vpop.permute.xlu1 %1168 }
 0x1bd   : > { %v1167_v38 = vpop.permute.xlu0 %1166  ;;  %v1608_v56 = vsel %vm6274_vm1, %v1559_v41, %v1169_v49  ;;  %vm2841_vm12 = vcmp.ne.s32.totalorder %v2452_v1, 0  ;;  %v2982_v20 = vadd.s32 24, %v2452_v1 }
 0x1be   : > { %v3962_v61 = vpop.f32.mrb[8].mxu0  ;;  %v1606_v15 = vsel %vm6269_vm13, %v1557_v2, %v1167_v38  ;;  %vm2888_vm13 = vcmp.lt.s32.totalorder %v2452_v1, 0 }
 0x1bf   : > { %v1870_v40 = vpop.f32.mrb[9].mxu0  ;;  %v3309_v3 = vsel %vm5676_vm14, %v3962_v61, 0.0  ;;  %vm6276_vm14 = vmmov %vm6271_vm8 }
 0x1c0   : > { %v3307_v0 = vsel %vm3072_vm15, %v1870_v40, 0.0  ;;  %v3963_v58 = vpop.f32.mrb[10].mxu0  ;;  %v1252_v46 = vpop.permute.xlu1 %1251  ;;  %v3409_v34 = vmul.f32 %v3309_v3, %v3309_v3  ;;  %vm6277_vm15 = vmmov %vm6273_vm10 }
 0x1c1   : > { %v3353_v22 = vadd.f32 %v5622_v13, %v3307_v0  ;;  %v3407_v11 = vmul.f32 %v3307_v0, %v3307_v0  ;;  %v3804_v50 = vpack.c.bf16 %v3963_v58, %v3962_v61  ;;  %v1873_v18 = vpop.f32.mrb[11].mxu0  ;;  %v1250_v27 = vpop.permute.xlu0 %1249  ;;  %v3310_v42 = vsel %vm5709_vm2, %v3963_v58, 0.0 }
 0x1c2   : > { %v3799_v6 = vpack.c.bf16 %v1873_v18, %v1870_v40  ;;  %v3308_v32 = vsel %vm5682_vm0, %v1873_v18, 0.0  ;;  %v1655_v62 = vsel %vm6270_vm7, %v1606_v15, %v1250_v27  ;;  %v3410_v54 = vmul.f32 %v3310_v42, %v3310_v42 }
 0x1c3   : > { %v3453_v48 = vadd.f32 %v5627_v45, %v3407_v11  ;;  %3895 = vst [vmem:[%s5446_s14 + $0x28] sm:$0xff] %v3804_v50   ;;  %v3354_v13 = vadd.f32 %v3353_v22, %v3308_v32  ;;  %v3408_v36 = vmul.f32 %v3308_v32, %v3308_v32  ;;  %v1657_v26 = vsel %vm6275_vm11, %v1608_v56, %v1252_v46 }
 0x1c4   : > { %3894 = vst [vmem:[%s5446_s14 + $0x20] sm:$0xff] %v3799_v6   ;;  %v5729_v14 = vpop.permute.xlu1 %595  ;;  %v2473_v61 = vmul.u32 24, %v2472_v24  ;;  %v2484_v40 = vmul.u32 24, %v2483_v7  ;;  %vm2842_vm7 = vcmp.ne.s32.totalorder %v2463_v19, 0  ;;  %v5789_v6 = vadd.s32 136, %v5175_v53 }
 0x1c5   : > { %v3355_v35 = vadd.f32 %v3354_v13, %v3309_v3  ;;  %v3454_v63 = vadd.f32 %v3453_v48, %v3408_v36  ;;  %v1311_v45 = vpop.permute.xlu0 %1310  ;;  %v5786_v3 = vadd.s32 128, %v5175_v53  ;;  %v5792_v32 = vadd.s32 152, %v5175_v53 }
 0x1c6   : > { %v1704_v59 = vsel %vm6271_vm8, %v1655_v62, %v1311_v45  ;;  %v2474_v49 = vsub.s32 %v5659_v57, %v2473_v61  ;;  %v2485_v5 = vsub.s32 %v5671_v52, %v2484_v40  ;;  %vm2889_vm8 = vcmp.lt.s32.totalorder %v2463_v19, 0 }
 0x1c7   : > { %v3455_v47 = vadd.f32 %v3454_v63, %v3409_v34  ;;  %3988 = vmatprep.mubr.msk.bf16.mxu1 %vm6273_vm10, %v1704_v59  ;;  %v5740_v60 = vadd.f32 %v3355_v35, %v3310_v42  ;;  %vm5762_vm10 = vmand %vm2888_vm13, %vm2841_vm12  ;;  %v5795_v48 = vmul.u32.u64.low 2863311531, %v5773_v31  ;;  %v5796_v13 = vmul.u32.u64.high 2863311531, %v5773_v31, %v5795_v48 }
 0x1c8   : > { %v598_v38 = vpop.permute.xlu1 %597  ;;  %vm2843_vm0 = vcmp.ne.s32.totalorder %v2474_v49, 0  ;;  %vm2890_vm2 = vcmp.lt.s32.totalorder %v2474_v49, 0  ;;  %v2984_v17 = vadd.s32 24, %v2474_v49  ;;  %vm2844_vm1 = vcmp.ne.s32.totalorder %v2485_v5, 0 }
 0x1c9   : > { %v1313_v43 = vpop.permute.xlu0 %1312  ;;  %v5745_v51 = vadd.f32 %v3455_v47, %v3410_v54  ;;  %vm5758_vm9 = vmand %vm2890_vm2, %vm2843_vm0  ;;  %vm2891_vm11 = vcmp.lt.s32.totalorder %v2485_v5, 0  ;;  %v2985_v50 = vadd.s32 24, %v2485_v5  ;;  %v3029_v18 = vsel %vm5762_vm10, %v2982_v20, %v2452_v1 }
 0x1ca   : > { %v1706_v23 = vsel %vm6276_vm14, %v1657_v26, %v1313_v43  ;;  %vm5766_vm14 = vmand %vm2889_vm8, %vm2842_vm7  ;;  %v3031_v11 = vsel %vm5758_vm9, %v2984_v17, %v2474_v49  ;;  %vm3076_vm2 = vcmp.lt.s32.totalorder %v3029_v18, 16  ;;  %v1364_v8 = vsel %vm1322_vm3, %v4975_v9, %v5729_v14 }
 0x1cb   : > { %3989 = vmatmul.mubr.msk.bf16.gmra.mrb[12].mxu1 %vm6277_vm15, %v1706_v23  ;;  %vm5779_vm15 = vmand %vm2891_vm11, %vm2844_vm1  ;;  %v3030_v12 = vsel %vm5766_vm14, %v2983_v39, %v2463_v19  ;;  %vm5798_vm0 = vcmp.lt.s32.totalorder %v3031_v11, 16  ;;  %v5809_v35 = vmul.u32.u64.low 2863311531, %v5786_v3  ;;  %v5810_v63 = vmul.u32.u64.high 2863311531, %v5786_v3, %v5809_v35 }
 0x1cc   : > { %v697_v21 = vpop.permute.xlu1 %696  ;;  %v3032_v15 = vsel %vm5779_vm15, %v2985_v50, %v2485_v5  ;;  %vm5804_vm12 = vcmp.lt.s32.totalorder %v3030_v12, 16  ;;  %v5813_v62 = vmul.u32.u64.low 2863311531, %v5789_v6  ;;  %v5814_v45 = vmul.u32.u64.high 2863311531, %v5789_v6, %v5813_v62 }
 0x1cd   : > { %v695_v16 = vpop.permute.xlu0 %694  ;;  %v1366_v59 = vsel %vm1322_vm3, %v4996_v44, %v598_v38  ;;  %v5822_v37 = vmul.u32.u64.low 2863311531, %v5792_v32  ;;  %v5823_v41 = vmul.u32.u64.high 2863311531, %v5792_v32, %v5822_v37  ;;  %vm5827_vm13 = vcmp.lt.s32.totalorder %v3032_v15, 16 }
 0x1ce   : > { %v1416_v54 = vsel %vm1372_vm4, %v1366_v59, %v697_v21  ;;  %v1414_v47 = vsel %vm1372_vm4, %v1364_v8, %v695_v16  ;;  %vm6292_vm7 = vcmask 326656   ;;  %vm6293_vm8 = vcmask 392192  }
 0x1cf   : > { %vm6294_vm9 = vcmask 457728   ;;  %vm6295_vm10 = vcmask 523264   ;;  %v2494_v52 = vshrl.u32 %v5810_v63, 4  ;;  %vm6296_vm1 = vmmov %vm6292_vm7  ;;  %vm6297_vm11 = vcmask 588800  }
 0x1d0   : > { %v5752_v10 = vpop.permute.xlu1 %774  ;;  %vm6298_vm14 = vmmov %vm6293_vm8 }
 0x1d1   : > { %v773_v4 = vpop.permute.xlu0 %772  ;;  %v1465_v40 = vsel %vm1421_vm5, %v1416_v54, %v5752_v10  ;;  %vm6299_vm15 = vmmov %vm6294_vm9  ;;  %v2495_v42 = vmul.u32 24, %v2494_v52 }
 0x1d2   : > { %v1463_v14 = vsel %vm1421_vm5, %v1414_v47, %v773_v4 }
 0x1d4   : > { %v5756_v25 = vpop.permute.xlu1 %1016 }
 0x1d5   : > { %v1015_v0 = vpop.permute.xlu0 %1014  ;;  %v1514_v39 = vsel %vm1470_vm6, %v1465_v40, %v5756_v25 }
 0x1d6   : > { %v1512_v55 = vsel %vm1470_vm6, %v1463_v14, %v1015_v0  ;;  %v2516_v0 = vshrl.u32 %v5796_v13, 4 }
 0x1d8   : > { %v5770_v46 = vpop.permute.xlu1 %1114 }
 0x1d9   : > { %v1113_v22 = vpop.permute.xlu0 %1112  ;;  %v1563_v11 = vsel %vm6296_vm1, %v1514_v39, %v5770_v46  ;;  %v2527_v46 = vshrl.u32 %v5823_v41, 4 }
 0x1da   : > { %v1561_v16 = vsel %vm6292_vm7, %v1512_v55, %v1113_v22  ;;  %v2505_v22 = vshrl.u32 %v5814_v45, 4 }
 0x1db   : > { %v2528_v45 = vmul.u32 24, %v2527_v46 }
 0x1dc   : > { %v1173_v2 = vpop.permute.xlu1 %1172 }
 0x1dd   : > { %v1171_v36 = vpop.permute.xlu0 %1170  ;;  %v1612_v12 = vsel %vm6298_vm14, %v1563_v11, %v1173_v2  ;;  %v2496_v2 = vsub.s32 %v5786_v3, %v2495_v42  ;;  %v2529_v37 = vsub.s32 %v5792_v32, %v2528_v45 }
 0x1de   : > { %v3966_v34 = vpop.f32.mrb[12].mxu0  ;;  %v1610_v19 = vsel %vm6293_vm8, %v1561_v16, %v1171_v36  ;;  %v2517_v36 = vmul.u32 24, %v2516_v0 }
 0x1df   : > { %v1886_v24 = vpop.f32.mrb[13].mxu0  ;;  %v3313_v7 = vsel %vm5798_vm0, %v3966_v34, 0.0  ;;  %vm6300_vm0 = vmmov %vm6295_vm10  ;;  %vm2845_vm7 = vcmp.ne.s32.totalorder %v2496_v2, 0  ;;  %vm2892_vm8 = vcmp.lt.s32.totalorder %v2496_v2, 0  ;;  %v2986_v3 = vadd.s32 24, %v2496_v2 }
 0x1e0   : > { %v3311_v56 = vsel %vm3076_vm2, %v1886_v24, 0.0  ;;  %v3967_v28 = vpop.f32.mrb[14].mxu0  ;;  %v1256_v9 = vpop.permute.xlu1 %1255  ;;  %v3413_v57 = vmul.f32 %v3313_v7, %v3313_v7  ;;  %vm6301_vm2 = vmmov %vm6297_vm11  ;;  %v2518_v62 = vsub.s32 %v5773_v31, %v2517_v36  ;;  %vm2848_vm14 = vcmp.ne.s32.totalorder %v2529_v37, 0 }
 0x1e1   : > { %v3357_v44 = vadd.f32 %v5740_v60, %v3311_v56  ;;  %v3411_v38 = vmul.f32 %v3311_v56, %v3311_v56  ;;  %v3814_v43 = vpack.c.bf16 %v3967_v28, %v3966_v34  ;;  %v1889_v23 = vpop.f32.mrb[15].mxu0  ;;  %v1254_v61 = vpop.permute.xlu0 %1253  ;;  %v3314_v4 = vsel %vm5827_vm13, %v3967_v28, 0.0 }
 0x1e2   : > { %v3809_v21 = vpack.c.bf16 %v1889_v23, %v1886_v24  ;;  %v3312_v29 = vsel %vm5804_vm12, %v1889_v23, 0.0  ;;  %v3414_v50 = vmul.f32 %v3314_v4, %v3314_v4  ;;  %v1661_v25 = vsel %vm6299_vm15, %v1612_v12, %v1256_v9 }
 0x1e3   : > { %v3457_v49 = vadd.f32 %v5745_v51, %v3411_v38  ;;  %3897 = vst [vmem:[%s5446_s14 + $0x38] sm:$0xff] %v3814_v43   ;;  %v3358_v60 = vadd.f32 %v3357_v44, %v3312_v29  ;;  %v3412_v1 = vmul.f32 %v3312_v29, %v3312_v29  ;;  %v1659_v51 = vsel %vm6294_vm9, %v1610_v19, %v1254_v61  ;;  %v4187_v38 = vld [vmem:[%s4238_s17 + $0xb8] sm:$0xf] }
 0x1e4   : > { %3896 = vst [vmem:[%s5446_s14 + $0x30] sm:$0xff] %v3809_v21   ;;  %v5847_v5 = vpop.permute.xlu1 %599  ;;  %v2506_v34 = vmul.u32 24, %v2505_v22  ;;  %vm2847_vm12 = vcmp.ne.s32.totalorder %v2518_v62, 0  ;;  %vm2894_vm13 = vcmp.lt.s32.totalorder %v2518_v62, 0  ;;  %v2988_v31 = vadd.s32 24, %v2518_v62 }
 0x1e5   : > { %v3359_v17 = vadd.f32 %v3358_v60, %v3313_v7  ;;  %v3458_v58 = vadd.f32 %v3457_v49, %v3412_v1  ;;  %v1315_v20 = vpop.permute.xlu0 %1314  ;;  %vm5872_vm1 = vmand %vm2894_vm13, %vm2847_vm12  ;;  %vm2895_vm15 = vcmp.lt.s32.totalorder %v2529_v37, 0  ;;  %v2989_v14 = vadd.s32 24, %v2529_v37 }
 0x1e6   : > { %v1708_v10 = vsel %vm6295_vm10, %v1659_v51, %v1315_v20  ;;  %v2507_v8 = vsub.s32 %v5789_v6, %v2506_v34  ;;  %v3035_v26 = vsel %vm5872_vm1, %v2988_v31, %v2518_v62  ;;  %v5889_v44 = vadd.s32 176, %v5175_v53 }
 0x1e7   : > { %v3459_v18 = vadd.f32 %v3458_v58, %v3413_v57  ;;  %3992 = vmatprep.mubr.msk.bf16.mxu1 %vm6297_vm11, %v1708_v10  ;;  %v5859_v27 = vadd.f32 %v3359_v17, %v3314_v4  ;;  %vm5876_vm11 = vmand %vm2892_vm8, %vm2845_vm7  ;;  %v3616_v43 = vcombine.low %v4187_v38, %v4187_v38  ;;  %v5899_v7 = vadd.s32 160, %v5175_v53 }
 0x1e8   : > { %v602_v48 = vpop.permute.xlu1 %601  ;;  %vm2846_vm9 = vcmp.ne.s32.totalorder %v2507_v8, 0  ;;  %vm2893_vm10 = vcmp.lt.s32.totalorder %v2507_v8, 0  ;;  %v2987_v56 = vadd.s32 24, %v2507_v8  ;;  %v3033_v9 = vsel %vm5876_vm11, %v2986_v3, %v2496_v2 }
 0x1e9   : > { %v1317_v13 = vpop.permute.xlu0 %1316  ;;  %v5863_v30 = vadd.f32 %v3459_v18, %v3414_v50  ;;  %v5902_v21 = vadd.s32 184, %v5175_v53  ;;  %vm5904_vm12 = vcmp.lt.s32.totalorder %v3035_v26, 16  ;;  %vm5908_vm13 = vcmp.lt.s32.totalorder %v3033_v9, 16 }
 0x1ea   : > { %v1710_v15 = vsel %vm6300_vm0, %v1661_v25, %v1317_v13  ;;  %vm5880_vm0 = vmand %vm2893_vm10, %vm2846_vm9  ;;  %v5913_v49 = vadd.s32 168, %v5175_v53  ;;  %v5922_v19 = vmul.u32.u64.low 2863311531, %v5889_v44  ;;  %v5923_v4 = vmul.u32.u64.high 2863311531, %v5889_v44, %v5922_v19 }
 0x1eb   : > { %3993 = vmatmul.mubr.msk.bf16.gmra.mrb[16].mxu1 %vm6301_vm2, %v1710_v15  ;;  %vm5892_vm2 = vmand %vm2895_vm15, %vm2848_vm14  ;;  %v3034_v55 = vsel %vm5880_vm0, %v2987_v56, %v2507_v8  ;;  %v1368_v0 = vsel %vm1322_vm3, %v5073_v33, %v5847_v5  ;;  %v1371_v57 = vsel %vm1322_vm3, %v3616_v43, %v602_v48  ;;  %vm6322_vm9 = vcmask 457728  }
 0x1ec   : > { %v701_v35 = vpop.permute.xlu1 %700  ;;  %v3036_v1 = vsel %vm5892_vm2, %v2989_v14, %v2529_v37  ;;  %vm5917_vm7 = vcmp.lt.s32.totalorder %v3034_v55, 16  ;;  %v5930_v58 = vmul.u32.u64.low 2863311531, %v5899_v7  ;;  %v5931_v51 = vmul.u32.u64.high 2863311531, %v5899_v7, %v5930_v58  ;;  %vm6323_vm10 = vmmov %vm6322_vm9 }
 0x1ed   : > { %v699_v63 = vpop.permute.xlu0 %698  ;;  %v1420_v20 = vsel %vm1372_vm4, %v1371_v57, %v701_v35  ;;  %v5936_v52 = vmul.u32.u64.low 2863311531, %v5902_v21  ;;  %v5937_v22 = vmul.u32.u64.high 2863311531, %v5902_v21, %v5936_v52  ;;  %vm5949_vm3 = vcmp.lt.s32.totalorder %v3036_v1, 16 }
 0x1ee   : > { %v1418_v39 = vsel %vm1372_vm4, %v1368_v0, %v699_v63  ;;  %v5942_v50 = vmul.u32.u64.low 2863311531, %v5913_v49  ;;  %v5943_v18 = vmul.u32.u64.high 2863311531, %v5913_v49, %v5942_v50  ;;  %vm6318_vm4 = vcmask 326656  }
 0x1ef   : > { %vm6324_vm1 = vcmask 523264   ;;  %vm6326_vm14 = vcmask 588800   ;;  %v2560_v43 = vshrl.u32 %v5923_v4, 4  ;;  %v2538_v61 = vshrl.u32 %v5931_v51, 4 }
 0x1f0   : > { %v779_v59 = vpop.permute.xlu1 %778  ;;  %vm6325_vm11 = vmmov %vm6324_vm1  ;;  %v2549_v29 = vshrl.u32 %v5943_v18, 4  ;;  %v2571_v1 = vshrl.u32 %v5937_v22, 4  ;;  %v2291_v52 = vadd.s32 208, %v5175_v53  ;;  %v2289_v22 = vadd.s32 192, %v5175_v53 }
 0x1f1   : > { %v777_v24 = vpop.permute.xlu0 %776  ;;  %v1469_v11 = vsel %vm1421_vm5, %v1420_v20, %v779_v59  ;;  %vm6327_vm15 = vmmov %vm6326_vm14  ;;  %v2561_v16 = vmul.u32 24, %v2560_v43 }
 0x1f2   : > { %v1467_v33 = vsel %vm1421_vm5, %v1418_v39, %v777_v24  ;;  %vm6319_vm5 = vmmov %vm6318_vm4  ;;  %v2550_v40 = vmul.u32 24, %v2549_v29  ;;  %v2572_v57 = vmul.u32 24, %v2571_v1 }
 0x1f3   : > { %v2562_v19 = vsub.s32 %v5889_v44, %v2561_v16 }
 0x1f4   : > { %v1021_v41 = vpop.permute.xlu1 %1020  ;;  %v2551_v4 = vsub.s32 %v5913_v49, %v2550_v40 }
 0x1f5   : > { %v1019_v47 = vpop.permute.xlu0 %1018  ;;  %v1518_v12 = vsel %vm1470_vm6, %v1469_v11, %v1021_v41  ;;  %vm2851_vm0 = vcmp.ne.s32.totalorder %v2562_v19, 0  ;;  %vm2898_vm2 = vcmp.lt.s32.totalorder %v2562_v19, 0  ;;  %v2992_v20 = vadd.s32 24, %v2562_v19 }
 0x1f6   : > { %v1516_v48 = vsel %vm1470_vm6, %v1467_v33, %v1019_v47  ;;  %vm6320_vm6 = vcmask 392192   ;;  %v2991_v44 = vadd.s32 24, %v2551_v4  ;;  %v2290_v11 = vadd.s32 200, %v5175_v53 }
 0x1f7   : > { %vm6321_vm8 = vmmov %vm6320_vm6 }
 0x1f8   : > { %v1119_v28 = vpop.permute.xlu1 %1118 }
 0x1f9   : > { %v1117_v23 = vpop.permute.xlu0 %1116  ;;  %v1567_v2 = vsel %vm6318_vm4, %v1518_v12, %v1119_v28  ;;  %vm5981_vm4 = vmand %vm2898_vm2, %vm2851_vm0  ;;  %v5996_v18 = vmul.u32.u64.low 2863311531, %v2291_v52  ;;  %v5997_v12 = vmul.u32.u64.high 2863311531, %v2291_v52, %v5996_v18 }
 0x1fa   : > { %v1565_v45 = vsel %vm6319_vm5, %v1516_v48, %v1117_v23  ;;  %v3039_v39 = vsel %vm5981_vm4, %v2992_v20, %v2562_v19  ;;  %v2295_v20 = vadd.s32 240, %v5175_v53 }
 0x1fc   : > { %v1177_v60 = vpop.permute.xlu1 %1176 }
 0x1fd   : > { %v1175_v17 = vpop.permute.xlu0 %1174  ;;  %v1616_v24 = vsel %vm6320_vm6, %v1567_v2, %v1177_v60  ;;  %v2539_v60 = vmul.u32 24, %v2538_v61 }
 0x1fe   : > { %v3970_v10 = vpop.f32.mrb[16].mxu0  ;;  %v1614_v54 = vsel %vm6321_vm8, %v1565_v45, %v1175_v17  ;;  %v2573_v17 = vsub.s32 %v5902_v21, %v2572_v57 }
 0x1ff   : > { %v1902_v5 = vpop.f32.mrb[17].mxu0  ;;  %v3317_v42 = vsel %vm5904_vm12, %v3970_v10, 0.0  ;;  %v2540_v0 = vsub.s32 %v5899_v7, %v2539_v60 }
 0x200   : > { %v3315_v25 = vsel %vm5908_vm13, %v1902_v5, 0.0  ;;  %v3971_v13 = vpop.f32.mrb[18].mxu0  ;;  %v1260_v15 = vpop.permute.xlu1 %1259  ;;  %v3417_v31 = vmul.f32 %v3317_v42, %v3317_v42  ;;  %vm2852_vm6 = vcmp.ne.s32.totalorder %v2573_v17, 0  ;;  %vm2899_vm8 = vcmp.lt.s32.totalorder %v2573_v17, 0 }
 0x201   : > { %v3361_v46 = vadd.f32 %v5859_v27, %v3315_v25  ;;  %v3415_v34 = vmul.f32 %v3315_v25, %v3315_v25  ;;  %v3824_v35 = vpack.c.bf16 %v3971_v13, %v3970_v10  ;;  %v1905_v63 = vpop.f32.mrb[19].mxu0  ;;  %v1258_v62 = vpop.permute.xlu0 %1257  ;;  %v3318_v3 = vsel %vm5949_vm3, %v3971_v13, 0.0 }
 0x202   : > { %v3819_v8 = vpack.c.bf16 %v1905_v63, %v1902_v5  ;;  %v3316_v59 = vsel %vm5917_vm7, %v1905_v63, 0.0  ;;  %v1665_v47 = vsel %vm6322_vm9, %v1616_v24, %v1260_v15  ;;  %v1663_v28 = vsel %vm6323_vm10, %v1614_v54, %v1258_v62  ;;  %vm5987_vm10 = vmand %vm2899_vm8, %vm2852_vm6 }
 0x203   : > { %v3461_v37 = vadd.f32 %v5863_v30, %v3415_v34  ;;  %3899 = vst [vmem:[%s5446_s14 + $0x48] sm:$0xff] %v3824_v35   ;;  %v3362_v41 = vadd.f32 %v3361_v46, %v3316_v59  ;;  %v3416_v27 = vmul.f32 %v3316_v59, %v3316_v59  ;;  %v3418_v14 = vmul.f32 %v3318_v3, %v3318_v3 }
 0x204   : > { %3898 = vst [vmem:[%s5446_s14 + $0x40] sm:$0xff] %v3819_v8   ;;  %v1321_v6 = vpop.permute.xlu1 %1320  ;;  %vm2849_vm12 = vcmp.ne.s32.totalorder %v2540_v0, 0  ;;  %vm2896_vm13 = vcmp.lt.s32.totalorder %v2540_v0, 0  ;;  %vm2850_vm7 = vcmp.ne.s32.totalorder %v2551_v4, 0  ;;  %vm2897_vm3 = vcmp.lt.s32.totalorder %v2551_v4, 0 }
 0x205   : > { %v3363_v56 = vadd.f32 %v3362_v41, %v3317_v42  ;;  %v3462_v32 = vadd.f32 %v3461_v37, %v3416_v27  ;;  %v1714_v26 = vsel %vm6324_vm1, %v1665_v47, %v1321_v6  ;;  %v1319_v30 = vpop.permute.xlu0 %1318  ;;  %v2990_v51 = vadd.s32 24, %v2540_v0  ;;  %vm2943_vm5 = vmand %vm2896_vm13, %vm2849_vm12 }
 0x206   : > { %v1712_v9 = vsel %vm6325_vm11, %v1663_v28, %v1319_v30  ;;  %vm2944_vm9 = vmand %vm2897_vm3, %vm2850_vm7  ;;  %v2993_v49 = vadd.s32 24, %v2573_v17  ;;  %vm3086_vm11 = vcmp.lt.s32.totalorder %v3039_v39, 16  ;;  %v2292_v15 = vadd.s32 216, %v5175_v53 }
 0x207   : > { %v3463_v38 = vadd.f32 %v3462_v32, %v3417_v31  ;;  %3996 = vmatprep.mubr.msk.bf16.mxu1 %vm6326_vm14, %v1712_v9  ;;  %v3364_v23 = vadd.f32 %v3363_v56, %v3318_v3  ;;  %v3037_v7 = vsel %vm2943_vm5, %v2990_v51, %v2540_v0  ;;  %v3038_v10 = vsel %vm2944_vm9, %v2991_v44, %v2551_v4 }
 0x208   : > { %3997 = vmatmul.mubr.msk.bf16.gmra.mrb[20].mxu1 %vm6327_vm15, %v1714_v26  ;;  %vm3084_vm1 = vcmp.lt.s32.totalorder %v3037_v7, 16  ;;  %v3040_v5 = vsel %vm5987_vm10, %v2993_v49, %v2573_v17  ;;  %vm3085_vm14 = vcmp.lt.s32.totalorder %v3038_v10, 16  ;;  %v2604_v32 = vshrl.u32 %v5997_v12, 4 }
 0x209   : > { %v3464_v55 = vadd.f32 %v3463_v38, %v3418_v14  ;;  %v5999_v48 = vmul.u32.u64.low 2863311531, %v2289_v22  ;;  %v6000_v25 = vmul.u32.u64.high 2863311531, %v2289_v22, %v5999_v48  ;;  %vm3087_vm15 = vcmp.lt.s32.totalorder %v3040_v5, 16 }
 0x20a   : > { %v6003_v42 = vmul.u32.u64.low 2863311531, %v2290_v11  ;;  %v6004_v46 = vmul.u32.u64.high 2863311531, %v2290_v11, %v6003_v42  ;;  %v6008_v27 = vmul.u32.u64.low 2863311531, %v2292_v15  ;;  %v6009_v54 = vmul.u32.u64.high 2863311531, %v2292_v15, %v6008_v27 }
 0x20b   : > { %v2582_v26 = vshrl.u32 %v6000_v25, 4  ;;  %v2605_v14 = vmul.u32 24, %v2604_v32  ;;  %v2293_v44 = vadd.s32 224, %v5175_v53  ;;  %v2294_v7 = vadd.s32 232, %v5175_v53 }
 0x20c   : > { %v2593_v9 = vshrl.u32 %v6004_v46, 4  ;;  %v2615_v43 = vshrl.u32 %v6009_v54, 4 }
 0x20d   : > { %v2583_v38 = vmul.u32 24, %v2582_v26  ;;  %v2606_v61 = vsub.s32 %v2291_v52, %v2605_v14  ;;  %v6030_v10 = vmul.u32.u64.low 2863311531, %v2295_v20  ;;  %v6031_v52 = vmul.u32.u64.high 2863311531, %v2295_v20, %v6030_v10 }
 0x20e   : > { %v2616_v29 = vmul.u32 24, %v2615_v43  ;;  %v6037_v18 = vmul.u32.u64.low 2863311531, %v2294_v7  ;;  %v6038_v12 = vmul.u32.u64.high 2863311531, %v2294_v7, %v6037_v18 }
 0x20f   : > { %vm2855_vm0 = vcmp.ne.s32.totalorder %v2606_v61, 0  ;;  %vm2902_vm2 = vcmp.lt.s32.totalorder %v2606_v61, 0  ;;  %v2996_v19 = vadd.s32 24, %v2606_v61  ;;  %v2648_v27 = vshrl.u32 %v6031_v52, 4 }
 0x210   : > { %v2617_v60 = vsub.s32 %v2292_v15, %v2616_v29  ;;  %vm6015_vm4 = vmand %vm2902_vm2, %vm2855_vm0 }
 0x211   : > { %v3043_v17 = vsel %vm6015_vm4, %v2996_v19, %v2606_v61  ;;  %v2299_v19 = vadd.s32 272, %v5175_v53 }
 0x212   : > { %vm2856_vm6 = vcmp.ne.s32.totalorder %v2617_v60, 0  ;;  %vm2903_vm8 = vcmp.lt.s32.totalorder %v2617_v60, 0  ;;  %v2997_v4 = vadd.s32 24, %v2617_v60 }
 0x213   : > { %vm6021_vm10 = vmand %vm2903_vm8, %vm2856_vm6 }
 0x214   : > { %v3044_v39 = vsel %vm6021_vm10, %v2997_v4, %v2617_v60 }
 0x21e   : > { %v3974_v33 = vpop.f32.mrb[20].mxu0 }
 0x21f   : > { %v1918_v50 = vpop.f32.mrb[21].mxu0  ;;  %v3321_v2 = vsel %vm3086_vm11, %v3974_v33, 0.0  ;;  %vm3090_vm11 = vcmp.lt.s32.totalorder %v3043_v17, 16 }
 0x220   : > { %v3319_v13 = vsel %vm3084_vm1, %v1918_v50, 0.0  ;;  %v3975_v36 = vpop.f32.mrb[22].mxu0  ;;  %v3421_v31 = vmul.f32 %v3321_v2, %v3321_v2 }
 0x221   : > { %v3365_v34 = vadd.f32 %v3364_v23, %v3319_v13  ;;  %v3419_v35 = vmul.f32 %v3319_v13, %v3319_v13  ;;  %v3834_v63 = vpack.c.bf16 %v3975_v36, %v3974_v33  ;;  %v1921_v62 = vpop.f32.mrb[23].mxu0  ;;  %v3322_v41 = vsel %vm3087_vm15, %v3975_v36, 0.0 }
 0x222   : > { %v3829_v45 = vpack.c.bf16 %v1921_v62, %v1918_v50  ;;  %v3320_v8 = vsel %vm3085_vm14, %v1921_v62, 0.0  ;;  %v3422_v6 = vmul.f32 %v3322_v41, %v3322_v41  ;;  %v2594_v23 = vmul.u32 24, %v2593_v9 }
 0x223   : > { %v3465_v59 = vadd.f32 %v3464_v55, %v3419_v35  ;;  %3901 = vst [vmem:[%s5446_s14 + $0x58] sm:$0xff] %v3834_v63   ;;  %v3366_v24 = vadd.f32 %v3365_v34, %v3320_v8  ;;  %v3420_v37 = vmul.f32 %v3320_v8, %v3320_v8  ;;  %v2584_v55 = vsub.s32 %v2289_v22, %v2583_v38 }
 0x224   : > { %3900 = vst [vmem:[%s5446_s14 + $0x50] sm:$0xff] %v3829_v45   ;;  %v2595_v16 = vsub.s32 %v2290_v11, %v2594_v23  ;;  %v6033_v22 = vmul.u32.u64.low 2863311531, %v2293_v44  ;;  %v6034_v11 = vmul.u32.u64.high 2863311531, %v2293_v44, %v6033_v22  ;;  %v2296_v50 = vadd.s32 248, %v5175_v53 }
 0x225   : > { %v3367_v3 = vadd.f32 %v3366_v24, %v3321_v2  ;;  %v3466_v47 = vadd.f32 %v3465_v59, %v3420_v37  ;;  %vm2853_vm12 = vcmp.ne.s32.totalorder %v2584_v55, 0  ;;  %vm2900_vm13 = vcmp.lt.s32.totalorder %v2584_v55, 0 }
 0x226   : > { %vm2854_vm7 = vcmp.ne.s32.totalorder %v2595_v16, 0  ;;  %vm2901_vm3 = vcmp.lt.s32.totalorder %v2595_v16, 0  ;;  %v2994_v40 = vadd.s32 24, %v2584_v55  ;;  %vm2947_vm5 = vmand %vm2900_vm13, %vm2853_vm12  ;;  %v2995_v0 = vadd.s32 24, %v2595_v16 }
 0x227   : > { %v3467_v56 = vadd.f32 %v3466_v47, %v3421_v31  ;;  %v3368_v28 = vadd.f32 %v3367_v3, %v3322_v41  ;;  %vm2948_vm9 = vmand %vm2901_vm3, %vm2854_vm7  ;;  %vm3091_vm15 = vcmp.lt.s32.totalorder %v3044_v39, 16  ;;  %v2626_v31 = vshrl.u32 %v6034_v11, 4 }
 0x228   : > { %v3041_v57 = vsel %vm2947_vm5, %v2994_v40, %v2584_v55  ;;  %v3042_v51 = vsel %vm2948_vm9, %v2995_v0, %v2595_v16  ;;  %v6042_v2 = vmul.u32.u64.low 2863311531, %v2296_v50  ;;  %v6043_v45 = vmul.u32.u64.high 2863311531, %v2296_v50, %v6042_v2 }
 0x229   : > { %v3468_v30 = vadd.f32 %v3467_v56, %v3422_v6  ;;  %vm3088_vm1 = vcmp.lt.s32.totalorder %v3041_v57, 16  ;;  %vm3089_vm14 = vcmp.lt.s32.totalorder %v3042_v51, 16  ;;  %v2637_v47 = vshrl.u32 %v6038_v12, 4 }
 0x22a   : > { %v2649_v6 = vmul.u32 24, %v2648_v27  ;;  %v2627_v56 = vmul.u32 24, %v2626_v31  ;;  %v2659_v32 = vshrl.u32 %v6043_v45, 4  ;;  %v2297_v0 = vadd.s32 256, %v5175_v53 }
 0x22b   : > { %v2298_v57 = vadd.s32 264, %v5175_v53 }
 0x22c   : > { %v2650_v26 = vsub.s32 %v2295_v20, %v2649_v6  ;;  %v2660_v9 = vmul.u32 24, %v2659_v32  ;;  %v6064_v51 = vmul.u32.u64.low 2863311531, %v2299_v19  ;;  %v6065_v20 = vmul.u32.u64.high 2863311531, %v2299_v19, %v6064_v51 }
 0x22d   : > { %v6071_v10 = vmul.u32.u64.low 2863311531, %v2298_v57  ;;  %v6072_v52 = vmul.u32.u64.high 2863311531, %v2298_v57, %v6071_v10 }
 0x22e   : > { %vm2859_vm0 = vcmp.ne.s32.totalorder %v2650_v26, 0  ;;  %vm2906_vm2 = vcmp.lt.s32.totalorder %v2650_v26, 0  ;;  %v2661_v38 = vsub.s32 %v2296_v50, %v2660_v9  ;;  %v3000_v61 = vadd.s32 24, %v2650_v26 }
 0x22f   : > { %vm6049_vm4 = vmand %vm2906_vm2, %vm2859_vm0  ;;  %v2692_v2 = vshrl.u32 %v6065_v20, 4 }
 0x230   : > { %vm2860_vm6 = vcmp.ne.s32.totalorder %v2661_v38, 0  ;;  %vm2907_vm8 = vcmp.lt.s32.totalorder %v2661_v38, 0  ;;  %v3001_v16 = vadd.s32 24, %v2661_v38  ;;  %v3047_v60 = vsel %vm6049_vm4, %v3000_v61, %v2650_v26 }
 0x231   : > { %vm6055_vm10 = vmand %vm2907_vm8, %vm2860_vm6  ;;  %v2303_v61 = vadd.s32 304, %v5175_v53 }
 0x232   : > { %v3048_v17 = vsel %vm6055_vm10, %v3001_v16, %v2661_v38 }
 0x23e   : > { %v3978_v49 = vpop.f32.mrb[0].mxu1 }
 0x23f   : > { %v1934_v21 = vpop.f32.mrb[1].mxu1  ;;  %v3325_v15 = vsel %vm3090_vm11, %v3978_v49, 0.0  ;;  %vm3094_vm11 = vcmp.lt.s32.totalorder %v3047_v60, 16 }
 0x240   : > { %v3323_v33 = vsel %vm3088_vm1, %v1934_v21, 0.0  ;;  %v3979_v5 = vpop.f32.mrb[2].mxu1  ;;  %v3425_v8 = vmul.f32 %v3325_v15, %v3325_v15 }
 0x241   : > { %v3369_v48 = vadd.f32 %v3368_v28, %v3323_v33  ;;  %v3423_v25 = vmul.f32 %v3323_v33, %v3323_v33  ;;  %v3844_v13 = vpack.c.bf16 %v3979_v5, %v3978_v49  ;;  %v1937_v36 = vpop.f32.mrb[3].mxu1  ;;  %v3326_v62 = vsel %vm3091_vm15, %v3979_v5, 0.0 }
 0x242   : > { %v3839_v42 = vpack.c.bf16 %v1937_v36, %v1934_v21  ;;  %v3324_v46 = vsel %vm3089_vm14, %v1937_v36, 0.0  ;;  %v3426_v37 = vmul.f32 %v3326_v62, %v3326_v62  ;;  %v2638_v28 = vmul.u32 24, %v2637_v47 }
 0x243   : > { %v3469_v34 = vadd.f32 %v3468_v30, %v3423_v25  ;;  %3903 = vst [vmem:[%s5446_s14 + $0x68] sm:$0xff] %v3844_v13   ;;  %v3370_v35 = vadd.f32 %v3369_v48, %v3324_v46  ;;  %v3424_v63 = vmul.f32 %v3324_v46, %v3324_v46  ;;  %v2628_v30 = vsub.s32 %v2293_v44, %v2627_v56 }
 0x244   : > { %3902 = vst [vmem:[%s5446_s14 + $0x60] sm:$0xff] %v3839_v42   ;;  %v2639_v14 = vsub.s32 %v2294_v7, %v2638_v28  ;;  %v6067_v44 = vmul.u32.u64.low 2863311531, %v2297_v0  ;;  %v6068_v7 = vmul.u32.u64.high 2863311531, %v2297_v0, %v6067_v44  ;;  %v2300_v21 = vadd.s32 280, %v5175_v53 }
 0x245   : > { %v3371_v59 = vadd.f32 %v3370_v35, %v3325_v15  ;;  %v3470_v24 = vadd.f32 %v3469_v34, %v3424_v63  ;;  %vm2857_vm12 = vcmp.ne.s32.totalorder %v2628_v30, 0  ;;  %vm2904_vm13 = vcmp.lt.s32.totalorder %v2628_v30, 0 }
 0x246   : > { %vm2858_vm7 = vcmp.ne.s32.totalorder %v2639_v14, 0  ;;  %vm2905_vm3 = vcmp.lt.s32.totalorder %v2639_v14, 0  ;;  %v2998_v23 = vadd.s32 24, %v2628_v30  ;;  %vm2951_vm5 = vmand %vm2904_vm13, %vm2857_vm12  ;;  %v2999_v55 = vadd.s32 24, %v2639_v14 }
 0x247   : > { %v3471_v41 = vadd.f32 %v3470_v24, %v3425_v8  ;;  %v3372_v54 = vadd.f32 %v3371_v59, %v3326_v62  ;;  %vm2952_vm9 = vmand %vm2905_vm3, %vm2858_vm7  ;;  %vm3095_vm15 = vcmp.lt.s32.totalorder %v3048_v17, 16  ;;  %v2670_v8 = vshrl.u32 %v6068_v7, 4 }
 0x248   : > { %v3045_v29 = vsel %vm2951_vm5, %v2998_v23, %v2628_v30  ;;  %v3046_v40 = vsel %vm2952_vm9, %v2999_v55, %v2639_v14  ;;  %v6076_v15 = vmul.u32.u64.low 2863311531, %v2300_v21  ;;  %v6077_v42 = vmul.u32.u64.high 2863311531, %v2300_v21, %v6076_v15 }
 0x249   : > { %v3472_v3 = vadd.f32 %v3471_v41, %v3426_v37  ;;  %vm3092_vm1 = vcmp.lt.s32.totalorder %v3045_v29, 16  ;;  %vm3093_vm14 = vcmp.lt.s32.totalorder %v3046_v40, 16  ;;  %v2681_v24 = vshrl.u32 %v6072_v52, 4 }
 0x24a   : > { %v2693_v37 = vmul.u32 24, %v2692_v2  ;;  %v2671_v41 = vmul.u32 24, %v2670_v8  ;;  %v2703_v27 = vshrl.u32 %v6077_v42, 4  ;;  %v2301_v55 = vadd.s32 288, %v5175_v53 }
 0x24b   : > { %v2302_v29 = vadd.s32 296, %v5175_v53 }
 0x24c   : > { %v2694_v31 = vsub.s32 %v2299_v19, %v2693_v37  ;;  %v2704_v47 = vmul.u32 24, %v2703_v27  ;;  %v6098_v40 = vmul.u32.u64.low 2863311531, %v2303_v61  ;;  %v6099_v19 = vmul.u32.u64.high 2863311531, %v2303_v61, %v6098_v40 }
 0x24d   : > { %v6105_v51 = vmul.u32.u64.low 2863311531, %v2302_v29  ;;  %v6106_v20 = vmul.u32.u64.high 2863311531, %v2302_v29, %v6105_v51 }
 0x24e   : > { %vm2863_vm0 = vcmp.ne.s32.totalorder %v2694_v31, 0  ;;  %vm2910_vm2 = vcmp.lt.s32.totalorder %v2694_v31, 0  ;;  %v2705_v56 = vsub.s32 %v2300_v21, %v2704_v47  ;;  %v3004_v26 = vadd.s32 24, %v2694_v31 }
 0x24f   : > { %vm6083_vm4 = vmand %vm2910_vm2, %vm2863_vm0  ;;  %v2736_v15 = vshrl.u32 %v6099_v19, 4 }
 0x250   : > { %vm2864_vm6 = vcmp.ne.s32.totalorder %v2705_v56, 0  ;;  %vm2911_vm8 = vcmp.lt.s32.totalorder %v2705_v56, 0  ;;  %v3005_v14 = vadd.s32 24, %v2705_v56  ;;  %v3051_v38 = vsel %vm6083_vm4, %v3004_v26, %v2694_v31 }
 0x251   : > { %vm6089_vm10 = vmand %vm2911_vm8, %vm2864_vm6  ;;  %v2307_v26 = vadd.s32 336, %v5175_v53 }
 0x252   : > { %v3052_v60 = vsel %vm6089_vm10, %v3005_v14, %v2705_v56 }
 0x25e   : > { %v3982_v4 = vpop.f32.mrb[4].mxu1 }
 0x25f   : > { %v1950_v58 = vpop.f32.mrb[5].mxu1  ;;  %v3329_v50 = vsel %vm3094_vm11, %v3982_v4, 0.0  ;;  %vm3098_vm11 = vcmp.lt.s32.totalorder %v3051_v38, 16 }
 0x260   : > { %v3327_v49 = vsel %vm3092_vm1, %v1950_v58, 0.0  ;;  %v3983_v39 = vpop.f32.mrb[6].mxu1  ;;  %v3429_v46 = vmul.f32 %v3329_v50, %v3329_v50 }
 0x261   : > { %v3373_v22 = vadd.f32 %v3372_v54, %v3327_v49  ;;  %v3427_v11 = vmul.f32 %v3327_v49, %v3327_v49  ;;  %v3854_v33 = vpack.c.bf16 %v3983_v39, %v3982_v4  ;;  %v1953_v5 = vpop.f32.mrb[7].mxu1  ;;  %v3330_v36 = vsel %vm3095_vm15, %v3983_v39, 0.0 }
 0x262   : > { %v3849_v18 = vpack.c.bf16 %v1953_v5, %v1950_v58  ;;  %v3328_v12 = vsel %vm3093_vm14, %v1953_v5, 0.0  ;;  %v3430_v63 = vmul.f32 %v3330_v36, %v3330_v36  ;;  %v2682_v54 = vmul.u32 24, %v2681_v24 }
 0x263   : > { %v3473_v48 = vadd.f32 %v3472_v3, %v3427_v11  ;;  %3905 = vst [vmem:[%s5446_s14 + $0x78] sm:$0xff] %v3854_v33   ;;  %v3374_v25 = vadd.f32 %v3373_v22, %v3328_v12  ;;  %v3428_v13 = vmul.f32 %v3328_v12, %v3328_v12  ;;  %v2672_v3 = vsub.s32 %v2297_v0, %v2671_v41 }
 0x264   : > { %3904 = vst [vmem:[%s5446_s14 + $0x70] sm:$0xff] %v3849_v18   ;;  %v2683_v6 = vsub.s32 %v2298_v57, %v2682_v54  ;;  %v6101_v0 = vmul.u32.u64.low 2863311531, %v2301_v55  ;;  %v6102_v57 = vmul.u32.u64.high 2863311531, %v2301_v55, %v6101_v0  ;;  %v2304_v58 = vadd.s32 312, %v5175_v53 }
 0x265   : > { %v3375_v34 = vadd.f32 %v3374_v25, %v3329_v50  ;;  %v3474_v35 = vadd.f32 %v3473_v48, %v3428_v13  ;;  %vm2861_vm12 = vcmp.ne.s32.totalorder %v2672_v3, 0  ;;  %vm2908_vm13 = vcmp.lt.s32.totalorder %v2672_v3, 0 }
 0x266   : > { %vm2862_vm7 = vcmp.ne.s32.totalorder %v2683_v6, 0  ;;  %vm2909_vm3 = vcmp.lt.s32.totalorder %v2683_v6, 0  ;;  %v3002_v28 = vadd.s32 24, %v2672_v3  ;;  %vm2955_vm5 = vmand %vm2908_vm13, %vm2861_vm12  ;;  %v3003_v30 = vadd.s32 24, %v2683_v6 }
 0x267   : > { %v3475_v62 = vadd.f32 %v3474_v35, %v3429_v46  ;;  %v3376_v45 = vadd.f32 %v3375_v34, %v3330_v36  ;;  %vm2956_vm9 = vmand %vm2909_vm3, %vm2862_vm7  ;;  %vm3099_vm15 = vcmp.lt.s32.totalorder %v3052_v60, 16  ;;  %v2714_v46 = vshrl.u32 %v6102_v57, 4 }
 0x268   : > { %v3049_v9 = vsel %vm2955_vm5, %v3002_v28, %v2672_v3  ;;  %v3050_v23 = vsel %vm2956_vm9, %v3003_v30, %v2683_v6  ;;  %v6110_v50 = vmul.u32.u64.low 2863311531, %v2304_v58  ;;  %v6111_v18 = vmul.u32.u64.high 2863311531, %v2304_v58, %v6110_v50 }
 0x269   : > { %v3476_v59 = vadd.f32 %v3475_v62, %v3430_v63  ;;  %vm3096_vm1 = vcmp.lt.s32.totalorder %v3049_v9, 16  ;;  %vm3097_vm14 = vcmp.lt.s32.totalorder %v3050_v23, 16  ;;  %v2725_v35 = vshrl.u32 %v6106_v20, 4 }
 0x26a   : > { %v2737_v63 = vmul.u32 24, %v2736_v15  ;;  %v2715_v62 = vmul.u32 24, %v2714_v46  ;;  %v2747_v2 = vshrl.u32 %v6111_v18, 4  ;;  %v2305_v30 = vadd.s32 320, %v5175_v53 }
 0x26b   : > { %v2306_v9 = vadd.s32 328, %v5175_v53 }
 0x26c   : > { %v2738_v8 = vsub.s32 %v2303_v61, %v2737_v63  ;;  %v2748_v24 = vmul.u32 24, %v2747_v2  ;;  %v6132_v23 = vmul.u32.u64.low 2863311531, %v2307_v26  ;;  %v6133_v61 = vmul.u32.u64.high 2863311531, %v2307_v26, %v6132_v23 }
 0x26d   : > { %v6139_v40 = vmul.u32.u64.low 2863311531, %v2306_v9  ;;  %v6140_v19 = vmul.u32.u64.high 2863311531, %v2306_v9, %v6139_v40 }
 0x26e   : > { %vm2867_vm0 = vcmp.ne.s32.totalorder %v2738_v8, 0  ;;  %vm2914_vm2 = vcmp.lt.s32.totalorder %v2738_v8, 0  ;;  %v2749_v41 = vsub.s32 %v2304_v58, %v2748_v24  ;;  %v3008_v31 = vadd.s32 24, %v2738_v8 }
 0x26f   : > { %vm6117_vm4 = vmand %vm2914_vm2, %vm2867_vm0 }
 0x270   : > { %vm2868_vm6 = vcmp.ne.s32.totalorder %v2749_v41, 0  ;;  %vm2915_vm8 = vcmp.lt.s32.totalorder %v2749_v41, 0  ;;  %v3009_v6 = vadd.s32 24, %v2749_v41  ;;  %v3055_v56 = vsel %vm6117_vm4, %v3008_v31, %v2738_v8 }
 0x271   : > { %vm6123_vm10 = vmand %vm2915_vm8, %vm2868_vm6 }
 0x272   : > { %v3056_v38 = vsel %vm6123_vm10, %v3009_v6, %v2749_v41 }
 0x27e   : > { %v3986_v16 = vpop.f32.mrb[8].mxu1 }
 0x27f   : > { %v1966_v1 = vpop.f32.mrb[9].mxu1  ;;  %v3333_v21 = vsel %vm3098_vm11, %v3986_v16, 0.0  ;;  %vm3102_vm11 = vcmp.lt.s32.totalorder %v3055_v56, 16 }
 0x280   : > { %v3331_v4 = vsel %vm3096_vm1, %v1966_v1, 0.0  ;;  %v3987_v17 = vpop.f32.mrb[10].mxu1  ;;  %v3433_v12 = vmul.f32 %v3333_v21, %v3333_v21 }
 0x281   : > { %v3377_v44 = vadd.f32 %v3376_v45, %v3331_v4  ;;  %v3431_v7 = vmul.f32 %v3331_v4, %v3331_v4  ;;  %v3864_v49 = vpack.c.bf16 %v3987_v17, %v3986_v16  ;;  %v1969_v39 = vpop.f32.mrb[11].mxu1  ;;  %v3334_v5 = vsel %vm3099_vm15, %v3987_v17, 0.0 }
 0x282   : > { %v3859_v10 = vpack.c.bf16 %v1969_v39, %v1966_v1  ;;  %v3332_v52 = vsel %vm3097_vm14, %v1969_v39, 0.0  ;;  %v3434_v13 = vmul.f32 %v3334_v5, %v3334_v5  ;;  %v2726_v45 = vmul.u32 24, %v2725_v35 }
 0x283   : > { %v3477_v22 = vadd.f32 %v3476_v59, %v3431_v7  ;;  %3907 = vst [vmem:[%s5446_s14 + $0x88] sm:$0xff] %v3864_v49   ;;  %v3378_v11 = vadd.f32 %v3377_v44, %v3332_v52  ;;  %v3432_v33 = vmul.f32 %v3332_v52, %v3332_v52  ;;  %v2716_v59 = vsub.s32 %v2301_v55, %v2715_v62 }
 0x284   : > { %3906 = vst [vmem:[%s5446_s14 + $0x80] sm:$0xff] %v3859_v10   ;;  %v2727_v37 = vsub.s32 %v2302_v29, %v2726_v45  ;;  %v6135_v55 = vmul.u32.u64.low 2863311531, %v2305_v30  ;;  %v6136_v29 = vmul.u32.u64.high 2863311531, %v2305_v30, %v6135_v55  ;;  %v2308_v1 = vadd.s32 344, %v5175_v53 }
 0x285   : > { %v3379_v48 = vadd.f32 %v3378_v11, %v3333_v21  ;;  %v3478_v25 = vadd.f32 %v3477_v22, %v3432_v33  ;;  %vm2865_vm12 = vcmp.ne.s32.totalorder %v2716_v59, 0  ;;  %vm2912_vm13 = vcmp.lt.s32.totalorder %v2716_v59, 0 }
 0x286   : > { %vm2866_vm7 = vcmp.ne.s32.totalorder %v2727_v37, 0  ;;  %vm2913_vm3 = vcmp.lt.s32.totalorder %v2727_v37, 0  ;;  %v3006_v54 = vadd.s32 24, %v2716_v59  ;;  %vm2959_vm5 = vmand %vm2912_vm13, %vm2865_vm12  ;;  %v3007_v3 = vadd.s32 24, %v2727_v37 }
 0x287   : > { %v3479_v36 = vadd.f32 %v3478_v25, %v3433_v12  ;;  %v3380_v42 = vadd.f32 %v3379_v48, %v3334_v5  ;;  %vm2960_vm9 = vmand %vm2913_vm3, %vm2866_vm7  ;;  %vm3103_vm15 = vcmp.lt.s32.totalorder %v3056_v38, 16  ;;  %v2758_v18 = vshrl.u32 %v6136_v29, 4 }
 0x288   : > { %v3053_v47 = vsel %vm2959_vm5, %v3006_v54, %v2716_v59  ;;  %v3054_v28 = vsel %vm2960_vm9, %v3007_v3, %v2727_v37  ;;  %v6144_v21 = vmul.u32.u64.low 2863311531, %v2308_v1  ;;  %v6145_v10 = vmul.u32.u64.high 2863311531, %v2308_v1, %v6144_v21 }
 0x289   : > { %v3480_v34 = vadd.f32 %v3479_v36, %v3434_v13  ;;  %vm3100_vm1 = vcmp.lt.s32.totalorder %v3053_v47, 16  ;;  %vm3101_vm14 = vcmp.lt.s32.totalorder %v3054_v28, 16  ;;  %v2780_v12 = vshrl.u32 %v6133_v61, 4 }
 0x28a   : > { %v2769_v25 = vshrl.u32 %v6140_v19, 4  ;;  %v2759_v13 = vmul.u32 24, %v2758_v18  ;;  %v2791_v36 = vshrl.u32 %v6145_v10, 4  ;;  %v2309_v37 = vadd.s32 352, %v5175_v53 }
 0x28b   : > { %v2781_v15 = vmul.u32 24, %v2780_v12  ;;  %v2311_v54 = vadd.s32 368, %v5175_v53  ;;  %v2310_v3 = vadd.s32 360, %v5175_v53 }
 0x28c   : > { %v2760_v46 = vsub.s32 %v2305_v30, %v2759_v13  ;;  %v6170_v56 = vmul.u32.u64.low 2863311531, %v2309_v37  ;;  %v6171_v32 = vmul.u32.u64.high 2863311531, %v2309_v37, %v6170_v56 }
 0x28d   : > { %v2782_v35 = vsub.s32 %v2307_v26, %v2781_v15 }
 0x28e   : > { %vm2869_vm0 = vcmp.ne.s32.totalorder %v2760_v46, 0  ;;  %vm2916_vm2 = vcmp.lt.s32.totalorder %v2760_v46, 0  ;;  %v3010_v2 = vadd.s32 24, %v2760_v46 }
 0x28f   : > { %vm2871_vm12 = vcmp.ne.s32.totalorder %v2782_v35, 0  ;;  %vm2918_vm13 = vcmp.lt.s32.totalorder %v2782_v35, 0  ;;  %vm2963_vm4 = vmand %vm2916_vm2, %vm2869_vm0  ;;  %v3012_v8 = vadd.s32 24, %v2782_v35 }
 0x290   : > { %vm6151_vm5 = vmand %vm2918_vm13, %vm2871_vm12  ;;  %v3057_v41 = vsel %vm2963_vm4, %v3010_v2, %v2760_v46 }
 0x291   : > { %v3059_v47 = vsel %vm6151_vm5, %v3012_v8, %v2782_v35 }
 0x29e   : > { %v3990_v14 = vpop.f32.mrb[12].mxu1 }
 0x29f   : > { %v1982_v43 = vpop.f32.mrb[13].mxu1  ;;  %v3337_v58 = vsel %vm3102_vm11, %v3990_v14, 0.0  ;;  %vm3106_vm11 = vcmp.lt.s32.totalorder %v3059_v47, 16 }
 0x2a0   : > { %v3335_v16 = vsel %vm3100_vm1, %v1982_v43, 0.0  ;;  %v3991_v60 = vpop.f32.mrb[14].mxu1  ;;  %v3437_v52 = vmul.f32 %v3337_v58, %v3337_v58  ;;  %vm3104_vm1 = vcmp.lt.s32.totalorder %v3057_v41, 16 }
 0x2a1   : > { %v3381_v0 = vadd.f32 %v3380_v42, %v3335_v16  ;;  %v3435_v57 = vmul.f32 %v3335_v16, %v3335_v16  ;;  %v3874_v4 = vpack.c.bf16 %v3991_v60, %v3990_v14  ;;  %v1985_v17 = vpop.f32.mrb[15].mxu1  ;;  %v3338_v39 = vsel %vm3103_vm15, %v3991_v60, 0.0 }
 0x2a2   : > { %v3869_v51 = vpack.c.bf16 %v1985_v17, %v1982_v43  ;;  %v3336_v20 = vsel %vm3101_vm14, %v1985_v17, 0.0  ;;  %v3438_v33 = vmul.f32 %v3338_v39, %v3338_v39  ;;  %v2770_v42 = vmul.u32 24, %v2769_v25 }
 0x2a3   : > { %v3481_v44 = vadd.f32 %v3480_v34, %v3435_v57  ;;  %3909 = vst [vmem:[%s5446_s14 + $0x98] sm:$0xff] %v3874_v4   ;;  %v3382_v7 = vadd.f32 %v3381_v0, %v3336_v20  ;;  %v3436_v49 = vmul.f32 %v3336_v20, %v3336_v20  ;;  %v2792_v34 = vmul.u32 24, %v2791_v36 }
 0x2a4   : > { %3908 = vst [vmem:[%s5446_s14 + $0x90] sm:$0xff] %v3869_v51   ;;  %v2771_v63 = vsub.s32 %v2306_v9, %v2770_v42  ;;  %v6175_v30 = vmul.u32.u64.low 2863311531, %v2311_v54  ;;  %v6176_v9 = vmul.u32.u64.high 2863311531, %v2311_v54, %v6175_v30  ;;  %v2802_v20 = vshrl.u32 %v6171_v32, 4 }
 0x2a5   : > { %v3383_v22 = vadd.f32 %v3382_v7, %v3337_v58  ;;  %v3482_v11 = vadd.f32 %v3481_v44, %v3436_v49  ;;  %v2793_v62 = vsub.s32 %v2308_v1, %v2792_v34 }
 0x2a6   : > { %vm2870_vm7 = vcmp.ne.s32.totalorder %v2771_v63, 0  ;;  %vm2917_vm3 = vcmp.lt.s32.totalorder %v2771_v63, 0  ;;  %v3011_v59 = vadd.s32 24, %v2771_v63  ;;  %v2824_v44 = vshrl.u32 %v6176_v9, 4 }
 0x2a7   : > { %v3483_v5 = vadd.f32 %v3482_v11, %v3437_v52  ;;  %v3384_v50 = vadd.f32 %v3383_v22, %v3338_v39  ;;  %vm2872_vm6 = vcmp.ne.s32.totalorder %v2793_v62, 0  ;;  %vm2919_vm8 = vcmp.lt.s32.totalorder %v2793_v62, 0  ;;  %vm6155_vm9 = vmand %vm2917_vm3, %vm2870_vm7 }
 0x2a8   : > { %v3013_v27 = vadd.s32 24, %v2793_v62  ;;  %vm6161_vm10 = vmand %vm2919_vm8, %vm2872_vm6  ;;  %v3058_v6 = vsel %vm6155_vm9, %v3011_v59, %v2771_v63  ;;  %v6178_v14 = vmul.u32.u64.low 2863311531, %v2310_v3  ;;  %v6179_v38 = vmul.u32.u64.high 2863311531, %v2310_v3, %v6178_v14 }
 0x2a9   : > { %v3484_v48 = vadd.f32 %v3483_v5, %v3438_v33  ;;  %vm3105_vm14 = vcmp.lt.s32.totalorder %v3058_v6, 16  ;;  %v2803_v10 = vmul.u32 24, %v2802_v20  ;;  %v2825_v22 = vmul.u32 24, %v2824_v44 }
 0x2aa   : > { %v3060_v26 = vsel %vm6161_vm10, %v3013_v27, %v2793_v62  ;;  %v2813_v21 = vshrl.u32 %v6179_v38, 4 }
 0x2ab   : > { %vm3107_vm15 = vcmp.lt.s32.totalorder %v3060_v26, 16  ;;  %v2804_v33 = vsub.s32 %v2309_v37, %v2803_v10  ;;  %v2826_v5 = vsub.s32 %v2311_v54, %v2825_v22 }
 0x2ac   : > { %v2814_v11 = vmul.u32 24, %v2813_v21 }
 0x2ad   : > { %vm2873_vm0 = vcmp.ne.s32.totalorder %v2804_v33, 0  ;;  %vm2920_vm2 = vcmp.lt.s32.totalorder %v2804_v33, 0  ;;  %vm2875_vm12 = vcmp.ne.s32.totalorder %v2826_v5, 0  ;;  %vm2922_vm13 = vcmp.lt.s32.totalorder %v2826_v5, 0 }
 0x2ae   : > { %v3014_v18 = vadd.s32 24, %v2804_v33  ;;  %vm2967_vm4 = vmand %vm2920_vm2, %vm2873_vm0  ;;  %v3016_v12 = vadd.s32 24, %v2826_v5 }
 0x2af   : > { %vm2969_vm5 = vmand %vm2922_vm13, %vm2875_vm12 }
 0x2b0   : > { %v3061_v25 = vsel %vm2967_vm4, %v3014_v18, %v2804_v33  ;;  %v3063_v13 = vsel %vm2969_vm5, %v3016_v12, %v2826_v5 }
 0x2b1   : > { %vm3108_vm8 = vcmp.lt.s32.totalorder %v3061_v25, 16  ;;  %vm3110_vm9 = vcmp.lt.s32.totalorder %v3063_v13, 16 }
 0x2be   : > { %v3994_v28 = vpop.f32.mrb[16].mxu1 }
 0x2bf   : > { %v1998_v53 = vpop.f32.mrb[17].mxu1  ;;  %v3341_v60 = vsel %vm3106_vm11, %v3994_v28, 0.0 }
 0x2c0   : > { %v3339_v43 = vsel %vm3104_vm1, %v1998_v53, 0.0  ;;  %v3995_v23 = vpop.f32.mrb[18].mxu1  ;;  %v3441_v17 = vmul.f32 %v3341_v60, %v3341_v60 }
 0x2c1   : > { %v3385_v61 = vadd.f32 %v3384_v50, %v3339_v43  ;;  %v3439_v55 = vmul.f32 %v3339_v43, %v3339_v43  ;;  %v3884_v29 = vpack.c.bf16 %v3995_v23, %v3994_v28  ;;  %v2001_v16 = vpop.f32.mrb[19].mxu1  ;;  %v3342_v4 = vsel %vm3107_vm15, %v3995_v23, 0.0 }
 0x2c2   : > { %v3879_v1 = vpack.c.bf16 %v2001_v16, %v1998_v53  ;;  %v3340_v40 = vsel %vm3105_vm14, %v2001_v16, 0.0  ;;  %v3442_v7 = vmul.f32 %v3342_v4, %v3342_v4  ;;  %v2815_v50 = vsub.s32 %v2310_v3, %v2814_v11 }
 0x2c3   : > { %v3485_v19 = vadd.f32 %v3484_v48, %v3439_v55  ;;  %3911 = vst [vmem:[%s5446_s14 + $0xa8] sm:$0xff] %v3884_v29   ;;  %v3386_v0 = vadd.f32 %v3385_v61, %v3340_v40  ;;  %v3440_v57 = vmul.f32 %v3340_v40, %v3340_v40 }
 0x2c4   : > { %3910 = vst [vmem:[%s5446_s14 + $0xa0] sm:$0xff] %v3879_v1   ;;  %vm2874_vm7 = vcmp.ne.s32.totalorder %v2815_v50, 0  ;;  %vm2921_vm3 = vcmp.lt.s32.totalorder %v2815_v50, 0  ;;  %v3015_v48 = vadd.s32 24, %v2815_v50 }
 0x2c5   : > { %v3387_v58 = vadd.f32 %v3386_v0, %v3341_v60  ;;  %v3486_v51 = vadd.f32 %v3485_v19, %v3440_v57  ;;  %vm2968_vm6 = vmand %vm2921_vm3, %vm2874_vm7 }
 0x2c6   : > { %v3062_v36 = vsel %vm2968_vm6, %v3015_v48, %v2815_v50 }
 0x2c7   : > { %v3487_v49 = vadd.f32 %v3486_v51, %v3441_v17  ;;  %v3388_v39 = vadd.f32 %v3387_v58, %v3342_v4  ;;  %vm3109_vm10 = vcmp.lt.s32.totalorder %v3062_v36, 16 }
 0x2c9   : > { %v3488_v52 = vadd.f32 %v3487_v49, %v3442_v7 }
 0x2db   : > { %v3998_v15 = vpop.f32.mrb[20].mxu1 }
 0x2dc   : > { %v3775_v42 = vpack.c.bf16 %v3998_v15, %v3998_v15  ;;  %v2014_v46 = vpop.f32.mrb[21].mxu1  ;;  %v3345_v45 = vsel %vm3110_vm9, %v3998_v15, 0.0 }
 0x2dd   : > { %v3343_v34 = vsel %vm3108_vm8, %v2014_v46, 0.0  ;;  %v3999_v35 = vpop.f32.mrb[22].mxu1  ;;  %v3445_v27 = vmul.f32 %v3345_v45, %v3345_v45 }
 0x2de   : > { %2263 = vst [vmem:[%s5446_s14 + $0xb8] sm:$0xf] %v3775_v42  ;;  %v3389_v63 = vadd.f32 %v3388_v39, %v3343_v34  ;;  %v3443_v62 = vmul.f32 %v3343_v34, %v3343_v34  ;;  %v2017_v2 = vpop.f32.mrb[23].mxu1 }
 0x2df   : > { %v3889_v8 = vpack.c.bf16 %v2017_v2, %v2014_v46  ;;  %v3344_v59 = vsel %vm3109_vm10, %v2017_v2, 0.0 }
 0x2e0   : > { %v3489_v24 = vadd.f32 %v3488_v52, %v3443_v62  ;;  %v3390_v37 = vadd.f32 %v3389_v63, %v3344_v59  ;;  %v3444_v41 = vmul.f32 %v3344_v59, %v3344_v59 }
 0x2e1   : > { %3912 = vst [vmem:[%s5446_s14 + $0xb0] sm:$0xff] %v3889_v8  }
 0x2e2   : > { %v3391_v54 = vadd.f32 %v3390_v37, %v3345_v45  ;;  %v3490_v31 = vadd.f32 %v3489_v24, %v3444_v41 }
 0x2e4   : > { %v3392_v3 = vrot.slane %v3391_v54, 4  ;;  %v3491_v47 = vadd.f32 %v3490_v31, %v3445_v27 }
 0x2e6   : > { %v3393_v6 = vadd.f32 %v3392_v3, %v3391_v54  ;;  %v3492_v56 = vrot.slane %v3491_v47, 4 }
 0x2e8   : > { %v3394_v32 = vrot.slane %v3393_v6, 2  ;;  %v3493_v28 = vadd.f32 %v3492_v56, %v3491_v47 }
 0x2ea   : > { %v3395_v26 = vadd.f32 %v3394_v32, %v3393_v6  ;;  %v3494_v30 = vrot.slane %v3493_v28, 2 }
 0x2ec   : > { %v3396_v9 = vrot.slane %v3395_v26, 1  ;;  %v3495_v53 = vadd.f32 %v3494_v30, %v3493_v28 }
 0x2ee   : > { %v3397_v14 = vadd.f32 %v3396_v9, %v3395_v26  ;;  %v3496_v38 = vrot.slane %v3495_v53, 1 }
 0x2f0   : > { %3398 = vst [vmem:[%s181_s18] sm:$0x1] %v3397_v14  ;;  %v3497_v43 = vadd.f32 %v3496_v38, %v3495_v53 }
 0x2f2   : > { %3498 = vst [vmem:[%s181_s18 + $0x1] sm:$0x1] %v3497_v43 }
 0x2f3 PF: > { %s14_s12 = sadd.s32 1, %s4194_s12  }
 0x2f4   : > { %p11_p4 = scmp.ge.s32.totalorder %s14_s12, 4  }
 0x2f6   :  { %13 = sbr.rel (!%p11_p4) target bundleno = 1 (0x1), region = 70 }

// kernel: double_conv.6
= control target key start
LH: loop header
LB: loop body
LE: loop exit
PB: predicated region body
PF: predicated region fallthrough
CT: control target
= control target key end

     0   :  { %s5769_s12 = smov 0   ;;  %s9132_s0 = inlined_call_operand.vmem [shape: bf16[2,432,128], index: 0, kind: input, shape index: {}]   ;;  %s9133_s1 = inlined_call_operand.vmem [shape: bf16[1152,128], index: 1, kind: input, shape index: {}]   ;;  %s9134_s2 = inlined_call_operand.vmem [shape: bf16[2,376,128], index: 2, kind: output, shape index: {0}]   ;;  %s9135_s3 = inlined_call_operand.vmem [shape: f32[2,2,128], index: 3, kind: output, shape index: {1}]  }
   0x1 LB: > { %s4747_s13 = sadd.s32 4294967295, %s5746_s12   ;;  %p4751_p0 = scmp.ge.s32.totalorder %s5746_s12, 1  ;;  %s5746_s12 = sphi %s5769_s12, %s14_s12  }
   0x2   : > { %p140_p1 = scmp.lt.s32.totalorder %s5746_s12, 3 }
   0x4   : > { %p141_p2 = pnand %p4751_p0, %p140_p1 }
   0x6   : > { %144 = sbr.rel (%p141_p2) target bundleno = 830 (0x33e), region = 28 }
   0xd   : > { %v5570_v0 = vld [vmem:[%s9133_s1] sm:$0xff]   ;;  %v9136_v1 = vmov 0   ;;  %v5572_v3 = vld [vmem:[%s9133_s1 + $0x8] sm:$0xff]   ;;  %v5574_v5 = vld [vmem:[%s9133_s1 + $0x10] sm:$0xff]   ;;  %p168_p3 = scmp.lt.s32.totalorder %s4747_s13, 1  ;;  %vm653_vm1 = vcmask 1046528  }
   0xe   : > { %2070 = vmatprep.subr.bf16.mxu1 %v9136_v1  ;;  %2294 = vmatprep.subr.bf16.mxu0 %v9136_v1  ;;  %v5571_v2 = vld [vmem:[%s9133_s1 + $0x80] sm:$0xff]   ;;  %v5573_v4 = vld [vmem:[%s9133_s1 + $0x88] sm:$0xff]   ;;  %v5575_v6 = vld [vmem:[%s9133_s1 + $0x90] sm:$0xff]   ;;  %vm434_vm0 = vsmask.f32 7424 }
   0xf   : > { %2071 = vmatpush1.bf16.msra.mxu1 %v5570_v0  ;;  %2295 = vmatpush1.bf16.msra.mxu0 %v5571_v2  ;;  %v5576_v7 = vld [vmem:[%s9133_s1 + $0x18] sm:$0xff]   ;;  %v5578_v9 = vld [vmem:[%s9133_s1 + $0x20] sm:$0xff]   ;;  %v5580_v11 = vld [vmem:[%s9133_s1 + $0x28] sm:$0xff]   ;;  %s9808_s13 = smov (!%p168_p3, %s4747_s13), 1 }
  0x10   : > { %2072 = vmatprep.subr.bf16.mxu1 %v9136_v1  ;;  %2296 = vmatprep.subr.bf16.mxu0 %v9136_v1  ;;  %v5577_v8 = vld [vmem:[%s9133_s1 + $0x98] sm:$0xff]   ;;  %v5579_v10 = vld [vmem:[%s9133_s1 + $0xa0] sm:$0xff]   ;;  %v5581_v12 = vld [vmem:[%s9133_s1 + $0xa8] sm:$0xff]   ;;  %s5465_s17 = smul.u32 216, %s9808_s13  ;;  %s4754_s28 = sshll.u32 %s9808_s13, 1 }
  0x11   : > { %v5582_v13 = vld [vmem:[%s9133_s1 + $0x30] sm:$0xff]   ;;  %v5584_v15 = vld [vmem:[%s9133_s1 + $0x38] sm:$0xff]   ;;  %v5586_v17 = vld [vmem:[%s9133_s1 + $0x40] sm:$0xff]   ;;  %s181_s4 = scalar_lea.vmem %s9135_s3, %s4754_s28 }
  0x12   : > { %v5583_v14 = vld [vmem:[%s9133_s1 + $0xb0] sm:$0xff]   ;;  %v5585_v16 = vld [vmem:[%s9133_s1 + $0xb8] sm:$0xff]   ;;  %s5851_s24 = scalar_lea.vmem %s9132_s0, %s5465_s17  ;;  %v5587_v18 = vld [vmem:[%s9133_s1 + $0xc0] sm:$0xff]  }
  0x13   : > { %2073 = vmatpush1.bf16.msra.mxu1 %v5572_v3  ;;  %2297 = vmatpush1.bf16.msra.mxu0 %v5573_v4  ;;  %v183_v19 = vld [vmem:[%s5851_s24] sm:$0xf]  ;;  %v5863_v20 = vld [vmem:[%s5851_s24 + $0x4] sm:$0xf]  ;;  %v185_v21 = vld [vmem:[%s5851_s24 + $0x8] sm:$0xf] }
  0x14   : > { %2074 = vmatprep.subr.bf16.mxu1 %v9136_v1  ;;  %2298 = vmatprep.subr.bf16.mxu0 %v9136_v1  ;;  %v186_v22 = vld [vmem:[%s5851_s24 + $0xc] sm:$0xf]  ;;  %v5868_v23 = vcombine.low %v183_v19, %v5863_v20  ;;  %v187_v24 = vld [vmem:[%s5851_s24 + $0x10] sm:$0xf]  ;;  %v5592_v38 = vld [vmem:[%s9133_s1 + $0x58] sm:$0xff]  }
  0x15   : > { %v5588_v25 = vld [vmem:[%s9133_s1 + $0x48] sm:$0xff]   ;;  %v5874_v26 = vcombine.low %v185_v21, %v186_v22  ;;  %v5876_v27 = vcombine.low %v186_v22, %v187_v24  ;;  %v5590_v33 = vld [vmem:[%s9133_s1 + $0x50] sm:$0xff]   ;;  %v5593_v39 = vld [vmem:[%s9133_s1 + $0xd8] sm:$0xff]  }
  0x16   : > { %v5589_v28 = vld [vmem:[%s9133_s1 + $0xc8] sm:$0xff]   ;;  %v436_v29 = vshrl.u32 %v5868_v23, 16  ;;  %v438_v30 = vshll.u32 %v5868_v23, 16  ;;  %v5591_v35 = vld [vmem:[%s9133_s1 + $0xd0] sm:$0xff]   ;;  %v5594_v40 = vld [vmem:[%s9133_s1 + $0x60] sm:$0xff]  }
  0x17   : > { %2075 = vmatpush1.bf16.msra.mxu1 %v5574_v5  ;;  %2299 = vmatpush1.bf16.msra.mxu0 %v5575_v6  ;;  %v443_v31 = vshll.u32 %v5874_v26, 16  ;;  %v5595_v41 = vld [vmem:[%s9133_s1 + $0xe0] sm:$0xff]   ;;  %v188_v42 = vld [vmem:[%s5851_s24 + $0x14] sm:$0xf]  ;;  %v5596_v43 = vld [vmem:[%s9133_s1 + $0x68] sm:$0xff]   ;;  %v447_v50 = vshrl.u32 %v5874_v26, 16 }
  0x18   : > { %2076 = vmatprep.subr.bf16.mxu1 %v9136_v1  ;;  %2300 = vmatprep.subr.bf16.mxu0 %v9136_v1  ;;  %v440_v32 = vrot.slane %v438_v30, 1  ;;  %v5597_v44 = vld [vmem:[%s9133_s1 + $0xe8] sm:$0xff]   ;;  %v5920_v45 = vcombine.low %v187_v24, %v188_v42  ;;  %v231_v46 = vld [vmem:[%s5851_s24] sm:$0xe]  ;;  %v5598_v47 = vld [vmem:[%s9133_s1 + $0x70] sm:$0xff]   ;;  %v655_v54 = vrot.slane %v5874_v26, 1 }
  0x19   : > { %2326 = vmatprep.mubr.bf16.mxu0 %v5876_v27  ;;  %v445_v34 = vrot.slane %v443_v31, 1  ;;  %v5599_v48 = vld [vmem:[%s9133_s1 + $0xf0] sm:$0xff]   ;;  %v4780_v49 = vcombine.low %v231_v46, %v5863_v20  ;;  %v190_v52 = vld [vmem:[%s5851_s24 + $0x1c] sm:$0xf]  ;;  %v189_v55 = vld [vmem:[%s5851_s24 + $0x18] sm:$0xf] }
  0x1a   : > { %v441_v36 = vor.u32 %v440_v32, %v436_v29  ;;  %v451_v51 = vshll.u32 %v5920_v45, 16  ;;  %v5600_v53 = vld [vmem:[%s9133_s1 + $0x78] sm:$0xff]   ;;  %v5945_v60 = vcombine.low %v189_v55, %v190_v52  ;;  %v5948_v61 = vcombine.low %v188_v42, %v189_v55  ;;  %v5607_v63 = vld [vmem:[%s9133_s1 + $0x100] sm:$0xff]   ;;  %v194_v19 = vld [vmem:[%s5851_s24 + $0x2c] sm:$0xf] }
  0x1b   : > { %2077 = vmatpush1.bf16.msra.mxu1 %v5576_v7  ;;  %2301 = vmatpush1.bf16.msra.mxu0 %v5577_v8  ;;  %v5601_v56 = vld [vmem:[%s9133_s1 + $0xf8] sm:$0xff]   ;;  %v654_v57 = vrot.slane %v4780_v49, 1  ;;  %v449_v58 = vor.u32 %v447_v50, %v445_v34  ;;  %v455_v2 = vshrl.u32 %v5920_v45, 16  ;;  %v192_v4 = vld [vmem:[%s5851_s24 + $0x24] sm:$0xf]  ;;  %v657_v6 = vrot.slane %v5920_v45, 1 }
  0x1c   : > { %2078 = vmatprep.subr.bf16.mxu1 %v9136_v1  ;;  %2302 = vmatprep.subr.bf16.mxu0 %v9136_v1  ;;  %v446_v37 = vsel %vm434_vm0, %v441_v36, %v445_v34  ;;  %v453_v59 = vrot.slane %v451_v51, 1  ;;  %9254 = vst [vmem:[#allocation2_spill] sm:$0xff] %v5945_v60  ;;  %v459_v3 = vshll.u32 %v5945_v60, 16  ;;  %v5629_v5 = vld [vmem:[%s9133_s1 + $0x180] sm:$0xff]   ;;  %v5610_v8 = vld [vmem:[%s9133_s1 + $0x108] sm:$0xff]   ;;  %v5639_v20 = vld [vmem:[%s9133_s1 + $0x190] sm:$0xff]  }
  0x1d   : > { %2102 = vmatprep.mubr.bf16.mxu1 %v446_v37  ;;  %v656_v62 = vsel %vm653_vm1, %v654_v57, %v655_v54  ;;  %v191_v7 = vld [vmem:[%s5851_s24 + $0x20] sm:$0xf]  ;;  %v193_v21 = vld [vmem:[%s5851_s24 + $0x28] sm:$0xf]  ;;  %v659_v22 = vrot.slane %v5945_v60, 1  ;;  %v5636_v57 = vld [vmem:[%s9133_s1 + $0x138] sm:$0xff]  }
  0x1e   : > { %v454_v0 = vsel %vm434_vm0, %v449_v58, %v453_v59  ;;  %v196_v30 = vld [vmem:[%s5851_s24 + $0x34] sm:$0xf]  ;;  %v5623_v31 = vld [vmem:[%s9133_s1 + $0x120] sm:$0xff]   ;;  %v6013_v34 = vcombine.low %v192_v4, %v193_v21  ;;  %v6028_v42 = vld [vmem:[%s5851_s24 + $0x3c] sm:$0xf] }
  0x1f   : > { %2079 = vmatpush1.bf16.msra.mxu1 %v5578_v9  ;;  %2303 = vmatpush1.bf16.msra.mxu0 %v5579_v10  ;;  %v457_v9 = vor.u32 %v455_v2, %v453_v59  ;;  %v461_v10 = vrot.slane %v459_v3, 1  ;;  %v660_v32 = vsel %vm653_vm1, %v657_v6, %v659_v22  ;;  %v5649_v36 = vld [vmem:[%s9133_s1 + $0x1a0] sm:$0xff]   ;;  %v197_v46 = vld [vmem:[%s5851_s24 + $0x38] sm:$0xf] }
  0x20   : > { %2080 = vmatprep.subr.bf16.mxu1 %v9136_v1  ;;  %2304 = vmatprep.subr.bf16.mxu0 %v9136_v1  ;;  %v5665_v59 = vld [vmem:[%s9133_s1 + $0x1b8] sm:$0xff]   ;;  %v6071_v2 = vcombine.low %v196_v30, %v197_v46 }
  0x23   : > { %2081 = vmatpush1.bf16.msra.mxu1 %v5580_v11  ;;  %2305 = vmatpush1.bf16.msra.mxu0 %v5581_v12  ;;  %v5970_v11 = vcombine.low %v191_v7, %v192_v4  ;;  %v5635_v12 = vld [vmem:[%s9133_s1 + $0x188] sm:$0xff]   ;;  %v5642_v4 = vld [vmem:[%s9133_s1 + $0x140] sm:$0xff]  }
  0x24   : > { %2082 = vmatprep.subr.bf16.mxu1 %v9136_v1  ;;  %2306 = vmatprep.subr.bf16.mxu0 %v9136_v1 }
  0x25   : > { %9255 = vst [vmem:[#allocation3_spill] sm:$0xff] %v5970_v11  ;;  %v471_v29 = vshrl.u32 %v5970_v11, 16  ;;  %v661_v37 = vrot.slane %v5970_v11, 1 }
  0x27   : > { %2083 = vmatpush1.bf16.msra.mxu1 %v5582_v13  ;;  %2307 = vmatpush1.bf16.msra.mxu0 %v5583_v14  ;;  %v658_v13 = vsel %vm653_vm1, %v655_v54, %v657_v6  ;;  %v5615_v14 = vld [vmem:[%s9133_s1 + $0x110] sm:$0xff]  }
  0x28   : > { %2084 = vmatprep.subr.bf16.mxu1 %v9136_v1  ;;  %2308 = vmatprep.subr.bf16.mxu0 %v9136_v1 }
  0x2b   : > { %2085 = vmatpush1.bf16.msra.mxu1 %v5584_v15  ;;  %2309 = vmatpush1.bf16.msra.mxu0 %v5585_v16  ;;  %v462_v15 = vsel %vm434_vm0, %v457_v9, %v461_v10  ;;  %v5982_v16 = vcombine.low %v190_v52, %v191_v7  ;;  %v5659_v52 = vld [vmem:[%s9133_s1 + $0x1b0] sm:$0xff]   ;;  %v5646_v9 = vld [vmem:[%s9133_s1 + $0x148] sm:$0xff]  }
  0x2c   : > { %2086 = vmatprep.subr.bf16.mxu1 %v9136_v1  ;;  %2310 = vmatprep.subr.bf16.mxu0 %v9136_v1 }
  0x2f   : > { %2087 = vmatpush1.bf16.msra.mxu1 %v5586_v17  ;;  %2311 = vmatpush1.bf16.msra.mxu0 %v5587_v18  ;;  %v463_v17 = vshrl.u32 %v5945_v60, 16  ;;  %v467_v18 = vshll.u32 %v5970_v11, 16 }
  0x30   : > { %2088 = vmatprep.subr.bf16.mxu1 %v9136_v1  ;;  %2312 = vmatprep.subr.bf16.mxu0 %v9136_v1 }
  0x31   : > { %v469_v24 = vrot.slane %v467_v18, 1 }
  0x33   : > { %2089 = vmatpush1.bf16.msra.mxu1 %v5588_v25  ;;  %2313 = vmatpush1.bf16.msra.mxu0 %v5589_v28  ;;  %v5996_v25 = vcombine.low %v193_v21, %v194_v19  ;;  %v5618_v28 = vld [vmem:[%s9133_s1 + $0x118] sm:$0xff]   ;;  %v5652_v21 = vld [vmem:[%s9133_s1 + $0x150] sm:$0xff]  }
  0x34   : > { %2090 = vmatprep.subr.bf16.mxu1 %v9136_v1  ;;  %2314 = vmatprep.subr.bf16.mxu0 %v9136_v1 }
  0x35   : > { %9256 = vst [vmem:[#allocation4_spill] sm:$0xff] %v5996_v25  ;;  %v663_v54 = vrot.slane %v5996_v25, 1 }
  0x37   : > { %2091 = vmatpush1.bf16.msra.mxu1 %v5590_v33  ;;  %2315 = vmatpush1.bf16.msra.mxu0 %v5591_v35  ;;  %v475_v35 = vshll.u32 %v5996_v25, 16 }
  0x38   : > { %2092 = vmatprep.subr.bf16.mxu1 %v9136_v1  ;;  %2316 = vmatprep.subr.bf16.mxu0 %v9136_v1 }
  0x3b   : > { %2093 = vmatpush1.bf16.msra.mxu1 %v5592_v38  ;;  %2317 = vmatpush1.bf16.msra.mxu0 %v5593_v39  ;;  %v195_v38 = vld [vmem:[%s5851_s24 + $0x30] sm:$0xf]  ;;  %v473_v39 = vor.u32 %v471_v29, %v469_v24 }
  0x3c   : > { %2094 = vmatprep.subr.bf16.mxu1 %v9136_v1  ;;  %2318 = vmatprep.subr.bf16.mxu0 %v9136_v1  ;;  %v6045_v50 = vcombine.low %v194_v19, %v195_v38 }
  0x3f   : > { %2095 = vmatpush1.bf16.msra.mxu1 %v5594_v40  ;;  %2319 = vmatpush1.bf16.msra.mxu0 %v5595_v41  ;;  %v477_v40 = vrot.slane %v475_v35, 1  ;;  %v6025_v41 = vcombine.low %v195_v38, %v196_v30  ;;  %v5656_v30 = vld [vmem:[%s9133_s1 + $0x158] sm:$0xff]  }
  0x40   : > { %2096 = vmatprep.subr.bf16.mxu1 %v9136_v1  ;;  %2320 = vmatprep.subr.bf16.mxu0 %v9136_v1 }
  0x41   : > { %9257 = vst [vmem:[#allocation5_spill] sm:$0xff] %v6025_v41  ;;  %v478_v49 = vsel %vm434_vm0, %v473_v39, %v477_v40  ;;  %v483_v51 = vshll.u32 %v6025_v41, 16  ;;  %v487_v3 = vshrl.u32 %v6025_v41, 16  ;;  %v665_v6 = vrot.slane %v6025_v41, 1  ;;  %v5662_v39 = vld [vmem:[%s9133_s1 + $0x160] sm:$0xff]  }
  0x43   : > { %2097 = vmatpush1.bf16.msra.mxu1 %v5596_v43  ;;  %2321 = vmatpush1.bf16.msra.mxu0 %v5597_v44  ;;  %v5626_v43 = vld [vmem:[%s9133_s1 + $0x128] sm:$0xff]   ;;  %v479_v44 = vshrl.u32 %v5996_v25, 16 }
  0x44   : > { %2098 = vmatprep.subr.bf16.mxu1 %v9136_v1  ;;  %2322 = vmatprep.subr.bf16.mxu0 %v9136_v1 }
  0x45   : > { %v481_v55 = vor.u32 %v479_v44, %v477_v40  ;;  %v5677_v40 = vld [vmem:[%s9133_s1 + $0x1e0] sm:$0xff]   ;;  %v203_v44 = vld [vmem:[%s5851_s24 + $0x50] sm:$0xf] }
  0x47   : > { %2099 = vmatpush1.bf16.msra.mxu1 %v5598_v47  ;;  %2323 = vmatpush1.bf16.msra.mxu0 %v5599_v48  ;;  %v5632_v47 = vld [vmem:[%s9133_s1 + $0x130] sm:$0xff]   ;;  %v662_v48 = vsel %vm653_vm1, %v659_v22, %v661_v37 }
  0x48   : > { %2100 = vmatprep.subr.bf16.mxu1 %v9136_v1  ;;  %2324 = vmatprep.subr.bf16.mxu0 %v9136_v1  ;;  %v5673_v22 = vld [vmem:[%s9133_s1 + $0x1d0] sm:$0xff]  }
  0x4b   : > { %2101 = vmatpush1.bf16.msra.mxu1 %v5600_v53  ;;  %2325 = vmatpush1.bf16.msra.mxu0 %v5601_v56  ;;  %v6052_v53 = vcombine.low %v197_v46, %v6028_v42  ;;  %v485_v56 = vrot.slane %v483_v51, 1  ;;  %v783_v51 = vshrl.u32 %v5876_v27, 16 }
  0x4c   : > { %5237 = vmatprep.subr.bf16.mxu1 %v9136_v1  ;;  %2518 = vmatprep.subr.bf16.mxu0 %v9136_v1 }
  0x4d   : > { %9258 = vst [vmem:[#allocation6_spill] sm:$0xff] %v6052_v53  ;;  %v491_v58 = vshll.u32 %v6052_v53, 16 }
  0x4e   : > { %2103 = vmatmul.mubr.bf16.vlgmr.msra.gmra.mrb[0].mxu1 %v5868_v23  ;;  %2327 = vmatmul.mubr.bf16.vlgmr.msra.gmra.mrb[0].mxu0 %v656_v62  ;;  %v465_v23 = vor.u32 %v463_v17, %v461_v10  ;;  %v200_v62 = vld [vmem:[%s5851_s24 + $0x44] sm:$0xf]  ;;  %v489_v10 = vor.u32 %v487_v3, %v485_v56  ;;  %v666_v17 = vsel %vm653_vm1, %v663_v54, %v665_v6 }
  0x4f   : > { %2110 = vmatprep.mubr.bf16.mxu1 %v454_v0  ;;  %2519 = vmatpush1.bf16.msra.mxu0 %v5607_v63  ;;  %v664_v63 = vsel %vm653_vm1, %v661_v37, %v663_v54  ;;  %v486_v0 = vsel %vm434_vm0, %v481_v55, %v485_v56  ;;  %v493_v7 = vrot.slane %v491_v58, 1 }
  0x50   : > { %2334 = vmatprep.mubr.bf16.mxu0 %v5948_v61  ;;  %2520 = vmatprep.subr.bf16.mxu0 %v9136_v1  ;;  %v470_v33 = vsel %vm434_vm0, %v465_v23, %v469_v24  ;;  %v667_v23 = vrot.slane %v6052_v53, 1  ;;  %v201_v24 = vld [vmem:[%s5851_s24 + $0x48] sm:$0xf] }
  0x51   : > { %5253 = vmatpush1.bf16.msra.mxu1 %v5629_v5  ;;  %v5669_v5 = vld [vmem:[%s9133_s1 + $0x1c0] sm:$0xff]   ;;  %v494_v18 = vsel %vm434_vm0, %v489_v10, %v493_v7  ;;  %v6132_v37 = vcombine.low %v200_v62, %v201_v24 }
  0x52   : > { %5238 = vmatprep.subr.bf16.mxu1 %v9136_v1  ;;  %v668_v35 = vsel %vm653_vm1, %v665_v6, %v667_v23  ;;  %v5678_v6 = vld [vmem:[%s9133_s1 + $0x178] sm:$0xff]  }
  0x53   : > { %2521 = vmatpush1.bf16.msra.mxu0 %v5610_v8  ;;  %v199_v8 = vld [vmem:[%s5851_s24 + $0x40] sm:$0xf] }
  0x54   : > { %2522 = vmatprep.subr.bf16.mxu0 %v9136_v1  ;;  %v6101_v19 = vcombine.low %v6028_v42, %v199_v8  ;;  %v785_v42 = vshll.u32 %v5876_v27, 16  ;;  %v205_v27 = vld [vmem:[%s5851_s24 + $0x58] sm:$0xf] }
  0x55   : > { %5254 = vmatpush1.bf16.msra.mxu1 %v5635_v12  ;;  %v6089_v12 = vcombine.low %v199_v8, %v200_v62  ;;  %v5672_v62 = vld [vmem:[%s9133_s1 + $0x170] sm:$0xff]   ;;  %v790_v8 = vshll.u32 %v5948_v61, 16 }
  0x56   : > { %2111 = vmatmul.mubr.bf16.gmra.mrb[4].mxu1 %v5874_v26  ;;  %5239 = vmatprep.subr.bf16.mxu1 %v9136_v1  ;;  %v5645_v26 = vld [vmem:[%s9133_s1 + $0x198] sm:$0xff]  }
  0x57   : > { %2335 = vmatmul.mubr.bf16.gmra.mrb[4].mxu0 %v658_v13  ;;  %2118 = vmatprep.mubr.bf16.mxu1 %v462_v15  ;;  %9259 = vst [vmem:[#allocation7_spill] sm:$0xff] %v6089_v12  ;;  %v495_v13 = vshrl.u32 %v6052_v53, 16  ;;  %v202_v15 = vld [vmem:[%s5851_s24 + $0x4c] sm:$0xf]  ;;  %v792_v10 = vrot.slane %v790_v8, 1 }
  0x58   : > { %2342 = vmatprep.mubr.bf16.mxu0 %v5982_v16  ;;  %2523 = vmatpush1.bf16.msra.mxu0 %v5615_v14  ;;  %v5670_v14 = vld [vmem:[%s9133_s1 + $0x1c8] sm:$0xff]   ;;  %v6116_v29 = vcombine.low %v201_v24, %v202_v15  ;;  %v6160_v54 = vcombine.low %v202_v15, %v203_v44  ;;  %v211_v8 = vld [vmem:[%s5851_s24 + $0x70] sm:$0xf] }
  0x59   : > { %2524 = vmatprep.subr.bf16.mxu0 %v9136_v1  ;;  %5255 = vmatpush1.bf16.msra.mxu1 %v5639_v20  ;;  %v499_v20 = vshll.u32 %v6089_v12, 16 }
  0x5a   : > { %5240 = vmatprep.subr.bf16.mxu1 %v9136_v1  ;;  %v507_v38 = vshll.u32 %v6116_v29, 16 }
  0x5c   : > { %2525 = vmatpush1.bf16.msra.mxu0 %v5618_v28  ;;  %v497_v28 = vor.u32 %v495_v13, %v493_v7 }
  0x5d   : > { %2526 = vmatprep.subr.bf16.mxu0 %v9136_v1  ;;  %5256 = vmatpush1.bf16.msra.mxu1 %v5645_v26  ;;  %v501_v26 = vrot.slane %v499_v20, 1  ;;  %v208_v20 = vld [vmem:[%s5851_s24 + $0x64] sm:$0xf] }
  0x5e   : > { %2119 = vmatmul.mubr.bf16.gmra.mrb[8].mxu1 %v5920_v45  ;;  %5241 = vmatprep.subr.bf16.mxu1 %v9136_v1  ;;  %v5655_v45 = vld [vmem:[%s9133_s1 + $0x1a8] sm:$0xff]  }
  0x5f   : > { %2343 = vmatmul.mubr.bf16.gmra.mrb[8].mxu0 %v660_v32  ;;  %2126 = vmatprep.mubr.bf16.mxu1 %v470_v33  ;;  %v503_v32 = vshrl.u32 %v6089_v12, 16  ;;  %v6128_v33 = vld [vmem:[%s5851_s24 + $0x54] sm:$0xf] }
  0x60   : > { %2350 = vmatprep.mubr.bf16.mxu0 %v6013_v34  ;;  %2527 = vmatpush1.bf16.msra.mxu0 %v5623_v31  ;;  %v5674_v31 = vld [vmem:[%s9133_s1 + $0x1d8] sm:$0xff]  }
  0x61   : > { %2528 = vmatprep.subr.bf16.mxu0 %v9136_v1  ;;  %5257 = vmatpush1.bf16.msra.mxu1 %v5649_v36  ;;  %v502_v36 = vsel %vm434_vm0, %v497_v28, %v501_v26  ;;  %v505_v46 = vor.u32 %v503_v32, %v501_v26  ;;  %v794_v32 = vshrl.u32 %v5948_v61, 16 }
  0x62   : > { %5242 = vmatprep.subr.bf16.mxu1 %v9136_v1 }
  0x64   : > { %2529 = vmatpush1.bf16.msra.mxu0 %v5626_v43  ;;  %v669_v43 = vrot.slane %v6089_v12, 1 }
  0x65   : > { %2530 = vmatprep.subr.bf16.mxu0 %v9136_v1  ;;  %5258 = vmatpush1.bf16.msra.mxu1 %v5655_v45  ;;  %v5666_v45 = vld [vmem:[%s9133_s1 + $0x168] sm:$0xff]  }
  0x66   : > { %2127 = vmatmul.mubr.bf16.gmra.mrb[12].mxu1 %v5945_v60  ;;  %5243 = vmatprep.subr.bf16.mxu1 %v9136_v1  ;;  %v670_v55 = vsel %vm653_vm1, %v667_v23, %v669_v43  ;;  %v228_v60 = vld [vmem:[%s5851_s24 + $0xb4] sm:$0xf] }
  0x67   : > { %2351 = vmatmul.mubr.bf16.gmra.mrb[12].mxu0 %v662_v48  ;;  %2134 = vmatprep.mubr.bf16.mxu1 %v478_v49  ;;  %v6152_v48 = vcombine.low %v203_v44, %v6128_v33  ;;  %v5679_v49 = vld [vmem:[%s9133_s1 + $0x1e8] sm:$0xff]  }
  0x68   : > { %2358 = vmatprep.mubr.bf16.mxu0 %v6045_v50  ;;  %2531 = vmatpush1.bf16.msra.mxu0 %v5632_v47  ;;  %v509_v47 = vrot.slane %v507_v38, 1 }
  0x69   : > { %2532 = vmatprep.subr.bf16.mxu0 %v9136_v1  ;;  %5259 = vmatpush1.bf16.msra.mxu1 %v5659_v52  ;;  %v787_v52 = vrot.slane %v785_v42, 1  ;;  %v515_v58 = vshll.u32 %v6152_v48, 16  ;;  %v519_v13 = vshrl.u32 %v6152_v48, 16  ;;  %v673_v23 = vrot.slane %v6152_v48, 1 }
  0x6a   : > { %5244 = vmatprep.subr.bf16.mxu1 %v9136_v1  ;;  %v510_v56 = vsel %vm434_vm0, %v505_v46, %v509_v47 }
  0x6b   : > { %v788_v7 = vor.u32 %v787_v52, %v783_v51  ;;  %v1005_v52 = vrot.slane %v6013_v34, 1 }
  0x6c   : > { %2533 = vmatpush1.bf16.msra.mxu0 %v5636_v57  ;;  %v511_v57 = vshrl.u32 %v6116_v29, 16 }
  0x6d   : > { %2534 = vmatprep.subr.bf16.mxu0 %v9136_v1  ;;  %5260 = vmatpush1.bf16.msra.mxu1 %v5665_v59  ;;  %v206_v59 = vld [vmem:[%s5851_s24 + $0x5c] sm:$0xf] }
  0x6e   : > { %2135 = vmatmul.mubr.bf16.gmra.mrb[16].mxu1 %v5970_v11  ;;  %5245 = vmatprep.subr.bf16.mxu1 %v9136_v1  ;;  %v6178_v3 = vcombine.low %v205_v27, %v206_v59 }
  0x6f   : > { %2359 = vmatmul.mubr.bf16.gmra.mrb[16].mxu0 %v664_v63  ;;  %2142 = vmatprep.mubr.bf16.mxu1 %v486_v0  ;;  %v5683_v63 = vld [vmem:[%s9133_s1 + $0x1f0] sm:$0xff]   ;;  %v671_v0 = vrot.slane %v6116_v29, 1 }
  0x70   : > { %2366 = vmatprep.mubr.bf16.mxu0 %v6071_v2  ;;  %2535 = vmatpush1.bf16.msra.mxu0 %v5642_v4  ;;  %v513_v4 = vor.u32 %v511_v57, %v509_v47  ;;  %v209_v47 = vld [vmem:[%s5851_s24 + $0x68] sm:$0xf]  ;;  %v802_v57 = vshrl.u32 %v5982_v16, 16 }
  0x71   : > { %2536 = vmatprep.subr.bf16.mxu0 %v9136_v1  ;;  %5261 = vmatpush1.bf16.msra.mxu1 %v5669_v5  ;;  %v517_v5 = vrot.slane %v515_v58, 1  ;;  %v672_v15 = vsel %vm653_vm1, %v669_v43, %v671_v0  ;;  %v527_v43 = vshrl.u32 %v6178_v3, 16  ;;  %v806_v58 = vshll.u32 %v6013_v34, 16 }
  0x72   : > { %5246 = vmatprep.subr.bf16.mxu1 %v9136_v1 }
  0x73   : > { %v521_v24 = vor.u32 %v519_v13, %v517_v5  ;;  %v1007_v13 = vrot.slane %v6045_v50, 1 }
  0x74   : > { %2537 = vmatpush1.bf16.msra.mxu0 %v5646_v9  ;;  %v5684_v9 = vld [vmem:[%s9133_s1 + $0x1f8] sm:$0xff]  }
  0x75   : > { %2538 = vmatprep.subr.bf16.mxu0 %v9136_v1  ;;  %5262 = vmatpush1.bf16.msra.mxu1 %v5670_v14  ;;  %v523_v14 = vshll.u32 %v6178_v3, 16 }
  0x76   : > { %2143 = vmatmul.mubr.bf16.gmra.mrb[20].mxu1 %v5996_v25  ;;  %5247 = vmatprep.subr.bf16.mxu1 %v9136_v1 }
  0x77   : > { %2367 = vmatmul.mubr.bf16.gmra.mrb[20].mxu0 %v666_v17  ;;  %2150 = vmatprep.mubr.bf16.mxu1 %v494_v18  ;;  %v518_v17 = vsel %vm434_vm0, %v513_v4, %v517_v5  ;;  %v6195_v18 = vcombine.low %v6128_v33, %v205_v27  ;;  %v525_v28 = vrot.slane %v523_v14, 1  ;;  %v798_v33 = vshll.u32 %v5982_v16, 16 }
  0x78   : > { %2374 = vmatprep.mubr.bf16.mxu0 %v6101_v19  ;;  %2539 = vmatpush1.bf16.msra.mxu0 %v5652_v21  ;;  %v6199_v21 = vsel %vm434_vm0, %v788_v7, %v792_v10  ;;  %v808_v27 = vrot.slane %v806_v58, 1  ;;  %v212_v7 = vld [vmem:[%s5851_s24 + $0x74] sm:$0xf] }
  0x79   : > { %2540 = vmatprep.subr.bf16.mxu0 %v9136_v1  ;;  %5263 = vmatpush1.bf16.msra.mxu1 %v5673_v22  ;;  %v207_v22 = vld [vmem:[%s5851_s24 + $0x60] sm:$0xf]  ;;  %v800_v38 = vrot.slane %v798_v33, 1  ;;  %v526_v42 = vsel %vm434_vm0, %v521_v24, %v525_v28 }
  0x7a   : > { %5248 = vmatprep.subr.bf16.mxu1 %v9136_v1  ;;  %v6205_v26 = vcombine.low %v207_v22, %v208_v20 }
  0x7c   : > { %2541 = vmatpush1.bf16.msra.mxu0 %v5656_v30  ;;  %v9138_v30 = vrot.slane %v5948_v61, 1  ;;  %v531_v44 = vshll.u32 %v6205_v26, 16  ;;  %v535_v5 = vshrl.u32 %v6205_v26, 16 }
  0x7d   : > { %2542 = vmatprep.subr.bf16.mxu0 %v9136_v1  ;;  %5264 = vmatpush1.bf16.msra.mxu1 %v5674_v31  ;;  %v1003_v31 = vrot.slane %v5982_v16, 1 }
  0x7e   : > { %2151 = vmatmul.mubr.bf16.gmra.mrb[24].mxu1 %v6025_v41  ;;  %5249 = vmatprep.subr.bf16.mxu1 %v9136_v1 }
  0x7f   : > { %2375 = vmatmul.mubr.bf16.gmra.mrb[24].mxu0 %v668_v35  ;;  %2158 = vmatprep.mubr.bf16.mxu1 %v502_v36  ;;  %v6215_v35 = vsel %vm653_vm1, %v9138_v30, %v1003_v31  ;;  %v796_v36 = vor.u32 %v794_v32, %v792_v10  ;;  %v6252_v10 = vcombine.low %v211_v8, %v212_v7 }
  0x80   : > { %2382 = vmatprep.mubr.bf16.mxu0 %v6132_v37  ;;  %2543 = vmatpush1.bf16.msra.mxu0 %v5662_v39  ;;  %v674_v39 = vsel %vm653_vm1, %v671_v0, %v673_v23  ;;  %v6240_v0 = vcombine.low %v208_v20, %v209_v47  ;;  %v814_v20 = vshll.u32 %v6045_v50, 16 }
  0x81   : > { %2544 = vmatprep.subr.bf16.mxu0 %v9136_v1  ;;  %5265 = vmatpush1.bf16.msra.mxu1 %v5677_v40  ;;  %v6218_v40 = vcombine.low %v206_v59, %v207_v22  ;;  %v6225_v46 = vsel %vm434_vm0, %v796_v36, %v800_v38  ;;  %v6237_v59 = vsel %vm653_vm1, %v1003_v31, %v1005_v52  ;;  %v547_v36 = vshll.u32 %v6252_v10, 16 }
  0x82   : > { %5250 = vmatprep.subr.bf16.mxu1 %v9136_v1  ;;  %v6259_v22 = vsel %vm653_vm1, %v1005_v52, %v1007_v13  ;;  %v816_v24 = vrot.slane %v814_v20, 1  ;;  %v822_v52 = vshll.u32 %v6071_v2, 16 }
  0x84   : > { %2545 = vmatpush1.bf16.msra.mxu0 %v5666_v45  ;;  %v210_v45 = vld [vmem:[%s5851_s24 + $0x6c] sm:$0xf] }
  0x85   : > { %2546 = vmatprep.subr.bf16.mxu0 %v9136_v1  ;;  %5266 = vmatpush1.bf16.msra.mxu1 %v5679_v49  ;;  %v675_v49 = vrot.slane %v6178_v3, 1  ;;  %v6230_v51 = vcombine.low %v209_v47, %v210_v45  ;;  %v6262_v31 = vcombine.low %v210_v45, %v211_v8  ;;  %v549_v47 = vrot.slane %v547_v36, 1 }
  0x86   : > { %2159 = vmatmul.mubr.bf16.gmra.mrb[28].mxu1 %v6052_v53  ;;  %5251 = vmatprep.subr.bf16.mxu1 %v9136_v1  ;;  %v681_v8 = vrot.slane %v6252_v10, 1 }
  0x87   : > { %2383 = vmatmul.mubr.bf16.gmra.mrb[28].mxu0 %v670_v55  ;;  %2166 = vmatprep.mubr.bf16.mxu1 %v510_v56  ;;  %v529_v55 = vor.u32 %v527_v43, %v525_v28  ;;  %v533_v56 = vrot.slane %v531_v44, 1  ;;  %v543_v33 = vshrl.u32 %v6230_v51, 16  ;;  %v1009_v44 = vrot.slane %v6071_v2, 1 }
  0x88   : > { %2390 = vmatprep.mubr.bf16.mxu0 %v6160_v54  ;;  %2547 = vmatpush1.bf16.msra.mxu0 %v5672_v62  ;;  %v804_v62 = vor.u32 %v802_v57, %v800_v38  ;;  %v214_v38 = vld [vmem:[%s5851_s24 + $0x7c] sm:$0xf]  ;;  %v824_v57 = vrot.slane %v822_v52, 1 }
  0x89   : > { %2548 = vmatprep.subr.bf16.mxu0 %v9136_v1  ;;  %5267 = vmatpush1.bf16.msra.mxu1 %v5683_v63  ;;  %v676_v63 = vsel %vm653_vm1, %v673_v23, %v675_v49  ;;  %v534_v4 = vsel %vm434_vm0, %v529_v55, %v533_v56  ;;  %v537_v14 = vor.u32 %v535_v5, %v533_v56  ;;  %v216_v5 = vld [vmem:[%s5851_s24 + $0x84] sm:$0xf] }
  0x8a   : > { %5252 = vmatprep.subr.bf16.mxu1 %v9136_v1  ;;  %v6247_v16 = vsel %vm434_vm0, %v804_v62, %v808_v27  ;;  %v6281_v55 = vsel %vm653_vm1, %v1007_v13, %v1009_v44 }
  0x8c   : > { %2549 = vmatpush1.bf16.msra.mxu0 %v5678_v6  ;;  %v539_v6 = vshll.u32 %v6230_v51, 16 }
  0x8d   : > { %5268 = vmatpush1.bf16.msra.mxu1 %v5684_v9  ;;  %2742 = vmatprep.subr.bf16.mxu0 %v9136_v1  ;;  %v677_v9 = vrot.slane %v6205_v26, 1 }
  0x8e   : > { %2167 = vmatmul.mubr.bf16.gmra.mrb[32].mxu1 %v6089_v12 }
  0x8f   : > { %2391 = vmatmul.mubr.bf16.gmra.mrb[32].mxu0 %v672_v15  ;;  %2174 = vmatprep.mubr.bf16.mxu1 %v518_v17  ;;  %v541_v15 = vrot.slane %v539_v6, 1  ;;  %v810_v17 = vshrl.u32 %v6013_v34, 16  ;;  %v678_v28 = vsel %vm653_vm1, %v675_v49, %v677_v9  ;;  %v818_v49 = vshrl.u32 %v6045_v50, 16  ;;  %v215_v6 = vld [vmem:[%s5851_s24 + $0x80] sm:$0xf] }
  0x90   : > { %2398 = vmatprep.mubr.bf16.mxu0 %v6195_v18 }
  0x91   : > { %v812_v23 = vor.u32 %v810_v17, %v808_v27  ;;  %v542_v32 = vsel %vm434_vm0, %v537_v14, %v541_v15  ;;  %v545_v45 = vor.u32 %v543_v33, %v541_v15  ;;  %v820_v56 = vor.u32 %v818_v49, %v816_v24 }
  0x92   : > { %v826_v15 = vshrl.u32 %v6071_v2, 16  ;;  %v830_v17 = vshll.u32 %v6101_v19, 16 }
  0x93   : > { %v6269_v34 = vsel %vm434_vm0, %v812_v23, %v816_v24  ;;  %v550_v27 = vsel %vm434_vm0, %v545_v45, %v549_v47  ;;  %v6291_v50 = vsel %vm434_vm0, %v820_v56, %v824_v57  ;;  %v218_v45 = vld [vmem:[%s5851_s24 + $0x8c] sm:$0xf]  ;;  %v834_v56 = vshrl.u32 %v6101_v19, 16 }
  0x94   : > { %v828_v23 = vor.u32 %v826_v15, %v824_v57  ;;  %v832_v24 = vrot.slane %v830_v17, 1  ;;  %v838_v57 = vshll.u32 %v6132_v37, 16  ;;  %v220_v17 = vld [vmem:[%s5851_s24 + $0x94] sm:$0xf] }
  0x96   : > { %2175 = vmatmul.mubr.bf16.gmra.mrb[36].mxu1 %v6116_v29  ;;  %v6313_v2 = vsel %vm434_vm0, %v828_v23, %v832_v24 }
  0x97   : > { %2399 = vmatmul.mubr.bf16.gmra.mrb[36].mxu0 %v674_v39  ;;  %2182 = vmatprep.mubr.bf16.mxu1 %v526_v42  ;;  %v213_v39 = vld [vmem:[%s5851_s24 + $0x78] sm:$0xf]  ;;  %v679_v42 = vrot.slane %v6230_v51, 1 }
  0x98   : > { %2406 = vmatprep.mubr.bf16.mxu0 %v6218_v40  ;;  %v6274_v43 = vcombine.low %v213_v39, %v214_v38  ;;  %v6284_v62 = vcombine.low %v212_v7, %v213_v39  ;;  %v6296_v7 = vcombine.low %v215_v6, %v216_v5 }
  0x99   : > { %v680_v58 = vsel %vm653_vm1, %v677_v9, %v679_v42  ;;  %v1011_v9 = vrot.slane %v6101_v19, 1 }
  0x9a   : > { %v559_v36 = vshrl.u32 %v6274_v43, 16  ;;  %v563_v39 = vshll.u32 %v6296_v7, 16  ;;  %v567_v15 = vshrl.u32 %v6296_v7, 16  ;;  %v685_v23 = vrot.slane %v6296_v7, 1 }
  0x9b   : > { %v6303_v20 = vsel %vm653_vm1, %v1009_v44, %v1011_v9  ;;  %v217_v44 = vld [vmem:[%s5851_s24 + $0x88] sm:$0xf] }
  0x9c   : > { %v565_v52 = vrot.slane %v563_v39, 1 }
  0x9e   : > { %2183 = vmatmul.mubr.bf16.gmra.mrb[40].mxu1 %v6152_v48 }
  0x9f   : > { %2407 = vmatmul.mubr.bf16.gmra.mrb[40].mxu0 %v676_v63  ;;  %2190 = vmatprep.mubr.bf16.mxu1 %v534_v4  ;;  %v551_v63 = vshrl.u32 %v6252_v10, 16  ;;  %v555_v4 = vshll.u32 %v6274_v43, 16 }
  0xa0   : > { %2414 = vmatprep.mubr.bf16.mxu0 %v6240_v0 }
  0xa1   : > { %v553_v13 = vor.u32 %v551_v63, %v549_v47  ;;  %v557_v14 = vrot.slane %v555_v4, 1  ;;  %v683_v47 = vrot.slane %v6274_v43, 1  ;;  %v840_v63 = vrot.slane %v838_v57, 1 }
  0xa3   : > { %v558_v33 = vsel %vm434_vm0, %v553_v13, %v557_v14  ;;  %v561_v49 = vor.u32 %v559_v36, %v557_v14  ;;  %v684_v4 = vsel %vm653_vm1, %v681_v8, %v683_v47  ;;  %v846_v36 = vshll.u32 %v6160_v54, 16 }
  0xa5   : > { %v566_v13 = vsel %vm434_vm0, %v561_v49, %v565_v52  ;;  %v848_v49 = vrot.slane %v846_v36, 1 }
  0xa6   : > { %2191 = vmatmul.mubr.bf16.gmra.mrb[44].mxu1 %v6178_v3 }
  0xa7   : > { %2415 = vmatmul.mubr.bf16.gmra.mrb[44].mxu0 %v678_v28  ;;  %2198 = vmatprep.mubr.bf16.mxu1 %v542_v32  ;;  %v682_v28 = vsel %vm653_vm1, %v679_v42, %v681_v8  ;;  %v6306_v32 = vcombine.low %v214_v38, %v215_v6  ;;  %v6318_v38 = vcombine.low %v217_v44, %v218_v45  ;;  %v1013_v42 = vrot.slane %v6132_v37, 1 }
  0xa8   : > { %2422 = vmatprep.mubr.bf16.mxu0 %v6262_v31  ;;  %v6328_v6 = vcombine.low %v216_v5, %v217_v44  ;;  %v1015_v8 = vrot.slane %v6160_v54, 1 }
  0xa9   : > { %v571_v14 = vshll.u32 %v6318_v38, 16 }
  0xaa   : > { %v6347_v39 = vsel %vm653_vm1, %v1013_v42, %v1015_v8 }
  0xae   : > { %2199 = vmatmul.mubr.bf16.gmra.mrb[48].mxu1 %v6205_v26 }
  0xaf   : > { %2423 = vmatmul.mubr.bf16.gmra.mrb[48].mxu0 %v680_v58  ;;  %2206 = vmatprep.mubr.bf16.mxu1 %v550_v27  ;;  %v6325_v58 = vsel %vm653_vm1, %v1011_v9, %v1013_v42  ;;  %v836_v27 = vor.u32 %v834_v56, %v832_v24  ;;  %v219_v9 = vld [vmem:[%s5851_s24 + $0x90] sm:$0xf]  ;;  %v569_v24 = vor.u32 %v567_v15, %v565_v52  ;;  %v221_v42 = vld [vmem:[%s5851_s24 + $0x98] sm:$0xf] }
  0xb0   : > { %2430 = vmatprep.mubr.bf16.mxu0 %v6284_v62  ;;  %v6340_v5 = vcombine.low %v219_v9, %v220_v17  ;;  %v686_v56 = vsel %vm653_vm1, %v683_v47, %v685_v23  ;;  %v6350_v57 = vcombine.low %v218_v45, %v219_v9  ;;  %v1017_v47 = vrot.slane %v6195_v18, 1 }
  0xb1   : > { %v6335_v19 = vsel %vm434_vm0, %v836_v27, %v840_v63  ;;  %v850_v9 = vshrl.u32 %v6160_v54, 16 }
  0xb2   : > { %v579_v52 = vshll.u32 %v6340_v5, 16  ;;  %v583_v30 = vshrl.u32 %v6340_v5, 16 }
  0xb3   : > { %v852_v36 = vor.u32 %v850_v9, %v848_v49  ;;  %v858_v9 = vshrl.u32 %v6195_v18, 16 }
  0xb6   : > { %2207 = vmatmul.mubr.bf16.gmra.mrb[52].mxu1 %v6230_v51 }
  0xb7   : > { %2431 = vmatmul.mubr.bf16.gmra.mrb[52].mxu0 %v682_v28  ;;  %2214 = vmatprep.mubr.bf16.mxu1 %v558_v33  ;;  %v573_v28 = vrot.slane %v571_v14, 1  ;;  %v842_v33 = vshrl.u32 %v6132_v37, 16  ;;  %v581_v14 = vrot.slane %v579_v52, 1  ;;  %v1019_v52 = vrot.slane %v6218_v40, 1 }
  0xb8   : > { %2438 = vmatprep.mubr.bf16.mxu0 %v6306_v32 }
  0xb9   : > { %v844_v44 = vor.u32 %v842_v33, %v840_v63  ;;  %v574_v27 = vsel %vm434_vm0, %v569_v24, %v573_v28  ;;  %v687_v63 = vrot.slane %v6318_v38, 1  ;;  %v854_v24 = vshll.u32 %v6195_v18, 16 }
  0xba   : > { %v6369_v33 = vsel %vm653_vm1, %v1015_v8, %v1017_v47  ;;  %v223_v8 = vld [vmem:[%s5851_s24 + $0xa0] sm:$0xf] }
  0xbb   : > { %v6357_v37 = vsel %vm434_vm0, %v844_v44, %v848_v49  ;;  %v856_v44 = vrot.slane %v854_v24, 1  ;;  %v689_v49 = vrot.slane %v6340_v5, 1  ;;  %v6397_v24 = vsel %vm653_vm1, %v1017_v47, %v1019_v52 }
  0xbd   : > { %v6379_v54 = vsel %vm434_vm0, %v852_v36, %v856_v44  ;;  %v860_v36 = vor.u32 %v858_v9, %v856_v44  ;;  %v690_v12 = vsel %vm653_vm1, %v687_v63, %v689_v49  ;;  %v1021_v9 = vrot.slane %v6240_v0, 1 }
  0xbe   : > { %2215 = vmatmul.mubr.bf16.gmra.mrb[56].mxu1 %v6252_v10 }
  0xbf   : > { %2439 = vmatmul.mubr.bf16.gmra.mrb[56].mxu0 %v684_v4  ;;  %2222 = vmatprep.mubr.bf16.mxu1 %v566_v13  ;;  %v575_v4 = vshrl.u32 %v6318_v38, 16  ;;  %v222_v13 = vld [vmem:[%s5851_s24 + $0x9c] sm:$0xf] }
  0xc0   : > { %2446 = vmatprep.mubr.bf16.mxu0 %v6328_v6  ;;  %v6362_v45 = vcombine.low %v221_v42, %v222_v13 }
  0xc1   : > { %v577_v15 = vor.u32 %v575_v4, %v573_v28  ;;  %v224_v4 = vld [vmem:[%s5851_s24 + $0xa4] sm:$0xf] }
  0xc2   : > { %9260 = vst [vmem:[#allocation8_spill] sm:$0xff] %v6362_v45  ;;  %v587_v28 = vshll.u32 %v6362_v45, 16  ;;  %v591_v53 = vshrl.u32 %v6362_v45, 16  ;;  %v691_v47 = vrot.slane %v6362_v45, 1 }
  0xc3   : > { %v582_v1 = vsel %vm434_vm0, %v577_v15, %v581_v14 }
  0xc4   : > { %v589_v15 = vrot.slane %v587_v28, 1  ;;  %v226_v28 = vld [vmem:[%s5851_s24 + $0xac] sm:$0xf] }
  0xc6   : > { %2223 = vmatmul.mubr.bf16.gmra.mrb[60].mxu1 %v6274_v43  ;;  %v593_v44 = vor.u32 %v591_v53, %v589_v15  ;;  %v692_v53 = vsel %vm653_vm1, %v689_v49, %v691_v47  ;;  %v227_v49 = vld [vmem:[%s5851_s24 + $0xb0] sm:$0xf] }
  0xc7   : > { %2447 = vmatmul.mubr.bf16.gmra.mrb[60].mxu0 %v686_v56  ;;  %2230 = vmatprep.mubr.bf16.mxu1 %v574_v27  ;;  %v688_v56 = vsel %vm653_vm1, %v685_v23, %v687_v63  ;;  %v6372_v27 = vcombine.low %v220_v17, %v221_v42  ;;  %v6384_v23 = vcombine.low %v223_v8, %v224_v4  ;;  %v6389_v17 = vld [vmem:[%s9133_s1 + $0x200] sm:$0xff]   ;;  %v225_v63 = vld [vmem:[%s5851_s24 + $0xa8] sm:$0xf] }
  0xc8   : > { %2454 = vmatprep.mubr.bf16.mxu0 %v6350_v57  ;;  %v585_v42 = vor.u32 %v583_v30, %v581_v14  ;;  %5173 = vmatprep.subr.bf16.mxu1 %v6389_v17  ;;  %v6402_v30 = vcombine.low %v222_v13, %v223_v8  ;;  %v6414_v8 = vcombine.low %v225_v63, %v226_v28 }
  0xc9   : > { %9261 = vst [vmem:[#allocation9_spill] sm:$0xff] %v6384_v23  ;;  %v595_v18 = vshll.u32 %v6384_v23, 16  ;;  %v6424_v11 = vcombine.low %v224_v4, %v225_v63  ;;  %v874_v63 = vshrl.u32 %v6240_v0, 16 }
  0xca   : > { %v590_v41 = vsel %vm434_vm0, %v585_v42, %v589_v15  ;;  %9262 = vst [vmem:[#allocation10_spill] sm:$0xff] %v6402_v30  ;;  %9263 = vst [vmem:[#allocation11_spill] sm:$0xff] %v6414_v8  ;;  %v866_v42 = vshrl.u32 %v6218_v40, 16  ;;  %v599_v15 = vshrl.u32 %v6384_v23, 16 }
  0xcb   : > { %v597_v13 = vrot.slane %v595_v18, 1  ;;  %v603_v18 = vshll.u32 %v6414_v8, 16 }
  0xcd   : > { %v598_v25 = vsel %vm434_vm0, %v593_v44, %v597_v13  ;;  %v605_v4 = vrot.slane %v603_v18, 1  ;;  %v6436_v44 = vcombine.low %v227_v49, %v228_v60 }
  0xce   : > { %2231 = vmatmul.mubr.bf16.gmra.mrb[64].mxu1 %v6296_v7 }
  0xcf   : > { %2455 = vmatmul.mubr.bf16.gmra.mrb[64].mxu0 %v688_v56  ;;  %2238 = vmatprep.mubr.bf16.mxu1 %v582_v1  ;;  %v862_v1 = vshll.u32 %v6218_v40, 16  ;;  %v611_v18 = vshll.u32 %v6436_v44, 16 }
  0xd0   : > { %2462 = vmatprep.mubr.bf16.mxu0 %v6372_v27 }
  0xd1   : > { %v864_v56 = vrot.slane %v862_v1, 1  ;;  %v870_v1 = vshll.u32 %v6240_v0, 16 }
  0xd3   : > { %v6406_v14 = vsel %vm434_vm0, %v860_v36, %v864_v56  ;;  %v872_v36 = vrot.slane %v870_v1, 1  ;;  %v878_v1 = vshll.u32 %v6262_v31, 16 }
  0xd6   : > { %2239 = vmatmul.mubr.bf16.gmra.mrb[68].mxu1 %v6318_v38 }
  0xd7   : > { %2463 = vmatmul.mubr.bf16.gmra.mrb[68].mxu0 %v690_v12  ;;  %2246 = vmatprep.mubr.bf16.mxu1 %v590_v41  ;;  %v6419_v12 = vsel %vm653_vm1, %v1019_v52, %v1021_v9  ;;  %v868_v41 = vor.u32 %v866_v42, %v864_v56  ;;  %v693_v52 = vrot.slane %v6384_v23, 1  ;;  %v601_v56 = vor.u32 %v599_v15, %v597_v13 }
  0xd8   : > { %2470 = vmatprep.mubr.bf16.mxu0 %v6402_v30  ;;  %9264 = vst [vmem:[#allocation12_spill] sm:$0xff] %v6419_v12  ;;  %v1023_v42 = vrot.slane %v6262_v31, 1  ;;  %v607_v15 = vshrl.u32 %v6414_v8, 16  ;;  %v230_v12 = vld [vmem:[%s5851_s24 + $0xbc] sm:$0x1] }
  0xd9   : > { %v6428_v40 = vsel %vm434_vm0, %v868_v41, %v872_v36  ;;  %v694_v13 = vsel %vm653_vm1, %v691_v47, %v693_v52  ;;  %v606_v30 = vsel %vm434_vm0, %v601_v56, %v605_v4  ;;  %v6456_v47 = vld [vmem:[%s5851_s24 + $0xb8] sm:$0xf] }
  0xda   : > { %9265 = vst [vmem:[#allocation13_spill] sm:$0xff] %v6428_v40  ;;  %v6441_v41 = vsel %vm653_vm1, %v1021_v9, %v1023_v42  ;;  %v6446_v40 = vcombine.low %v226_v28, %v227_v49  ;;  %v695_v9 = vrot.slane %v6414_v8, 1  ;;  %v613_v28 = vrot.slane %v611_v18, 1 }
  0xdb   : > { %9266 = vst [vmem:[#allocation14_spill] sm:$0xff] %v6441_v41  ;;  %v6461_v56 = vcombine.low %v6456_v47, %v230_v12  ;;  %v882_v49 = vshrl.u32 %v6262_v31, 16  ;;  %v615_v12 = vshrl.u32 %v6436_v44, 16 }
  0xdd   : > { %v619_v31 = vshll.u32 %v6461_v56, 16 }
  0xde   : > { %2247 = vmatmul.mubr.bf16.gmra.mrb[72].mxu1 %v6340_v5 }
  0xdf   : > { %2471 = vmatmul.mubr.bf16.gmra.mrb[72].mxu0 %v692_v53  ;;  %2254 = vmatprep.mubr.bf16.mxu1 %v598_v25  ;;  %v876_v25 = vor.u32 %v874_v63, %v872_v36  ;;  %v880_v53 = vrot.slane %v878_v1, 1  ;;  %v609_v36 = vor.u32 %v607_v15, %v605_v4  ;;  %v1025_v63 = vrot.slane %v6284_v62, 1 }
  0xe0   : > { %2478 = vmatprep.mubr.bf16.mxu0 %v6424_v11  ;;  %v886_v1 = vshll.u32 %v6284_v62, 16  ;;  %v696_v4 = vsel %vm653_vm1, %v693_v52, %v695_v9  ;;  %v6470_v15 = vcombine.low %v228_v60, %v6456_v47  ;;  %v697_v52 = vrot.slane %v6436_v44, 1 }
  0xe1   : > { %v6450_v0 = vsel %vm434_vm0, %v876_v25, %v880_v53  ;;  %v6466_v25 = vsel %vm653_vm1, %v1023_v42, %v1025_v63  ;;  %v614_v18 = vsel %vm434_vm0, %v609_v36, %v613_v28  ;;  %v1027_v60 = vrot.slane %v6306_v32, 1 }
  0xe2   : > { %9267 = vst [vmem:[#allocation15_spill] sm:$0xff] %v6450_v0  ;;  %9268 = vst [vmem:[#allocation16_spill] sm:$0xff] %v6466_v25  ;;  %v617_v42 = vor.u32 %v615_v12, %v613_v28  ;;  %v890_v36 = vshrl.u32 %v6284_v62, 16  ;;  %v698_v25 = vsel %vm653_vm1, %v695_v9, %v697_v52  ;;  %v6500_v12 = vld [vmem:[%s5851_s24 + $0x48] sm:$0xff]   ;;  %v623_v9 = vshrl.u32 %v6461_v56, 16 }
  0xe3   : > { %v1257_v41 = vshrl.u32 %v6500_v12, 16 }
  0xe6   : > { %2255 = vmatmul.mubr.bf16.gmra.mrb[76].mxu1 %v6362_v45 }
  0xe7   : > { %2479 = vmatmul.mubr.bf16.gmra.mrb[76].mxu0 %v694_v13  ;;  %2262 = vmatprep.mubr.bf16.mxu1 %v606_v30  ;;  %v884_v30 = vor.u32 %v882_v49, %v880_v53  ;;  %v888_v13 = vrot.slane %v886_v1, 1  ;;  %v621_v53 = vrot.slane %v619_v31, 1  ;;  %v894_v49 = vshll.u32 %v6306_v32, 16  ;;  %v6485_v1 = vld [vmem:[%s5851_s24 + $0xbc] sm:$0xf] }
  0xe8   : > { %2486 = vmatprep.mubr.bf16.mxu0 %v6446_v40  ;;  %9270 = vst [vmem:[#allocation18_spill] sm:$0xff] %v6485_v1 }
  0xe9   : > { %v6476_v0 = vsel %vm434_vm0, %v884_v30, %v888_v13  ;;  %v6488_v30 = vld [vmem:[%s5851_s24 + $0xc0] sm:$0xf]  ;;  %v622_v28 = vsel %vm434_vm0, %v617_v42, %v621_v53  ;;  %v6511_v42 = vld [vmem:[%s5851_s24 + $0xc4] sm:$0xf] }
  0xea   : > { %9269 = vst [vmem:[#allocation17_spill] sm:$0xff] %v6476_v0  ;;  %9271 = vst [vmem:[#allocation19_spill] sm:$0xff] %v6488_v30  ;;  %v896_v0 = vrot.slane %v894_v49, 1  ;;  %v6497_v62 = vcombine.low %v6485_v1, %v6488_v30  ;;  %v1253_v49 = vshll.u32 %v6500_v12, 16  ;;  %v236_v30 = vld [vmem:[%s5851_s24 + $0xc] sm:$0xe] }
  0xee   : > { %2263 = vmatmul.mubr.bf16.gmra.mrb[80].mxu1 %v6384_v23  ;;  %v6526_v23 = vrot.slane %v1253_v49, 1  ;;  %v906_v49 = vshrl.u32 %v6328_v6, 16 }
  0xef   : > { %2487 = vmatmul.mubr.bf16.gmra.mrb[80].mxu0 %v696_v4  ;;  %2270 = vmatprep.mubr.bf16.mxu1 %v614_v18  ;;  %v6491_v4 = vsel %vm653_vm1, %v1025_v63, %v1027_v60  ;;  %v892_v18 = vor.u32 %v890_v36, %v888_v13  ;;  %v699_v63 = vrot.slane %v6461_v56, 1  ;;  %v1029_v13 = vrot.slane %v6328_v6, 1  ;;  %v6514_v36 = vld [vmem:[%s5851_s24 + $0x50] sm:$0xff]  }
  0xf0   : > { %2494 = vmatprep.mubr.bf16.mxu0 %v6470_v15  ;;  %9272 = vst [vmem:[#allocation20_spill] sm:$0xff] %v6491_v4  ;;  %v625_v4 = vor.u32 %v623_v9, %v621_v53  ;;  %9275 = vst [vmem:[#allocation23_spill] sm:$0xff] %v6526_v23  ;;  %v6538_v9 = vld [vmem:[%s5851_s24 + $0x58] sm:$0xff]  }
  0xf1   : > { %v6503_v31 = vsel %vm434_vm0, %v892_v18, %v896_v0  ;;  %v898_v18 = vshrl.u32 %v6306_v32, 16  ;;  %v1261_v32 = vshll.u32 %v6514_v36, 16 }
  0xf2   : > { %9273 = vst [vmem:[#allocation21_spill] sm:$0xff] %v6503_v31  ;;  %v700_v31 = vsel %vm653_vm1, %v697_v52, %v699_v63  ;;  %v1259_v52 = vor.u32 %v1257_v41, %v6526_v23  ;;  %v1265_v41 = vshrl.u32 %v6514_v36, 16  ;;  %v918_v23 = vshll.u32 %v6372_v27, 16 }
  0xf3   : > { %v900_v56 = vor.u32 %v898_v18, %v896_v0  ;;  %v1031_v0 = vrot.slane %v6350_v57, 1  ;;  %v1263_v53 = vrot.slane %v1261_v32, 1  ;;  %v910_v18 = vshll.u32 %v6350_v57, 16 }
  0xf4   : > { %v1269_v32 = vshll.u32 %v6538_v9, 16 }
  0xf6   : > { %2271 = vmatmul.mubr.bf16.gmra.mrb[84].mxu1 %v6414_v8  ;;  %v4804_v8 = vcombine.low %v6511_v42, %v6511_v42 }
  0xf7   : > { %2495 = vmatmul.mubr.bf16.gmra.mrb[84].mxu0 %v698_v25  ;;  %2278 = vmatprep.mubr.bf16.mxu1 %v622_v28  ;;  %v902_v25 = vshll.u32 %v6328_v6, 16  ;;  %v6520_v28 = vsel %vm653_vm1, %v1027_v60, %v1029_v13  ;;  %v5723_v60 = vld [vmem:[%s5851_s24 + $0x10] sm:$0xf] }
  0xf8   : > { %2502 = vmatprep.mubr.bf16.mxu0 %v6497_v62  ;;  %9274 = vst [vmem:[#allocation22_spill] sm:$0xff] %v6520_v28  ;;  %v4806_v28 = vcombine.low %v236_v30, %v5723_v60  ;;  %v4778_v30 = vcombine.low %v6456_v47, %v6456_v47  ;;  %v9155_v60 = vrot.slane %v6372_v27, 1 }
  0xf9   : > { %v904_v1 = vrot.slane %v902_v25, 1 }
  0xfa   : > { %v1000_v25 = vrot.slane %v4806_v28, 1  ;;  %v9276_v28 = vrot.slane %v5948_v61, 1  ;;  %v6565_v61 = vsel %vm653_vm1, %v1031_v0, %v9155_v60 }
  0xfb   : > { %v6531_v45 = vsel %vm434_vm0, %v900_v56, %v904_v1  ;;  %v6543_v56 = vsel %vm653_vm1, %v1029_v13, %v1031_v0  ;;  %v5700_v0 = vld [vmem:[%s9133_s1 + $0x208] sm:$0xff]  }
  0xfc   : > { %v1002_v13 = vsel %vm653_vm1, %v1000_v25, %v9276_v28 }
  0xfe   : > { %2279 = vmatmul.mubr.bf16.gmra.mrb[88].mxu1 %v6436_v44 }
  0xff   : > { %2503 = vmatmul.mubr.bf16.gmra.mrb[88].mxu0 %v700_v31  ;;  %2286 = vmatprep.mubr.bf16.mxu1 %v625_v4  ;;  %v908_v4 = vor.u32 %v906_v49, %v904_v1  ;;  %v912_v31 = vrot.slane %v910_v18, 1  ;;  %v1267_v1 = vor.u32 %v1265_v41, %v1263_v53  ;;  %v1271_v49 = vrot.slane %v1269_v32, 1  ;;  %v6586_v41 = vld [vmem:[%s5851_s24 + $0x68] sm:$0xff]  }
 0x100   : > { %2510 = vmatprep.mubr.bf16.mxu0 %v4804_v8  ;;  %v1264_v8 = vsel %vm434_vm0, %v1259_v52, %v1263_v53  ;;  %v6558_v52 = vld [vmem:[%s5851_s24 + $0x60] sm:$0xff]   ;;  %v914_v18 = vshrl.u32 %v6350_v57, 16  ;;  %v1273_v53 = vshrl.u32 %v6538_v9, 16  ;;  %v9277_v32 = vmov 0  }
 0x101   : > { %v6551_v6 = vsel %vm434_vm0, %v908_v4, %v912_v31  ;;  %v1277_v4 = vshll.u32 %v6558_v52, 16  ;;  %v1281_v28 = vshrl.u32 %v6558_v52, 16 }
 0x102   : > { %v916_v25 = vor.u32 %v914_v18, %v912_v31  ;;  %v1275_v31 = vor.u32 %v1273_v53, %v1271_v49  ;;  %v5726_v18 = vld [vmem:[%s9133_s1 + $0x190] sm:$0xff]   ;;  %v5727_v53 = vld [vmem:[%s9133_s1 + $0x198] sm:$0xff]  }
 0x106   : > { %2287 = vmatmul.mubr.bf16.gmra.mrb[92].mxu1 %v4778_v30  ;;  %v1272_v30 = vsel %vm434_vm0, %v1267_v1, %v1271_v49 }
 0x107   : > { %2511 = vmatmul.mubr.bf16.gmra.mrb[92].mxu0 %v699_v63  ;;  %2822 = vmatprep.mubr.bf16.mxu1 %v1264_v8  ;;  %v6567_v63 = vrot.slane %v918_v23, 1  ;;  %v5724_v23 = vld [vmem:[%s9133_s1 + $0x180] sm:$0xff]   ;;  %v1279_v8 = vrot.slane %v1277_v4, 1  ;;  %v934_v4 = vshll.u32 %v6424_v11, 16 }
 0x108   : > { %2550 = vmatprep.mubr.bf16.mxu0 %v1002_v13  ;;  %v1285_v13 = vshll.u32 %v6586_v41, 16 }
 0x109   : > { %v6574_v57 = vsel %vm434_vm0, %v916_v25, %v6567_v63  ;;  %v1283_v1 = vor.u32 %v1281_v28, %v1279_v8  ;;  %v6610_v25 = vld [vmem:[%s5851_s24 + $0x70] sm:$0xff]   ;;  %v942_v28 = vshll.u32 %v6446_v40, 16 }
 0x10a   : > { %v1287_v49 = vrot.slane %v1285_v13, 1 }
 0x10e   : > { %2823 = vmatmul.mubr.bf16.vlgmr.msra.gmra.mrb[96].mxu1 %v6116_v29  ;;  %v5703_v29 = vld [vmem:[%s9133_s1 + $0x210] sm:$0xff]  }
 0x10f   : > { %2551 = vmatmul.mubr.bf16.vlgmr.msra.gmra.mrb[0].mxu0 %v6199_v21  ;;  %2830 = vmatprep.mubr.bf16.mxu1 %v1272_v30  ;;  %v5725_v21 = vld [vmem:[%s9133_s1 + $0x188] sm:$0xff]   ;;  %v1293_v30 = vshll.u32 %v6610_v25, 16 }
 0x110   : > { %2743 = vmatpush1.bf16.msra.mxu0 %v5724_v23  ;;  %2558 = vmatprep.mubr.bf16.mxu0 %v6215_v35  ;;  %v1280_v35 = vsel %vm434_vm0, %v1275_v31, %v1279_v8  ;;  %v9153_v31 = vrot.slane %v6424_v11, 1  ;;  %v1039_v8 = vrot.slane %v6446_v40, 1 }
 0x111   : > { %2744 = vmatprep.subr.bf16.mxu0 %v9277_v32  ;;  %5174 = vmatpush3.bf16.msra.mxu1 %v6389_v17  ;;  %v5708_v17 = vld [vmem:[%s9133_s1 + $0x218] sm:$0xff]  }
 0x112   : > { %5175 = vmatprep.subr.bf16.mxu1 %v5700_v0 }
 0x114   : > { %2745 = vmatpush1.bf16.msra.mxu0 %v5725_v21  ;;  %v6633_v21 = vld [vmem:[%s5851_s24 + $0x78] sm:$0xff]  }
 0x115   : > { %2746 = vmatprep.subr.bf16.mxu0 %v9277_v32  ;;  %5176 = vmatpush3.bf16.msra.mxu1 %v5700_v0  ;;  %v5712_v0 = vld [vmem:[%s9133_s1 + $0x228] sm:$0xff]  }
 0x116   : > { %2831 = vmatmul.mubr.bf16.gmra.mrb[100].mxu1 %v6152_v48  ;;  %5177 = vmatprep.subr.bf16.mxu1 %v5703_v29  ;;  %v5711_v48 = vld [vmem:[%s9133_s1 + $0x220] sm:$0xff]  }
 0x117   : > { %2559 = vmatmul.mubr.bf16.gmra.mrb[4].mxu0 %v6225_v46  ;;  %2838 = vmatprep.mubr.bf16.mxu1 %v1280_v35  ;;  %v1289_v46 = vshrl.u32 %v6586_v41, 16  ;;  %v6638_v35 = vrot.slane %v934_v4, 1 }
 0x118   : > { %2566 = vmatprep.mubr.bf16.mxu0 %v6237_v59  ;;  %2747 = vmatpush1.bf16.msra.mxu0 %v5726_v18  ;;  %v1288_v59 = vsel %vm434_vm0, %v1283_v1, %v1287_v49  ;;  %v5714_v1 = vld [vmem:[%s9133_s1 + $0x230] sm:$0xff]   ;;  %v944_v18 = vrot.slane %v942_v28, 1 }
 0x119   : > { %2748 = vmatprep.subr.bf16.mxu0 %v9277_v32  ;;  %5178 = vmatpush3.bf16.msra.mxu1 %v5703_v29  ;;  %v1291_v23 = vor.u32 %v1289_v46, %v1287_v49  ;;  %v1295_v29 = vrot.slane %v1293_v30, 1  ;;  %v1301_v30 = vshll.u32 %v6633_v21, 16 }
 0x11a   : > { %5179 = vmatprep.subr.bf16.mxu1 %v5708_v17 }
 0x11c   : > { %2749 = vmatpush1.bf16.msra.mxu0 %v5727_v53  ;;  %v5729_v53 = vld [vmem:[%s9133_s1 + $0x1a8] sm:$0xff]  }
 0x11d   : > { %2750 = vmatprep.subr.bf16.mxu0 %v9277_v32  ;;  %5180 = vmatpush3.bf16.msra.mxu1 %v5708_v17 }
 0x11e   : > { %2839 = vmatmul.mubr.bf16.gmra.mrb[104].mxu1 %v6178_v3  ;;  %5181 = vmatprep.subr.bf16.mxu1 %v5711_v48  ;;  %v5728_v3 = vld [vmem:[%s9133_s1 + $0x1a0] sm:$0xff]  }
 0x11f   : > { %2567 = vmatmul.mubr.bf16.gmra.mrb[8].mxu0 %v6247_v16  ;;  %2846 = vmatprep.mubr.bf16.mxu1 %v1288_v59  ;;  %v938_v16 = vshrl.u32 %v6424_v11, 16  ;;  %v1296_v59 = vsel %vm434_vm0, %v1291_v23, %v1295_v29  ;;  %v5715_v23 = vld [vmem:[%s9133_s1 + $0x238] sm:$0xff]  }
 0x120   : > { %2574 = vmatprep.mubr.bf16.mxu0 %v6259_v22  ;;  %2751 = vmatpush1.bf16.msra.mxu0 %v5728_v3  ;;  %v6648_v22 = vsel %vm653_vm1, %v9153_v31, %v1039_v8  ;;  %v5733_v31 = vld [vmem:[%s9133_s1 + $0x1c8] sm:$0xff]  }
 0x121   : > { %2752 = vmatprep.subr.bf16.mxu0 %v9277_v32  ;;  %v6643_v13 = vpop.f32.mrb[0].mxu1  ;;  %5182 = vmatpush3.bf16.msra.mxu1 %v5711_v48  ;;  %v940_v49 = vor.u32 %v938_v16, %v6638_v35  ;;  %v1297_v48 = vshrl.u32 %v6610_v25, 16  ;;  %v1041_v16 = vrot.slane %v6470_v15, 1 }
 0x122   : > { %9278 = vst [vmem:[#allocation24_spill] sm:$0xff] %v6643_v13  ;;  %v2106_v17 = vpop.f32.mrb[1].mxu1  ;;  %5183 = vmatprep.subr.bf16.mxu1 %v5712_v0 }
 0x123   : > { %v6654_v46 = vpop.f32.mrb[2].mxu1  ;;  %v6663_v3 = vsel %vm434_vm0, %v940_v49, %v944_v18  ;;  %v1299_v28 = vor.u32 %v1297_v48, %v1295_v29  ;;  %v1303_v17 = vrot.slane %v1301_v30, 1  ;;  %v6674_v49 = vld [vmem:[%s5851_s24 + $0x80] sm:$0xff]  }
 0x124   : > { %9279 = vst [vmem:[#allocation25_spill] sm:$0xff] %v6654_v46  ;;  %2753 = vmatpush1.bf16.msra.mxu0 %v5729_v53  ;;  %v2109_v4 = vpop.f32.mrb[3].mxu1  ;;  %v950_v53 = vshll.u32 %v6470_v15, 16  ;;  %v9308_v46 = vrot.slane %v6372_v27, 1 }
 0x125   : > { %2754 = vmatprep.subr.bf16.mxu0 %v9277_v32  ;;  %5184 = vmatpush3.bf16.msra.mxu1 %v5712_v0  ;;  %v946_v0 = vshrl.u32 %v6446_v40, 16  ;;  %v1304_v4 = vsel %vm434_vm0, %v1299_v28, %v1303_v17  ;;  %v1305_v40 = vshrl.u32 %v6633_v21, 16 }
 0x126   : > { %2847 = vmatmul.mubr.bf16.gmra.mrb[108].mxu1 %v6205_v26  ;;  %5185 = vmatprep.subr.bf16.mxu1 %v5714_v1  ;;  %v5730_v26 = vld [vmem:[%s9133_s1 + $0x1b0] sm:$0xff]   ;;  %v952_v48 = vrot.slane %v950_v53, 1  ;;  %v6704_v53 = vld [vmem:[%s5851_s24 + $0x88] sm:$0xff]  }
 0x127   : > { %2575 = vmatmul.mubr.bf16.gmra.mrb[12].mxu0 %v6269_v34  ;;  %2854 = vmatprep.mubr.bf16.mxu1 %v1296_v59  ;;  %v948_v59 = vor.u32 %v946_v0, %v944_v18  ;;  %v9154_v18 = vrot.slane %v6497_v62, 1  ;;  %v1307_v28 = vor.u32 %v1305_v40, %v1303_v17 }
 0x128   : > { %2582 = vmatprep.mubr.bf16.mxu0 %v6281_v55  ;;  %2755 = vmatpush1.bf16.msra.mxu0 %v5730_v26  ;;  %v6685_v55 = vsel %vm653_vm1, %v1039_v8, %v1041_v16  ;;  %v1309_v26 = vshll.u32 %v6674_v49, 16 }
 0x129   : > { %2756 = vmatprep.subr.bf16.mxu0 %v9277_v32  ;;  %v6682_v34 = vpop.f32.mrb[4].mxu1  ;;  %5186 = vmatpush3.bf16.msra.mxu1 %v5714_v1  ;;  %v5731_v1 = vld [vmem:[%s9133_s1 + $0x1b8] sm:$0xff]  }
 0x12a   : > { %9280 = vst [vmem:[#allocation26_spill] sm:$0xff] %v6682_v34  ;;  %v2114_v29 = vpop.f32.mrb[5].mxu1  ;;  %5187 = vmatprep.subr.bf16.mxu1 %v5715_v23  ;;  %v1311_v0 = vrot.slane %v1309_v26, 1  ;;  %v1313_v26 = vshrl.u32 %v6674_v49, 16 }
 0x12b   : > { %v6687_v30 = vpop.f32.mrb[6].mxu1  ;;  %v6696_v29 = vsel %vm434_vm0, %v948_v59, %v952_v48  ;;  %v5732_v59 = vld [vmem:[%s9133_s1 + $0x1c0] sm:$0xff]  }
 0x12c   : > { %9281 = vst [vmem:[#allocation27_spill] sm:$0xff] %v6687_v30  ;;  %2757 = vmatpush1.bf16.msra.mxu0 %v5731_v1  ;;  %v2117_v8 = vpop.f32.mrb[7].mxu1 }
 0x12d   : > { %2758 = vmatprep.subr.bf16.mxu0 %v9277_v32  ;;  %5188 = vmatpush3.bf16.msra.mxu1 %v5715_v23  ;;  %v954_v23 = vshrl.u32 %v6470_v15, 16  ;;  %v1312_v15 = vsel %vm434_vm0, %v1307_v28, %v1311_v0  ;;  %v1317_v8 = vshll.u32 %v6704_v53, 16 }
 0x12e   : > { %2855 = vmatmul.mubr.bf16.gmra.mrb[112].mxu1 %v6230_v51  ;;  %v958_v51 = vshll.u32 %v6497_v62, 16 }
 0x12f   : > { %2583 = vmatmul.mubr.bf16.gmra.mrb[16].mxu0 %v6291_v50  ;;  %2862 = vmatprep.mubr.bf16.mxu1 %v1304_v4  ;;  %v6717_v50 = vsel %vm653_vm1, %v1041_v16, %v9154_v18  ;;  %v956_v17 = vor.u32 %v954_v23, %v952_v48  ;;  %v1315_v48 = vor.u32 %v1313_v26, %v1311_v0  ;;  %v1319_v28 = vrot.slane %v1317_v8, 1  ;;  %v6738_v23 = vld [vmem:[%s5851_s24 + $0x90] sm:$0xff]  }
 0x130   : > { %2590 = vmatprep.mubr.bf16.mxu0 %v6303_v20  ;;  %2759 = vmatpush1.bf16.msra.mxu0 %v5732_v59  ;;  %v6719_v4 = vrot.slane %v958_v51, 1  ;;  %v1325_v0 = vshll.u32 %v6738_v23, 16 }
 0x131   : > { %v6711_v1 = vpop.f32.mrb[8].mxu1  ;;  %2760 = vmatprep.subr.bf16.mxu0 %v9277_v32 }
 0x132   : > { %9282 = vst [vmem:[#allocation28_spill] sm:$0xff] %v6711_v1  ;;  %v2122_v20 = vpop.f32.mrb[9].mxu1  ;;  %v6731_v16 = vsel %vm434_vm0, %v956_v17, %v6719_v4  ;;  %v1327_v8 = vrot.slane %v1325_v0, 1  ;;  %v9302_v1 = vld [vmem:[#allocation18_spill] sm:$0xff] }
 0x133   : > { %v6721_v40 = vpop.f32.mrb[10].mxu1 }
 0x134   : > { %9283 = vst [vmem:[#allocation29_spill] sm:$0xff] %v6721_v40  ;;  %v2125_v59 = vpop.f32.mrb[11].mxu1  ;;  %2761 = vmatpush1.bf16.msra.mxu0 %v5733_v31  ;;  %v5734_v31 = vld [vmem:[%s9133_s1 + $0x1d0] sm:$0xff]  }
 0x135   : > { %2762 = vmatprep.subr.bf16.mxu0 %v9277_v32  ;;  %v6759_v59 = vld [vmem:[%s5851_s24 + $0x98] sm:$0xff]  }
 0x136   : > { %2863 = vmatmul.mubr.bf16.gmra.mrb[116].mxu1 %v6252_v10 }
 0x137   : > { %2591 = vmatmul.mubr.bf16.gmra.mrb[20].mxu0 %v6313_v2  ;;  %2870 = vmatprep.mubr.bf16.mxu1 %v1312_v15  ;;  %v1320_v2 = vsel %vm434_vm0, %v1315_v48, %v1319_v28  ;;  %v5735_v15 = vld [vmem:[%s9133_s1 + $0x1d8] sm:$0xff]   ;;  %v5736_v48 = vld [vmem:[%s9133_s1 + $0x1e0] sm:$0xff]  }
 0x138   : > { %2598 = vmatprep.mubr.bf16.mxu0 %v6325_v58  ;;  %2763 = vmatpush1.bf16.msra.mxu0 %v5734_v31  ;;  %v1321_v58 = vshrl.u32 %v6704_v53, 16 }
 0x139   : > { %v6743_v51 = vpop.f32.mrb[12].mxu1  ;;  %2764 = vmatprep.subr.bf16.mxu0 %v9277_v32 }
 0x13a   : > { %9284 = vst [vmem:[#allocation30_spill] sm:$0xff] %v6743_v51  ;;  %v2130_v10 = vpop.f32.mrb[13].mxu1  ;;  %v1323_v26 = vor.u32 %v1321_v58, %v1319_v28  ;;  %v1333_v28 = vshll.u32 %v6759_v59, 16  ;;  %v5737_v58 = vld [vmem:[%s9133_s1 + $0x1e8] sm:$0xff]  }
 0x13b   : > { %v6746_v20 = vpop.f32.mrb[14].mxu1 }
 0x13c   : > { %9285 = vst [vmem:[#allocation31_spill] sm:$0xff] %v6746_v20  ;;  %v2133_v17 = vpop.f32.mrb[15].mxu1  ;;  %2765 = vmatpush1.bf16.msra.mxu0 %v5735_v15  ;;  %v6780_v15 = vld [vmem:[%s5851_s24 + $0xa0] sm:$0xff]  }
 0x13d   : > { %2766 = vmatprep.subr.bf16.mxu0 %v9277_v32  ;;  %v1335_v17 = vrot.slane %v1333_v28, 1 }
 0x13e   : > { %2871 = vmatmul.mubr.bf16.gmra.mrb[120].mxu1 %v6274_v43 }
 0x13f   : > { %2599 = vmatmul.mubr.bf16.gmra.mrb[24].mxu0 %v6335_v19  ;;  %2878 = vmatprep.mubr.bf16.mxu1 %v1320_v2  ;;  %v1328_v19 = vsel %vm434_vm0, %v1323_v26, %v1327_v8  ;;  %v5738_v26 = vld [vmem:[%s9133_s1 + $0x1f0] sm:$0xff]  }
 0x140   : > { %2606 = vmatprep.mubr.bf16.mxu0 %v6347_v39  ;;  %2767 = vmatpush1.bf16.msra.mxu0 %v5736_v48  ;;  %v1329_v39 = vshrl.u32 %v6738_v23, 16 }
 0x141   : > { %v6764_v31 = vpop.f32.mrb[16].mxu1  ;;  %2768 = vmatprep.subr.bf16.mxu0 %v9277_v32 }
 0x142   : > { %9286 = vst [vmem:[#allocation32_spill] sm:$0xff] %v6764_v31  ;;  %v2138_v43 = vpop.f32.mrb[17].mxu1  ;;  %v1331_v0 = vor.u32 %v1329_v39, %v1327_v8  ;;  %v1341_v8 = vshll.u32 %v6780_v15, 16  ;;  %v5739_v39 = vld [vmem:[%s9133_s1 + $0x1f8] sm:$0xff]  }
 0x143   : > { %v6767_v10 = vpop.f32.mrb[18].mxu1 }
 0x144   : > { %9287 = vst [vmem:[#allocation33_spill] sm:$0xff] %v6767_v10  ;;  %v2141_v2 = vpop.f32.mrb[19].mxu1  ;;  %2769 = vmatpush1.bf16.msra.mxu0 %v5737_v58  ;;  %v1343_v28 = vrot.slane %v1341_v8, 1 }
 0x145   : > { %2770 = vmatprep.subr.bf16.mxu0 %v9277_v32  ;;  %v6800_v2 = vld [vmem:[%s5851_s24 + $0xa8] sm:$0xff]  }
 0x146   : > { %2879 = vmatmul.mubr.bf16.gmra.mrb[124].mxu1 %v6296_v7 }
 0x147   : > { %2607 = vmatmul.mubr.bf16.gmra.mrb[28].mxu0 %v6357_v37  ;;  %2886 = vmatprep.mubr.bf16.mxu1 %v1328_v19  ;;  %v1336_v37 = vsel %vm434_vm0, %v1331_v0, %v1335_v17 }
 0x148   : > { %2614 = vmatprep.mubr.bf16.mxu0 %v6369_v33  ;;  %2771 = vmatpush1.bf16.msra.mxu0 %v5738_v26  ;;  %v1337_v33 = vshrl.u32 %v6759_v59, 16 }
 0x149   : > { %v6785_v48 = vpop.f32.mrb[20].mxu1  ;;  %2772 = vmatprep.subr.bf16.mxu0 %v9277_v32 }
 0x14a   : > { %9288 = vst [vmem:[#allocation34_spill] sm:$0xff] %v6785_v48  ;;  %v2146_v7 = vpop.f32.mrb[21].mxu1  ;;  %v1339_v32 = vor.u32 %v1337_v33, %v1335_v17  ;;  %v6813_v33 = vld [vmem:[%s5851_s24 + $0xb0] sm:$0xff]  }
 0x14b   : > { %v6788_v43 = vpop.f32.mrb[22].mxu1 }
 0x14c   : > { %9289 = vst [vmem:[#allocation35_spill] sm:$0xff] %v6788_v43  ;;  %v2149_v19 = vpop.f32.mrb[23].mxu1  ;;  %2773 = vmatpush1.bf16.msra.mxu0 %v5739_v39  ;;  %v1344_v7 = vsel %vm434_vm0, %v1339_v32, %v1343_v28 }
 0x14d   : > { %v1345_v19 = vshrl.u32 %v6780_v15, 16 }
 0x14e   : > { %2887 = vmatmul.mubr.bf16.gmra.mrb[128].mxu1 %v6318_v38  ;;  %v1349_v38 = vshll.u32 %v6800_v2, 16 }
 0x14f   : > { %2615 = vmatmul.mubr.bf16.gmra.mrb[32].mxu0 %v6379_v54  ;;  %2894 = vmatprep.mubr.bf16.mxu1 %v1336_v37  ;;  %v1347_v17 = vor.u32 %v1345_v19, %v1343_v28  ;;  %v9293_v28 = vld [vmem:[#allocation14_spill] sm:$0xff] }
 0x150   : > { %2622 = vmatprep.mubr.bf16.mxu0 %v6397_v24  ;;  %v9290_v24 = vld [vmem:[#allocation12_spill] sm:$0xff]  ;;  %v1351_v37 = vrot.slane %v1349_v38, 1 }
 0x151   : > { %v6802_v58 = vpop.f32.mrb[24].mxu1 }
 0x152   : > { %v2154_v0 = vpop.f32.mrb[25].mxu1 }
 0x153   : > { %v6804_v26 = vpop.f32.mrb[26].mxu1  ;;  %v1352_v0 = vsel %vm434_vm0, %v1347_v17, %v1351_v37 }
 0x154   : > { %v2157_v54 = vpop.f32.mrb[27].mxu1 }
 0x155   : > { %v1353_v54 = vshrl.u32 %v6800_v2, 16 }
 0x156   : > { %2895 = vmatmul.mubr.bf16.gmra.mrb[132].mxu1 %v6340_v5  ;;  %v1357_v5 = vshll.u32 %v6813_v33, 16 }
 0x157   : > { %2623 = vmatmul.mubr.bf16.gmra.mrb[36].mxu0 %v6406_v14  ;;  %2902 = vmatprep.mubr.bf16.mxu1 %v1344_v7  ;;  %v9291_v7 = vld [vmem:[#allocation8_spill] sm:$0xff]  ;;  %v1355_v19 = vor.u32 %v1353_v54, %v1351_v37 }
 0x158   : > { %2630 = vmatprep.mubr.bf16.mxu0 %v9290_v24  ;;  %v9292_v24 = vld [vmem:[#allocation13_spill] sm:$0xff]  ;;  %v1359_v38 = vrot.slane %v1357_v5, 1  ;;  %v9296_v37 = vld [vmem:[#allocation16_spill] sm:$0xff] }
 0x159   : > { %v6815_v8 = vpop.f32.mrb[28].mxu1 }
 0x15a   : > { %v2162_v39 = vpop.f32.mrb[29].mxu1  ;;  %v1360_v43 = vsel %vm434_vm0, %v1355_v19, %v1359_v38 }
 0x15b   : > { %v6817_v32 = vpop.f32.mrb[30].mxu1  ;;  %v6826_v39 = vld [vmem:[%s5851_s24 + $0xb8] sm:$0xff]  }
 0x15c   : > { %v2165_v14 = vpop.f32.mrb[31].mxu1 }
 0x15d   : > { %v1361_v14 = vshrl.u32 %v6813_v33, 16 }
 0x15e   : > { %2903 = vmatmul.mubr.bf16.gmra.mrb[136].mxu1 %v9291_v7  ;;  %v1365_v7 = vshll.u32 %v6826_v39, 16 }
 0x15f   : > { %2631 = vmatmul.mubr.bf16.gmra.mrb[40].mxu0 %v9292_v24  ;;  %2910 = vmatprep.mubr.bf16.mxu1 %v1352_v0  ;;  %v9294_v0 = vld [vmem:[#allocation9_spill] sm:$0xff]  ;;  %v1363_v54 = vor.u32 %v1361_v14, %v1359_v38  ;;  %v9299_v38 = vld [vmem:[#allocation20_spill] sm:$0xff] }
 0x160   : > { %2638 = vmatprep.mubr.bf16.mxu0 %v9293_v28  ;;  %v9295_v28 = vld [vmem:[#allocation15_spill] sm:$0xff]  ;;  %v1367_v5 = vrot.slane %v1365_v7, 1 }
 0x161   : > { %v6828_v18 = vpop.f32.mrb[32].mxu1 }
 0x162   : > { %v2170_v17 = vpop.f32.mrb[33].mxu1  ;;  %v1368_v31 = vsel %vm434_vm0, %v1363_v54, %v1367_v5 }
 0x163   : > { %v6830_v60 = vpop.f32.mrb[34].mxu1  ;;  %v6839_v17 = vld [vmem:[%s5851_s24 + $0xc0] sm:$0xff]  }
 0x164   : > { %v2173_v24 = vpop.f32.mrb[35].mxu1 }
 0x165   : > { %v1369_v24 = vshrl.u32 %v6826_v39, 16 }
 0x166   : > { %2911 = vmatmul.mubr.bf16.gmra.mrb[140].mxu1 %v9294_v0  ;;  %v1373_v0 = vshll.u32 %v6839_v17, 16 }
 0x167   : > { %2639 = vmatmul.mubr.bf16.gmra.mrb[44].mxu0 %v9295_v28  ;;  %2918 = vmatprep.mubr.bf16.mxu1 %v1360_v43  ;;  %v9297_v43 = vld [vmem:[#allocation11_spill] sm:$0xff]  ;;  %v1371_v14 = vor.u32 %v1369_v24, %v1367_v5  ;;  %v9301_v5 = vld [vmem:[#allocation22_spill] sm:$0xff] }
 0x168   : > { %2646 = vmatprep.mubr.bf16.mxu0 %v9296_v37  ;;  %v9298_v37 = vld [vmem:[#allocation17_spill] sm:$0xff]  ;;  %v1375_v7 = vrot.slane %v1373_v0, 1 }
 0x169   : > { %v6841_v48 = vpop.f32.mrb[36].mxu1 }
 0x16a   : > { %v2178_v19 = vpop.f32.mrb[37].mxu1  ;;  %v1376_v40 = vsel %vm434_vm0, %v1371_v14, %v1375_v7  ;;  %v4807_v14 = vcombine.low %v6456_v47, %v9302_v1  ;;  %v9303_v1 = vld [vmem:[#allocation19_spill] sm:$0xff] }
 0x16b   : > { %v6843_v10 = vpop.f32.mrb[38].mxu1  ;;  %v6852_v19 = vld [vmem:[%s5851_s24 + $0xc8] sm:$0xff]  }
 0x16c   : > { %v2181_v28 = vpop.f32.mrb[39].mxu1 }
 0x16d   : > { %v1377_v28 = vshrl.u32 %v6839_v17, 16 }
 0x16e   : > { %2919 = vmatmul.mubr.bf16.gmra.mrb[144].mxu1 %v9297_v43  ;;  %v1381_v43 = vshll.u32 %v6852_v19, 16 }
 0x16f   : > { %2647 = vmatmul.mubr.bf16.gmra.mrb[48].mxu0 %v9298_v37  ;;  %2926 = vmatprep.mubr.bf16.mxu1 %v1368_v31  ;;  %v9300_v31 = vld [vmem:[#allocation21_spill] sm:$0xff]  ;;  %v1379_v24 = vor.u32 %v1377_v28, %v1375_v7  ;;  %v4808_v28 = vcombine.low %v9303_v1, %v6511_v42 }
 0x170   : > { %2654 = vmatprep.mubr.bf16.mxu0 %v9299_v38  ;;  %v1383_v0 = vrot.slane %v1381_v43, 1  ;;  %v6865_v38 = vld [vmem:[%s5851_s24 + $0xd0] sm:$0x1f]  }
 0x171   : > { %v6854_v20 = vpop.f32.mrb[40].mxu1 }
 0x172   : > { %v2186_v54 = vpop.f32.mrb[41].mxu1 }
 0x173   : > { %v6856_v51 = vpop.f32.mrb[42].mxu1 }
 0x174   : > { %v2189_v37 = vpop.f32.mrb[43].mxu1 }
 0x175   : > { %v1384_v37 = vsel %vm434_vm0, %v1379_v24, %v1383_v0 }
 0x176   : > { %2927 = vmatmul.mubr.bf16.gmra.mrb[148].mxu1 %v6436_v44  ;;  %v1385_v44 = vshrl.u32 %v6852_v19, 16 }
 0x177   : > { %2655 = vmatmul.mubr.bf16.gmra.mrb[52].mxu0 %v9300_v31  ;;  %2934 = vmatprep.mubr.bf16.mxu1 %v1376_v40  ;;  %v1389_v40 = vshll.u32 %v6865_v38, 16 }
 0x178   : > { %2662 = vmatprep.mubr.bf16.mxu0 %v9301_v5  ;;  %v1387_v7 = vor.u32 %v1385_v44, %v1383_v0  ;;  %v288_v44 = vld [vmem:[%s5851_s24 + $0x18] sm:$0xe] }
 0x179   : > { %v6867_v54 = vpop.f32.mrb[44].mxu1  ;;  %v1391_v47 = vrot.slane %v1389_v40, 1 }
 0x17a   : > { %v2194_v30 = vpop.f32.mrb[45].mxu1 }
 0x17b   : > { %v6871_v34 = vpop.f32.mrb[46].mxu1  ;;  %v1392_v24 = vsel %vm434_vm0, %v1387_v7, %v1391_v47 }
 0x17c   : > { %v2197_v31 = vpop.f32.mrb[47].mxu1 }
 0x17d   : > { %v5710_v31 = vld [vmem:[%s5851_s24 + $0xc8] sm:$0xff]  }
 0x17e   : > { %2935 = vmatmul.mubr.bf16.gmra.mrb[152].mxu1 %v4807_v14 }
 0x17f   : > { %2663 = vmatmul.mubr.bf16.gmra.mrb[56].mxu0 %v6531_v45  ;;  %2942 = vmatprep.mubr.bf16.mxu1 %v1384_v37  ;;  %v1393_v45 = vshrl.u32 %v6865_v38, 16  ;;  %v6890_v37 = vld [vmem:[%s5851_s24 + $0x1c] sm:$0xf] }
 0x180   : > { %2670 = vmatprep.mubr.bf16.mxu0 %v6543_v56  ;;  %v9305_v56 = vld [vmem:[#allocation10_spill] sm:$0xff] }
 0x181   : > { %v6878_v30 = vpop.f32.mrb[48].mxu1  ;;  %v1035_v0 = vrot.slane %v9305_v56, 1  ;;  %v1395_v7 = vor.u32 %v1393_v45, %v1391_v47 }
 0x182   : > { %v2202_v43 = vpop.f32.mrb[49].mxu1 }
 0x183   : > { %v6882_v5 = vpop.f32.mrb[50].mxu1  ;;  %v1036_v13 = vsel %vm653_vm1, %v9308_v46, %v1035_v0 }
 0x184   : > { %9304 = vst [vmem:[#allocation12_spill] sm:$0xff] %v6882_v5  ;;  %v2205_v14 = vpop.f32.mrb[51].mxu1  ;;  %v6914_v5 = vld [vmem:[%s5851_s24 + $0x28] sm:$0xff]  }
 0x186   : > { %2943 = vmatmul.mubr.bf16.gmra.mrb[156].mxu1 %v4808_v28  ;;  %v926_v28 = vshll.u32 %v9305_v56, 16 }
 0x187   : > { %2671 = vmatmul.mubr.bf16.gmra.mrb[60].mxu0 %v6551_v6  ;;  %2950 = vmatprep.mubr.bf16.mxu1 %v1392_v24  ;;  %v922_v6 = vshrl.u32 %v6372_v27, 16  ;;  %v6901_v24 = vld [vmem:[%s5851_s24 + $0x20] sm:$0xff]  }
 0x188   : > { %2678 = vmatprep.mubr.bf16.mxu0 %v6565_v61  ;;  %v4835_v61 = vcombine.low %v288_v44, %v6890_v37  ;;  %v928_v45 = vrot.slane %v926_v28, 1  ;;  %v5713_v44 = vld [vmem:[%s5851_s24 + $0xd0] ss:$0 sps:$4 sm:$0xff]   ;;  %v1426_v28 = vrot.slane %v6914_v5, 1 }
 0x189   : > { %v6893_v40 = vpop.f32.mrb[52].mxu1  ;;  %v924_v47 = vor.u32 %v922_v6, %v6567_v63  ;;  %v6922_v63 = vld [vmem:[%s5851_s24 + $0x30] sm:$0xff]  }
 0x18a   : > { %9306 = vst [vmem:[#allocation8_spill] sm:$0xff] %v6893_v40  ;;  %v2210_v1 = vpop.f32.mrb[53].mxu1 }
 0x18b   : > { %v6896_v43 = vpop.f32.mrb[54].mxu1  ;;  %v1423_v1 = vrot.slane %v4835_v61, 1  ;;  %v929_v46 = vsel %vm434_vm0, %v924_v47, %v928_v45  ;;  %v1428_v47 = vrot.slane %v6922_v63, 1 }
 0x18c   : > { %9307 = vst [vmem:[#allocation13_spill] sm:$0xff] %v6896_v43  ;;  %v2213_v14 = vpop.f32.mrb[55].mxu1  ;;  %v1424_v43 = vrot.slane %v6901_v24, 1 }
 0x18e   : > { %2951 = vmatmul.mubr.bf16.gmra.mrb[160].mxu1 %v5710_v31 }
 0x18f   : > { %2679 = vmatmul.mubr.bf16.gmra.mrb[64].mxu0 %v6574_v57  ;;  %2958 = vmatprep.mubr.bf16.mxu1 %v1395_v7  ;;  %v1425_v57 = vsel %vm653_vm1, %v1423_v1, %v1424_v43  ;;  %v9309_v7 = vrot.slane %v6424_v11, 1 }
 0x190   : > { %2686 = vmatprep.mubr.bf16.mxu0 %v1036_v13  ;;  %v930_v13 = vshrl.u32 %v9305_v56, 16 }
 0x191   : > { %v6910_v40 = vpop.f32.mrb[56].mxu1  ;;  %v1038_v6 = vsel %vm653_vm1, %v1035_v0, %v9309_v7 }
 0x192   : > { %v2218_v14 = vpop.f32.mrb[57].mxu1  ;;  %v932_v61 = vor.u32 %v930_v13, %v928_v45 }
 0x193   : > { %v6916_v27 = vpop.f32.mrb[58].mxu1  ;;  %v1427_v14 = vsel %vm653_vm1, %v1424_v43, %v1426_v28 }
 0x194   : > { %v2221_v31 = vpop.f32.mrb[59].mxu1  ;;  %v937_v0 = vsel %vm434_vm0, %v932_v61, %v6638_v35 }
 0x195   : > { %v6933_v31 = vld [vmem:[%s5851_s24 + $0x38] sm:$0xff]  }
 0x196   : > { %2959 = vmatmul.mubr.bf16.gmra.mrb[164].mxu1 %v5713_v44  ;;  %v1429_v44 = vsel %vm653_vm1, %v1426_v28, %v1428_v47  ;;  %v1430_v45 = vrot.slane %v6933_v31, 1 }
 0x197   : > { %2687 = vmatmul.mubr.bf16.gmra.mrb[68].mxu0 %v929_v46  ;;  %5189 = vmatprep.mubr.bf16.mxu1 %v1425_v57  ;;  %v6941_v46 = vld [vmem:[%s5851_s24 + $0x40] sm:$0xff]  }
 0x198   : > { %2694 = vmatprep.mubr.bf16.mxu0 %v1038_v6  ;;  %v1432_v43 = vrot.slane %v6941_v46, 1  ;;  %v1431_v35 = vsel %vm653_vm1, %v1428_v47, %v1430_v45 }
 0x199   : > { %v6929_v1 = vpop.f32.mrb[60].mxu1 }
 0x19a   : > { %v2226_v56 = vpop.f32.mrb[61].mxu1  ;;  %v1433_v28 = vsel %vm653_vm1, %v1430_v45, %v1432_v43 }
 0x19b   : > { %v6935_v11 = vpop.f32.mrb[62].mxu1  ;;  %v1434_v56 = vrot.slane %v6500_v12, 1  ;;  %v1438_v12 = vrot.slane %v6538_v9, 1 }
 0x19c   : > { %v2229_v57 = vpop.f32.mrb[63].mxu1 }
 0x19e   : > { %5190 = vmatmul.mubr.bf16.vlgmr.msra.gmra.mrb[168].mxu1 %v1427_v14 }
 0x19f   : > { %2695 = vmatmul.mubr.bf16.gmra.mrb[72].mxu0 %v937_v0  ;;  %5193 = vmatprep.mubr.bf16.mxu1 %v1429_v44  ;;  %v235_v0 = vld [vmem:[%s5851_s24 + $0xc8] sm:$0x1]  ;;  %v1435_v44 = vsel %vm653_vm1, %v1432_v43, %v1434_v56  ;;  %v240_v43 = vld [vmem:[%s5851_s24 + $0x18] sm:$0xf]  ;;  %s5466_s24 = smul.u32 188, %s9808_s13 }
 0x1a0   : > { %2702 = vmatprep.mubr.bf16.mxu0 %v6648_v22  ;;  %v1436_v22 = vrot.slane %v6514_v36, 1  ;;  %v1440_v36 = vrot.slane %v6558_v52, 1  ;;  %v4811_v9 = vcombine.low %v240_v43, %v6890_v37 }
 0x1a1   : > { %v6946_v13 = vpop.f32.mrb[64].mxu1  ;;  %s7823_s27 = scalar_lea.vmem %s9134_s2, %s5466_s24 }
 0x1a2   : > { %v2234_v7 = vpop.f32.mrb[65].mxu1  ;;  %v1437_v45 = vsel %vm653_vm1, %v1434_v56, %v1436_v22 }
 0x1a3   : > { %v6949_v6 = vpop.f32.mrb[66].mxu1 }
 0x1a4   : > { %v2237_v61 = vpop.f32.mrb[67].mxu1 }
 0x1a5   : > { %v1439_v61 = vsel %vm653_vm1, %v1436_v22, %v1438_v12  ;;  %v1442_v22 = vrot.slane %v6586_v41, 1  ;;  %v1206_v41 = vshrl.u32 %v4811_v9, 16 }
 0x1a6   : > { %5194 = vmatmul.mubr.bf16.gmra.mrb[172].mxu1 %v1431_v35 }
 0x1a7   : > { %2703 = vmatmul.mubr.bf16.gmra.mrb[76].mxu0 %v6663_v3  ;;  %5197 = vmatprep.mubr.bf16.mxu1 %v1433_v28  ;;  %v4805_v3 = vcombine.low %v6511_v42, %v235_v0  ;;  %v1441_v42 = vsel %vm653_vm1, %v1438_v12, %v1440_v36 }
 0x1a8   : > { %2710 = vmatprep.mubr.bf16.mxu0 %v6685_v55 }
 0x1a9   : > { %v6956_v14 = vpop.f32.mrb[68].mxu1  ;;  %v1045_v55 = vrot.slane %v4805_v3, 1  ;;  %v966_v0 = vshll.u32 %v4805_v3, 16 }
 0x1aa   : > { %v2242_v47 = vpop.f32.mrb[69].mxu1 }
 0x1ab   : > { %v6960_v57 = vpop.f32.mrb[70].mxu1 }
 0x1ac   : > { %v2245_v7 = vpop.f32.mrb[71].mxu1 }
 0x1ad   : > { %v1444_v7 = vrot.slane %v6610_v25, 1  ;;  %v970_v25 = vshrl.u32 %v4805_v3, 16 }
 0x1ae   : > { %5198 = vmatmul.mubr.bf16.gmra.mrb[176].mxu1 %v1435_v44 }
 0x1af   : > { %2711 = vmatmul.mubr.bf16.gmra.mrb[80].mxu0 %v6696_v29  ;;  %5201 = vmatprep.mubr.bf16.mxu1 %v1437_v45  ;;  %v962_v29 = vshrl.u32 %v6497_v62, 16  ;;  %v968_v45 = vrot.slane %v966_v0, 1 }
 0x1b0   : > { %2718 = vmatprep.mubr.bf16.mxu0 %v6717_v50  ;;  %v9310_v50 = vrot.slane %v6497_v62, 1  ;;  %v1443_v62 = vsel %vm653_vm1, %v1440_v36, %v1442_v22  ;;  %v1448_v36 = vrot.slane %v6674_v49, 1  ;;  %v1450_v49 = vrot.slane %v6704_v53, 1 }
 0x1b1   : > { %v6968_v35 = vpop.f32.mrb[72].mxu1  ;;  %v964_v44 = vor.u32 %v962_v29, %v6719_v4  ;;  %v1213_v4 = vshll.u32 %v6901_v24, 16  ;;  %v1446_v29 = vrot.slane %v6633_v21, 1  ;;  %v1217_v21 = vshrl.u32 %v6901_v24, 16 }
 0x1b2   : > { %v2250_v28 = vpop.f32.mrb[73].mxu1  ;;  %v1046_v52 = vsel %vm653_vm1, %v9310_v50, %v1045_v55  ;;  %v1229_v53 = vshll.u32 %v6922_v63, 16 }
 0x1b3   : > { %v6972_v56 = vpop.f32.mrb[74].mxu1  ;;  %v1208_v28 = vshll.u32 %v4811_v9, 16  ;;  %v1215_v50 = vrot.slane %v1213_v4, 1  ;;  %v1447_v9 = vsel %vm653_vm1, %v1444_v7, %v1446_v29 }
 0x1b4   : > { %v2253_v47 = vpop.f32.mrb[75].mxu1 }
 0x1b5   : > { %v1210_v47 = vrot.slane %v1208_v28, 1 }
 0x1b6   : > { %5202 = vmatmul.mubr.bf16.gmra.mrb[180].mxu1 %v1439_v61  ;;  %v969_v61 = vsel %vm434_vm0, %v964_v44, %v968_v45 }
 0x1b7   : > { %2719 = vmatmul.mubr.bf16.gmra.mrb[84].mxu0 %v6731_v16  ;;  %5205 = vmatprep.mubr.bf16.mxu1 %v1441_v42  ;;  %v1445_v16 = vsel %vm653_vm1, %v1442_v22, %v1444_v7  ;;  %v1211_v0 = vor.u32 %v1210_v47, %v1206_v41  ;;  %v972_v22 = vor.u32 %v970_v25, %v968_v45  ;;  %v1452_v45 = vrot.slane %v6738_v23, 1  ;;  %v9311_v23 = vld [vmem:[#allocation2_spill] sm:$0xff] }
 0x1b8   : > { %2726 = vmatprep.mubr.bf16.mxu0 %v1046_v52  ;;  %v1451_v41 = vsel %vm653_vm1, %v1448_v36, %v1450_v49 }
 0x1b9   : > { %v6984_v12 = vpop.f32.mrb[76].mxu1  ;;  %v1216_v3 = vsel %vm434_vm0, %v1211_v0, %v1215_v50  ;;  %v1453_v4 = vsel %vm653_vm1, %v1450_v49, %v1452_v45  ;;  %v1454_v0 = vrot.slane %v6759_v59, 1  ;;  %v1237_v59 = vshll.u32 %v6933_v31, 16 }
 0x1ba   : > { %v2258_v37 = vpop.f32.mrb[77].mxu1  ;;  %v1458_v49 = vrot.slane %v6800_v2, 1 }
 0x1bb   : > { %v6987_v43 = vpop.f32.mrb[78].mxu1  ;;  %v1449_v37 = vsel %vm653_vm1, %v1446_v29, %v1448_v36  ;;  %v1225_v29 = vshrl.u32 %v6914_v5, 16  ;;  %v1456_v36 = vrot.slane %v6780_v15, 1  ;;  %v9314_v15 = vld [vmem:[#allocation3_spill] sm:$0xff] }
 0x1bc   : > { %v2261_v42 = vpop.f32.mrb[79].mxu1 }
 0x1be   : > { %5206 = vmatmul.mubr.bf16.gmra.mrb[184].mxu1 %v1443_v62 }
 0x1bf   : > { %2727 = vmatmul.mubr.bf16.gmra.mrb[88].mxu0 %v969_v61  ;;  %5209 = vmatprep.mubr.bf16.mxu1 %v1445_v16  ;;  %v1219_v61 = vor.u32 %v1217_v21, %v1215_v50 }
 0x1c0   : > { %2734 = vmatprep.mubr.bf16.mxu0 %v1045_v55  ;;  %v1221_v55 = vshll.u32 %v6914_v5, 16 }
 0x1c1   : > { %v6994_v52 = vpop.f32.mrb[80].mxu1 }
 0x1c2   : > { %v2266_v44 = vpop.f32.mrb[81].mxu1  ;;  %v1223_v16 = vrot.slane %v1221_v55, 1  ;;  %v1233_v55 = vshrl.u32 %v6922_v63, 16  ;;  %v1459_v63 = vsel %vm653_vm1, %v1456_v36, %v1458_v49 }
 0x1c3   : > { %v6997_v28 = vpop.f32.mrb[82].mxu1 }
 0x1c4   : > { %v2269_v62 = vpop.f32.mrb[83].mxu1  ;;  %v1224_v25 = vsel %vm434_vm0, %v1219_v61, %v1223_v16  ;;  %v1227_v44 = vor.u32 %v1225_v29, %v1223_v16 }
 0x1c6   : > { %5210 = vmatmul.mubr.bf16.gmra.mrb[188].mxu1 %v1447_v9 }
 0x1c7   : > { %2735 = vmatmul.mubr.bf16.gmra.mrb[96].mxu0 %v972_v22  ;;  %5213 = vmatprep.mubr.bf16.mxu1 %v1449_v37  ;;  %v1231_v22 = vrot.slane %v1229_v53, 1  ;;  %v1455_v37 = vsel %vm653_vm1, %v1452_v45, %v1454_v0  ;;  %v1460_v45 = vrot.slane %v6813_v33, 1  ;;  %v1241_v33 = vshrl.u32 %v6933_v31, 16 }
 0x1c8   : > { %2774 = vmatprep.mubr.bf16.mxu0 %v1216_v3  ;;  %v1457_v3 = vsel %vm653_vm1, %v1454_v0, %v1456_v36  ;;  %v1464_v36 = vrot.slane %v6839_v17, 1  ;;  %v1468_v17 = vrot.slane %v6865_v38, 1 }
 0x1c9   : > { %v7005_v7 = vpop.f32.mrb[84].mxu1  ;;  %v1232_v21 = vsel %vm434_vm0, %v1227_v44, %v1231_v22  ;;  %v1235_v16 = vor.u32 %v1233_v55, %v1231_v22  ;;  %v1245_v22 = vshll.u32 %v6941_v46, 16 }
 0x1ca   : > { %v2274_v42 = vpop.f32.mrb[85].mxu1 }
 0x1cb   : > { %v7008_v47 = vpop.f32.mrb[86].mxu1  ;;  %v1239_v42 = vrot.slane %v1237_v59, 1 }
 0x1cc   : > { %v2277_v24 = vpop.f32.mrb[87].mxu1 }
 0x1cd   : > { %v1240_v2 = vsel %vm434_vm0, %v1235_v16, %v1239_v42  ;;  %v1249_v16 = vshrl.u32 %v6941_v46, 16 }
 0x1ce   : > { %5214 = vmatmul.mubr.bf16.gmra.mrb[192].mxu1 %v1451_v41 }
 0x1cf   : > { %2775 = vmatmul.mubr.bf16.vlgmr.msra.gmra.mrb[0].mxu0 %v9311_v23  ;;  %5217 = vmatprep.mubr.bf16.mxu1 %v1453_v4  ;;  %v1461_v23 = vsel %vm653_vm1, %v1458_v49, %v1460_v45 }
 0x1d0   : > { %2782 = vmatprep.mubr.bf16.mxu0 %v1224_v25 }
 0x1d1   : > { %v7017_v50 = vpop.f32.mrb[88].mxu1 }
 0x1d2   : > { %9312 = vst [vmem:[#allocation14_spill] sm:$0xff] %v7017_v50  ;;  %v2282_v9 = vpop.f32.mrb[89].mxu1 }
 0x1d3   : > { %v7020_v62 = vpop.f32.mrb[90].mxu1  ;;  %v9316_v9 = vld [vmem:[#allocation4_spill] sm:$0xff] }
 0x1d4   : > { %9313 = vst [vmem:[#allocation9_spill] sm:$0xff] %v7020_v62  ;;  %v2285_v5 = vpop.f32.mrb[91].mxu1 }
 0x1d5   : > { %v1243_v5 = vor.u32 %v1241_v33, %v1239_v42  ;;  %v9320_v33 = vld [vmem:[#allocation7_spill] sm:$0xff] }
 0x1d6   : > { %5218 = vmatmul.mubr.bf16.gmra.mrb[196].mxu1 %v1455_v37  ;;  %v1462_v37 = vrot.slane %v6826_v39, 1  ;;  %v1466_v39 = vrot.slane %v6852_v19, 1 }
 0x1d7   : > { %2783 = vmatmul.mubr.bf16.gmra.mrb[4].mxu0 %v9314_v15  ;;  %5221 = vmatprep.mubr.bf16.mxu1 %v1457_v3  ;;  %v1247_v3 = vrot.slane %v1245_v22, 1 }
 0x1d8   : > { %2790 = vmatprep.mubr.bf16.mxu0 %v1232_v21  ;;  %v1463_v59 = vsel %vm653_vm1, %v1460_v45, %v1462_v37  ;;  %v1465_v31 = vsel %vm653_vm1, %v1462_v37, %v1464_v36 }
 0x1d9   : > { %v2288_v61 = vpop.f32.mrb[92].mxu1  ;;  %v1251_v42 = vor.u32 %v1249_v16, %v1247_v3 }
 0x1da   : > { %v2512_v41 = vpop.f32.mrb[92].mxu0  ;;  %v2290_v24 = vpop.f32.mrb[93].mxu1 }
 0x1db   : > { %v7029_v4 = vadd.f32 %v2512_v41, %v2288_v61  ;;  %v2514_v25 = vpop.f32.mrb[93].mxu0  ;;  %v2291_v29 = vpop.f32.mrb[94].mxu1  ;;  %v1248_v61 = vsel %vm434_vm0, %v1243_v5, %v1247_v3  ;;  %v9317_v41 = vld [vmem:[#allocation5_spill] sm:$0xff] }
 0x1dc   : > { %v2515_v53 = vpop.f32.mrb[94].mxu0  ;;  %v2292_v0 = vpop.f32.mrb[95].mxu1  ;;  %v1467_v25 = vsel %vm653_vm1, %v1464_v36, %v1466_v39  ;;  %v1469_v29 = vsel %vm653_vm1, %v1466_v39, %v1468_v17 }
 0x1dd   : > { %9315 = vst [vmem:[#allocation15_spill] sm:$0xff] %v7029_v4  ;;  %v2516_v44 = vpop.f32.mrb[95].mxu0  ;;  %v9319_v0 = vld [vmem:[#allocation6_spill] sm:$0xff] }
 0x1de   : > { %5222 = vmatmul.mubr.bf16.gmra.mrb[200].mxu1 %v1459_v63 }
 0x1df   : > { %2791 = vmatmul.mubr.bf16.gmra.mrb[8].mxu0 %v9316_v9  ;;  %5225 = vmatprep.mubr.bf16.mxu1 %v1461_v23  ;;  %v9318_v23 = vld [vmem:[#allocation23_spill] sm:$0xff] }
 0x1e0   : > { %2798 = vmatprep.mubr.bf16.mxu0 %v1240_v2  ;;  %v1256_v46 = vsel %vm434_vm0, %v1251_v42, %v9318_v23 }
 0x1e1   : > { %v2824_v21 = vpop.f32.mrb[96].mxu1 }
 0x1e2   : > { %v2826_v55 = vpop.f32.mrb[97].mxu1 }
 0x1e3   : > { %v2827_v15 = vpop.f32.mrb[98].mxu1 }
 0x1e4   : > { %v2829_v49 = vpop.f32.mrb[99].mxu1 }
 0x1e6   : > { %5226 = vmatmul.mubr.bf16.gmra.mrb[204].mxu1 %v1463_v59 }
 0x1e7   : > { %2799 = vmatmul.mubr.bf16.gmra.mrb[12].mxu0 %v9317_v41  ;;  %5229 = vmatprep.mubr.bf16.mxu1 %v1465_v31 }
 0x1e8   : > { %2806 = vmatprep.mubr.bf16.mxu0 %v1248_v61 }
 0x1e9   : > { %v2832_v24 = vpop.f32.mrb[100].mxu1 }
 0x1ea   : > { %v2834_v45 = vpop.f32.mrb[101].mxu1 }
 0x1eb   : > { %v2835_v63 = vpop.f32.mrb[102].mxu1 }
 0x1ec   : > { %v2837_v53 = vpop.f32.mrb[103].mxu1 }
 0x1ee   : > { %5230 = vmatmul.mubr.bf16.gmra.mrb[208].mxu1 %v1467_v25 }
 0x1ef   : > { %2807 = vmatmul.mubr.bf16.gmra.mrb[16].mxu0 %v9319_v0  ;;  %5233 = vmatprep.mubr.bf16.mxu1 %v1469_v29 }
 0x1f0   : > { %2814 = vmatprep.mubr.bf16.mxu0 %v1256_v46 }
 0x1f1   : > { %v2840_v19 = vpop.f32.mrb[104].mxu1 }
 0x1f2   : > { %v2842_v44 = vpop.f32.mrb[105].mxu1 }
 0x1f3   : > { %v2843_v38 = vpop.f32.mrb[106].mxu1 }
 0x1f4   : > { %v2845_v2 = vpop.f32.mrb[107].mxu1 }
 0x1f6   : > { %5234 = vmatmul.mubr.bf16.gmra.mrb[212].mxu1 %v1468_v17 }
 0x1f7   : > { %2815 = vmatmul.mubr.bf16.gmra.mrb[20].mxu0 %v9320_v33 }
 0x1f9   : > { %v2848_v22 = vpop.f32.mrb[108].mxu1 }
 0x1fa   : > { %v2850_v9 = vpop.f32.mrb[109].mxu1 }
 0x1fb   : > { %v2851_v37 = vpop.f32.mrb[110].mxu1 }
 0x1fc   : > { %v2853_v36 = vpop.f32.mrb[111].mxu1 }
 0x201   : > { %v7052_v5 = vpop.f32.mrb[112].mxu1 }
 0x202   : > { %v2858_v3 = vpop.f32.mrb[113].mxu1 }
 0x203   : > { %v7054_v55 = vpop.f32.mrb[114].mxu1 }
 0x204   : > { %v2861_v59 = vpop.f32.mrb[115].mxu1 }
 0x209   : > { %v7056_v31 = vpop.f32.mrb[116].mxu1 }
 0x20a   : > { %v2866_v49 = vpop.f32.mrb[117].mxu1 }
 0x20b   : > { %v7058_v61 = vpop.f32.mrb[118].mxu1 }
 0x20c   : > { %v2869_v16 = vpop.f32.mrb[119].mxu1 }
 0x211   : > { %v7060_v41 = vpop.f32.mrb[120].mxu1 }
 0x212   : > { %v2600_v39 = vpop.f32.mrb[24].mxu0  ;;  %v2874_v17 = vpop.f32.mrb[121].mxu1 }
 0x213   : > { %v5281_v42 = vadd.f32 %v2600_v39, %v6802_v58  ;;  %v2602_v45 = vpop.f32.mrb[25].mxu0  ;;  %v7063_v25 = vpop.f32.mrb[122].mxu1 }
 0x214   : > { %v2603_v29 = vpop.f32.mrb[26].mxu0  ;;  %v2877_v53 = vpop.f32.mrb[123].mxu1 }
 0x215   : > { %v5283_v23 = vadd.f32 %v2603_v29, %v6804_v26  ;;  %v7066_v46 = vadd.f32 %v5281_v42, %v2824_v21  ;;  %v2605_v0 = vpop.f32.mrb[27].mxu0 }
 0x217   : > { %v7068_v44 = vadd.f32 %v5283_v23, %v2827_v15 }
 0x219   : > { %v7070_v2 = vpop.f32.mrb[124].mxu1 }
 0x21a   : > { %v2608_v33 = vpop.f32.mrb[28].mxu0  ;;  %v2882_v9 = vpop.f32.mrb[125].mxu1 }
 0x21b   : > { %v5285_v36 = vadd.f32 %v2608_v33, %v6815_v8  ;;  %v2610_v3 = vpop.f32.mrb[29].mxu0  ;;  %v7073_v58 = vpop.f32.mrb[126].mxu1 }
 0x21c   : > { %v2611_v59 = vpop.f32.mrb[30].mxu0  ;;  %v2885_v49 = vpop.f32.mrb[127].mxu1 }
 0x21d   : > { %v5287_v16 = vadd.f32 %v2611_v59, %v6817_v32  ;;  %v7076_v39 = vadd.f32 %v5285_v36, %v2832_v24  ;;  %v2613_v26 = vpop.f32.mrb[31].mxu0 }
 0x21f   : > { %v7078_v21 = vadd.f32 %v5287_v16, %v2835_v63 }
 0x221   : > { %v7080_v15 = vpop.f32.mrb[128].mxu1 }
 0x222   : > { %v2616_v17 = vpop.f32.mrb[32].mxu0  ;;  %v2890_v42 = vpop.f32.mrb[129].mxu1 }
 0x223   : > { %v5289_v45 = vadd.f32 %v2616_v17, %v6828_v18  ;;  %v2618_v29 = vpop.f32.mrb[33].mxu0  ;;  %v7083_v8 = vpop.f32.mrb[130].mxu1 }
 0x224   : > { %v2619_v53 = vpop.f32.mrb[34].mxu0  ;;  %v2893_v23 = vpop.f32.mrb[131].mxu1 }
 0x225   : > { %v5291_v0 = vadd.f32 %v2619_v53, %v6830_v60  ;;  %v7086_v33 = vadd.f32 %v5289_v45, %v2840_v19  ;;  %v2621_v32 = vpop.f32.mrb[35].mxu0 }
 0x227   : > { %9321 = vst [vmem:[#allocation16_spill] sm:$0xff] %v7086_v33  ;;  %v7088_v24 = vadd.f32 %v5291_v0, %v2843_v38 }
 0x229   : > { %9322 = vst [vmem:[#allocation11_spill] sm:$0xff] %v7088_v24  ;;  %v7090_v63 = vpop.f32.mrb[132].mxu1 }
 0x22a   : > { %v2624_v9 = vpop.f32.mrb[36].mxu0  ;;  %v2898_v36 = vpop.f32.mrb[133].mxu1 }
 0x22b   : > { %v5293_v3 = vadd.f32 %v2624_v9, %v6841_v48  ;;  %v2626_v59 = vpop.f32.mrb[37].mxu0  ;;  %v7093_v18 = vpop.f32.mrb[134].mxu1  ;;  %v3426_v9 = vlaneseq }
 0x22c   : > { %v2627_v49 = vpop.f32.mrb[38].mxu0  ;;  %v2901_v16 = vpop.f32.mrb[135].mxu1 }
 0x22d   : > { %v5295_v26 = vadd.f32 %v2627_v49, %v6843_v10  ;;  %v7096_v17 = vadd.f32 %v5293_v3, %v2848_v22  ;;  %v2629_v60 = vpop.f32.mrb[39].mxu0 }
 0x22f   : > { %9323 = vst [vmem:[#allocation17_spill] sm:$0xff] %v7096_v17  ;;  %v7098_v19 = vadd.f32 %v5295_v26, %v2851_v37  ;;  %v7117_v26 = vshrl.u32 %v3426_v9, 7 }
 0x231   : > { %9324 = vst [vmem:[#allocation20_spill] sm:$0xff] %v7098_v19  ;;  %v7100_v38 = vpop.f32.mrb[136].mxu1 }
 0x232   : > { %v2632_v42 = vpop.f32.mrb[40].mxu0  ;;  %v2906_v45 = vpop.f32.mrb[137].mxu1 }
 0x233   : > { %v5297_v29 = vadd.f32 %v2632_v42, %v6854_v20  ;;  %v2634_v53 = vpop.f32.mrb[41].mxu0  ;;  %v7103_v48 = vpop.f32.mrb[138].mxu1 }
 0x234   : > { %v2635_v23 = vpop.f32.mrb[42].mxu0  ;;  %v2909_v0 = vpop.f32.mrb[139].mxu1 }
 0x235   : > { %v5299_v32 = vadd.f32 %v2635_v23, %v6856_v51  ;;  %v7107_v10 = vadd.f32 %v5297_v29, %v7052_v5  ;;  %v2637_v22 = vpop.f32.mrb[43].mxu0  ;;  %v3441_v29 = vadd.s32 112, %v7117_v26  ;;  %v7130_v0 = vadd.s32 96, %v7117_v26 }
 0x237   : > { %9325 = vst [vmem:[#allocation21_spill] sm:$0xff] %v7107_v10  ;;  %v7110_v37 = vadd.f32 %v5299_v32, %v7054_v55 }
 0x239   : > { %9326 = vst [vmem:[#allocation22_spill] sm:$0xff] %v7110_v37  ;;  %v7112_v36 = vpop.f32.mrb[140].mxu1 }
 0x23a   : > { %v2640_v3 = vpop.f32.mrb[44].mxu0  ;;  %v2914_v59 = vpop.f32.mrb[141].mxu1 }
 0x23b   : > { %v5301_v20 = vadd.f32 %v2640_v3, %v6867_v54  ;;  %v2642_v49 = vpop.f32.mrb[45].mxu0  ;;  %v7115_v16 = vpop.f32.mrb[142].mxu1  ;;  %v9329_v59 = vld [vmem:[#allocation12_spill] sm:$0xff] }
 0x23c   : > { %v2643_v51 = vpop.f32.mrb[46].mxu0  ;;  %v2917_v60 = vpop.f32.mrb[143].mxu1 }
 0x23d   : > { %v5303_v5 = vadd.f32 %v2643_v51, %v6871_v34  ;;  %v7121_v42 = vadd.f32 %v5301_v20, %v7056_v31  ;;  %v2645_v55 = vpop.f32.mrb[47].mxu0  ;;  %v7135_v31 = vmul.u32.u64.low 2863311531, %v3441_v29  ;;  %v7136_v9 = vmul.u32.u64.high 2863311531, %v3441_v29, %v7135_v31 }
 0x23e   : > { %v7143_v60 = vadd.s32 120, %v7117_v26  ;;  %v7150_v55 = vadd.s32 104, %v7117_v26 }
 0x23f   : > { %9327 = vst [vmem:[#allocation18_spill] sm:$0xff] %v7121_v42  ;;  %v7124_v45 = vadd.f32 %v5303_v5, %v7058_v61 }
 0x241   : > { %9328 = vst [vmem:[#allocation19_spill] sm:$0xff] %v7124_v45  ;;  %v7127_v53 = vpop.f32.mrb[144].mxu1  ;;  %v9333_v45 = vld [vmem:[#allocation13_spill] sm:$0xff] }
 0x242   : > { %v2648_v54 = vpop.f32.mrb[48].mxu0  ;;  %v2922_v23 = vpop.f32.mrb[145].mxu1 }
 0x243   : > { %v5305_v32 = vadd.f32 %v2648_v54, %v6878_v30  ;;  %v2650_v22 = vpop.f32.mrb[49].mxu0  ;;  %v7133_v34 = vpop.f32.mrb[146].mxu1  ;;  %v7146_v5 = vmul.u32.u64.low 2863311531, %v7130_v0  ;;  %v7147_v30 = vmul.u32.u64.high 2863311531, %v7130_v0, %v7146_v5 }
 0x244   : > { %v2651_v3 = vpop.f32.mrb[50].mxu0  ;;  %v2925_v61 = vpop.f32.mrb[147].mxu1 }
 0x245   : > { %v5307_v20 = vadd.f32 %v2651_v3, %v9329_v59  ;;  %v7140_v49 = vadd.f32 %v5305_v32, %v7060_v41  ;;  %v2653_v51 = vpop.f32.mrb[51].mxu0  ;;  %v7158_v22 = vmul.u32.u64.low 2863311531, %v7143_v60  ;;  %v7159_v41 = vmul.u32.u64.high 2863311531, %v7143_v60, %v7158_v22 }
 0x246   : > { %v7162_v32 = vadd.s32 144, %v7117_v26  ;;  %v7165_v61 = vmul.u32.u64.low 2863311531, %v7150_v55  ;;  %v7166_v59 = vmul.u32.u64.high 2863311531, %v7150_v55, %v7165_v61  ;;  %v7169_v51 = vadd.s32 128, %v7117_v26 }
 0x247   : > { %9330 = vst [vmem:[#allocation10_spill] sm:$0xff] %v7140_v49  ;;  %v7153_v54 = vadd.f32 %v5307_v20, %v7063_v25  ;;  %v9332_v25 = vld [vmem:[#allocation8_spill] sm:$0xff]  ;;  %v3634_v49 = vshrl.u32 %v7136_v9, 4  ;;  %v3612_v24 = vshrl.u32 %v7147_v30, 4  ;;  %v7189_v9 = vadd.s32 152, %v7117_v26 }
 0x248   : > { %v7180_v61 = vmul.u32.u64.low 2863311531, %v7162_v32  ;;  %v7181_v42 = vmul.u32.u64.high 2863311531, %v7162_v32, %v7180_v61  ;;  %v3645_v30 = vshrl.u32 %v7159_v41, 4 }
 0x249   : > { %9331 = vst [vmem:[#allocation2_spill] sm:$0xff] %v7153_v54  ;;  %v7155_v23 = vpop.f32.mrb[148].mxu1  ;;  %v3613_v61 = vmul.u32 24, %v3612_v24 }
 0x24a   : > { %v2656_v31 = vpop.f32.mrb[52].mxu0  ;;  %v2930_v3 = vpop.f32.mrb[149].mxu1 }
 0x24b   : > { %v5309_v20 = vadd.f32 %v2656_v31, %v9332_v25  ;;  %v2658_v5 = vpop.f32.mrb[53].mxu0  ;;  %v7172_v54 = vpop.f32.mrb[150].mxu1  ;;  %v7185_v31 = vmul.u32.u64.low 2863311531, %v7169_v51  ;;  %v7186_v25 = vmul.u32.u64.high 2863311531, %v7169_v51, %v7185_v31 }
 0x24c   : > { %v2659_v22 = vpop.f32.mrb[54].mxu0  ;;  %v2933_v37 = vpop.f32.mrb[151].mxu1  ;;  %v3623_v31 = vshrl.u32 %v7166_v59, 4 }
 0x24d   : > { %v5311_v10 = vadd.f32 %v2659_v22, %v9333_v45  ;;  %v7177_v3 = vadd.f32 %v5309_v20, %v7070_v2  ;;  %v2661_v4 = vpop.f32.mrb[55].mxu0  ;;  %v3635_v45 = vmul.u32 24, %v3634_v49  ;;  %v7195_v2 = vadd.s32 136, %v7117_v26 }
 0x24e   : > { %v7198_v4 = vadd.s32 176, %v7117_v26 }
 0x24f   : > { %9334 = vst [vmem:[#allocation3_spill] sm:$0xff] %v7177_v3  ;;  %v7192_v37 = vadd.f32 %v5311_v10, %v7073_v58  ;;  %v7205_v3 = vmul.u32.u64.low 2863311531, %v7189_v9  ;;  %v7206_v58 = vmul.u32.u64.high 2863311531, %v7189_v9, %v7205_v3  ;;  %v7211_v62 = vsub.s32 %v3441_v29, %v3635_v45 }
 0x250   : > { %v7214_v19 = vmul.u32.u64.low 2863311531, %v7195_v2  ;;  %v7215_v33 = vmul.u32.u64.high 2863311531, %v7195_v2, %v7214_v19  ;;  %v7218_v24 = vmul.u32.u64.low 2863311531, %v7198_v4  ;;  %v7219_v59 = vmul.u32.u64.high 2863311531, %v7198_v4, %v7218_v24 }
 0x251   : > { %9335 = vst [vmem:[#allocation4_spill] sm:$0xff] %v7192_v37  ;;  %v7200_v20 = vpop.f32.mrb[152].mxu1  ;;  %9336 = vst [vmem:[#allocation5_spill] sm:$0xff] %v7211_v62  ;;  %v7227_v29 = vsub.s32 %v7130_v0, %v3613_v61  ;;  %v3646_v45 = vmul.u32 24, %v3645_v30  ;;  %v3656_v19 = vshrl.u32 %v7186_v25, 4  ;;  %vm4005_vm2 = vcmp.ne.s32.totalorder %v7211_v62, 0 }
 0x252   : > { %v2664_v5 = vpop.f32.mrb[56].mxu0  ;;  %v2938_v22 = vpop.f32.mrb[153].mxu1  ;;  %vm4052_vm3 = vcmp.lt.s32.totalorder %v7211_v62, 0  ;;  %v9342_v25 = vmov 0 }
 0x253   : > { %v5313_v10 = vadd.f32 %v2664_v5, %v6910_v40  ;;  %v2666_v49 = vpop.f32.mrb[57].mxu0  ;;  %v7209_v37 = vpop.f32.mrb[154].mxu1  ;;  %v3678_v5 = vshrl.u32 %v7181_v42, 4  ;;  %9338 = vst [vmem:[#allocation6_spill] sm:$0xff] %v7227_v29  ;;  %v7241_v42 = vadd.s32 24, %v7211_v62  ;;  %vm7243_vm4 = vmand %vm4052_vm3, %vm4005_vm2  ;;  %vm4003_vm5 = vcmp.ne.s32.totalorder %v7227_v29, 0 }
 0x254   : > { %v2667_v41 = vpop.f32.mrb[58].mxu0  ;;  %v2941_v22 = vpop.f32.mrb[155].mxu1  ;;  %v9343_v25 = vsel %vm7243_vm4, 4294967295, %v9342_v25  ;;  %vm4050_vm6 = vcmp.lt.s32.totalorder %v7227_v29, 0  ;;  %v7327_v62 = vadd.s32 192, %v7117_v26 }
 0x255   : > { %v5315_v50 = vadd.f32 %v2667_v41, %v6916_v27  ;;  %v7223_v3 = vadd.f32 %v5313_v10, %v7080_v15  ;;  %v2669_v40 = vpop.f32.mrb[59].mxu0  ;;  %v3624_v27 = vmul.u32 24, %v3623_v31  ;;  %v7236_v15 = vadd.s32 160, %v7117_v26  ;;  %9341 = vst [vmem:[#allocation8_spill] sm:$0xff] %v7241_v42  ;;  %9344 = vst [vmem:[#allocation13_spill] sm:$0xff] %v9343_v25 }
 0x256   : > { %v3679_v0 = vmul.u32 24, %v3678_v5  ;;  %v3657_v31 = vmul.u32 24, %v3656_v19  ;;  %v3689_v5 = vshrl.u32 %v7206_v58, 4  ;;  %vm7351_vm15 = vmand %vm4050_vm6, %vm4003_vm5 }
 0x257   : > { %9337 = vst [vmem:[#allocation23_spill] sm:$0xff] %v7223_v3  ;;  %v7231_v49 = vadd.f32 %v5315_v50, %v7083_v8  ;;  %v7248_v50 = vadd.s32 24, %v7227_v29  ;;  %v7251_v8 = vsub.s32 %v7143_v60, %v3646_v45  ;;  %v7259_v40 = vsub.s32 %v7150_v55, %v3624_v27 }
 0x258   : > { %v3722_v45 = vshrl.u32 %v7219_v59, 4  ;;  %v7280_v58 = vsub.s32 %v7162_v32, %v3679_v0 }
 0x259   : > { %9339 = vst [vmem:[#allocation7_spill] sm:$0xff] %v7231_v49  ;;  %v7238_v10 = vpop.f32.mrb[156].mxu1  ;;  %9345 = vst [vmem:[#allocation36_spill] sm:$0xff] %v7248_v50  ;;  %vm4006_vm7 = vcmp.ne.s32.totalorder %v7251_v8, 0  ;;  %vm4053_vm8 = vcmp.lt.s32.totalorder %v7251_v8, 0  ;;  %v7285_v59 = vadd.s32 24, %v7251_v8 }
 0x25a   : > { %9340 = vst [vmem:[#allocation12_spill] sm:$0xff] %v7238_v10  ;;  %v2672_v30 = vpop.f32.mrb[60].mxu0  ;;  %v2946_v61 = vpop.f32.mrb[157].mxu1  ;;  %9346 = vst [vmem:[#allocation37_spill] sm:$0xff] %v7251_v8  ;;  %vm4004_vm9 = vcmp.ne.s32.totalorder %v7259_v40, 0  ;;  %vm4051_vm10 = vcmp.lt.s32.totalorder %v7259_v40, 0 }
 0x25b   : > { %v5317_v41 = vadd.f32 %v2672_v30, %v6929_v1  ;;  %v2674_v22 = vpop.f32.mrb[61].mxu0  ;;  %v7254_v24 = vpop.f32.mrb[158].mxu1  ;;  %9348 = vst [vmem:[#allocation39_spill] sm:$0xff] %v7259_v40  ;;  %v3667_v61 = vshrl.u32 %v7215_v33, 4  ;;  %v7265_v1 = vmul.u32.u64.low 2863311531, %v7236_v15  ;;  %v7266_v19 = vmul.u32.u64.high 2863311531, %v7236_v15, %v7265_v1  ;;  %vm7367_vm0 = vmand %vm4053_vm8, %vm4006_vm7 }
 0x25c   : > { %9347 = vst [vmem:[#allocation38_spill] sm:$0xff] %v7254_v24  ;;  %v2675_v49 = vpop.f32.mrb[62].mxu0  ;;  %v2949_v60 = vpop.f32.mrb[159].mxu1  ;;  %v7269_v30 = vadd.s32 184, %v7117_v26  ;;  %9350 = vst [vmem:[#allocation41_spill] sm:$0xff] %v7280_v58  ;;  %v7299_v1 = vadd.s32 168, %v7117_v26 }
 0x25d   : > { %v7272_v22 = vadd.f32 %v5317_v41, %v7090_v63  ;;  %v5319_v55 = vadd.f32 %v2675_v49, %v6935_v11  ;;  %v2677_v27 = vpop.f32.mrb[63].mxu0  ;;  %9351 = vst [vmem:[#allocation42_spill] sm:$0xff] %v7285_v59  ;;  %v7288_v63 = vsub.s32 %v7169_v51, %v3657_v31  ;;  %v3690_v49 = vmul.u32 24, %v3689_v5  ;;  %vm7383_vm3 = vmand %vm4051_vm10, %vm4004_vm9 }
 0x25e   : > { %v3668_v41 = vmul.u32 24, %v3667_v61  ;;  %v3723_v60 = vmul.u32 24, %v3722_v45  ;;  %v7305_v51 = vadd.s32 24, %v7259_v40  ;;  %vm4009_vm11 = vcmp.ne.s32.totalorder %v7280_v58, 0 }
 0x25f   : > { %9349 = vst [vmem:[#allocation40_spill] sm:$0xff] %v7272_v22  ;;  %9352 = vst [vmem:[#allocation43_spill] sm:$0xff] %v7288_v63  ;;  %v7291_v11 = vadd.f32 %v5319_v55, %v7093_v18  ;;  %v7295_v32 = vmul.u32.u64.low 2863311531, %v7269_v30  ;;  %v7296_v0 = vmul.u32.u64.high 2863311531, %v7269_v30, %v7295_v32  ;;  %vm4056_vm12 = vcmp.lt.s32.totalorder %v7280_v58, 0 }
 0x260   : > { %9355 = vst [vmem:[#allocation46_spill] sm:$0xff] %v7305_v51  ;;  %v7310_v5 = vadd.s32 24, %v7280_v58  ;;  %vm4007_vm13 = vcmp.ne.s32.totalorder %v7288_v63, 0  ;;  %vm4054_vm14 = vcmp.lt.s32.totalorder %v7288_v63, 0  ;;  %v7315_v61 = vadd.s32 208, %v7117_v26  ;;  %vm7396_vm7 = vmand %vm4056_vm12, %vm4009_vm11 }
 0x261   : > { %9353 = vst [vmem:[#allocation44_spill] sm:$0xff] %v7291_v11  ;;  %v7301_v27 = vpop.f32.mrb[160].mxu1  ;;  %v7321_v33 = vsub.s32 %v7189_v9, %v3690_v49  ;;  %v7330_v11 = vsub.s32 %v7198_v4, %v3723_v60  ;;  %v3700_v3 = vshrl.u32 %v7266_v19, 4  ;;  %v9362_v4 = vmov 0  ;;  %vm7412_vm8 = vmand %vm4054_vm14, %vm4007_vm13 }
 0x262   : > { %9354 = vst [vmem:[#allocation45_spill] sm:$0xff] %v7301_v27  ;;  %v2680_v18 = vpop.f32.mrb[64].mxu0  ;;  %v2954_v31 = vpop.f32.mrb[161].mxu1  ;;  %9356 = vst [vmem:[#allocation47_spill] sm:$0xff] %v7310_v5  ;;  %v9363_v4 = vsel %vm7351_vm15, 4294967295, %v9362_v4  ;;  %v9380_v24 = vmov 0 }
 0x263   : > { %v5321_v45 = vadd.f32 %v2680_v18, %v6946_v13  ;;  %v2682_v55 = vpop.f32.mrb[65].mxu0  ;;  %v7318_v32 = vpop.f32.mrb[162].mxu1  ;;  %9358 = vst [vmem:[#allocation49_spill] sm:$0xff] %v7321_v33  ;;  %v7324_v31 = vsub.s32 %v7195_v2, %v3668_v41  ;;  %9360 = vst [vmem:[#allocation51_spill] sm:$0xff] %v7330_v11  ;;  %v7334_v13 = vmul.u32.u64.low 2863311531, %v7299_v1  ;;  %v7335_v18 = vmul.u32.u64.high 2863311531, %v7299_v1, %v7334_v13 }
 0x264   : > { %9357 = vst [vmem:[#allocation48_spill] sm:$0xff] %v7318_v32  ;;  %v2683_v42 = vpop.f32.mrb[66].mxu0  ;;  %v2957_v25 = vpop.f32.mrb[163].mxu1  ;;  %v7339_v2 = vadd.s32 8, %v7117_v26  ;;  %v7342_v41 = vadd.s32 216, %v7117_v26  ;;  %9364 = vst [vmem:[#allocation53_spill] sm:$0xff] %v9363_v4 }
 0x265   : > { %9359 = vst [vmem:[#allocation50_spill] sm:$0xff] %v7324_v31  ;;  %v5323_v9 = vadd.f32 %v2683_v42, %v6949_v6  ;;  %v2685_v49 = vpop.f32.mrb[67].mxu0  ;;  %v7345_v25 = vadd.f32 %v5321_v45, %v7100_v38  ;;  %v7356_v6 = vmul.u32.u64.low 2863311531, %v7117_v26  ;;  %v7357_v42 = vmul.u32.u64.high 2863311531, %v7117_v26, %v7356_v6 }
 0x266   : > { %v7360_v19 = vmul.u32.u64.low 2863311531, %v7315_v61  ;;  %v7361_v60 = vmul.u32.u64.high 2863311531, %v7315_v61, %v7360_v19  ;;  %v9365_v38 = vmov 0  ;;  %v7372_v45 = vadd.s32 24, %v7288_v63 }
 0x267   : > { %9361 = vst [vmem:[#allocation52_spill] sm:$0xff] %v7345_v25  ;;  %v9366_v38 = vsel %vm7367_vm0, 4294967295, %v9365_v38  ;;  %vm4010_vm1 = vcmp.ne.s32.totalorder %v7321_v33, 0  ;;  %vm4057_vm2 = vcmp.lt.s32.totalorder %v7321_v33, 0  ;;  %v7377_v55 = vadd.f32 %v5323_v9, %v7103_v48 }
 0x268   : > { %9367 = vst [vmem:[#allocation54_spill] sm:$0xff] %v9366_v38  ;;  %9368 = vst [vmem:[#allocation55_spill] sm:$0xff] %v7372_v45  ;;  %v9370_v13 = vmov 0  ;;  %vm4008_vm5 = vcmp.ne.s32.totalorder %v7324_v31, 0  ;;  %vm4055_vm6 = vcmp.lt.s32.totalorder %v7324_v31, 0  ;;  %v3701_v49 = vmul.u32 24, %v3700_v3 }
 0x269   : > { %9369 = vst [vmem:[#allocation56_spill] sm:$0xff] %v7377_v55  ;;  %v9371_v13 = vsel %vm7383_vm3, 4294967295, %v9370_v13  ;;  %v3733_v6 = vshrl.u32 %v7296_v0, 4  ;;  %v7390_v19 = vpop.f32.mrb[164].mxu1  ;;  %v9374_v48 = vmov 0  ;;  %vm4013_vm9 = vcmp.ne.s32.totalorder %v7330_v11, 0  ;;  %vm7431_vm11 = vmand %vm4057_vm2, %vm4010_vm1 }
 0x26a   : > { %9372 = vst [vmem:[#allocation57_spill] sm:$0xff] %v9371_v13  ;;  %9373 = vst [vmem:[#allocation58_spill] sm:$0xff] %v7390_v19  ;;  %v9375_v48 = vsel %vm7396_vm7, 4294967295, %v9374_v48  ;;  %v7401_v9 = vmul.u32.u64.low 2863311531, %v7327_v62  ;;  %v7402_v55 = vmul.u32.u64.high 2863311531, %v7327_v62, %v7401_v9  ;;  %v2688_v3 = vpop.f32.mrb[68].mxu0 }
 0x26b   : > { %9376 = vst [vmem:[#allocation59_spill] sm:$0xff] %v9375_v48  ;;  %v7405_v25 = vmul.u32.u64.low 2863311531, %v7339_v2  ;;  %v7406_v22 = vmul.u32.u64.high 2863311531, %v7339_v2, %v7405_v25  ;;  %v2962_v0 = vpop.f32.mrb[165].mxu1  ;;  %v9377_v19 = vmov 0  ;;  %vm4060_vm10 = vcmp.lt.s32.totalorder %v7330_v11, 0  ;;  %vm7449_vm12 = vmand %vm4055_vm6, %vm4008_vm5 }
 0x26c   : > { %v9378_v19 = vsel %vm7412_vm8, 4294967295, %v9377_v19  ;;  %v7419_v9 = vmul.u32.u64.low 2863311531, %v7342_v41  ;;  %v7420_v32 = vmul.u32.u64.high 2863311531, %v7342_v41, %v7419_v9  ;;  %v5325_v25 = vadd.f32 %v2688_v3, %v6956_v14  ;;  %v2690_v27 = vpop.f32.mrb[69].mxu0  ;;  %v2963_v0 = vpop.f32.mrb[166].mxu1  ;;  %vm7466_vm13 = vmand %vm4060_vm10, %vm4013_vm9 }
 0x26d   : > { %9379 = vst [vmem:[#allocation60_spill] sm:$0xff] %v9378_v19  ;;  %v9381_v24 = vsel %vm7431_vm11, 4294967295, %v9380_v24  ;;  %v7436_v10 = vadd.s32 24, %v7321_v33  ;;  %v7439_v14 = vadd.s32 24, %v7324_v31  ;;  %v2691_v27 = vpop.f32.mrb[70].mxu0  ;;  %v2964_v3 = vpop.f32.mrb[167].mxu1 }
 0x26e   : > { %9382 = vst [vmem:[#allocation61_spill] sm:$0xff] %v9381_v24  ;;  %v9385_v0 = vmov 0  ;;  %v7454_v17 = vadd.s32 24, %v7330_v11  ;;  %v3734_v29 = vmul.u32 24, %v3733_v6  ;;  %v3711_v50 = vshrl.u32 %v7335_v18, 4  ;;  %v2693_v4 = vpop.f32.mrb[71].mxu0 }
 0x26f   : > { %9383 = vst [vmem:[#allocation62_spill] sm:$0xff] %v7436_v10  ;;  %9384 = vst [vmem:[#allocation63_spill] sm:$0xff] %v7439_v14  ;;  %v9386_v0 = vsel %vm7449_vm12, 4294967295, %v9385_v0  ;;  %v5327_v3 = vadd.f32 %v2691_v27, %v6960_v57  ;;  %v9389_v8 = vmov 0  ;;  %v7471_v6 = vsub.s32 %v7236_v15, %v3701_v49 }
 0x270   : > { %9387 = vst [vmem:[#allocation64_spill] sm:$0xff] %v9386_v0  ;;  %9388 = vst [vmem:[#allocation65_spill] sm:$0xff] %v7454_v17  ;;  %v9390_v8 = vsel %vm7466_vm13, 4294967295, %v9389_v8  ;;  %v7474_v18 = vadd.f32 %v5325_v25, %v7112_v36  ;;  %v3480_v27 = vshrl.u32 %v7357_v42, 4  ;;  %v3766_v9 = vshrl.u32 %v7361_v60, 4 }
 0x271   : > { %9391 = vst [vmem:[#allocation66_spill] sm:$0xff] %v9390_v8  ;;  %9392 = vst [vmem:[#allocation67_spill] sm:$0xff] %v7471_v6  ;;  %v7495_v49 = vadd.s32 200, %v7117_v26  ;;  %v7498_v25 = vadd.f32 %v5327_v3, %v7115_v16  ;;  %v7505_v60 = vsub.s32 %v7269_v30, %v3734_v29  ;;  %v3712_v36 = vmul.u32 24, %v3711_v50  ;;  %v7510_v4 = vpop.f32.mrb[168].mxu1 }
 0x272   : > { %v7508_v57 = vadd.s32 16, %v7117_v26  ;;  %vm4011_vm14 = vcmp.ne.s32.totalorder %v7471_v6, 0  ;;  %vm4058_vm1 = vcmp.lt.s32.totalorder %v7471_v6, 0  ;;  %v3744_v16 = vshrl.u32 %v7402_v55, 4  ;;  %v2696_v15 = vpop.f32.mrb[72].mxu0  ;;  %v7516_v8 = vpop.f32.mrb[169].mxu1 }
 0x273   : > { %9393 = vst [vmem:[#allocation68_spill] sm:$0xff] %v7505_v60  ;;  %v3491_v3 = vshrl.u32 %v7406_v22, 4  ;;  %v3481_v42 = vmul.u32 24, %v3480_v27  ;;  %v3767_v29 = vmul.u32 24, %v3766_v9  ;;  %v3777_v50 = vshrl.u32 %v7420_v32, 4  ;;  %v2698_v17 = vpop.f32.mrb[73].mxu0  ;;  %vm7549_vm2 = vmand %vm4058_vm1, %vm4011_vm14 }
 0x274   : > { %v7520_v30 = vadd.s32 240, %v7117_v26  ;;  %v5329_v11 = vadd.f32 %v2696_v15, %v6968_v35  ;;  %v7523_v33 = vpop.f32.mrb[170].mxu1  ;;  %v7526_v10 = vmul.u32.u64.low 2863311531, %v7495_v49  ;;  %v7527_v55 = vmul.u32.u64.high 2863311531, %v7495_v49, %v7526_v10  ;;  %v2699_v24 = vpop.f32.mrb[74].mxu0 }
 0x275   : > { %v7530_v22 = vadd.s32 224, %v7117_v26  ;;  %v7532_v27 = vpop.f32.mrb[171].mxu1  ;;  %v7535_v32 = vadd.s32 24, %v7471_v6  ;;  %v7538_v9 = vsub.s32 %v7299_v1, %v3712_v36  ;;  %v5331_v15 = vadd.f32 %v2699_v24, %v6972_v56  ;;  %v2701_v58 = vpop.f32.mrb[75].mxu0 }
 0x276   : > { %v7541_v35 = vmul.u32.u64.low 2863311531, %v7508_v57  ;;  %v7542_v17 = vmul.u32.u64.high 2863311531, %v7508_v57, %v7541_v35  ;;  %v9396_v10 = vmov 0  ;;  %v3745_v5 = vmul.u32 24, %v3744_v16 }
 0x277   : > { %9394 = vst [vmem:[#allocation69_spill] sm:$0xff] %v7535_v32  ;;  %9395 = vst [vmem:[#allocation70_spill] sm:$0xff] %v7538_v9  ;;  %v9397_v10 = vsel %vm7549_vm2, 4294967295, %v9396_v10  ;;  %v3492_v48 = vmul.u32 24, %v3491_v3  ;;  %v7554_v1 = vadd.f32 %v5329_v11, %v7127_v53  ;;  %v7557_v36 = vsub.s32 %v7117_v26, %v3481_v42 }
 0x278   : > { %9398 = vst [vmem:[#allocation71_spill] sm:$0xff] %v9397_v10  ;;  %v3778_v35 = vmul.u32 24, %v3777_v50  ;;  %v7560_v56 = vmul.u32.u64.low 2863311531, %v7520_v30  ;;  %v7561_v24 = vmul.u32.u64.high 2863311531, %v7520_v30, %v7560_v56  ;;  %v7564_v58 = vsub.s32 %v7315_v61, %v3767_v29 }
 0x279   : > { %v7567_v31 = vmul.u32.u64.low 2863311531, %v7530_v22  ;;  %v7568_v14 = vmul.u32.u64.high 2863311531, %v7530_v22, %v7567_v31  ;;  %v7571_v16 = vadd.f32 %v5331_v15, %v7133_v34  ;;  %vm4014_vm5 = vcmp.ne.s32.totalorder %v7505_v60, 0  ;;  %v7582_v61 = vpop.f32.mrb[172].mxu1 }
 0x27a   : > { %9399 = vst [vmem:[#allocation72_spill] sm:$0xff] %v7564_v58  ;;  %vm4061_vm6 = vcmp.lt.s32.totalorder %v7505_v60, 0  ;;  %v7580_v11 = vadd.s32 24, %v7505_v60  ;;  %vm4012_vm9 = vcmp.ne.s32.totalorder %v7538_v9, 0  ;;  %v7587_v34 = vadd.s32 24, %v7538_v9  ;;  %v2704_v42 = vpop.f32.mrb[76].mxu0 }
 0x27b   : > { %v7590_v31 = vsub.s32 %v7327_v62, %v3745_v5  ;;  %v7592_v3 = vpop.f32.mrb[173].mxu1  ;;  %v7597_v29 = vsub.s32 %v7339_v2, %v3492_v48  ;;  %v7600_v50 = vsub.s32 %v7342_v41, %v3778_v35  ;;  %v5333_v15 = vadd.f32 %v2704_v42, %v6984_v12  ;;  %v2706_v56 = vpop.f32.mrb[77].mxu0  ;;  %vm7616_vm1 = vmand %vm4061_vm6, %vm4014_vm5 }
 0x27c   : > { %9400 = vst [vmem:[#allocation73_spill] sm:$0xff] %v7580_v11  ;;  %9401 = vst [vmem:[#allocation74_spill] sm:$0xff] %v7587_v34  ;;  %v7603_v53 = vpop.f32.mrb[174].mxu1  ;;  %v7606_v62 = vadd.s32 24, %v7557_v36  ;;  %v3755_v5 = vshrl.u32 %v7527_v55, 4  ;;  %v2707_v6 = vpop.f32.mrb[78].mxu0 }
 0x27d   : > { %9402 = vst [vmem:[#allocation75_spill] sm:$0xff] %v7590_v31  ;;  %9403 = vst [vmem:[#allocation76_spill] sm:$0xff] %v7600_v50  ;;  %v7610_v32 = vpop.f32.mrb[175].mxu1  ;;  %v9404_v2 = vmov 0  ;;  %v7622_v12 = vadd.s32 24, %v7564_v58  ;;  %v3502_v41 = vshrl.u32 %v7542_v17, 4  ;;  %v5335_v55 = vadd.f32 %v2707_v6, %v6987_v43 }
 0x27e   : > { %v9405_v2 = vsel %vm7616_vm1, 4294967295, %v9404_v2  ;;  %v7626_v48 = vadd.s32 24, %v7117_v26  ;;  %v2709_v35 = vpop.f32.mrb[79].mxu0  ;;  %vm9408_vm5 = vcmp.lt.s32.totalorder %v7538_v9, 0  ;;  %v9409_v42 = vmov 0 }
 0x27f   : > { %9406 = vst [vmem:[#allocation77_spill] sm:$0xff] %v9405_v2  ;;  %9407 = vst [vmem:[#allocation78_spill] sm:$0xff] %v7622_v12  ;;  %v7640_v17 = vadd.f32 %v5333_v15, %v7155_v23  ;;  %vm9412_vm13 = vcmp.ne.s32.totalorder %v7557_v36, 0  ;;  %vm9413_vm2 = vcmp.lt.s32.totalorder %v7557_v36, 0  ;;  %v3810_v6 = vshrl.u32 %v7561_v24, 4 }
 0x280   : > { %vm7633_vm6 = vmand %vm9408_vm5, %vm4012_vm9  ;;  %vm3992_vm9 = vcmp.ne.s32.totalorder %v7597_v29, 0  ;;  %vm4039_vm5 = vcmp.lt.s32.totalorder %v7597_v29, 0  ;;  %v3756_v23 = vmul.u32 24, %v3755_v5  ;;  %v3788_v15 = vshrl.u32 %v7568_v14, 4 }
 0x281   : > { %v9410_v42 = vsel %vm7633_vm6, 4294967295, %v9409_v42  ;;  %vm7646_vm11 = vmand %vm9413_vm2, %vm9412_vm13  ;;  %v7657_v56 = vadd.f32 %v5335_v55, %v7172_v54  ;;  %vm9416_vm13 = vcmp.ne.s32.totalorder %v7564_v58, 0  ;;  %vm9417_vm2 = vcmp.lt.s32.totalorder %v7564_v58, 0  ;;  %v7674_v14 = vpop.f32.mrb[176].mxu1 }
 0x282   : > { %9411 = vst [vmem:[#allocation79_spill] sm:$0xff] %v9410_v42  ;;  %vm7663_vm14 = vmand %vm9417_vm2, %vm9416_vm13  ;;  %v9418_v35 = vmov 0  ;;  %v3503_v10 = vmul.u32 24, %v3502_v41  ;;  %v7668_v0 = vmul.u32.u64.low 2863311531, %v7626_v48  ;;  %v7669_v24 = vmul.u32.u64.high 2863311531, %v7626_v48, %v7668_v0  ;;  %v2712_v60 = vpop.f32.mrb[80].mxu0 }
 0x283   : > { %v9419_v35 = vsel %vm7663_vm14, 4294967295, %v9418_v35  ;;  %v7672_v5 = vadd.s32 248, %v7117_v26  ;;  %9421 = vst [vmem:[#allocation81_spill] sm:$0xff] %v7674_v14  ;;  %vm9422_vm13 = vcmp.ne.s32.totalorder %v7590_v31, 0  ;;  %vm9423_vm2 = vcmp.lt.s32.totalorder %v7590_v31, 0  ;;  %v7699_v11 = vpop.f32.mrb[177].mxu1  ;;  %vm7708_vm7 = vmand %vm4039_vm5, %vm3992_vm9 }
 0x284   : > { %9420 = vst [vmem:[#allocation80_spill] sm:$0xff] %v9419_v35  ;;  %vm7692_vm10 = vmand %vm9423_vm2, %vm9422_vm13  ;;  %v9424_v41 = vmov 0  ;;  %v7697_v54 = vadd.s32 232, %v7117_v26  ;;  %v7702_v55 = vadd.s32 24, %v7590_v31  ;;  %v7713_v2 = vadd.s32 24, %v7597_v29  ;;  %v2714_v63 = vpop.f32.mrb[81].mxu0 }
 0x285   : > { %v9425_v41 = vsel %vm7692_vm10, 4294967295, %v9424_v41  ;;  %9427 = vst [vmem:[#allocation83_spill] sm:$0xff] %v7699_v11  ;;  %v7716_v9 = vadd.s32 24, %v7600_v50  ;;  %v3811_v34 = vmul.u32 24, %v3810_v6  ;;  %v5337_v42 = vadd.f32 %v2712_v60, %v6994_v52  ;;  %v7719_v45 = vpop.f32.mrb[178].mxu1  ;;  %v2715_v52 = vpop.f32.mrb[82].mxu0 }
 0x286   : > { %9426 = vst [vmem:[#allocation82_spill] sm:$0xff] %v9425_v41  ;;  %9428 = vst [vmem:[#allocation84_spill] sm:$0xff] %v7702_v55  ;;  %vm9433_vm9 = vcmp.ne.s32.totalorder %v7600_v50, 0  ;;  %vm9434_vm5 = vcmp.lt.s32.totalorder %v7600_v50, 0  ;;  %v9435_v14 = vmov 0  ;;  %v3789_v59 = vmul.u32 24, %v3788_v15 }
 0x287   : > { %9431 = vst [vmem:[#allocation85_spill] sm:$0xff] %v7716_v9  ;;  %9432 = vst [vmem:[#allocation86_spill] sm:$0xff] %v7719_v45  ;;  %v7734_v6 = vadd.s32 32, %v7117_v26  ;;  %v7736_v63 = vpop.f32.mrb[179].mxu1  ;;  %v7739_v60 = vsub.s32 %v7495_v49, %v3756_v23  ;;  %v7742_v19 = vsub.s32 %v7508_v57, %v3503_v10  ;;  %v5339_v35 = vadd.f32 %v2715_v52, %v6997_v28  ;;  %v2717_v15 = vpop.f32.mrb[83].mxu0  ;;  %v9462_v55 = vld [vmem:[#allocation38_spill] sm:$0xff] }
 0x288   : > { %vm7729_vm13 = vmand %vm9434_vm5, %vm9433_vm9  ;;  %9438 = vst [vmem:[#allocation88_spill] sm:$0xff] %v7736_v63  ;;  %v7745_v58 = vmul.u32.u64.low 2863311531, %v7672_v5  ;;  %v7746_v12 = vmul.u32.u64.high 2863311531, %v7672_v5, %v7745_v58  ;;  %v7750_v45 = vmul.u32.u64.low 2863311531, %v7697_v54  ;;  %v7751_v38 = vmul.u32.u64.high 2863311531, %v7697_v54, %v7750_v45 }
 0x289   : > { %v9436_v14 = vsel %vm7729_vm13, 4294967295, %v9435_v14  ;;  %9439 = vst [vmem:[#allocation89_spill] sm:$0xff] %v7739_v60  ;;  %v7754_v40 = vadd.f32 %v5337_v42, %v7200_v20  ;;  %v7769_v45 = vsub.s32 %v7520_v30, %v3811_v34  ;;  %v7772_v20 = vsub.s32 %v7530_v22, %v3789_v59  ;;  %v5203_v34 = vpop.f32.mrb[180].mxu1 }
 0x28a   : > { %9437 = vst [vmem:[#allocation87_spill] sm:$0xff] %v9436_v14  ;;  %v7775_v10 = vadd.s32 272, %v7117_v26  ;;  %v7778_v58 = vadd.s32 40, %v7117_v26  ;;  %v7781_v42 = vadd.f32 %v5339_v35, %v7209_v37  ;;  %v3513_v23 = vshrl.u32 %v7669_v24, 4  ;;  %v2720_v37 = vpop.f32.mrb[84].mxu0  ;;  %v3048_v35 = vpop.f32.mrb[181].mxu1 }
 0x28b   : > { %9440 = vst [vmem:[#allocation90_spill] sm:$0xff] %v7769_v45  ;;  %9441 = vst [vmem:[#allocation91_spill] sm:$0xff] %v7772_v20  ;;  %v7786_v52 = vmul.u32.u64.low 2863311531, %v7734_v6  ;;  %v7787_v30 = vmul.u32.u64.high 2863311531, %v7734_v6, %v7786_v52  ;;  %vm4063_vm9 = vcmp.lt.s32.totalorder %v7739_v60, 0  ;;  %v7792_v59 = vadd.s32 24, %v7739_v60 }
 0x28c   : > { %9442 = vst [vmem:[#allocation92_spill] sm:$0xff] %v7781_v42  ;;  %vm3993_vm5 = vcmp.ne.s32.totalorder %v7742_v19, 0  ;;  %v7797_v22 = vadd.f32 %v7076_v39, %v5203_v34  ;;  %v7800_v24 = vadd.s32 24, %v7742_v19  ;;  %v5341_v15 = vadd.f32 %v2720_v37, %v7005_v7  ;;  %v2722_v52 = vpop.f32.mrb[85].mxu0  ;;  %v5204_v57 = vpop.f32.mrb[182].mxu1  ;;  %v9474_v42 = vld [vmem:[#allocation20_spill] sm:$0xff] }
 0x28d   : > { %9443 = vst [vmem:[#allocation93_spill] sm:$0xff] %v7792_v59  ;;  %v7806_v28 = vadd.f32 %v7066_v46, %v3048_v35  ;;  %v7809_v49 = vadd.s32 24, %v7769_v45  ;;  %v2723_v39 = vpop.f32.mrb[86].mxu0  ;;  %v7813_v34 = vadd.f32 %v7078_v21, %v5204_v57  ;;  %v3051_v50 = vpop.f32.mrb[183].mxu1  ;;  %v3514_v9 = vmul.u32 24, %v3513_v23 }
 0x28e   : > { %9444 = vst [vmem:[#allocation94_spill] sm:$0xff] %v7797_v22  ;;  %v7817_v7 = vadd.s32 48, %v7117_v26  ;;  %v5343_v46 = vadd.f32 %v2723_v39, %v7008_v47  ;;  %v2725_v37 = vpop.f32.mrb[87].mxu0  ;;  %v7826_v35 = vadd.f32 %v7068_v44, %v3051_v50  ;;  %vm9449_vm13 = vcmp.ne.s32.totalorder %v7739_v60, 0  ;;  %v9456_v39 = vld [vmem:[#allocation12_spill] sm:$0xff] }
 0x28f   : > { %9445 = vst [vmem:[#allocation95_spill] sm:$0xff] %v7806_v28  ;;  %9446 = vst [vmem:[#allocation96_spill] sm:$0xff] %v7809_v49  ;;  %v9450_v21 = vmov 0  ;;  %v3821_v47 = vshrl.u32 %v7746_v12, 4  ;;  %v3799_v57 = vshrl.u32 %v7751_v38, 4  ;;  %v5042_v23 = vpack.c.bf16 %v7813_v34, %v7797_v22  ;;  %v9481_v49 = vld [vmem:[#allocation45_spill] sm:$0xff] }
 0x290   : > { %9447 = vst [vmem:[#allocation97_spill] sm:$0xff] %v7813_v34  ;;  %9448 = vst [vmem:[#allocation98_spill] sm:$0xff] %v7826_v35  ;;  %vm9453_vm14 = vcmp.lt.s32.totalorder %v7742_v19, 0  ;;  %v7849_v50 = vmul.u32.u64.low 2863311531, %v7778_v58  ;;  %v7850_v52 = vmul.u32.u64.high 2863311531, %v7778_v58, %v7849_v50  ;;  %v7853_v37 = vadd.f32 %v5341_v15, %v9456_v39  ;;  %v9469_v15 = vld [vmem:[#allocation17_spill] sm:$0xff] }
 0x291   : > { %vm7832_vm2 = vmand %vm4063_vm9, %vm9449_vm13  ;;  %v5037_v38 = vpack.c.bf16 %v7826_v35, %v7806_v28  ;;  %vm9457_vm13 = vcmp.ne.s32.totalorder %v7769_v45, 0  ;;  %vm9458_vm9 = vcmp.lt.s32.totalorder %v7769_v45, 0  ;;  %v9459_v12 = vmov 0  ;;  %5125 = vst [vmem:[%s7823_s27 + $0x38] sm:$0xff] %v5042_v23   ;;  %v5207_v22 = vpop.f32.mrb[184].mxu1  ;;  %v9472_v28 = vld [vmem:[#allocation16_spill] sm:$0xff] }
 0x292   : > { %v9451_v21 = vsel %vm7832_vm2, 4294967295, %v9450_v21  ;;  %vm7844_vm10 = vmand %vm9453_vm14, %vm3993_vm5  ;;  %v7866_v14 = vmul.u32.u64.low 2863311531, %v7775_v10  ;;  %v7867_v31 = vmul.u32.u64.high 2863311531, %v7775_v10, %v7866_v14  ;;  %v7870_v50 = vadd.f32 %v5343_v46, %v9462_v55 }
 0x293   : > { %9452 = vst [vmem:[#allocation99_spill] sm:$0xff] %v9451_v21  ;;  %vm7861_vm1 = vmand %vm9458_vm9, %vm9457_vm13  ;;  %v7878_v39 = vadd.s32 24, %v7772_v20  ;;  %v3524_v41 = vshrl.u32 %v7787_v30, 4  ;;  %v7882_v34 = vadd.s32 256, %v7117_v26  ;;  %vm9464_vm14 = vcmp.ne.s32.totalorder %v7772_v20, 0  ;;  %v3064_v14 = vpop.f32.mrb[185].mxu1 }
 0x294   : > { %v9460_v12 = vsel %vm7861_vm1, 4294967295, %v9459_v12  ;;  %5124 = vst [vmem:[%s7823_s27 + $0x30] sm:$0xff] %v5037_v38   ;;  %vm9465_vm5 = vcmp.lt.s32.totalorder %v7772_v20, 0  ;;  %v9466_v55 = vmov 0  ;;  %v7898_v30 = vsub.s32 %v7626_v48, %v3514_v9  ;;  %v2728_v38 = vpop.f32.mrb[88].mxu0  ;;  %v9471_v9 = vld [vmem:[#allocation14_spill] sm:$0xff] }
 0x295   : > { %9461 = vst [vmem:[#allocation12_spill] sm:$0xff] %v9460_v12  ;;  %9463 = vst [vmem:[#allocation38_spill] sm:$0xff] %v7878_v39  ;;  %v3822_v46 = vmul.u32 24, %v3821_v47  ;;  %v7901_v23 = vadd.s32 280, %v7117_v26  ;;  %v7904_v60 = vadd.f32 %v9469_v15, %v5207_v22  ;;  %v3800_v21 = vmul.u32 24, %v3799_v57  ;;  %v2730_v47 = vpop.f32.mrb[89].mxu0 }
 0x296   : > { %vm7893_vm13 = vmand %vm9465_vm5, %vm9464_vm14  ;;  %v7911_v35 = vadd.s32 264, %v7117_v26  ;;  %v5345_v48 = vadd.f32 %v2728_v38, %v9471_v9  ;;  %v7915_v51 = vadd.f32 %v9472_v28, %v3064_v14  ;;  %v5208_v13 = vpop.f32.mrb[186].mxu1  ;;  %v2731_v63 = vpop.f32.mrb[90].mxu0  ;;  %v3525_v38 = vmul.u32 24, %v3524_v41  ;;  %v9476_v14 = vld [vmem:[#allocation9_spill] sm:$0xff] }
 0x297   : > { %v9467_v55 = vsel %vm7893_vm13, 4294967295, %v9466_v55  ;;  %9470 = vst [vmem:[#allocation17_spill] sm:$0xff] %v7904_v60  ;;  %v7918_v22 = vmul.u32.u64.low 2863311531, %v7817_v7  ;;  %v7919_v15 = vmul.u32.u64.high 2863311531, %v7817_v7, %v7918_v22  ;;  %v7922_v11 = vadd.f32 %v9474_v42, %v5208_v13  ;;  %v3067_v59 = vpop.f32.mrb[187].mxu1  ;;  %v2733_v47 = vpop.f32.mrb[91].mxu0 }
 0x298   : > { %9468 = vst [vmem:[#allocation100_spill] sm:$0xff] %v9467_v55  ;;  %9473 = vst [vmem:[#allocation14_spill] sm:$0xff] %v7915_v51  ;;  %v7929_v28 = vadd.s32 56, %v7117_v26  ;;  %v5347_v9 = vadd.f32 %v2731_v63, %v9476_v14  ;;  %v9477_v22 = vld [vmem:[#allocation11_spill] sm:$0xff]  ;;  %v7937_v13 = vsub.s32 %v7672_v5, %v3822_v46  ;;  %v7942_v41 = vsub.s32 %v7697_v54, %v3800_v21  ;;  %v9487_v12 = vld [vmem:[#allocation21_spill] sm:$0xff] }
 0x299   : > { %9475 = vst [vmem:[#allocation16_spill] sm:$0xff] %v7922_v11  ;;  %v7933_v45 = vadd.f32 %v9477_v22, %v3067_v59  ;;  %v5052_v42 = vpack.c.bf16 %v7922_v11, %v7904_v60  ;;  %v3535_v57 = vshrl.u32 %v7850_v52, 4  ;;  %v7946_v63 = vadd.f32 %v5345_v48, %v9481_v49  ;;  %v9482_v52 = vld [vmem:[#allocation48_spill] sm:$0xff]  ;;  %v5211_v48 = vpop.f32.mrb[188].mxu1 }
 0x29a   : > { %9479 = vst [vmem:[#allocation9_spill] sm:$0xff] %v7937_v13  ;;  %9480 = vst [vmem:[#allocation11_spill] sm:$0xff] %v7942_v41  ;;  %v3854_v14 = vshrl.u32 %v7867_v31, 4  ;;  %v7952_v47 = vmul.u32.u64.low 2863311531, %v7882_v34  ;;  %v7953_v5 = vmul.u32.u64.high 2863311531, %v7882_v34, %v7952_v47  ;;  %v7957_v46 = vsub.s32 %v7734_v6, %v3525_v38  ;;  %v2736_v6 = vpop.f32.mrb[96].mxu0 }
 0x29b   : > { %9478 = vst [vmem:[#allocation20_spill] sm:$0xff] %v7933_v45  ;;  %v5047_v59 = vpack.c.bf16 %v7933_v45, %v7915_v51  ;;  %5127 = vst [vmem:[%s7823_s27 + $0x48] sm:$0xff] %v5052_v42   ;;  %v7960_v54 = vmul.u32.u64.low 2863311531, %v7929_v28  ;;  %v7961_v21 = vmul.u32.u64.high 2863311531, %v7929_v28, %v7960_v54  ;;  %v7964_v49 = vadd.f32 %v5347_v9, %v9482_v52  ;;  %v9483_v38 = vld [vmem:[#allocation18_spill] sm:$0xff]  ;;  %v3080_v42 = vpop.f32.mrb[189].mxu1 }
 0x29c   : > { %vm4041_vm14 = vcmp.lt.s32.totalorder %v7898_v30, 0  ;;  %v7969_v31 = vadd.s32 24, %v7898_v30  ;;  %v7974_v22 = vadd.f32 %v9483_v38, %v5211_v48  ;;  %v7977_v47 = vadd.s32 24, %v7937_v13  ;;  %v2738_v52 = vpop.f32.mrb[97].mxu0  ;;  %v5212_v39 = vpop.f32.mrb[190].mxu1  ;;  %v9489_v38 = vld [vmem:[#allocation19_spill] sm:$0xff] }
 0x29d   : > { %5126 = vst [vmem:[%s7823_s27 + $0x40] sm:$0xff] %v5047_v59   ;;  %v3536_v9 = vmul.u32 24, %v3535_v57  ;;  %v9486_v59 = vld [vmem:[#allocation15_spill] sm:$0xff]  ;;  %v7982_v20 = vadd.f32 %v9487_v12, %v3080_v42  ;;  %v3546_v55 = vshrl.u32 %v7919_v15, 4  ;;  %v2739_v48 = vpop.f32.mrb[98].mxu0  ;;  %v7987_v11 = vadd.f32 %v9489_v38, %v5212_v39  ;;  %v3083_v60 = vpop.f32.mrb[191].mxu1 }
 0x29e   : > { %9484 = vst [vmem:[#allocation45_spill] sm:$0xff] %v7974_v22  ;;  %9485 = vst [vmem:[#allocation48_spill] sm:$0xff] %v7977_v47  ;;  %v2737_v54 = vadd.f32 %v2736_v6, %v9486_v59  ;;  %v9491_v57 = vsel %vm7646_vm11, %v7606_v62, %v7557_v36  ;;  %vm9494_vm5 = vcmp.ne.s32.totalorder %v7898_v30, 0  ;;  %vm3995_vm13 = vcmp.ne.s32.totalorder %v7957_v46, 0  ;;  %v2740_v39 = vpop.f32.mrb[99].mxu0  ;;  %v9497_v15 = vld [vmem:[#allocation22_spill] sm:$0xff] }
 0x29f   : > { %9488 = vst [vmem:[#allocation18_spill] sm:$0xff] %v7982_v20  ;;  %9490 = vst [vmem:[#allocation15_spill] sm:$0xff] %v7987_v11  ;;  %vm7994_vm1 = vcmp.lt.s32.totalorder %v9491_v57, 16  ;;  %vm4042_vm2 = vcmp.lt.s32.totalorder %v7957_v46, 0  ;;  %v3855_v43 = vmul.u32 24, %v3854_v14  ;;  %v8009_v36 = vadd.f32 %v9497_v15, %v3083_v60  ;;  %v9505_v14 = vld [vmem:[#allocation58_spill] sm:$0xff] }
 0x2a0   : > { %vm8002_vm9 = vmand %vm4041_vm14, %vm9494_vm5  ;;  %vm9499_vm11 = vcmp.ne.s32.totalorder %v7937_v13, 0  ;;  %vm9500_vm6 = vcmp.lt.s32.totalorder %v7937_v13, 0  ;;  %v9501_v62 = vmov 0  ;;  %v8020_v42 = vadd.s32 24, %v7942_v41  ;;  %v9517_v13 = vld [vmem:[#allocation3_spill] sm:$0xff] }
 0x2a1   : > { %9498 = vst [vmem:[#allocation21_spill] sm:$0xff] %v8009_v36  ;;  %vm8015_vm12 = vmand %vm9500_vm6, %vm9499_vm11  ;;  %v8023_v59 = vadd.s32 64, %v7117_v26  ;;  %v8026_v52 = vadd.f32 %v9505_v14, %v2737_v54  ;;  %v5062_v60 = vpack.c.bf16 %v7987_v11, %v7974_v22  ;;  %v9506_v48 = vsel %vm7708_vm7, %v7713_v2, %v7597_v29  ;;  %v9522_v11 = vld [vmem:[#allocation4_spill] sm:$0xff]  ;;  %v9537_v38 = vld [vmem:[#allocation23_spill] sm:$0xff] }
 0x2a2   : > { %v9502_v62 = vsel %vm8015_vm12, 4294967295, %v9501_v62  ;;  %9504 = vst [vmem:[#allocation22_spill] sm:$0xff] %v8020_v42  ;;  %vm8035_vm6 = vcmp.lt.s32.totalorder %v9506_v48, 16  ;;  %vm9509_vm14 = vcmp.ne.s32.totalorder %v7942_v41, 0  ;;  %vm9510_vm5 = vcmp.lt.s32.totalorder %v7942_v41, 0  ;;  %vm8066_vm7 = vmand %vm4042_vm2, %vm3995_vm13  ;;  %v5215_v48 = vpop.f32.mrb[192].mxu1 }
 0x2a3   : > { %9503 = vst [vmem:[#allocation19_spill] sm:$0xff] %v9502_v62  ;;  %vm8043_vm11 = vmand %vm9510_vm5, %vm9509_vm14  ;;  %v9511_v54 = vmov 0  ;;  %v8048_v57 = vadd.s32 24, %v7957_v46  ;;  %v8051_v0 = vsub.s32 %v7778_v58, %v3536_v9  ;;  %v8054_v29 = vadd.s32 304, %v7117_v26  ;;  %v3096_v47 = vpop.f32.mrb[193].mxu1  ;;  %v9520_v41 = vld [vmem:[#allocation10_spill] sm:$0xff] }
 0x2a4   : > { %v9512_v54 = vsel %vm8043_vm11, 4294967295, %v9511_v54  ;;  %v5057_v2 = vpack.c.bf16 %v8009_v36, %v7982_v20  ;;  %v4182_v39 = vsel %vm8002_vm9, %v7969_v31, %v7898_v30  ;;  %v3547_v58 = vmul.u32 24, %v3546_v55  ;;  %5129 = vst [vmem:[%s7823_s27 + $0x58] sm:$0xff] %v5062_v60   ;;  %v2776_v30 = vpop.f32.mrb[0].mxu0 }
 0x2a5   : > { %9513 = vst [vmem:[#allocation58_spill] sm:$0xff] %v9512_v54  ;;  %9514 = vst [vmem:[#allocation101_spill] sm:$0xff] %v8054_v29  ;;  %v8071_v9 = vadd.s32 288, %v7117_v26  ;;  %v3557_v31 = vshrl.u32 %v7961_v21, 4  ;;  %v8081_v12 = vadd.s32 72, %v7117_v26  ;;  %v8089_v60 = vsub.s32 %v7775_v10, %v3855_v43  ;;  %v9519_v10 = vld [vmem:[#allocation24_spill] sm:$0xff] }
 0x2a6   : > { %5128 = vst [vmem:[%s7823_s27 + $0x50] sm:$0xff] %v5057_v2   ;;  %v8092_v62 = vmul.u32.u64.low 2863311531, %v8023_v59  ;;  %v8093_v14 = vmul.u32.u64.high 2863311531, %v8023_v59, %v8092_v62  ;;  %v8096_v21 = vadd.f32 %v9517_v13, %v5215_v48  ;;  %vm3996_vm2 = vcmp.ne.s32.totalorder %v8051_v0, 0  ;;  %v2778_v55 = vpop.f32.mrb[1].mxu0 }
 0x2a7   : > { %vm4043_vm13 = vcmp.lt.s32.totalorder %v8051_v0, 0  ;;  %v5269_v43 = vadd.f32 %v2776_v30, %v9519_v10  ;;  %v8106_v42 = vadd.f32 %v9520_v41, %v3096_v47  ;;  %v5216_v62 = vpop.f32.mrb[194].mxu1  ;;  %v8109_v13 = vadd.s32 24, %v8051_v0  ;;  %v2779_v54 = vpop.f32.mrb[2].mxu0 }
 0x2a8   : > { %9518 = vst [vmem:[#allocation3_spill] sm:$0xff] %v8096_v21  ;;  %v8112_v48 = vsub.s32 %v7817_v7, %v3547_v58  ;;  %v8115_v2 = vadd.f32 %v9522_v11, %v5216_v62  ;;  %v3099_v22 = vpop.f32.mrb[195].mxu1  ;;  %v9524_v30 = vsel %vm7844_vm10, %v7800_v24, %v7742_v19  ;;  %v3558_v47 = vmul.u32 24, %v3557_v31  ;;  %v9527_v11 = vld [vmem:[#allocation25_spill] sm:$0xff]  ;;  %v2781_v62 = vpop.f32.mrb[3].mxu0  ;;  %vm8136_vm10 = vmand %vm4043_vm13, %vm3996_vm2 }
 0x2a9   : > { %9521 = vst [vmem:[#allocation24_spill] sm:$0xff] %v8106_v42  ;;  %vm8122_vm9 = vcmp.lt.s32.totalorder %v9524_v30, 16  ;;  %v8127_v55 = vmul.u32.u64.low 2863311531, %v8081_v12  ;;  %v8128_v7 = vmul.u32.u64.high 2863311531, %v8081_v12, %v8127_v55  ;;  %v3001_v58 = vadd.f32 %v5269_v43, %v7516_v8  ;;  %v9530_v8 = vld [vmem:[#allocation2_spill] sm:$0xff] }
 0x2aa   : > { %9523 = vst [vmem:[#allocation10_spill] sm:$0xff] %v8115_v2  ;;  %v5270_v10 = vadd.f32 %v2779_v54, %v9527_v11  ;;  %v8141_v24 = vmul.u32.u64.low 2863311531, %v7901_v23  ;;  %v8142_v44 = vmul.u32.u64.high 2863311531, %v7901_v23, %v8141_v24  ;;  %v5072_v31 = vpack.c.bf16 %v8115_v2, %v8096_v21 }
 0x2ab   : > { %v8148_v43 = vadd.f32 %v9530_v8, %v3099_v22  ;;  %vm8150_vm14 = vcmp.lt.s32.totalorder %v4182_v39, 16  ;;  %v8155_v30 = vmul.u32.u64.low 2863311531, %v7911_v35  ;;  %v8156_v55 = vmul.u32.u64.high 2863311531, %v7911_v35, %v8155_v30  ;;  %v5219_v8 = vpop.f32.mrb[196].mxu1  ;;  %v9534_v39 = vld [vmem:[#allocation40_spill] sm:$0xff] }
 0x2ac   : > { %v4461_v11 = vsel %vm7994_vm1, %v3001_v58, 0.0  ;;  %v3004_v62 = vadd.f32 %v5270_v10, %v7532_v27  ;;  %v8163_v24 = vmul.u32.u64.low 2863311531, %v8054_v29  ;;  %v8164_v2 = vmul.u32.u64.high 2863311531, %v8054_v29, %v8163_v24  ;;  %5131 = vst [vmem:[%s7823_s27 + $0x68] sm:$0xff] %v5072_v31   ;;  %v3112_v36 = vpop.f32.mrb[197].mxu1 }
 0x2ad   : > { %9531 = vst [vmem:[#allocation4_spill] sm:$0xff] %v8148_v43  ;;  %v5067_v22 = vpack.c.bf16 %v8148_v43, %v8106_v42  ;;  %vm3997_vm1 = vcmp.ne.s32.totalorder %v8112_v48, 0  ;;  %v8176_v6 = vsub.s32 %v7929_v28, %v3558_v47  ;;  %vm4044_vm5 = vcmp.lt.s32.totalorder %v8112_v48, 0  ;;  %v2784_v43 = vpop.f32.mrb[4].mxu0  ;;  %v9536_v28 = vld [vmem:[#allocation26_spill] sm:$0xff]  ;;  %v5220_v20 = vpop.f32.mrb[198].mxu1 }
 0x2ae   : > { %v5007_v27 = vpack.c.bf16 %v3004_v62, %v3001_v58  ;;  %v4462_v10 = vsel %vm8035_vm6, %v3004_v62, 0.0  ;;  %v3568_v31 = vshrl.u32 %v8093_v14, 4  ;;  %v4561_v30 = vmul.f32 %v4461_v11, %v4461_v11  ;;  %v2786_v58 = vpop.f32.mrb[5].mxu0  ;;  %vm8240_vm13 = vmand %vm4044_vm5, %vm3997_vm1 }
 0x2af   : > { %v4508_v24 = vadd.f32 %v4462_v10, %v4461_v11  ;;  %v4562_v21 = vmul.f32 %v4462_v10, %v4462_v10  ;;  %5130 = vst [vmem:[%s7823_s27 + $0x60] sm:$0xff] %v5067_v22   ;;  %v8184_v42 = vadd.f32 %v9534_v39, %v5219_v8  ;;  %v5271_v47 = vadd.f32 %v2784_v43, %v9536_v28  ;;  %v2787_v22 = vpop.f32.mrb[6].mxu0  ;;  %v9538_v10 = vld [vmem:[#allocation44_spill] sm:$0xff]  ;;  %v3115_v8 = vpop.f32.mrb[199].mxu1 }
 0x2b0   : > { %5008 = vst [vmem:[%s7823_s27] sm:$0xff] %v5007_v27   ;;  %v8189_v62 = vadd.f32 %v9537_v38, %v3112_v36  ;;  %v8192_v45 = vadd.s32 24, %v8112_v48  ;;  %v8195_v14 = vadd.s32 80, %v7117_v26  ;;  %v8198_v39 = vadd.f32 %v9538_v10, %v5220_v20  ;;  %v9540_v27 = vld [vmem:[#allocation27_spill] sm:$0xff]  ;;  %v2789_v58 = vpop.f32.mrb[7].mxu0 }
 0x2b1   : > { %9535 = vst [vmem:[#allocation25_spill] sm:$0xff] %v8184_v42  ;;  %v4608_v11 = vadd.f32 %v4562_v21, %v4561_v30  ;;  %vm3998_vm6 = vcmp.ne.s32.totalorder %v8176_v6, 0  ;;  %v3579_v43 = vshrl.u32 %v8128_v7, 4  ;;  %v3009_v36 = vadd.f32 %v5271_v47, %v7510_v4  ;;  %v9541_v21 = vld [vmem:[#allocation7_spill] sm:$0xff] }
 0x2b2   : > { %9539 = vst [vmem:[#allocation2_spill] sm:$0xff] %v8198_v39  ;;  %v5272_v28 = vadd.f32 %v2787_v22, %v9540_v27  ;;  %vm4045_vm2 = vcmp.lt.s32.totalorder %v8176_v6, 0  ;;  %v8206_v38 = vadd.s32 88, %v7117_v26  ;;  %v5082_v20 = vpack.c.bf16 %v8198_v39, %v8184_v42 }
 0x2b3   : > { %v8211_v30 = vadd.f32 %v9541_v21, %v3115_v8  ;;  %v8214_v10 = vadd.s32 24, %v8176_v6  ;;  %v3569_v7 = vmul.u32 24, %v3568_v31  ;;  %v4463_v4 = vsel %vm8122_vm9, %v3009_v36, 0.0  ;;  %v5223_v31 = vpop.f32.mrb[200].mxu1 }
 0x2b4   : > { %v3012_v47 = vadd.f32 %v5272_v28, %v7523_v33  ;;  %v8220_v22 = vmul.u32.u64.low 2863311531, %v8195_v14  ;;  %v8221_v27 = vmul.u32.u64.high 2863311531, %v8195_v14, %v8220_v22  ;;  %v4509_v58 = vadd.f32 %v4508_v24, %v4463_v4  ;;  %5133 = vst [vmem:[%s7823_s27 + $0x78] sm:$0xff] %v5082_v20   ;;  %v2792_v24 = vpop.f32.mrb[8].mxu0 }
 0x2b5   : > { %v4563_v29 = vmul.f32 %v4463_v4, %v4463_v4  ;;  %v5077_v8 = vpack.c.bf16 %v8211_v30, %v8189_v62  ;;  %v3580_v21 = vmul.u32 24, %v3579_v43  ;;  %v8234_v20 = vadd.f32 %v7474_v18, %v5223_v31  ;;  %v3128_v4 = vpop.f32.mrb[201].mxu1  ;;  %v9544_v43 = vld [vmem:[#allocation28_spill] sm:$0xff] }
 0x2b6   : > { %v5012_v39 = vpack.c.bf16 %v3012_v47, %v3009_v36  ;;  %v4464_v41 = vsel %vm8150_vm14, %v3012_v47, 0.0  ;;  %v8229_v42 = vmul.u32.u64.low 2863311531, %v8206_v38  ;;  %v8230_v33 = vmul.u32.u64.high 2863311531, %v8206_v38, %v8229_v42  ;;  %v9548_v36 = vld [vmem:[#allocation52_spill] sm:$0xff]  ;;  %vm8262_vm14 = vmand %vm4045_vm2, %vm3998_vm6 }
 0x2b7   : > { %v4609_v28 = vadd.f32 %v4608_v11, %v4563_v29  ;;  %v4510_v51 = vadd.f32 %v4509_v58, %v4464_v41  ;;  %v4564_v22 = vmul.f32 %v4464_v41, %v4464_v41  ;;  %5132 = vst [vmem:[%s7823_s27 + $0x70] sm:$0xff] %v5077_v8   ;;  %v5273_v42 = vadd.f32 %v2792_v24, %v9544_v43  ;;  %v2794_v11 = vpop.f32.mrb[9].mxu0  ;;  %v5224_v58 = vpop.f32.mrb[202].mxu1  ;;  %v9551_v43 = vld [vmem:[#allocation29_spill] sm:$0xff] }
 0x2b8   : > { %5119 = vst [vmem:[%s7823_s27 + $0x8] sm:$0xff] %v5012_v39   ;;  %v9545_v29 = vsel %vm8066_vm7, %v8048_v57, %v7957_v46  ;;  %v8256_v47 = vadd.f32 %v9548_v36, %v3128_v4  ;;  %v8267_v15 = vsub.s32 %v8023_v59, %v3569_v7  ;;  %v2795_v57 = vpop.f32.mrb[10].mxu0  ;;  %v8270_v8 = vadd.f32 %v7498_v25, %v5224_v58  ;;  %v3131_v41 = vpop.f32.mrb[203].mxu1  ;;  %v9555_v11 = vld [vmem:[#allocation56_spill] sm:$0xff] }
 0x2b9   : > { %vm8251_vm9 = vcmp.lt.s32.totalorder %v9545_v29, 16  ;;  %v4610_v46 = vadd.f32 %v4609_v28, %v4564_v22  ;;  %v8273_v31 = vmul.u32.u64.low 2863311531, %v8071_v9  ;;  %v8274_v24 = vmul.u32.u64.high 2863311531, %v8071_v9, %v8273_v31  ;;  %v2797_v25 = vpop.f32.mrb[11].mxu0 }
 0x2ba   : > { %v3017_v4 = vadd.f32 %v5273_v42, %v7592_v3  ;;  %v5274_v29 = vadd.f32 %v2795_v57, %v9551_v43  ;;  %v9552_v59 = vsel %vm8136_vm10, %v8109_v13, %v8051_v0  ;;  %v8289_v28 = vsub.s32 %v8081_v12, %v3580_v21  ;;  %v2800_v18 = vpop.f32.mrb[12].mxu0  ;;  %v9556_v57 = vld [vmem:[#allocation30_spill] sm:$0xff] }
 0x2bb   : > { %vm8284_vm7 = vcmp.lt.s32.totalorder %v9552_v59, 16  ;;  %v5092_v22 = vpack.c.bf16 %v8270_v8, %v8234_v20  ;;  %v8294_v3 = vadd.f32 %v9555_v11, %v3131_v41  ;;  %v4185_v19 = vsel %vm8240_vm13, %v8192_v45, %v8112_v48  ;;  %v2802_v31 = vpop.f32.mrb[13].mxu0 }
 0x2bc   : > { %v4186_v0 = vsel %vm8262_vm14, %v8214_v10, %v8176_v6  ;;  %v4465_v12 = vsel %vm8251_vm9, %v3017_v4, 0.0  ;;  %v3020_v13 = vadd.f32 %v5274_v29, %v7610_v32  ;;  %vm3999_vm10 = vcmp.ne.s32.totalorder %v8267_v15, 0  ;;  %v5227_v10 = vpop.f32.mrb[204].mxu1  ;;  %v2803_v59 = vpop.f32.mrb[14].mxu0 }
 0x2bd   : > { %v3590_v21 = vshrl.u32 %v8221_v27, 4  ;;  %v4511_v42 = vadd.f32 %v4510_v51, %v4465_v12  ;;  %v4565_v36 = vmul.f32 %v4465_v12, %v4465_v12  ;;  %5135 = vst [vmem:[%s7823_s27 + $0x88] sm:$0xff] %v5092_v22   ;;  %v5087_v45 = vpack.c.bf16 %v8294_v3, %v8256_v47  ;;  %v3144_v39 = vpop.f32.mrb[205].mxu1  ;;  %v2805_v12 = vpop.f32.mrb[15].mxu0 }
 0x2be   : > { %vm4046_vm1 = vcmp.lt.s32.totalorder %v8267_v15, 0  ;;  %v5017_v48 = vpack.c.bf16 %v3020_v13, %v3017_v4  ;;  %v4466_v6 = vsel %vm8284_vm7, %v3020_v13, 0.0  ;;  %vm4000_vm5 = vcmp.ne.s32.totalorder %v8289_v28, 0  ;;  %v5228_v43 = vpop.f32.mrb[206].mxu1 }
 0x2bf   : > { %v3601_v32 = vshrl.u32 %v8230_v33, 4  ;;  %v4611_v54 = vadd.f32 %v4610_v46, %v4565_v36  ;;  %v4512_v27 = vadd.f32 %v4511_v42, %v4466_v6  ;;  %v4566_v51 = vmul.f32 %v4466_v6, %v4466_v6  ;;  %5134 = vst [vmem:[%s7823_s27 + $0x80] sm:$0xff] %v5087_v45   ;;  %v3147_v7 = vpop.f32.mrb[207].mxu1  ;;  %vm8341_vm13 = vmand %vm4046_vm1, %vm3999_vm10 }
 0x2c0   : > { %v8319_v58 = vadd.f32 %v7640_v17, %v5227_v10  ;;  %5120 = vst [vmem:[%s7823_s27 + $0x10] sm:$0xff] %v5017_v48   ;;  %v5275_v41 = vadd.f32 %v2800_v18, %v9556_v57  ;;  %v8324_v4 = vadd.f32 %v7554_v1, %v3144_v39  ;;  %vm4047_vm6 = vcmp.lt.s32.totalorder %v8289_v28, 0  ;;  %v9559_v1 = vld [vmem:[#allocation31_spill] sm:$0xff] }
 0x2c1   : > { %v3591_v33 = vmul.u32 24, %v3590_v21  ;;  %v4612_v46 = vadd.f32 %v4611_v54, %v4566_v51  ;;  %vm8327_vm2 = vcmp.lt.s32.totalorder %v4185_v19, 16  ;;  %v8332_v17 = vadd.f32 %v7657_v56, %v5228_v43  ;;  %vm8359_vm14 = vmand %vm4047_vm6, %vm4000_vm5  ;;  %v5231_v18 = vpop.f32.mrb[208].mxu1 }
 0x2c2   : > { %v4140_v25 = vadd.s32 24, %v8267_v15  ;;  %v3025_v22 = vadd.f32 %v5275_v41, %v7582_v61  ;;  %v5276_v11 = vadd.f32 %v2803_v59, %v9559_v1  ;;  %v4141_v56 = vadd.s32 24, %v8289_v28  ;;  %v2808_v41 = vpop.f32.mrb[16].mxu0  ;;  %v3160_v43 = vpop.f32.mrb[209].mxu1  ;;  %v9570_v1 = vld [vmem:[#allocation83_spill] sm:$0xff] }
 0x2c3   : > { %v3602_v13 = vmul.u32 24, %v3601_v32  ;;  %v9562_v21 = vshrl.u32 %v7953_v5, 4  ;;  %vm4233_vm9 = vcmp.lt.s32.totalorder %v4186_v0, 16  ;;  %v5102_v61 = vpack.c.bf16 %v8332_v17, %v8319_v58  ;;  %v2810_v29 = vpop.f32.mrb[17].mxu0 }
 0x2c4   : > { %v8353_v36 = vadd.f32 %v7571_v16, %v3147_v7  ;;  %vm4025_vm7 = vcmp.ne.s32.totalorder %v8089_v60, 0  ;;  %v4467_v5 = vsel %vm8327_vm2, %v3025_v22, 0.0  ;;  %v3028_v0 = vadd.f32 %v5276_v11, %v7603_v53  ;;  %v9571_v11 = vld [vmem:[#allocation33_spill] sm:$0xff] }
 0x2c5   : > { %v8348_v42 = vmul.u32 24, %v9562_v21  ;;  %v8368_v48 = vsub.s32 %v8195_v14, %v3591_v33  ;;  %v4513_v16 = vadd.f32 %v4512_v27, %v4467_v5  ;;  %v4567_v6 = vmul.f32 %v4467_v5, %v4467_v5  ;;  %5137 = vst [vmem:[%s7823_s27 + $0x98] sm:$0xff] %v5102_v61   ;;  %v9574_v21 = vld [vmem:[#allocation6_spill] sm:$0xff] }
 0x2c6   : > { %v5097_v10 = vpack.c.bf16 %v8353_v36, %v8324_v4  ;;  %v4187_v32 = vsel %vm8341_vm13, %v4140_v25, %v8267_v15  ;;  %v5022_v54 = vpack.c.bf16 %v3028_v0, %v3025_v22  ;;  %v4468_v51 = vsel %vm4233_vm9, %v3028_v0, 0.0  ;;  %v9566_v15 = vld [vmem:[#allocation32_spill] sm:$0xff] }
 0x2c7   : > { %v4188_v53 = vsel %vm8359_vm14, %v4141_v56, %v8289_v28  ;;  %v8380_v14 = vsub.s32 %v8206_v38, %v3602_v13  ;;  %v4613_v27 = vadd.f32 %v4612_v46, %v4567_v6  ;;  %v4514_v39 = vadd.f32 %v4513_v16, %v4468_v51  ;;  %v5232_v28 = vpop.f32.mrb[210].mxu1  ;;  %v9573_v13 = vld [vmem:[#allocation36_spill] sm:$0xff]  ;;  %v9612_v46 = vld [vmem:[#allocation81_spill] sm:$0xff] }
 0x2c8   : > { %v4568_v57 = vmul.f32 %v4468_v51, %v4468_v51  ;;  %5136 = vst [vmem:[%s7823_s27 + $0x90] sm:$0xff] %v5097_v10   ;;  %v8384_v31 = vadd.f32 %v7853_v37, %v5231_v18  ;;  %5121 = vst [vmem:[%s7823_s27 + $0x18] sm:$0xff] %v5022_v54   ;;  %v5277_v33 = vadd.f32 %v2808_v41, %v9566_v15  ;;  %vm4001_vm10 = vcmp.ne.s32.totalorder %v8368_v48, 0  ;;  %v2811_v37 = vpop.f32.mrb[18].mxu0  ;;  %v3163_v25 = vpop.f32.mrb[211].mxu1  ;;  %v9580_v0 = vld [vmem:[#allocation92_spill] sm:$0xff] }
 0x2c9   : > { %v8389_v59 = vadd.f32 %v7754_v40, %v3160_v43  ;;  %vm4048_vm1 = vcmp.lt.s32.totalorder %v8368_v48, 0  ;;  %vm8393_vm5 = vcmp.lt.s32.totalorder %v4187_v32, 16  ;;  %v8398_v7 = vadd.f32 %v7870_v50, %v5232_v28  ;;  %v2813_v19 = vpop.f32.mrb[19].mxu0  ;;  %v9583_v54 = vld [vmem:[#allocation88_spill] sm:$0xff]  ;;  %v9637_v50 = vld [vmem:[#allocation98_spill] sm:$0xff] }
 0x2ca   : > { %9565 = vst [vmem:[#allocation40_spill] sm:$0xff] %v8384_v31  ;;  %v4614_v38 = vadd.f32 %v4613_v27, %v4568_v57  ;;  %v4142_v22 = vadd.s32 24, %v8368_v48  ;;  %v3033_v40 = vadd.f32 %v5277_v33, %v9570_v1  ;;  %v5278_v12 = vadd.f32 %v2811_v37, %v9571_v11  ;;  %v9585_v27 = vld [vmem:[#allocation46_spill] sm:$0xff]  ;;  %v9586_v57 = vld [vmem:[#allocation39_spill] sm:$0xff]  ;;  %v9596_v56 = vld [vmem:[#allocation8_spill] sm:$0xff]  ;;  %v2816_v45 = vpop.f32.mrb[20].mxu0 }
 0x2cb   : > { %9569 = vst [vmem:[#allocation26_spill] sm:$0xff] %v8398_v7  ;;  %vm4002_vm6 = vcmp.ne.s32.totalorder %v8380_v14, 0  ;;  %vm4049_vm2 = vcmp.lt.s32.totalorder %v8380_v14, 0  ;;  %v9575_v61 = vsel %vm7351_vm15, %v9573_v13, %v9574_v21  ;;  %vm8415_vm14 = vcmp.lt.s32.totalorder %v4188_v53, 16  ;;  %vm8428_vm15 = vmand %vm4048_vm1, %vm4001_vm10  ;;  %v9597_v13 = vld [vmem:[#allocation5_spill] sm:$0xff]  ;;  %v9622_v53 = vld [vmem:[#allocation64_spill] sm:$0xff] }
 0x2cc   : > { %vm8410_vm13 = vcmp.lt.s32.totalorder %v9575_v61, 16  ;;  %v5112_v5 = vpack.c.bf16 %v8398_v7, %v8384_v31  ;;  %v8422_v16 = vadd.f32 %v9580_v0, %v3163_v25  ;;  %v8433_v10 = vadd.s32 312, %v7117_v26  ;;  %vm8458_vm10 = vmand %vm4049_vm2, %vm4002_vm6  ;;  %v9642_v43 = vld [vmem:[#allocation62_spill] sm:$0xff] }
 0x2cd   : > { %v4469_v32 = vsel %vm8393_vm5, %v3033_v40, 0.0  ;;  %v3036_v51 = vadd.f32 %v5278_v12, %v9583_v54  ;;  %v4143_v18 = vadd.s32 24, %v8380_v14  ;;  %v9587_v41 = vsel %vm7383_vm3, %v9585_v27, %v9586_v57  ;;  %v5235_v12 = vpop.f32.mrb[212].mxu1  ;;  %v9605_v27 = vld [vmem:[#allocation42_spill] sm:$0xff] }
 0x2ce   : > { %vm8444_vm9 = vcmp.lt.s32.totalorder %v9587_v41, 16  ;;  %v8449_v15 = vadd.s32 24, %v8089_v60  ;;  %v4515_v33 = vadd.f32 %v4514_v39, %v4469_v32  ;;  %v4569_v29 = vmul.f32 %v4469_v32, %v4469_v32  ;;  %5139 = vst [vmem:[%s7823_s27 + $0xa8] sm:$0xff] %v5112_v5   ;;  %v3176_v0 = vpop.f32.mrb[213].mxu1  ;;  %v2818_v32 = vpop.f32.mrb[21].mxu0 }
 0x2cf   : > { %v5107_v28 = vpack.c.bf16 %v8422_v16, %v8389_v59  ;;  %vm9592_vm3 = vcmp.lt.s32.totalorder %v8089_v60, 0  ;;  %v9593_v39 = vmov 0  ;;  %v8472_v37 = vsub.s32 %v7882_v34, %v8348_v42  ;;  %v9621_v32 = vld [vmem:[#allocation86_spill] sm:$0xff] }
 0x2d0   : > { %vm8466_vm1 = vmand %vm9592_vm3, %vm4025_vm7  ;;  %v5027_v25 = vpack.c.bf16 %v3036_v51, %v3033_v40  ;;  %v4470_v1 = vsel %vm8415_vm14, %v3036_v51, 0.0  ;;  %v4189_v11 = vsel %vm8428_vm15, %v4142_v22, %v8368_v48  ;;  %v9598_v21 = vsel %vm7243_vm4, %v9596_v56, %v9597_v13  ;;  %v9602_v22 = vld [vmem:[#allocation34_spill] sm:$0xff]  ;;  %v5236_v51 = vpop.f32.mrb[214].mxu1  ;;  %v9616_v13 = vld [vmem:[#allocation43_spill] sm:$0xff] }
 0x2d1   : > { %v9594_v39 = vsel %vm8466_vm1, 4294967295, %v9593_v39  ;;  %vm8484_vm7 = vcmp.lt.s32.totalorder %v9598_v21, 16  ;;  %v4615_v34 = vadd.f32 %v4614_v38, %v4569_v29  ;;  %v4516_v42 = vadd.f32 %v4515_v33, %v4470_v1  ;;  %5138 = vst [vmem:[%s7823_s27 + $0xa0] sm:$0xff] %v5107_v28   ;;  %v3179_v29 = vpop.f32.mrb[215].mxu1  ;;  %v9629_v33 = vld [vmem:[#allocation95_spill] sm:$0xff]  ;;  %v9633_v56 = vld [vmem:[#allocation41_spill] sm:$0xff] }
 0x2d2   : > { %v4570_v40 = vmul.f32 %v4470_v1, %v4470_v1  ;;  %v8490_v5 = vadd.f32 %v5235_v12, %v8026_v52  ;;  %v3865_v48 = vshrl.u32 %v8142_v44, 4  ;;  %5122 = vst [vmem:[%s7823_s27 + $0x20] sm:$0xff] %v5027_v25   ;;  %v5279_v6 = vadd.f32 %v2816_v45, %v9602_v22  ;;  %v9606_v52 = vld [vmem:[#allocation37_spill] sm:$0xff]  ;;  %v9613_v1 = vld [vmem:[#allocation35_spill] sm:$0xff] }
 0x2d3   : > { %v8496_v54 = vadd.f32 %v7946_v63, %v3176_v0  ;;  %v4190_v38 = vsel %vm8458_vm10, %v4143_v18, %v8380_v14  ;;  %v9607_v57 = vsel %vm7367_vm0, %v9605_v27, %v9606_v52  ;;  %vm8514_vm5 = vcmp.lt.s32.totalorder %v4189_v11, 16  ;;  %v2819_v18 = vpop.f32.mrb[22].mxu0  ;;  %v9615_v11 = vld [vmem:[#allocation55_spill] sm:$0xff]  ;;  %v9625_v52 = vld [vmem:[#allocation50_spill] sm:$0xff] }
 0x2d4   : > { %9601 = vst [vmem:[#allocation23_spill] sm:$0xff] %v8490_v5  ;;  %vm8506_vm4 = vcmp.lt.s32.totalorder %v9607_v57, 16  ;;  %v4616_v41 = vadd.f32 %v4615_v34, %v4570_v40  ;;  %v5003_v14 = vpack.c.bf16 %v8490_v5, %v8490_v5  ;;  %vm4023_vm0 = vcmp.ne.s32.totalorder %v8472_v37, 0  ;;  %v2821_v19 = vpop.f32.mrb[23].mxu0  ;;  %v9624_v27 = vld [vmem:[#allocation63_spill] sm:$0xff]  ;;  %v9726_v5 = vld [vmem:[#allocation45_spill] sm:$0xff] }
 0x2d5   : > { %9603 = vst [vmem:[#allocation44_spill] sm:$0xff] %v8496_v54  ;;  %v8522_v28 = vadd.s32 296, %v7117_v26  ;;  %v3041_v25 = vadd.f32 %v5279_v6, %v9612_v46  ;;  %v5280_v12 = vadd.f32 %v2819_v18, %v9613_v1  ;;  %v9617_v21 = vsel %vm7412_vm8, %v9615_v11, %v9616_v13  ;;  %v9632_v19 = vld [vmem:[#allocation47_spill] sm:$0xff] }
 0x2d6   : > { %vm8531_vm6 = vcmp.lt.s32.totalorder %v9617_v21, 16  ;;  %vm4070_vm2 = vcmp.lt.s32.totalorder %v8472_v37, 0  ;;  %v3843_v40 = vshrl.u32 %v8156_v55, 4  ;;  %3425 = vst [vmem:[%s7823_s27 + $0xb8] sm:$0xf] %v5003_v14  ;;  %vm4237_vm14 = vcmp.lt.s32.totalorder %v4190_v38, 16 }
 0x2d7   : > { %v8539_v45 = vadd.f32 %v7964_v49, %v3179_v29  ;;  %v8542_v0 = vadd.s32 24, %v8472_v37  ;;  %v3866_v22 = vmul.u32 24, %v3865_v48  ;;  %v4471_v6 = vsel %vm8514_vm5, %v3041_v25, 0.0 }
 0x2d8   : > { %v3044_v51 = vadd.f32 %v5280_v12, %v9621_v32  ;;  %vm9623_vm8 = vnez %v9622_v53  ;;  %v3898_v49 = vshrl.u32 %v8164_v2, 4  ;;  %v4517_v57 = vadd.f32 %v4516_v42, %v4471_v6  ;;  %v9630_v12 = vld [vmem:[#allocation59_spill] sm:$0xff]  ;;  %v9640_v53 = vld [vmem:[#allocation61_spill] sm:$0xff] }
 0x2d9   : > { %9620 = vst [vmem:[#allocation27_spill] sm:$0xff] %v8539_v45  ;;  %v9626_v55 = vsel %vm9623_vm8, %v9624_v27, %v9625_v52  ;;  %v4571_v14 = vmul.f32 %v4471_v6, %v4471_v6  ;;  %v5117_v48 = vpack.c.bf16 %v8539_v45, %v8496_v54  ;;  %v4473_v18 = vsel %vm8410_vm13, %v9629_v33, 0.0  ;;  %vm8580_vm13 = vmand %vm4070_vm2, %vm4023_vm0  ;;  %v9643_v27 = vld [vmem:[#allocation49_spill] sm:$0xff]  ;;  %v9737_v45 = vld [vmem:[#allocation11_spill] sm:$0xff] }
 0x2da   : > { %vm8552_vm15 = vcmp.lt.s32.totalorder %v9626_v55, 16  ;;  %v3876_v29 = vshrl.u32 %v8274_v24, 4  ;;  %v5032_v46 = vpack.c.bf16 %v3044_v51, %v3041_v25  ;;  %v4472_v1 = vsel %vm4237_vm14, %v3044_v51, 0.0  ;;  %v9774_v55 = vld [vmem:[#allocation25_spill] sm:$0xff] }
 0x2db   : > { %vm9631_vm10 = vnez %v9630_v12  ;;  %v3844_v42 = vmul.u32 24, %v3843_v40  ;;  %v4617_v13 = vadd.f32 %v4616_v41, %v4571_v14  ;;  %v4518_v21 = vadd.f32 %v4517_v57, %v4472_v1  ;;  %5140 = vst [vmem:[%s7823_s27 + $0xb0] sm:$0xff] %v5117_v48  }
 0x2dc   : > { %v9634_v11 = vsel %vm9631_vm10, %v9632_v19, %v9633_v56  ;;  %v4572_v6 = vmul.f32 %v4472_v1, %v4472_v1  ;;  %v4474_v24 = vsel %vm8444_vm9, %v9637_v50, 0.0  ;;  %v8585_v32 = vsub.s32 %v7901_v23, %v3866_v22  ;;  %5123 = vst [vmem:[%s7823_s27 + $0x28] sm:$0xff] %v5032_v46   ;;  %v9647_v23 = vld [vmem:[#allocation94_spill] sm:$0xff]  ;;  %v9648_v19 = vld [vmem:[#allocation71_spill] sm:$0xff]  ;;  %v9650_v56 = vld [vmem:[#allocation69_spill] sm:$0xff] }
 0x2dd   : > { %vm8568_vm3 = vcmp.lt.s32.totalorder %v9634_v11, 16  ;;  %v8588_v41 = vmul.u32.u64.low 2863311531, %v8522_v28  ;;  %v8589_v40 = vmul.u32.u64.high 2863311531, %v8522_v28, %v8588_v41  ;;  %v4573_v51 = vmul.f32 %v4473_v18, %v4473_v18  ;;  %v9651_v11 = vld [vmem:[#allocation67_spill] sm:$0xff] }
 0x2de   : > { %vm9641_vm5 = vnez %v9640_v53  ;;  %v3899_v57 = vmul.u32 24, %v3898_v49  ;;  %v4519_v14 = vadd.f32 %v4518_v21, %v4473_v18  ;;  %v4618_v48 = vadd.f32 %v4617_v13, %v4572_v6  ;;  %v9706_v41 = vld [vmem:[#allocation78_spill] sm:$0xff] }
 0x2df   : > { %v9644_v52 = vsel %vm9641_vm5, %v9642_v43, %v9643_v27  ;;  %v4475_v22 = vsel %vm8484_vm7, %v9647_v23, 0.0  ;;  %v3877_v33 = vmul.u32 24, %v3876_v29  ;;  %v4574_v12 = vmul.f32 %v4474_v24, %v4474_v24  ;;  %v9655_v29 = vld [vmem:[#allocation97_spill] sm:$0xff]  ;;  %v9656_v43 = vld [vmem:[#allocation79_spill] sm:$0xff]  ;;  %v9658_v27 = vld [vmem:[#allocation74_spill] sm:$0xff] }
 0x2e0   : > { %vm8597_vm9 = vcmp.lt.s32.totalorder %v9644_v52, 16  ;;  %v8605_v46 = vmul.u32.u64.low 2863311531, %v8433_v10  ;;  %v8606_v1 = vmul.u32.u64.high 2863311531, %v8433_v10, %v8605_v46  ;;  %vm9649_vm0 = vnez %v9648_v19  ;;  %v9659_v52 = vld [vmem:[#allocation70_spill] sm:$0xff] }
 0x2e1   : > { %v9652_v50 = vsel %vm9649_vm0, %v9650_v56, %v9651_v11  ;;  %v4520_v49 = vadd.f32 %v4519_v14, %v4474_v24  ;;  %v4619_v18 = vadd.f32 %v4618_v48, %v4573_v51  ;;  %v4476_v13 = vsel %vm8506_vm4, %v9655_v29, 0.0  ;;  %v9663_v14 = vld [vmem:[#allocation14_spill] sm:$0xff]  ;;  %v9664_v48 = vld [vmem:[#allocation101_spill] sm:$0xff]  ;;  %v9668_v29 = vld [vmem:[#allocation51_spill] sm:$0xff] }
 0x2e2   : > { %vm8613_vm2 = vcmp.lt.s32.totalorder %v9652_v50, 16  ;;  %vm4026_vm7 = vcmp.ne.s32.totalorder %v8585_v32, 0  ;;  %v8626_v21 = vsub.s32 %v7911_v35, %v3844_v42  ;;  %v8629_v6 = vadd.s32 336, %v7117_v26  ;;  %v9665_v11 = vld [vmem:[#allocation66_spill] sm:$0xff]  ;;  %v9667_v50 = vld [vmem:[#allocation65_spill] sm:$0xff]  ;;  %v9719_v24 = vld [vmem:[#allocation87_spill] sm:$0xff] }
 0x2e3   : > { %v4575_v53 = vmul.f32 %v4475_v22, %v4475_v22  ;;  %vm9657_vm14 = vnez %v9656_v43  ;;  %v4521_v44 = vadd.f32 %v4520_v49, %v4475_v22  ;;  %v4620_v51 = vadd.f32 %v4619_v18, %v4574_v12 }
 0x2e4   : > { %v9660_v23 = vsel %vm9657_vm14, %v9658_v27, %v9659_v52  ;;  %v4477_v35 = vsel %vm8531_vm6, %v9663_v14, 0.0  ;;  %v8645_v42 = vadd.s32 24, %v8585_v32  ;;  %v8648_v46 = vsub.s32 %v9664_v48, %v3899_v57  ;;  %v9672_v57 = vld [vmem:[#allocation20_spill] sm:$0xff]  ;;  %v9673_v27 = vld [vmem:[#allocation77_spill] sm:$0xff] }
 0x2e5   : > { %vm8636_vm8 = vcmp.lt.s32.totalorder %v9660_v23, 16  ;;  %v8651_v19 = vsub.s32 %v8071_v9, %v3877_v33  ;;  %v4576_v56 = vmul.f32 %v4476_v13, %v4476_v13  ;;  %vm9666_vm10 = vnez %v9665_v11  ;;  %v9675_v52 = vld [vmem:[#allocation73_spill] sm:$0xff]  ;;  %v9676_v23 = vld [vmem:[#allocation68_spill] sm:$0xff]  ;;  %v9681_v11 = vld [vmem:[#allocation82_spill] sm:$0xff] }
 0x2e6   : > { %v9669_v22 = vsel %vm9666_vm10, %v9667_v50, %v9668_v29  ;;  %v8663_v34 = vadd.s32 320, %v7117_v26  ;;  %v4522_v49 = vadd.f32 %v4521_v44, %v4476_v13  ;;  %v4621_v18 = vadd.f32 %v4620_v51, %v4575_v53  ;;  %v9680_v44 = vld [vmem:[#allocation17_spill] sm:$0xff]  ;;  %v9683_v50 = vld [vmem:[#allocation84_spill] sm:$0xff]  ;;  %v9684_v29 = vld [vmem:[#allocation75_spill] sm:$0xff] }
 0x2e7   : > { %vm8658_vm5 = vcmp.lt.s32.totalorder %v9669_v22, 16  ;;  %v4478_v9 = vsel %vm8552_vm15, %v9672_v57, 0.0  ;;  %v3887_v33 = vshrl.u32 %v8589_v40, 4  ;;  %v4577_v43 = vmul.f32 %v4477_v35, %v4477_v35 }
 0x2e8   : > { %vm9674_vm14 = vnez %v9673_v27  ;;  %v8681_v13 = vadd.s32 24, %v8626_v21  ;;  %v4523_v38 = vadd.f32 %v4522_v49, %v4477_v35  ;;  %v4622_v53 = vadd.f32 %v4621_v18, %v4576_v56  ;;  %v9688_v49 = vld [vmem:[#allocation16_spill] sm:$0xff] }
 0x2e9   : > { %v9677_v14 = vsel %vm9674_vm14, %v9675_v52, %v9676_v23  ;;  %v4479_v51 = vsel %vm8568_vm3, %v9680_v44, 0.0  ;;  %v4578_v40 = vmul.f32 %v4478_v9, %v4478_v9  ;;  %vm9682_vm14 = vnez %v9681_v11  ;;  %v9689_v44 = vld [vmem:[#allocation99_spill] sm:$0xff]  ;;  %v9691_v11 = vld [vmem:[#allocation93_spill] sm:$0xff] }
 0x2ea   : > { %vm8676_vm10 = vcmp.lt.s32.totalorder %v9677_v14, 16  ;;  %v9685_v22 = vsel %vm9682_vm14, %v9683_v50, %v9684_v29  ;;  %v3909_v35 = vshrl.u32 %v8606_v1, 4  ;;  %v4524_v2 = vadd.f32 %v4523_v38, %v4478_v9  ;;  %v9692_v50 = vld [vmem:[#allocation89_spill] sm:$0xff]  ;;  %v9727_v38 = vld [vmem:[#allocation100_spill] sm:$0xff] }
 0x2eb   : > { %vm8694_vm4 = vcmp.lt.s32.totalorder %v9685_v22, 16  ;;  %v4623_v56 = vadd.f32 %v4622_v53, %v4577_v43  ;;  %v4480_v18 = vsel %vm8597_vm9, %v9688_v49, 0.0  ;;  %v3888_v27 = vmul.u32 24, %v3887_v33  ;;  %v9699_v33 = vld [vmem:[#allocation18_spill] sm:$0xff] }
 0x2ec   : > { %v8703_v52 = vmul.u32.u64.low 2863311531, %v8663_v34  ;;  %v8704_v23 = vmul.u32.u64.high 2863311531, %v8663_v34, %v8703_v52  ;;  %v4579_v14 = vmul.f32 %v4479_v51, %v4479_v51  ;;  %vm9690_vm3 = vnez %v9689_v44 }
 0x2ed   : > { %v9693_v29 = vsel %vm9690_vm3, %v9691_v11, %v9692_v50  ;;  %vm9696_vm6 = vcmp.lt.s32.totalorder %v8585_v32, 0  ;;  %vm4074_vm0 = vcmp.lt.s32.totalorder %v8651_v19, 0  ;;  %v4525_v1 = vadd.f32 %v4524_v2, %v4479_v51  ;;  %v9707_v2 = vld [vmem:[#allocation72_spill] sm:$0xff] }
 0x2ee   : > { %vm8711_vm14 = vcmp.lt.s32.totalorder %v9693_v29, 16  ;;  %vm8719_vm9 = vmand %vm9696_vm6, %vm4026_vm7  ;;  %v4624_v9 = vadd.f32 %v4623_v56, %v4578_v40  ;;  %v4481_v43 = vsel %vm8613_vm2, %v9699_v33, 0.0  ;;  %vm9700_vm3 = vcmp.ne.s32.totalorder %v8626_v21, 0  ;;  %v9704_v40 = vld [vmem:[#allocation80_spill] sm:$0xff] }
 0x2ef   : > { %vm9701_vm15 = vcmp.lt.s32.totalorder %v8626_v21, 0  ;;  %v8736_v53 = vadd.s32 24, %v8648_v46  ;;  %v8739_v49 = vmul.u32.u64.low 2863311531, %v8629_v6  ;;  %v8740_v52 = vmul.u32.u64.high 2863311531, %v8629_v6, %v8739_v49 }
 0x2f0   : > { %vm8731_vm1 = vmand %vm9701_vm15, %vm9700_vm3  ;;  %v4580_v51 = vmul.f32 %v4480_v18, %v4480_v18  ;;  %vm9705_vm7 = vnez %v9704_v40  ;;  %vm9711_vm6 = vcmp.ne.s32.totalorder %v8648_v46, 0  ;;  %vm9712_vm15 = vcmp.lt.s32.totalorder %v8648_v46, 0  ;;  %v9715_v49 = vld [vmem:[#allocation21_spill] sm:$0xff] }
 0x2f1   : > { %v9708_v56 = vsel %vm9705_vm7, %v9706_v41, %v9707_v2  ;;  %vm8755_vm3 = vmand %vm9712_vm15, %vm9711_vm6  ;;  %v8760_v50 = vadd.s32 24, %v8651_v19  ;;  %v4526_v29 = vadd.f32 %v4525_v1, %v4480_v18  ;;  %v4625_v33 = vadd.f32 %v4624_v9, %v4579_v14  ;;  %v9721_v1 = vld [vmem:[#allocation85_spill] sm:$0xff]  ;;  %v9722_v9 = vld [vmem:[#allocation76_spill] sm:$0xff] }
 0x2f2   : > { %vm8747_vm2 = vcmp.lt.s32.totalorder %v9708_v56, 16  ;;  %v4482_v40 = vsel %vm8636_vm8, %v9715_v49, 0.0  ;;  %vm9716_vm7 = vcmp.ne.s32.totalorder %v8651_v19, 0  ;;  %v3910_v56 = vmul.u32 24, %v3909_v35 }
 0x2f3   : > { %vm8773_vm6 = vmand %vm4074_vm0, %vm9716_vm7  ;;  %v8778_v18 = vsub.s32 %v8522_v28, %v3888_v27  ;;  %v4581_v14 = vmul.f32 %v4481_v43, %v4481_v43  ;;  %vm9720_vm8 = vnez %v9719_v24  ;;  %v4212_v63 = vsel %vm8731_vm1, %v8681_v13, %v8626_v21  ;;  %v9729_v21 = vld [vmem:[#allocation38_spill] sm:$0xff]  ;;  %v9730_v13 = vld [vmem:[#allocation91_spill] sm:$0xff] }
 0x2f4   : > { %v9723_v49 = vsel %vm9720_vm8, %v9721_v1, %v9722_v9  ;;  %v4527_v61 = vadd.f32 %v4526_v29, %v4481_v43  ;;  %v4626_v35 = vadd.f32 %v4625_v33, %v4580_v51  ;;  %v4483_v28 = vsel %vm8658_vm5, %v9726_v5, 0.0  ;;  %v9734_v33 = vld [vmem:[#allocation15_spill] sm:$0xff]  ;;  %v9736_v27 = vld [vmem:[#allocation22_spill] sm:$0xff] }
 0x2f5   : > { %vm8785_vm15 = vcmp.lt.s32.totalorder %v9723_v49, 16  ;;  %v8801_v24 = vadd.s32 344, %v7117_v26  ;;  %v8804_v1 = vadd.s32 328, %v7117_v26  ;;  %v4582_v9 = vmul.f32 %v4482_v40, %v4482_v40 }
 0x2f6   : > { %vm9728_vm1 = vnez %v9727_v38  ;;  %v4528_v51 = vadd.f32 %v4527_v61, %v4482_v40  ;;  %v4627_v29 = vadd.f32 %v4626_v35, %v4581_v14  ;;  %v4484_v49 = vsel %vm8676_vm10, %v9734_v33, 0.0 }
 0x2f7   : > { %v9731_v43 = vsel %vm9728_vm1, %v9729_v21, %v9730_v13  ;;  %v8823_v38 = vsub.s32 %v8433_v10, %v3910_v56  ;;  %vm4028_vm5 = vcmp.ne.s32.totalorder %v8778_v18, 0  ;;  %v8827_v21 = vadd.s32 368, %v7117_v26  ;;  %v9741_v56 = vld [vmem:[#allocation24_spill] sm:$0xff] }
 0x2f8   : > { %vm8811_vm0 = vcmp.lt.s32.totalorder %v9731_v43, 16  ;;  %v4583_v13 = vmul.f32 %v4483_v28, %v4483_v28  ;;  %v9738_v5 = vsel %vm8043_vm11, %v9736_v27, %v9737_v45  ;;  %v3920_v48 = vshrl.u32 %v8704_v23, 4  ;;  %v9742_v45 = vld [vmem:[#allocation12_spill] sm:$0xff] }
 0x2f9   : > { %vm8834_vm7 = vcmp.lt.s32.totalorder %v9738_v5, 16  ;;  %v4529_v40 = vadd.f32 %v4528_v51, %v4483_v28  ;;  %v4628_v10 = vadd.f32 %v4627_v29, %v4582_v9  ;;  %v4485_v14 = vsel %vm8694_vm4, %v9741_v56, 0.0  ;;  %v9744_v27 = vld [vmem:[#allocation96_spill] sm:$0xff]  ;;  %v9745_v5 = vld [vmem:[#allocation90_spill] sm:$0xff] }
 0x2fa   : > { %vm4075_vm10 = vcmp.lt.s32.totalorder %v8778_v18, 0  ;;  %v8844_v35 = vmul.u32.u64.low 2863311531, %v8804_v1  ;;  %v8845_v33 = vmul.u32.u64.high 2863311531, %v8804_v1, %v8844_v35  ;;  %v4584_v43 = vmul.f32 %v4484_v49, %v4484_v49  ;;  %v9749_v51 = vld [vmem:[#allocation4_spill] sm:$0xff] }
 0x2fb   : > { %vm9743_vm11 = vnez %v9742_v45  ;;  %v3942_v28 = vshrl.u32 %v8740_v52, 4  ;;  %v4530_v57 = vadd.f32 %v4529_v40, %v4484_v49  ;;  %v4629_v9 = vadd.f32 %v4628_v10, %v4583_v13  ;;  %vm8876_vm1 = vmand %vm4075_vm10, %vm4028_vm5  ;;  %v9758_v10 = vld [vmem:[#allocation3_spill] sm:$0xff] }
 0x2fc   : > { %v9746_v54 = vsel %vm9743_vm11, %v9744_v27, %v9745_v5  ;;  %v4486_v29 = vsel %vm8711_vm14, %v9749_v51, 0.0  ;;  %v4169_v56 = vadd.s32 24, %v8778_v18  ;;  %v4585_v7 = vmul.f32 %v4485_v14, %v4485_v14  ;;  %v9752_v5 = vld [vmem:[#allocation9_spill] sm:$0xff] }
 0x2fd   : > { %vm8852_vm8 = vcmp.lt.s32.totalorder %v9746_v54, 16  ;;  %v8862_v35 = vmul.u32.u64.low 2863311531, %v8801_v24  ;;  %v8863_v45 = vmul.u32.u64.high 2863311531, %v8801_v24, %v8862_v35  ;;  %v9751_v54 = vld [vmem:[#allocation48_spill] sm:$0xff]  ;;  %v3921_v49 = vmul.u32 24, %v3920_v48 }
 0x2fe   : > { %v9753_v31 = vsel %vm8015_vm12, %v9751_v54, %v9752_v5  ;;  %v4531_v13 = vadd.f32 %v4530_v57, %v4485_v14  ;;  %v4630_v40 = vadd.f32 %v4629_v9, %v4584_v43  ;;  %v4487_v51 = vsel %vm8747_vm2, %v9758_v10, 0.0  ;;  %v9762_v9 = vld [vmem:[#allocation10_spill] sm:$0xff] }
 0x2ff   : > { %vm8870_vm4 = vcmp.lt.s32.totalorder %v9753_v31, 16  ;;  %vm4030_vm14 = vcmp.ne.s32.totalorder %v8823_v38, 0  ;;  %v8885_v31 = vadd.s32 352, %v7117_v26  ;;  %v8888_v35 = vadd.s32 360, %v7117_v26 }
 0x300   : > { %v4586_v27 = vmul.f32 %v4486_v29, %v4486_v29  ;;  %v9759_v48 = vsel %vm8580_vm13, %v8542_v0, %v8472_v37  ;;  %v3943_v44 = vmul.u32 24, %v3942_v28  ;;  %v4532_v43 = vadd.f32 %v4531_v13, %v4486_v29 }
 0x301   : > { %vm8895_vm12 = vcmp.lt.s32.totalorder %v9759_v48, 16  ;;  %v4631_v57 = vadd.f32 %v4630_v40, %v4585_v7  ;;  %v4488_v54 = vsel %vm8785_vm15, %v9762_v9, 0.0  ;;  %vm4077_vm2 = vcmp.lt.s32.totalorder %v8823_v38, 0 }
 0x302   : > { %v8904_v26 = vadd.s32 24, %v8823_v38  ;;  %v4216_v37 = vsel %vm8876_vm1, %v4169_v56, %v8778_v18  ;;  %v4587_v0 = vmul.f32 %v4487_v51, %v4487_v51  ;;  %vm8909_vm13 = vcmp.lt.s32.totalorder %v4212_v63, 16 }
 0x303   : > { %v8914_v7 = vsub.s32 %v8663_v34, %v3921_v49  ;;  %v4533_v28 = vadd.f32 %v4532_v43, %v4487_v51  ;;  %v4632_v41 = vadd.f32 %v4631_v57, %v4586_v27  ;;  %v4489_v29 = vsel %vm8811_vm0, %v8189_v62, 0.0  ;;  %v9775_v43 = vld [vmem:[#allocation2_spill] sm:$0xff] }
 0x304   : > { %v3931_v5 = vshrl.u32 %v8845_v33, 4  ;;  %v8921_v13 = vmul.u32.u64.low 2863311531, %v8885_v31  ;;  %v8922_v22 = vmul.u32.u64.high 2863311531, %v8885_v31, %v8921_v13  ;;  %v4588_v18 = vmul.f32 %v4488_v54, %v4488_v54 }
 0x305   : > { %vm9765_vm15 = vnez %v9594_v39  ;;  %v8934_v56 = vsub.s32 %v8629_v6, %v3943_v44  ;;  %v4534_v62 = vadd.f32 %v4533_v28, %v4488_v54  ;;  %v4633_v12 = vadd.f32 %v4632_v41, %v4587_v0  ;;  %v9806_v6 = vld [vmem:[#allocation23_spill] sm:$0xff] }
 0x306   : > { %v9766_v63 = vsel %vm9765_vm15, %v8449_v15, %v8089_v60  ;;  %v4490_v33 = vsel %vm8834_vm7, %v8211_v30, 0.0  ;;  %v3953_v49 = vshrl.u32 %v8863_v45, 4  ;;  %v4589_v60 = vmul.f32 %v4489_v29, %v4489_v29  ;;  %vm8957_vm7 = vmand %vm4077_vm2, %vm4030_vm14 }
 0x307   : > { %vm8929_vm5 = vcmp.lt.s32.totalorder %v9766_v63, 16  ;;  %v8941_v39 = vmul.u32.u64.low 2863311531, %v8888_v35  ;;  %v8942_v40 = vmul.u32.u64.high 2863311531, %v8888_v35, %v8941_v39  ;;  %v9769_v15 = vsel %vm8719_vm9, %v8645_v42, %v8585_v32 }
 0x308   : > { %vm8949_vm0 = vcmp.lt.s32.totalorder %v9769_v15, 16  ;;  %vm4031_vm10 = vcmp.ne.s32.totalorder %v8914_v7, 0  ;;  %v4634_v61 = vadd.f32 %v4633_v12, %v4588_v18  ;;  %v4535_v45 = vadd.f32 %v4534_v62, %v4489_v29  ;;  %v9805_v39 = vld [vmem:[#allocation27_spill] sm:$0xff] }
 0x309   : > { %v4491_v32 = vsel %vm8852_vm8, %v9774_v55, 0.0  ;;  %v3932_v42 = vmul.u32 24, %v3931_v5  ;;  %v8966_v10 = vmul.u32.u64.low 2863311531, %v8827_v21  ;;  %v8967_v51 = vmul.u32.u64.high 2863311531, %v8827_v21, %v8966_v10 }
 0x30a   : > { %v4590_v27 = vmul.f32 %v4490_v33, %v4490_v33  ;;  %vm4078_vm9 = vcmp.lt.s32.totalorder %v8914_v7, 0  ;;  %v4536_v48 = vadd.f32 %v4535_v45, %v4490_v33  ;;  %v4635_v44 = vadd.f32 %v4634_v61, %v4589_v60 }
 0x30b   : > { %v4492_v57 = vsel %vm8870_vm4, %v9775_v43, 0.0  ;;  %v9776_v23 = vsel %vm8773_vm6, %v8760_v50, %v8651_v19  ;;  %v4218_v54 = vsel %vm8957_vm7, %v8904_v26, %v8823_v38  ;;  %v3954_v0 = vmul.u32 24, %v3953_v49  ;;  %vm8999_vm4 = vmand %vm4078_vm9, %vm4031_vm10 }
 0x30c   : > { %vm8978_vm11 = vcmp.lt.s32.totalorder %v9776_v23, 16  ;;  %v4591_v28 = vmul.f32 %v4491_v32, %v4491_v32  ;;  %vm8986_vm8 = vcmp.lt.s32.totalorder %v4216_v37, 16  ;;  %v4172_v2 = vadd.s32 24, %v8914_v7 }
 0x30d   : > { %v4537_v52 = vadd.f32 %v4536_v48, %v4491_v32  ;;  %v4636_v29 = vadd.f32 %v4635_v44, %v4590_v27  ;;  %v4493_v19 = vsel %vm8895_vm12, %v8256_v47, 0.0  ;;  %vm4033_vm6 = vcmp.ne.s32.totalorder %v8934_v56, 0 }
 0x30e   : > { %v9004_v38 = vsub.s32 %v8804_v1, %v3932_v42  ;;  %v3964_v26 = vshrl.u32 %v8922_v22, 4  ;;  %v4592_v37 = vmul.f32 %v4492_v57, %v4492_v57  ;;  %v9783_v47 = vsel %vm8755_vm3, %v8736_v53, %v8648_v46 }
 0x30f   : > { %vm9012_vm1 = vcmp.lt.s32.totalorder %v9783_v47, 16  ;;  %vm4080_vm14 = vcmp.lt.s32.totalorder %v8934_v56, 0  ;;  %v4538_v5 = vadd.f32 %v4537_v52, %v4492_v57  ;;  %v4637_v13 = vadd.f32 %v4636_v29, %v4591_v28 }
 0x310   : > { %v4494_v1 = vsel %vm8909_vm13, %v8294_v3, 0.0  ;;  %v9021_v22 = vadd.s32 24, %v8934_v56  ;;  %v9024_v11 = vsub.s32 %v8801_v24, %v3954_v0  ;;  %v3975_v46 = vshrl.u32 %v8942_v40, 4  ;;  %vm9045_vm15 = vmand %vm4080_vm14, %vm4033_vm6 }
 0x311   : > { %v4593_v53 = vmul.f32 %v4493_v19, %v4493_v19  ;;  %v4219_v18 = vsel %vm8999_vm4, %v4172_v2, %v8914_v7  ;;  %v4539_v63 = vadd.f32 %v4538_v5, %v4493_v19  ;;  %v4638_v62 = vadd.f32 %v4637_v13, %v4592_v37 }
 0x312   : > { %v4495_v25 = vsel %vm8929_vm5, %v8234_v20, 0.0  ;;  %vm4032_vm3 = vcmp.ne.s32.totalorder %v9004_v38, 0  ;;  %v3986_v3 = vshrl.u32 %v8967_v51, 4  ;;  %v3965_v12 = vmul.u32 24, %v3964_v26 }
 0x313   : > { %v4594_v24 = vmul.f32 %v4494_v1, %v4494_v1  ;;  %vm4079_vm12 = vcmp.lt.s32.totalorder %v9004_v38, 0  ;;  %v4540_v33 = vadd.f32 %v4539_v63, %v4494_v1  ;;  %v4639_v49 = vadd.f32 %v4638_v62, %v4593_v53  ;;  %v9803_v63 = vld [vmem:[#allocation26_spill] sm:$0xff] }
 0x314   : > { %v4496_v7 = vsel %vm8949_vm0, %v8270_v8, 0.0  ;;  %vm4034_vm2 = vcmp.ne.s32.totalorder %v9024_v11, 0  ;;  %vm4081_vm13 = vcmp.lt.s32.totalorder %v9024_v11, 0  ;;  %v3976_v34 = vmul.u32 24, %v3975_v46  ;;  %vm9059_vm0 = vmand %vm4079_vm12, %vm4032_vm3 }
 0x315   : > { %v4595_v20 = vmul.f32 %v4495_v25, %v4495_v25  ;;  %v4173_v40 = vadd.s32 24, %v9004_v38  ;;  %v4541_v60 = vadd.f32 %v4540_v33, %v4495_v25  ;;  %v4640_v15 = vadd.f32 %v4639_v49, %v4594_v24  ;;  %vm9080_vm10 = vmand %vm4081_vm13, %vm4034_vm2  ;;  %v9804_v33 = vld [vmem:[#allocation44_spill] sm:$0xff] }
 0x316   : > { %v4497_v8 = vsel %vm8978_vm11, %v8324_v4, 0.0  ;;  %vm9053_vm5 = vcmp.lt.s32.totalorder %v4218_v54, 16  ;;  %v3987_v61 = vmul.u32 24, %v3986_v3  ;;  %v3966_v45 = vsub.s32 %v8885_v31, %v3965_v12 }
 0x317   : > { %v4596_v55 = vmul.f32 %v4496_v7, %v4496_v7  ;;  %v4175_v32 = vadd.s32 24, %v9024_v11  ;;  %v4542_v42 = vadd.f32 %v4541_v60, %v4496_v7  ;;  %v4641_v10 = vadd.f32 %v4640_v15, %v4595_v20 }
 0x318   : > { %v4498_v4 = vsel %vm8986_vm8, %v8353_v36, 0.0  ;;  %v4221_v51 = vsel %vm9045_vm15, %v9021_v22, %v8934_v56  ;;  %vm9072_vm7 = vcmp.lt.s32.totalorder %v4219_v18, 16  ;;  %v3977_v48 = vsub.s32 %v8888_v35, %v3976_v34  ;;  %v9802_v22 = vld [vmem:[#allocation40_spill] sm:$0xff] }
 0x319   : > { %v4597_v36 = vmul.f32 %v4497_v8, %v4497_v8  ;;  %v4220_v44 = vsel %vm9059_vm0, %v4173_v40, %v9004_v38  ;;  %v4543_v56 = vadd.f32 %v4542_v42, %v4497_v8  ;;  %v4642_v43 = vadd.f32 %v4641_v10, %v4596_v55 }
 0x31a   : > { %v4499_v57 = vsel %vm9012_vm1, %v8319_v58, 0.0  ;;  %v3988_v23 = vsub.s32 %v8827_v21, %v3987_v61  ;;  %vm4035_vm9 = vcmp.ne.s32.totalorder %v3966_v45, 0  ;;  %vm4082_vm11 = vcmp.lt.s32.totalorder %v3966_v45, 0 }
 0x31b   : > { %v4598_v9 = vmul.f32 %v4498_v4, %v4498_v4  ;;  %v4222_v35 = vsel %vm9080_vm10, %v4175_v32, %v9024_v11  ;;  %v4544_v54 = vadd.f32 %v4543_v56, %v4498_v4  ;;  %v4643_v0 = vadd.f32 %v4642_v43, %v4597_v36  ;;  %vm9098_vm1 = vmand %vm4082_vm11, %vm4035_vm9 }
 0x31c   : > { %v4500_v28 = vsel %vm9053_vm5, %v8332_v17, 0.0  ;;  %v4176_v41 = vadd.s32 24, %v3966_v45  ;;  %vm4036_vm8 = vcmp.ne.s32.totalorder %v3977_v48, 0  ;;  %vm4083_vm6 = vcmp.lt.s32.totalorder %v3977_v48, 0 }
 0x31d   : > { %v4599_v2 = vmul.f32 %v4499_v57, %v4499_v57  ;;  %vm4267_vm4 = vcmp.lt.s32.totalorder %v4220_v44, 16  ;;  %v4545_v21 = vadd.f32 %v4544_v54, %v4499_v57  ;;  %v4644_v52 = vadd.f32 %v4643_v0, %v4598_v9  ;;  %vm9105_vm2 = vmand %vm4083_vm6, %vm4036_vm8 }
 0x31e   : > { %v4501_v29 = vsel %vm9072_vm7, %v8389_v59, 0.0  ;;  %vm4037_vm14 = vcmp.ne.s32.totalorder %v3988_v23, 0  ;;  %vm4084_vm3 = vcmp.lt.s32.totalorder %v3988_v23, 0  ;;  %v4177_v19 = vadd.s32 24, %v3977_v48 }
 0x31f   : > { %v4600_v50 = vmul.f32 %v4500_v28, %v4500_v28  ;;  %vm4268_vm12 = vcmp.lt.s32.totalorder %v4221_v51, 16  ;;  %v4546_v38 = vadd.f32 %v4545_v21, %v4500_v28  ;;  %v4645_v26 = vadd.f32 %v4644_v52, %v4599_v2  ;;  %vm9112_vm15 = vmand %vm4084_vm3, %vm4037_vm14 }
 0x320   : > { %v4502_v37 = vsel %vm4267_vm4, %v8422_v16, 0.0  ;;  %v4178_v47 = vadd.s32 24, %v3988_v23  ;;  %v4223_v14 = vsel %vm9098_vm1, %v4176_v41, %v3966_v45  ;;  %v4601_v5 = vmul.f32 %v4501_v29, %v4501_v29 }
 0x321   : > { %vm4269_vm13 = vcmp.lt.s32.totalorder %v4222_v35, 16  ;;  %v4547_v13 = vadd.f32 %v4546_v38, %v4501_v29  ;;  %v4646_v1 = vadd.f32 %v4645_v26, %v4600_v50  ;;  %v4503_v11 = vsel %vm4268_vm12, %v9802_v22, 0.0 }
 0x322   : > { %v4224_v46 = vsel %vm9105_vm2, %v4177_v19, %v3977_v48  ;;  %v4602_v53 = vmul.f32 %v4502_v37, %v4502_v37  ;;  %vm4270_vm5 = vcmp.lt.s32.totalorder %v4223_v14, 16  ;;  %v4504_v62 = vsel %vm4269_vm13, %v9803_v63, 0.0 }
 0x323   : > { %v4548_v16 = vadd.f32 %v4547_v13, %v4502_v37  ;;  %v4647_v18 = vadd.f32 %v4646_v1, %v4601_v5  ;;  %v4225_v25 = vsel %vm9112_vm15, %v4178_v47, %v3988_v23  ;;  %v4603_v3 = vmul.f32 %v4503_v11, %v4503_v11 }
 0x324   : > { %vm4271_vm0 = vcmp.lt.s32.totalorder %v4224_v46, 16  ;;  %v4505_v49 = vsel %vm4270_vm5, %v9804_v33, 0.0  ;;  %v4604_v7 = vmul.f32 %v4504_v62, %v4504_v62  ;;  %vm4272_vm7 = vcmp.lt.s32.totalorder %v4225_v25, 16 }
 0x325   : > { %v4549_v12 = vadd.f32 %v4548_v16, %v4503_v11  ;;  %v4648_v24 = vadd.f32 %v4647_v18, %v4602_v53  ;;  %v4506_v40 = vsel %vm4271_vm0, %v9805_v39, 0.0  ;;  %v4605_v60 = vmul.f32 %v4505_v49, %v4505_v49 }
 0x326   : > { %v4507_v30 = vsel %vm4272_vm7, %v9806_v6, 0.0  ;;  %v4606_v45 = vmul.f32 %v4506_v40, %v4506_v40 }
 0x327   : > { %v4550_v34 = vadd.f32 %v4549_v12, %v4504_v62  ;;  %v4649_v20 = vadd.f32 %v4648_v24, %v4603_v3  ;;  %v4607_v32 = vmul.f32 %v4507_v30, %v4507_v30 }
 0x329   : > { %v4551_v15 = vadd.f32 %v4550_v34, %v4505_v49  ;;  %v4650_v8 = vadd.f32 %v4649_v20, %v4604_v7 }
 0x32b   : > { %v4552_v61 = vadd.f32 %v4551_v15, %v4506_v40  ;;  %v4651_v55 = vadd.f32 %v4650_v8, %v4605_v60 }
 0x32d   : > { %v4553_v42 = vadd.f32 %v4552_v61, %v4507_v30  ;;  %v4652_v10 = vadd.f32 %v4651_v55, %v4606_v45 }
 0x32f   : > { %v4554_v4 = vrot.slane %v4553_v42, 4  ;;  %v4653_v51 = vadd.f32 %v4652_v10, %v4607_v32 }
 0x331   : > { %v4555_v27 = vadd.f32 %v4554_v4, %v4553_v42  ;;  %v4654_v31 = vrot.slane %v4653_v51, 4 }
 0x333   : > { %v4556_v48 = vrot.slane %v4555_v27, 2  ;;  %v4655_v36 = vadd.f32 %v4654_v31, %v4653_v51 }
 0x335   : > { %v4557_v44 = vadd.f32 %v4556_v48, %v4555_v27  ;;  %v4656_v56 = vrot.slane %v4655_v36, 2 }
 0x337   : > { %v4558_v43 = vrot.slane %v4557_v44, 1  ;;  %v4657_v57 = vadd.f32 %v4656_v56, %v4655_v36 }
 0x339   : > { %v4559_v23 = vadd.f32 %v4558_v43, %v4557_v44  ;;  %v4658_v9 = vrot.slane %v4657_v57, 1 }
 0x33b   : > { %4560 = vst [vmem:[%s181_s4] sm:$0x1] %v4559_v23  ;;  %v4659_v35 = vadd.f32 %v4658_v9, %v4657_v57 }
 0x33d   : > { %4660 = vst [vmem:[%s181_s4 + $0x1] sm:$0x1] %v4659_v35 }
 0x33e PF: > { %s14_s12 = sadd.s32 1, %s5746_s12  }
 0x33f   : > { %p11_p4 = scmp.ge.s32.totalorder %s14_s12, 4  }
 0x341   :  { %13 = sbr.rel (!%p11_p4) target bundleno = 1 (0x1), region = 70 }

</bundles_post_ra>
